<compile_context>
chip_gen: v6e
topology: v6e:2x2x1
jax: 0.10.0
libtpu: 0.0.40
codegen_flags: <defaults>
</compile_context>

<pallas_src>
import math

import jax
import jax.numpy as jnp
from jax.experimental import pallas as pl
from jax.experimental.pallas import tpu as pltpu

# ---------------------------------------------------------------------------
# Model hyper-parameters (small, consistent with the DETR forward structure)
# ---------------------------------------------------------------------------
NUM_CLASSES = 2      # class_embed replaced with out_features=num_classes
NUM_QUERIES = 20
HIDDEN = 32          # transformer d_model (DETR uses 256)
NUM_HEADS = 4
FFN_DIM = 64
NUM_ENC_LAYERS = 2
NUM_DEC_LAYERS = 2
BACKBONE_DIM = 64    # synthetic backbone output channels (ResNet-50 uses 2048)
PATCH = 32           # synthetic backbone stride (DETR feature stride is 32)
HEAD_PAD = 128       # lane-dense padded width of the fused head output slab


# ---------------------------------------------------------------------------
# Sinusoidal positional encoding (plain-JAX glue, computed once per forward)
# ---------------------------------------------------------------------------
def position_embedding_sine(hp, wp, hidden, temperature=10000.0):
    """DETR PositionEmbeddingSine (normalize=True, scale=2*pi, no padding)."""
    num_pos_feats = hidden // 2
    scale = 2.0 * math.pi
    eps = 1e-6
    y_embed = jnp.broadcast_to(
        jnp.arange(1, hp + 1, dtype=jnp.float32)[:, None], (hp, wp))
    x_embed = jnp.broadcast_to(
        jnp.arange(1, wp + 1, dtype=jnp.float32)[None, :], (hp, wp))
    y_embed = y_embed / (hp + eps) * scale
    x_embed = x_embed / (wp + eps) * scale
    dim_t = jnp.arange(num_pos_feats, dtype=jnp.float32)
    dim_t = temperature ** (2.0 * jnp.floor(dim_t / 2.0) / num_pos_feats)
    pos_x = x_embed[..., None] / dim_t
    pos_y = y_embed[..., None] / dim_t
    pos_x = jnp.stack([jnp.sin(pos_x[..., 0::2]),
                       jnp.cos(pos_x[..., 1::2])], axis=-1).reshape(hp, wp, -1)
    pos_y = jnp.stack([jnp.sin(pos_y[..., 0::2]),
                       jnp.cos(pos_y[..., 1::2])], axis=-1).reshape(hp, wp, -1)
    pos = jnp.concatenate([pos_y, pos_x], axis=-1)    # (hp, wp, hidden)
    return pos.reshape(hp * wp, hidden)


# ---------------------------------------------------------------------------
# Full forward pass: one fused Pallas kernel over the batch grid
# ---------------------------------------------------------------------------
def detr_forward(params, images):
    B, C, H, W = images.shape
    Hp, Wp = H // PATCH, W // PATCH
    S = Hp * Wp
    CP = C * PATCH * PATCH
    E = HIDDEN
    Q = NUM_QUERIES

    # im2col patchify (layout glue) + bf16 cast (halves HBM read of patches).
    patches = (images.reshape(B, C, Hp, PATCH, Wp, PATCH)
                     .transpose(0, 2, 4, 1, 3, 5)
                     .reshape(B, S, CP)
                     .astype(jnp.bfloat16))
    pos = position_embedding_sine(Hp, Wp, E).reshape(1, S, E)

    leaves, treedef = jax.tree_util.tree_flatten(params)
    n_leaves = len(leaves)

    def kernel(*refs):
        patch_ref, pos_ref = refs[0], refs[1]
        p = jax.tree_util.tree_unflatten(treedef, refs[2:2 + n_leaves])
        out_ref = refs[2 + n_leaves]

        # ----- in-kernel helpers (all activations stay in VMEM/vregs) -----
        def mm(x, w):
            # bf16 MXU operands, f32 accumulation.
            return jnp.dot(x.astype(jnp.bfloat16), w.astype(jnp.bfloat16),
                           preferred_element_type=jnp.float32)

        def lin(x, m):
            return mm(x, m["w"][...]) + m["b"][...]

        def layer_norm(x, g_ref, b_ref, eps=1e-5):
            mu = jnp.mean(x, axis=-1, keepdims=True)
            var = jnp.mean(jnp.square(x - mu), axis=-1, keepdims=True)
            return (x - mu) * jax.lax.rsqrt(var + eps) * g_ref[...] + b_ref[...]

        def sdpa(q, k, v):
            dh = E // NUM_HEADS
            scale = 1.0 / math.sqrt(dh)
            outs = []
            for h in range(NUM_HEADS):          # unrolled, all inside one launch
                sl = slice(h * dh, (h + 1) * dh)
                qh = q[:, sl].astype(jnp.bfloat16)
                kh = k[:, sl].astype(jnp.bfloat16)
                vh = v[:, sl].astype(jnp.bfloat16)
                # q @ k^T without materializing the transpose.
                s = jax.lax.dot_general(
                    qh, kh, (((1,), (1,)), ((), ())),
                    preferred_element_type=jnp.float32) * scale
                s = s - jnp.max(s, axis=-1, keepdims=True)
                e = jnp.exp(s)
                pr = e * pl.reciprocal(jnp.sum(e, axis=-1, keepdims=True),
                                       approx=True)
                outs.append(jnp.dot(pr.astype(jnp.bfloat16), vh,
                                    preferred_element_type=jnp.float32))
            return jnp.concatenate(outs, axis=-1)

        def attention(q_in, k_in, v_in, ap):
            wqkv = ap["wqkv"][...]              # (E, 3E) fused QKV weight
            bqkv = ap["bqkv"][...]              # (1, 3E)
            if q_in is k_in:                    # self-attn: fused 2E-lane Q|K
                qk = mm(q_in, wqkv[:, :2 * E]) + bqkv[:, :2 * E]
                q, k = qk[:, :E], qk[:, E:]
            else:                               # cross-attn: distinct sources
                q = mm(q_in, wqkv[:, :E]) + bqkv[:, :E]
                k = mm(k_in, wqkv[:, E:2 * E]) + bqkv[:, E:2 * E]
            v = mm(v_in, wqkv[:, 2 * E:]) + bqkv[:, 2 * E:]
            o = sdpa(q, k, v)
            return mm(o, ap["wo"][...]) + ap["bo"][...]

        # ----- forward for one batch element -----
        x = patch_ref[0]                        # (S, CP) bf16
        posv = pos_ref[0]                       # (S, E)  f32
        qpos = p["query_embed"][...]            # (Q, E)  f32

        # Backbone patchify conv (matmul + ReLU) + 1x1 input projection.
        feat = jnp.maximum(lin(x, p["backbone"]), 0.0)
        src = lin(feat, p["input_proj"])        # (S, E)

        # Transformer encoder (post-norm, eval mode => dropout = identity).
        for lp in p["encoder"]:
            qk_in = src + posv
            a = attention(qk_in, qk_in, src, lp["attn"])
            src = layer_norm(src + a, lp["ln1_g"], lp["ln1_b"])
            ffh = jnp.maximum(lin(src, lp["ffn1"]), 0.0)
            src = layer_norm(src + lin(ffh, lp["ffn2"]),
                             lp["ln2_g"], lp["ln2_b"])
        memory = src
        mem_pos = memory + posv

        # Transformer decoder (tgt starts at zeros, learned query embeddings).
        tgt = jnp.zeros((Q, E), jnp.float32)
        for lp in p["decoder"]:
            q_in = tgt + qpos
            a = attention(q_in, q_in, tgt, lp["self_attn"])
            tgt = layer_norm(tgt + a, lp["ln1_g"], lp["ln1_b"])
            a = attention(tgt + qpos, mem_pos, memory, lp["cross_attn"])
            tgt = layer_norm(tgt + a, lp["ln2_g"], lp["ln2_b"])
            ffh = jnp.maximum(lin(tgt, lp["ffn1"]), 0.0)
            tgt = layer_norm(tgt + lin(ffh, lp["ffn2"]),
                             lp["ln3_g"], lp["ln3_b"])

        hs = layer_norm(tgt, p["decoder_norm"]["g"], p["decoder_norm"]["b"])

        # Prediction heads packed into one lane-dense (Q, 128) output slab.
        logits = lin(hs, p["class_embed"])                       # (Q, 2)
        bb = jnp.maximum(lin(hs, p["bbox_embed"][0]), 0.0)
        bb = jnp.maximum(lin(bb, p["bbox_embed"][1]), 0.0)
        boxes = jax.nn.sigmoid(lin(bb, p["bbox_embed"][2]))      # (Q, 4)
        pad = jnp.zeros((Q, HEAD_PAD - NUM_CLASSES - 4), jnp.float32)
        out_ref[0] = jnp.concatenate([logits, boxes, pad], axis=-1)

    in_specs = [
        pl.BlockSpec((1, S, CP), lambda b: (b, 0, 0)),   # patches: per-batch
        pl.BlockSpec((1, S, E), lambda b: (0, 0, 0)),    # pos: shared
    ]
    in_specs += [pl.BlockSpec(leaf.shape, lambda b, n=leaf.ndim: (0,) * n)
                 for leaf in leaves]                     # weights: shared

    out = pl.pallas_call(
        kernel,
        out_shape=jax.ShapeDtypeStruct((B, Q, HEAD_PAD), jnp.float32),
        grid=(B,),
        in_specs=in_specs,
        out_specs=pl.BlockSpec((1, Q, HEAD_PAD), lambda b: (b, 0, 0)),
        compiler_params=pltpu.CompilerParams(
            dimension_semantics=("parallel",)),
    )(patches, pos, *leaves)

    return {"pred_logits": out[:, :, :NUM_CLASSES],
            "pred_boxes": out[:, :, NUM_CLASSES:NUM_CLASSES + 4]}


# ---------------------------------------------------------------------------
# Deterministic synthetic parameter init (bf16 matmul weights, f32 the rest)
# ---------------------------------------------------------------------------
def init_params(key):
    keys = iter(jax.random.split(key, 256))

    def uniform(shape, bound):
        return jax.random.uniform(next(keys), shape, jnp.float32, -bound, bound)

    def lin_init(fan_in, fan_out):
        bound = 1.0 / math.sqrt(fan_in)
        return {"w": uniform((fan_in, fan_out), bound).astype(jnp.bfloat16),
                "b": uniform((1, fan_out), bound)}

    def attn_init(dim):
        bound = 1.0 / math.sqrt(dim)
        return {"wqkv": uniform((dim, 3 * dim), bound).astype(jnp.bfloat16),
                "bqkv": uniform((1, 3 * dim), bound),
                "wo": uniform((dim, dim), bound).astype(jnp.bfloat16),
                "bo": uniform((1, dim), bound)}

    def ln_init(dim):
        return jnp.ones((1, dim), jnp.float32), jnp.zeros((1, dim), jnp.float32)

    def enc_layer_init():
        g1, b1 = ln_init(HIDDEN)
        g2, b2 = ln_init(HIDDEN)
        return {"attn": attn_init(HIDDEN),
                "ffn1": lin_init(HIDDEN, FFN_DIM),
                "ffn2": lin_init(FFN_DIM, HIDDEN),
                "ln1_g": g1, "ln1_b": b1, "ln2_g": g2, "ln2_b": b2}

    def dec_layer_init():
        g1, b1 = ln_init(HIDDEN)
        g2, b2 = ln_init(HIDDEN)
        g3, b3 = ln_init(HIDDEN)
        return {"self_attn": attn_init(HIDDEN),
                "cross_attn": attn_init(HIDDEN),
                "ffn1": lin_init(HIDDEN, FFN_DIM),
                "ffn2": lin_init(FFN_DIM, HIDDEN),
                "ln1_g": g1, "ln1_b": b1, "ln2_g": g2, "ln2_b": b2,
                "ln3_g": g3, "ln3_b": b3}

    gdn, bdn = ln_init(HIDDEN)
    params = {
        "backbone": lin_init(3 * PATCH * PATCH, BACKBONE_DIM),
        "input_proj": lin_init(BACKBONE_DIM, HIDDEN),
        "query_embed": jax.random.normal(next(keys),
                                         (NUM_QUERIES, HIDDEN), jnp.float32),
        "encoder": [enc_layer_init() for _ in range(NUM_ENC_LAYERS)],
        "decoder": [dec_layer_init() for _ in range(NUM_DEC_LAYERS)],
        "decoder_norm": {"g": gdn, "b": bdn},
        "class_embed": lin_init(HIDDEN, NUM_CLASSES),
        "bbox_embed": [lin_init(HIDDEN, HIDDEN),
                       lin_init(HIDDEN, HIDDEN),
                       lin_init(HIDDEN, 4)],
    }
    return params


# ---------------------------------------------------------------------------
# Main
# ---------------------------------------------------------------------------
if __name__ == "__main__":
    key = jax.random.PRNGKey(0)
    k_img, k_par = jax.random.split(key)

    # NCHW images, as in the PyTorch module.
    images = jax.random.normal(k_img, (2, 3, 128, 128), jnp.float32)
    params = init_params(k_par)

    fwd = jax.jit(detr_forward)
    out = fwd(params, images)
    jax.block_until_ready(out)

    assert out["pred_logits"].shape == (2, NUM_QUERIES, NUM_CLASSES)
    assert out["pred_boxes"].shape == (2, NUM_QUERIES, 4)
    assert bool(jnp.all(jnp.isfinite(out["pred_logits"])))
    assert bool(jnp.all((out["pred_boxes"] >= 0) & (out["pred_boxes"] <= 1)))

    print("KERNEL_OK")
</pallas_src>

<mosaic_0001>
module attributes {stable_mosaic.version = 11 : i64} {
  func.func @kernel(%arg0: i32, %arg1: memref<1x16x3072xbf16, #tpu.memory_space<vmem>>, %arg2: memref<1x16x32xf32, #tpu.memory_space<vmem>>, %arg3: memref<1x64xf32, #tpu.memory_space<vmem>>, %arg4: memref<3072x64xbf16, #tpu.memory_space<vmem>>, %arg5: memref<1x32xf32, #tpu.memory_space<vmem>>, %arg6: memref<32x32xbf16, #tpu.memory_space<vmem>>, %arg7: memref<1x32xf32, #tpu.memory_space<vmem>>, %arg8: memref<32x32xbf16, #tpu.memory_space<vmem>>, %arg9: memref<1x4xf32, #tpu.memory_space<vmem>>, %arg10: memref<32x4xbf16, #tpu.memory_space<vmem>>, %arg11: memref<1x2xf32, #tpu.memory_space<vmem>>, %arg12: memref<32x2xbf16, #tpu.memory_space<vmem>>, %arg13: memref<1x32xf32, #tpu.memory_space<vmem>>, %arg14: memref<1x96xf32, #tpu.memory_space<vmem>>, %arg15: memref<32x32xbf16, #tpu.memory_space<vmem>>, %arg16: memref<32x96xbf16, #tpu.memory_space<vmem>>, %arg17: memref<1x64xf32, #tpu.memory_space<vmem>>, %arg18: memref<32x64xbf16, #tpu.memory_space<vmem>>, %arg19: memref<1x32xf32, #tpu.memory_space<vmem>>, %arg20: memref<64x32xbf16, #tpu.memory_space<vmem>>, %arg21: memref<1x32xf32, #tpu.memory_space<vmem>>, %arg22: memref<1x32xf32, #tpu.memory_space<vmem>>, %arg23: memref<1x32xf32, #tpu.memory_space<vmem>>, %arg24: memref<1x32xf32, #tpu.memory_space<vmem>>, %arg25: memref<1x32xf32, #tpu.memory_space<vmem>>, %arg26: memref<1x32xf32, #tpu.memory_space<vmem>>, %arg27: memref<1x32xf32, #tpu.memory_space<vmem>>, %arg28: memref<1x96xf32, #tpu.memory_space<vmem>>, %arg29: memref<32x32xbf16, #tpu.memory_space<vmem>>, %arg30: memref<32x96xbf16, #tpu.memory_space<vmem>>, %arg31: memref<1x32xf32, #tpu.memory_space<vmem>>, %arg32: memref<1x96xf32, #tpu.memory_space<vmem>>, %arg33: memref<32x32xbf16, #tpu.memory_space<vmem>>, %arg34: memref<32x96xbf16, #tpu.memory_space<vmem>>, %arg35: memref<1x64xf32, #tpu.memory_space<vmem>>, %arg36: memref<32x64xbf16, #tpu.memory_space<vmem>>, %arg37: memref<1x32xf32, #tpu.memory_space<vmem>>, %arg38: memref<64x32xbf16, #tpu.memory_space<vmem>>, %arg39: memref<1x32xf32, #tpu.memory_space<vmem>>, %arg40: memref<1x32xf32, #tpu.memory_space<vmem>>, %arg41: memref<1x32xf32, #tpu.memory_space<vmem>>, %arg42: memref<1x32xf32, #tpu.memory_space<vmem>>, %arg43: memref<1x32xf32, #tpu.memory_space<vmem>>, %arg44: memref<1x32xf32, #tpu.memory_space<vmem>>, %arg45: memref<1x32xf32, #tpu.memory_space<vmem>>, %arg46: memref<1x96xf32, #tpu.memory_space<vmem>>, %arg47: memref<32x32xbf16, #tpu.memory_space<vmem>>, %arg48: memref<32x96xbf16, #tpu.memory_space<vmem>>, %arg49: memref<1x32xf32, #tpu.memory_space<vmem>>, %arg50: memref<1x32xf32, #tpu.memory_space<vmem>>, %arg51: memref<1x32xf32, #tpu.memory_space<vmem>>, %arg52: memref<1x96xf32, #tpu.memory_space<vmem>>, %arg53: memref<32x32xbf16, #tpu.memory_space<vmem>>, %arg54: memref<32x96xbf16, #tpu.memory_space<vmem>>, %arg55: memref<1x64xf32, #tpu.memory_space<vmem>>, %arg56: memref<32x64xbf16, #tpu.memory_space<vmem>>, %arg57: memref<1x32xf32, #tpu.memory_space<vmem>>, %arg58: memref<64x32xbf16, #tpu.memory_space<vmem>>, %arg59: memref<1x32xf32, #tpu.memory_space<vmem>>, %arg60: memref<1x32xf32, #tpu.memory_space<vmem>>, %arg61: memref<1x32xf32, #tpu.memory_space<vmem>>, %arg62: memref<1x32xf32, #tpu.memory_space<vmem>>, %arg63: memref<1x32xf32, #tpu.memory_space<vmem>>, %arg64: memref<1x96xf32, #tpu.memory_space<vmem>>, %arg65: memref<32x32xbf16, #tpu.memory_space<vmem>>, %arg66: memref<32x96xbf16, #tpu.memory_space<vmem>>, %arg67: memref<1x64xf32, #tpu.memory_space<vmem>>, %arg68: memref<32x64xbf16, #tpu.memory_space<vmem>>, %arg69: memref<1x32xf32, #tpu.memory_space<vmem>>, %arg70: memref<64x32xbf16, #tpu.memory_space<vmem>>, %arg71: memref<1x32xf32, #tpu.memory_space<vmem>>, %arg72: memref<1x32xf32, #tpu.memory_space<vmem>>, %arg73: memref<1x32xf32, #tpu.memory_space<vmem>>, %arg74: memref<1x32xf32, #tpu.memory_space<vmem>>, %arg75: memref<1x32xf32, #tpu.memory_space<vmem>>, %arg76: memref<64x32xbf16, #tpu.memory_space<vmem>>, %arg77: memref<20x32xf32, #tpu.memory_space<vmem>>, %arg78: memref<1x20x128xf32, #tpu.memory_space<vmem>>) attributes {dimension_semantics = [#tpu.dimension_semantics<parallel>], iteration_bounds = array<i64: 2>, scalar_prefetch = 0 : i64, scratch_operands = 0 : i64, tpu.core_type = #tpu.core_type<tc>, window_params = [{transform_indices = @transform_0, window_bounds = array<i64: 1, 16, 3072>}, {pipeline_mode = #tpu.pipeline_mode<synchronous>, transform_indices = @transform_1, window_bounds = array<i64: 1, 16, 32>}, {pipeline_mode = #tpu.pipeline_mode<synchronous>, transform_indices = @transform_2, window_bounds = array<i64: 1, 64>}, {pipeline_mode = #tpu.pipeline_mode<synchronous>, transform_indices = @transform_3, window_bounds = array<i64: 3072, 64>}, {pipeline_mode = #tpu.pipeline_mode<synchronous>, transform_indices = @transform_4, window_bounds = array<i64: 1, 32>}, {pipeline_mode = #tpu.pipeline_mode<synchronous>, transform_indices = @transform_5, window_bounds = array<i64: 32, 32>}, {pipeline_mode = #tpu.pipeline_mode<synchronous>, transform_indices = @transform_6, window_bounds = array<i64: 1, 32>}, {pipeline_mode = #tpu.pipeline_mode<synchronous>, transform_indices = @transform_7, window_bounds = array<i64: 32, 32>}, {pipeline_mode = #tpu.pipeline_mode<synchronous>, transform_indices = @transform_8, window_bounds = array<i64: 1, 4>}, {pipeline_mode = #tpu.pipeline_mode<synchronous>, transform_indices = @transform_9, window_bounds = array<i64: 32, 4>}, {pipeline_mode = #tpu.pipeline_mode<synchronous>, transform_indices = @transform_10, window_bounds = array<i64: 1, 2>}, {pipeline_mode = #tpu.pipeline_mode<synchronous>, transform_indices = @transform_11, window_bounds = array<i64: 32, 2>}, {pipeline_mode = #tpu.pipeline_mode<synchronous>, transform_indices = @transform_12, window_bounds = array<i64: 1, 32>}, {pipeline_mode = #tpu.pipeline_mode<synchronous>, transform_indices = @transform_13, window_bounds = array<i64: 1, 96>}, {pipeline_mode = #tpu.pipeline_mode<synchronous>, transform_indices = @transform_14, window_bounds = array<i64: 32, 32>}, {pipeline_mode = #tpu.pipeline_mode<synchronous>, transform_indices = @transform_15, window_bounds = array<i64: 32, 96>}, {pipeline_mode = #tpu.pipeline_mode<synchronous>, transform_indices = @transform_16, window_bounds = array<i64: 1, 64>}, {pipeline_mode = #tpu.pipeline_mode<synchronous>, transform_indices = @transform_17, window_bounds = array<i64: 32, 64>}, {pipeline_mode = #tpu.pipeline_mode<synchronous>, transform_indices = @transform_18, window_bounds = array<i64: 1, 32>}, {pipeline_mode = #tpu.pipeline_mode<synchronous>, transform_indices = @transform_19, window_bounds = array<i64: 64, 32>}, {pipeline_mode = #tpu.pipeline_mode<synchronous>, transform_indices = @transform_20, window_bounds = array<i64: 1, 32>}, {pipeline_mode = #tpu.pipeline_mode<synchronous>, transform_indices = @transform_21, window_bounds = array<i64: 1, 32>}, {pipeline_mode = #tpu.pipeline_mode<synchronous>, transform_indices = @transform_22, window_bounds = array<i64: 1, 32>}, {pipeline_mode = #tpu.pipeline_mode<synchronous>, transform_indices = @transform_23, window_bounds = array<i64: 1, 32>}, {pipeline_mode = #tpu.pipeline_mode<synchronous>, transform_indices = @transform_24, window_bounds = array<i64: 1, 32>}, {pipeline_mode = #tpu.pipeline_mode<synchronous>, transform_indices = @transform_25, window_bounds = array<i64: 1, 32>}, {pipeline_mode = #tpu.pipeline_mode<synchronous>, transform_indices = @transform_26, window_bounds = array<i64: 1, 32>}, {pipeline_mode = #tpu.pipeline_mode<synchronous>, transform_indices = @transform_27, window_bounds = array<i64: 1, 96>}, {pipeline_mode = #tpu.pipeline_mode<synchronous>, transform_indices = @transform_28, window_bounds = array<i64: 32, 32>}, {pipeline_mode = #tpu.pipeline_mode<synchronous>, transform_indices = @transform_29, window_bounds = array<i64: 32, 96>}, {pipeline_mode = #tpu.pipeline_mode<synchronous>, transform_indices = @transform_30, window_bounds = array<i64: 1, 32>}, {pipeline_mode = #tpu.pipeline_mode<synchronous>, transform_indices = @transform_31, window_bounds = array<i64: 1, 96>}, {pipeline_mode = #tpu.pipeline_mode<synchronous>, transform_indices = @transform_32, window_bounds = array<i64: 32, 32>}, {pipeline_mode = #tpu.pipeline_mode<synchronous>, transform_indices = @transform_33, window_bounds = array<i64: 32, 96>}, {pipeline_mode = #tpu.pipeline_mode<synchronous>, transform_indices = @transform_34, window_bounds = array<i64: 1, 64>}, {pipeline_mode = #tpu.pipeline_mode<synchronous>, transform_indices = @transform_35, window_bounds = array<i64: 32, 64>}, {pipeline_mode = #tpu.pipeline_mode<synchronous>, transform_indices = @transform_36, window_bounds = array<i64: 1, 32>}, {pipeline_mode = #tpu.pipeline_mode<synchronous>, transform_indices = @transform_37, window_bounds = array<i64: 64, 32>}, {pipeline_mode = #tpu.pipeline_mode<synchronous>, transform_indices = @transform_38, window_bounds = array<i64: 1, 32>}, {pipeline_mode = #tpu.pipeline_mode<synchronous>, transform_indices = @transform_39, window_bounds = array<i64: 1, 32>}, {pipeline_mode = #tpu.pipeline_mode<synchronous>, transform_indices = @transform_40, window_bounds = array<i64: 1, 32>}, {pipeline_mode = #tpu.pipeline_mode<synchronous>, transform_indices = @transform_41, window_bounds = array<i64: 1, 32>}, {pipeline_mode = #tpu.pipeline_mode<synchronous>, transform_indices = @transform_42, window_bounds = array<i64: 1, 32>}, {pipeline_mode = #tpu.pipeline_mode<synchronous>, transform_indices = @transform_43, window_bounds = array<i64: 1, 32>}, {pipeline_mode = #tpu.pipeline_mode<synchronous>, transform_indices = @transform_44, window_bounds = array<i64: 1, 32>}, {pipeline_mode = #tpu.pipeline_mode<synchronous>, transform_indices = @transform_45, window_bounds = array<i64: 1, 96>}, {pipeline_mode = #tpu.pipeline_mode<synchronous>, transform_indices = @transform_46, window_bounds = array<i64: 32, 32>}, {pipeline_mode = #tpu.pipeline_mode<synchronous>, transform_indices = @transform_47, window_bounds = array<i64: 32, 96>}, {pipeline_mode = #tpu.pipeline_mode<synchronous>, transform_indices = @transform_48, window_bounds = array<i64: 1, 32>}, {pipeline_mode = #tpu.pipeline_mode<synchronous>, transform_indices = @transform_49, window_bounds = array<i64: 1, 32>}, {pipeline_mode = #tpu.pipeline_mode<synchronous>, transform_indices = @transform_50, window_bounds = array<i64: 1, 32>}, {pipeline_mode = #tpu.pipeline_mode<synchronous>, transform_indices = @transform_51, window_bounds = array<i64: 1, 96>}, {pipeline_mode = #tpu.pipeline_mode<synchronous>, transform_indices = @transform_52, window_bounds = array<i64: 32, 32>}, {pipeline_mode = #tpu.pipeline_mode<synchronous>, transform_indices = @transform_53, window_bounds = array<i64: 32, 96>}, {pipeline_mode = #tpu.pipeline_mode<synchronous>, transform_indices = @transform_54, window_bounds = array<i64: 1, 64>}, {pipeline_mode = #tpu.pipeline_mode<synchronous>, transform_indices = @transform_55, window_bounds = array<i64: 32, 64>}, {pipeline_mode = #tpu.pipeline_mode<synchronous>, transform_indices = @transform_56, window_bounds = array<i64: 1, 32>}, {pipeline_mode = #tpu.pipeline_mode<synchronous>, transform_indices = @transform_57, window_bounds = array<i64: 64, 32>}, {pipeline_mode = #tpu.pipeline_mode<synchronous>, transform_indices = @transform_58, window_bounds = array<i64: 1, 32>}, {pipeline_mode = #tpu.pipeline_mode<synchronous>, transform_indices = @transform_59, window_bounds = array<i64: 1, 32>}, {pipeline_mode = #tpu.pipeline_mode<synchronous>, transform_indices = @transform_60, window_bounds = array<i64: 1, 32>}, {pipeline_mode = #tpu.pipeline_mode<synchronous>, transform_indices = @transform_61, window_bounds = array<i64: 1, 32>}, {pipeline_mode = #tpu.pipeline_mode<synchronous>, transform_indices = @transform_62, window_bounds = array<i64: 1, 32>}, {pipeline_mode = #tpu.pipeline_mode<synchronous>, transform_indices = @transform_63, window_bounds = array<i64: 1, 96>}, {pipeline_mode = #tpu.pipeline_mode<synchronous>, transform_indices = @transform_64, window_bounds = array<i64: 32, 32>}, {pipeline_mode = #tpu.pipeline_mode<synchronous>, transform_indices = @transform_65, window_bounds = array<i64: 32, 96>}, {pipeline_mode = #tpu.pipeline_mode<synchronous>, transform_indices = @transform_66, window_bounds = array<i64: 1, 64>}, {pipeline_mode = #tpu.pipeline_mode<synchronous>, transform_indices = @transform_67, window_bounds = array<i64: 32, 64>}, {pipeline_mode = #tpu.pipeline_mode<synchronous>, transform_indices = @transform_68, window_bounds = array<i64: 1, 32>}, {pipeline_mode = #tpu.pipeline_mode<synchronous>, transform_indices = @transform_69, window_bounds = array<i64: 64, 32>}, {pipeline_mode = #tpu.pipeline_mode<synchronous>, transform_indices = @transform_70, window_bounds = array<i64: 1, 32>}, {pipeline_mode = #tpu.pipeline_mode<synchronous>, transform_indices = @transform_71, window_bounds = array<i64: 1, 32>}, {pipeline_mode = #tpu.pipeline_mode<synchronous>, transform_indices = @transform_72, window_bounds = array<i64: 1, 32>}, {pipeline_mode = #tpu.pipeline_mode<synchronous>, transform_indices = @transform_73, window_bounds = array<i64: 1, 32>}, {pipeline_mode = #tpu.pipeline_mode<synchronous>, transform_indices = @transform_74, window_bounds = array<i64: 1, 32>}, {pipeline_mode = #tpu.pipeline_mode<synchronous>, transform_indices = @transform_75, window_bounds = array<i64: 64, 32>}, {pipeline_mode = #tpu.pipeline_mode<synchronous>, transform_indices = @transform_76, window_bounds = array<i64: 20, 32>}, {transform_indices = @transform_77, window_bounds = array<i64: 1, 20, 128>}]} {
    %c0 = arith.constant 0 : index
    %c0_0 = arith.constant 0 : index
    %c0_1 = arith.constant 0 : index
    %0 = vector.load %arg1[%c0, %c0_0, %c0_1] : memref<1x16x3072xbf16, #tpu.memory_space<vmem>>, vector<1x16x3072xbf16>
    %1 = vector.shape_cast %0 : vector<1x16x3072xbf16> to vector<16x3072xbf16>
    %c0_2 = arith.constant 0 : index
    %c0_3 = arith.constant 0 : index
    %c0_4 = arith.constant 0 : index
    %2 = vector.load %arg2[%c0_2, %c0_3, %c0_4] : memref<1x16x32xf32, #tpu.memory_space<vmem>>, vector<1x16x32xf32>
    %3 = vector.shape_cast %2 : vector<1x16x32xf32> to vector<16x32xf32>
    %c0_5 = arith.constant 0 : index
    %c0_6 = arith.constant 0 : index
    %4 = vector.load %arg77[%c0_5, %c0_6] : memref<20x32xf32, #tpu.memory_space<vmem>>, vector<20x32xf32>
    %c0_7 = arith.constant 0 : index
    %c0_8 = arith.constant 0 : index
    %5 = vector.load %arg4[%c0_7, %c0_8] : memref<3072x64xbf16, #tpu.memory_space<vmem>>, vector<3072x64xbf16>
    %cst = arith.constant dense<0.000000e+00> : vector<16x64xf32>
    %6 = tpu.matmul %1, %5, %cst {dimension_numbers = #tpu.dot_dimension_numbers<[1], [0], [0], [1], [0, 0, 1, 1], [], []>} : vector<16x3072xbf16>, vector<3072x64xbf16>, vector<16x64xf32> -> vector<16x64xf32>
    %c0_9 = arith.constant 0 : index
    %c0_10 = arith.constant 0 : index
    %7 = vector.load %arg3[%c0_9, %c0_10] : memref<1x64xf32, #tpu.memory_space<vmem>>, vector<1x64xf32>
    %8 = vector.broadcast %7 : vector<1x64xf32> to vector<16x64xf32>
    %9 = arith.addf %6, %8 : vector<16x64xf32>
    %cst_11 = arith.constant 0.000000e+00 : f32
    %10 = vector.broadcast %cst_11 : f32 to vector<16x64xf32>
    %11 = arith.maximumf %9, %10 : vector<16x64xf32>
    %c0_12 = arith.constant 0 : index
    %c0_13 = arith.constant 0 : index
    %12 = vector.load %arg76[%c0_12, %c0_13] : memref<64x32xbf16, #tpu.memory_space<vmem>>, vector<64x32xbf16>
    %13 = arith.truncf %11 : vector<16x64xf32> to vector<16x64xbf16>
    %cst_14 = arith.constant dense<0.000000e+00> : vector<16x32xf32>
    %14 = tpu.matmul %13, %12, %cst_14 {dimension_numbers = #tpu.dot_dimension_numbers<[1], [0], [0], [1], [0, 0, 1, 1], [], []>} : vector<16x64xbf16>, vector<64x32xbf16>, vector<16x32xf32> -> vector<16x32xf32>
    %c0_15 = arith.constant 0 : index
    %c0_16 = arith.constant 0 : index
    %15 = vector.load %arg75[%c0_15, %c0_16] : memref<1x32xf32, #tpu.memory_space<vmem>>, vector<1x32xf32>
    %16 = vector.broadcast %15 : vector<1x32xf32> to vector<16x32xf32>
    %17 = arith.addf %14, %16 : vector<16x32xf32>
    %18 = arith.addf %17, %3 : vector<16x32xf32>
    %c0_17 = arith.constant 0 : index
    %c0_18 = arith.constant 0 : index
    %19 = vector.load %arg54[%c0_17, %c0_18] : memref<32x96xbf16, #tpu.memory_space<vmem>>, vector<32x96xbf16>
    %c0_19 = arith.constant 0 : index
    %c0_20 = arith.constant 0 : index
    %20 = vector.load %arg52[%c0_19, %c0_20] : memref<1x96xf32, #tpu.memory_space<vmem>>, vector<1x96xf32>
    %21 = vector.extract_strided_slice %19 {offsets = [0, 0], sizes = [32, 64], strides = [1, 1]} : vector<32x96xbf16> to vector<32x64xbf16>
    %22 = arith.truncf %18 : vector<16x32xf32> to vector<16x32xbf16>
    %cst_21 = arith.constant dense<0.000000e+00> : vector<16x64xf32>
    %23 = tpu.matmul %22, %21, %cst_21 {dimension_numbers = #tpu.dot_dimension_numbers<[1], [0], [0], [1], [0, 0, 1, 1], [], []>} : vector<16x32xbf16>, vector<32x64xbf16>, vector<16x64xf32> -> vector<16x64xf32>
    %24 = vector.extract_strided_slice %20 {offsets = [0, 0], sizes = [1, 64], strides = [1, 1]} : vector<1x96xf32> to vector<1x64xf32>
    %25 = vector.broadcast %24 : vector<1x64xf32> to vector<16x64xf32>
    %26 = arith.addf %23, %25 : vector<16x64xf32>
    %27 = vector.extract_strided_slice %26 {offsets = [0, 0], sizes = [16, 32], strides = [1, 1]} : vector<16x64xf32> to vector<16x32xf32>
    %28 = vector.extract_strided_slice %26 {offsets = [0, 32], sizes = [16, 32], strides = [1, 1]} : vector<16x64xf32> to vector<16x32xf32>
    %29 = vector.extract_strided_slice %19 {offsets = [0, 64], sizes = [32, 32], strides = [1, 1]} : vector<32x96xbf16> to vector<32x32xbf16>
    %30 = arith.truncf %17 : vector<16x32xf32> to vector<16x32xbf16>
    %cst_22 = arith.constant dense<0.000000e+00> : vector<16x32xf32>
    %31 = tpu.matmul %30, %29, %cst_22 {dimension_numbers = #tpu.dot_dimension_numbers<[1], [0], [0], [1], [0, 0, 1, 1], [], []>} : vector<16x32xbf16>, vector<32x32xbf16>, vector<16x32xf32> -> vector<16x32xf32>
    %32 = vector.extract_strided_slice %20 {offsets = [0, 64], sizes = [1, 32], strides = [1, 1]} : vector<1x96xf32> to vector<1x32xf32>
    %33 = vector.broadcast %32 : vector<1x32xf32> to vector<16x32xf32>
    %34 = arith.addf %31, %33 : vector<16x32xf32>
    %35 = vector.extract_strided_slice %27 {offsets = [0, 0], sizes = [16, 8], strides = [1, 1]} : vector<16x32xf32> to vector<16x8xf32>
    %36 = arith.truncf %35 : vector<16x8xf32> to vector<16x8xbf16>
    %37 = vector.extract_strided_slice %28 {offsets = [0, 0], sizes = [16, 8], strides = [1, 1]} : vector<16x32xf32> to vector<16x8xf32>
    %38 = arith.truncf %37 : vector<16x8xf32> to vector<16x8xbf16>
    %39 = vector.extract_strided_slice %34 {offsets = [0, 0], sizes = [16, 8], strides = [1, 1]} : vector<16x32xf32> to vector<16x8xf32>
    %40 = arith.truncf %39 : vector<16x8xf32> to vector<16x8xbf16>
    %cst_23 = arith.constant dense<0.000000e+00> : vector<16x16xf32>
    %41 = tpu.matmul %36, %38, %cst_23 {dimension_numbers = #tpu.dot_dimension_numbers<[1], [1], [0], [0], [0, 0, 1, 0], [], []>} : vector<16x8xbf16>, vector<16x8xbf16>, vector<16x16xf32> -> vector<16x16xf32>
    %cst_24 = arith.constant 0.353553385 : f32
    %42 = vector.broadcast %cst_24 : f32 to vector<16x16xf32>
    %43 = arith.mulf %41, %42 : vector<16x16xf32>
    %cst_25 = arith.constant dense<0xFF800000> : vector<16xf32>
    %44 = vector.multi_reduction <maximumf>, %43, %cst_25 [1] : vector<16x16xf32> to vector<16xf32>
    %45 = vector.shape_cast %44 : vector<16xf32> to vector<16x1xf32>
    %46 = vector.broadcast %45 : vector<16x1xf32> to vector<16x16xf32>
    %47 = arith.subf %43, %46 : vector<16x16xf32>
    %48 = math.exp %47 : vector<16x16xf32>
    %cst_26 = arith.constant dense<0.000000e+00> : vector<16xf32>
    %49 = vector.multi_reduction <add>, %48, %cst_26 [1] : vector<16x16xf32> to vector<16xf32>
    %50 = vector.shape_cast %49 : vector<16xf32> to vector<16x1xf32>
    %51 = tpu.reciprocal %50 {approx = true} : vector<16x1xf32> -> vector<16x1xf32>
    %52 = vector.broadcast %51 : vector<16x1xf32> to vector<16x16xf32>
    %53 = arith.mulf %48, %52 : vector<16x16xf32>
    %54 = arith.truncf %53 : vector<16x16xf32> to vector<16x16xbf16>
    %cst_27 = arith.constant dense<0.000000e+00> : vector<16x8xf32>
    %55 = tpu.matmul %54, %40, %cst_27 {dimension_numbers = #tpu.dot_dimension_numbers<[1], [0], [0], [1], [0, 0, 1, 1], [], []>} : vector<16x16xbf16>, vector<16x8xbf16>, vector<16x8xf32> -> vector<16x8xf32>
    %56 = vector.extract_strided_slice %27 {offsets = [0, 8], sizes = [16, 8], strides = [1, 1]} : vector<16x32xf32> to vector<16x8xf32>
    %57 = arith.truncf %56 : vector<16x8xf32> to vector<16x8xbf16>
    %58 = vector.extract_strided_slice %28 {offsets = [0, 8], sizes = [16, 8], strides = [1, 1]} : vector<16x32xf32> to vector<16x8xf32>
    %59 = arith.truncf %58 : vector<16x8xf32> to vector<16x8xbf16>
    %60 = vector.extract_strided_slice %34 {offsets = [0, 8], sizes = [16, 8], strides = [1, 1]} : vector<16x32xf32> to vector<16x8xf32>
    %61 = arith.truncf %60 : vector<16x8xf32> to vector<16x8xbf16>
    %cst_28 = arith.constant dense<0.000000e+00> : vector<16x16xf32>
    %62 = tpu.matmul %57, %59, %cst_28 {dimension_numbers = #tpu.dot_dimension_numbers<[1], [1], [0], [0], [0, 0, 1, 0], [], []>} : vector<16x8xbf16>, vector<16x8xbf16>, vector<16x16xf32> -> vector<16x16xf32>
    %cst_29 = arith.constant 0.353553385 : f32
    %63 = vector.broadcast %cst_29 : f32 to vector<16x16xf32>
    %64 = arith.mulf %62, %63 : vector<16x16xf32>
    %cst_30 = arith.constant dense<0xFF800000> : vector<16xf32>
    %65 = vector.multi_reduction <maximumf>, %64, %cst_30 [1] : vector<16x16xf32> to vector<16xf32>
    %66 = vector.shape_cast %65 : vector<16xf32> to vector<16x1xf32>
    %67 = vector.broadcast %66 : vector<16x1xf32> to vector<16x16xf32>
    %68 = arith.subf %64, %67 : vector<16x16xf32>
    %69 = math.exp %68 : vector<16x16xf32>
    %cst_31 = arith.constant dense<0.000000e+00> : vector<16xf32>
    %70 = vector.multi_reduction <add>, %69, %cst_31 [1] : vector<16x16xf32> to vector<16xf32>
    %71 = vector.shape_cast %70 : vector<16xf32> to vector<16x1xf32>
    %72 = tpu.reciprocal %71 {approx = true} : vector<16x1xf32> -> vector<16x1xf32>
    %73 = vector.broadcast %72 : vector<16x1xf32> to vector<16x16xf32>
    %74 = arith.mulf %69, %73 : vector<16x16xf32>
    %75 = arith.truncf %74 : vector<16x16xf32> to vector<16x16xbf16>
    %cst_32 = arith.constant dense<0.000000e+00> : vector<16x8xf32>
    %76 = tpu.matmul %75, %61, %cst_32 {dimension_numbers = #tpu.dot_dimension_numbers<[1], [0], [0], [1], [0, 0, 1, 1], [], []>} : vector<16x16xbf16>, vector<16x8xbf16>, vector<16x8xf32> -> vector<16x8xf32>
    %77 = vector.extract_strided_slice %27 {offsets = [0, 16], sizes = [16, 8], strides = [1, 1]} : vector<16x32xf32> to vector<16x8xf32>
    %78 = arith.truncf %77 : vector<16x8xf32> to vector<16x8xbf16>
    %79 = vector.extract_strided_slice %28 {offsets = [0, 16], sizes = [16, 8], strides = [1, 1]} : vector<16x32xf32> to vector<16x8xf32>
    %80 = arith.truncf %79 : vector<16x8xf32> to vector<16x8xbf16>
    %81 = vector.extract_strided_slice %34 {offsets = [0, 16], sizes = [16, 8], strides = [1, 1]} : vector<16x32xf32> to vector<16x8xf32>
    %82 = arith.truncf %81 : vector<16x8xf32> to vector<16x8xbf16>
    %cst_33 = arith.constant dense<0.000000e+00> : vector<16x16xf32>
    %83 = tpu.matmul %78, %80, %cst_33 {dimension_numbers = #tpu.dot_dimension_numbers<[1], [1], [0], [0], [0, 0, 1, 0], [], []>} : vector<16x8xbf16>, vector<16x8xbf16>, vector<16x16xf32> -> vector<16x16xf32>
    %cst_34 = arith.constant 0.353553385 : f32
    %84 = vector.broadcast %cst_34 : f32 to vector<16x16xf32>
    %85 = arith.mulf %83, %84 : vector<16x16xf32>
    %cst_35 = arith.constant dense<0xFF800000> : vector<16xf32>
    %86 = vector.multi_reduction <maximumf>, %85, %cst_35 [1] : vector<16x16xf32> to vector<16xf32>
    %87 = vector.shape_cast %86 : vector<16xf32> to vector<16x1xf32>
    %88 = vector.broadcast %87 : vector<16x1xf32> to vector<16x16xf32>
    %89 = arith.subf %85, %88 : vector<16x16xf32>
    %90 = math.exp %89 : vector<16x16xf32>
    %cst_36 = arith.constant dense<0.000000e+00> : vector<16xf32>
    %91 = vector.multi_reduction <add>, %90, %cst_36 [1] : vector<16x16xf32> to vector<16xf32>
    %92 = vector.shape_cast %91 : vector<16xf32> to vector<16x1xf32>
    %93 = tpu.reciprocal %92 {approx = true} : vector<16x1xf32> -> vector<16x1xf32>
    %94 = vector.broadcast %93 : vector<16x1xf32> to vector<16x16xf32>
    %95 = arith.mulf %90, %94 : vector<16x16xf32>
    %96 = arith.truncf %95 : vector<16x16xf32> to vector<16x16xbf16>
    %cst_37 = arith.constant dense<0.000000e+00> : vector<16x8xf32>
    %97 = tpu.matmul %96, %82, %cst_37 {dimension_numbers = #tpu.dot_dimension_numbers<[1], [0], [0], [1], [0, 0, 1, 1], [], []>} : vector<16x16xbf16>, vector<16x8xbf16>, vector<16x8xf32> -> vector<16x8xf32>
    %98 = vector.extract_strided_slice %27 {offsets = [0, 24], sizes = [16, 8], strides = [1, 1]} : vector<16x32xf32> to vector<16x8xf32>
    %99 = arith.truncf %98 : vector<16x8xf32> to vector<16x8xbf16>
    %100 = vector.extract_strided_slice %28 {offsets = [0, 24], sizes = [16, 8], strides = [1, 1]} : vector<16x32xf32> to vector<16x8xf32>
    %101 = arith.truncf %100 : vector<16x8xf32> to vector<16x8xbf16>
    %102 = vector.extract_strided_slice %34 {offsets = [0, 24], sizes = [16, 8], strides = [1, 1]} : vector<16x32xf32> to vector<16x8xf32>
    %103 = arith.truncf %102 : vector<16x8xf32> to vector<16x8xbf16>
    %cst_38 = arith.constant dense<0.000000e+00> : vector<16x16xf32>
    %104 = tpu.matmul %99, %101, %cst_38 {dimension_numbers = #tpu.dot_dimension_numbers<[1], [1], [0], [0], [0, 0, 1, 0], [], []>} : vector<16x8xbf16>, vector<16x8xbf16>, vector<16x16xf32> -> vector<16x16xf32>
    %cst_39 = arith.constant 0.353553385 : f32
    %105 = vector.broadcast %cst_39 : f32 to vector<16x16xf32>
    %106 = arith.mulf %104, %105 : vector<16x16xf32>
    %cst_40 = arith.constant dense<0xFF800000> : vector<16xf32>
    %107 = vector.multi_reduction <maximumf>, %106, %cst_40 [1] : vector<16x16xf32> to vector<16xf32>
    %108 = vector.shape_cast %107 : vector<16xf32> to vector<16x1xf32>
    %109 = vector.broadcast %108 : vector<16x1xf32> to vector<16x16xf32>
    %110 = arith.subf %106, %109 : vector<16x16xf32>
    %111 = math.exp %110 : vector<16x16xf32>
    %cst_41 = arith.constant dense<0.000000e+00> : vector<16xf32>
    %112 = vector.multi_reduction <add>, %111, %cst_41 [1] : vector<16x16xf32> to vector<16xf32>
    %113 = vector.shape_cast %112 : vector<16xf32> to vector<16x1xf32>
    %114 = tpu.reciprocal %113 {approx = true} : vector<16x1xf32> -> vector<16x1xf32>
    %115 = vector.broadcast %114 : vector<16x1xf32> to vector<16x16xf32>
    %116 = arith.mulf %111, %115 : vector<16x16xf32>
    %117 = arith.truncf %116 : vector<16x16xf32> to vector<16x16xbf16>
    %cst_42 = arith.constant dense<0.000000e+00> : vector<16x8xf32>
    %118 = tpu.matmul %117, %103, %cst_42 {dimension_numbers = #tpu.dot_dimension_numbers<[1], [0], [0], [1], [0, 0, 1, 1], [], []>} : vector<16x16xbf16>, vector<16x8xbf16>, vector<16x8xf32> -> vector<16x8xf32>
    %119 = tpu.concatenate %55, %76, %97, %118 in 1 : vector<16x8xf32>, vector<16x8xf32>, vector<16x8xf32>, vector<16x8xf32> -> vector<16x32xf32>
    %c0_43 = arith.constant 0 : index
    %c0_44 = arith.constant 0 : index
    %120 = vector.load %arg53[%c0_43, %c0_44] : memref<32x32xbf16, #tpu.memory_space<vmem>>, vector<32x32xbf16>
    %121 = arith.truncf %119 : vector<16x32xf32> to vector<16x32xbf16>
    %cst_45 = arith.constant dense<0.000000e+00> : vector<16x32xf32>
    %122 = tpu.matmul %121, %120, %cst_45 {dimension_numbers = #tpu.dot_dimension_numbers<[1], [0], [0], [1], [0, 0, 1, 1], [], []>} : vector<16x32xbf16>, vector<32x32xbf16>, vector<16x32xf32> -> vector<16x32xf32>
    %c0_46 = arith.constant 0 : index
    %c0_47 = arith.constant 0 : index
    %123 = vector.load %arg51[%c0_46, %c0_47] : memref<1x32xf32, #tpu.memory_space<vmem>>, vector<1x32xf32>
    %124 = vector.broadcast %123 : vector<1x32xf32> to vector<16x32xf32>
    %125 = arith.addf %122, %124 : vector<16x32xf32>
    %126 = arith.addf %17, %125 : vector<16x32xf32>
    %cst_48 = arith.constant dense<0.000000e+00> : vector<16xf32>
    %127 = vector.multi_reduction <add>, %126, %cst_48 [1] : vector<16x32xf32> to vector<16xf32>
    %128 = vector.shape_cast %127 : vector<16xf32> to vector<16x1xf32>
    %cst_49 = arith.constant 3.200000e+01 : f32
    %129 = vector.broadcast %cst_49 : f32 to vector<16x1xf32>
    %130 = arith.divf %128, %129 : vector<16x1xf32>
    %131 = vector.broadcast %130 : vector<16x1xf32> to vector<16x32xf32>
    %132 = arith.subf %126, %131 : vector<16x32xf32>
    %133 = arith.mulf %132, %132 : vector<16x32xf32>
    %cst_50 = arith.constant dense<0.000000e+00> : vector<16xf32>
    %134 = vector.multi_reduction <add>, %133, %cst_50 [1] : vector<16x32xf32> to vector<16xf32>
    %135 = vector.shape_cast %134 : vector<16xf32> to vector<16x1xf32>
    %cst_51 = arith.constant 3.200000e+01 : f32
    %136 = vector.broadcast %cst_51 : f32 to vector<16x1xf32>
    %137 = arith.divf %135, %136 : vector<16x1xf32>
    %138 = vector.broadcast %130 : vector<16x1xf32> to vector<16x32xf32>
    %139 = arith.subf %126, %138 : vector<16x32xf32>
    %cst_52 = arith.constant 9.99999974E-6 : f32
    %140 = vector.broadcast %cst_52 : f32 to vector<16x1xf32>
    %141 = arith.addf %137, %140 : vector<16x1xf32>
    %142 = math.rsqrt %141 : vector<16x1xf32>
    %143 = vector.broadcast %142 : vector<16x1xf32> to vector<16x32xf32>
    %144 = arith.mulf %139, %143 : vector<16x32xf32>
    %c0_53 = arith.constant 0 : index
    %c0_54 = arith.constant 0 : index
    %145 = vector.load %arg60[%c0_53, %c0_54] : memref<1x32xf32, #tpu.memory_space<vmem>>, vector<1x32xf32>
    %146 = vector.broadcast %145 : vector<1x32xf32> to vector<16x32xf32>
    %147 = arith.mulf %144, %146 : vector<16x32xf32>
    %c0_55 = arith.constant 0 : index
    %c0_56 = arith.constant 0 : index
    %148 = vector.load %arg59[%c0_55, %c0_56] : memref<1x32xf32, #tpu.memory_space<vmem>>, vector<1x32xf32>
    %149 = vector.broadcast %148 : vector<1x32xf32> to vector<16x32xf32>
    %150 = arith.addf %147, %149 : vector<16x32xf32>
    %c0_57 = arith.constant 0 : index
    %c0_58 = arith.constant 0 : index
    %151 = vector.load %arg56[%c0_57, %c0_58] : memref<32x64xbf16, #tpu.memory_space<vmem>>, vector<32x64xbf16>
    %152 = arith.truncf %150 : vector<16x32xf32> to vector<16x32xbf16>
    %cst_59 = arith.constant dense<0.000000e+00> : vector<16x64xf32>
    %153 = tpu.matmul %152, %151, %cst_59 {dimension_numbers = #tpu.dot_dimension_numbers<[1], [0], [0], [1], [0, 0, 1, 1], [], []>} : vector<16x32xbf16>, vector<32x64xbf16>, vector<16x64xf32> -> vector<16x64xf32>
    %c0_60 = arith.constant 0 : index
    %c0_61 = arith.constant 0 : index
    %154 = vector.load %arg55[%c0_60, %c0_61] : memref<1x64xf32, #tpu.memory_space<vmem>>, vector<1x64xf32>
    %155 = vector.broadcast %154 : vector<1x64xf32> to vector<16x64xf32>
    %156 = arith.addf %153, %155 : vector<16x64xf32>
    %cst_62 = arith.constant 0.000000e+00 : f32
    %157 = vector.broadcast %cst_62 : f32 to vector<16x64xf32>
    %158 = arith.maximumf %156, %157 : vector<16x64xf32>
    %c0_63 = arith.constant 0 : index
    %c0_64 = arith.constant 0 : index
    %159 = vector.load %arg58[%c0_63, %c0_64] : memref<64x32xbf16, #tpu.memory_space<vmem>>, vector<64x32xbf16>
    %160 = arith.truncf %158 : vector<16x64xf32> to vector<16x64xbf16>
    %cst_65 = arith.constant dense<0.000000e+00> : vector<16x32xf32>
    %161 = tpu.matmul %160, %159, %cst_65 {dimension_numbers = #tpu.dot_dimension_numbers<[1], [0], [0], [1], [0, 0, 1, 1], [], []>} : vector<16x64xbf16>, vector<64x32xbf16>, vector<16x32xf32> -> vector<16x32xf32>
    %c0_66 = arith.constant 0 : index
    %c0_67 = arith.constant 0 : index
    %162 = vector.load %arg57[%c0_66, %c0_67] : memref<1x32xf32, #tpu.memory_space<vmem>>, vector<1x32xf32>
    %163 = vector.broadcast %162 : vector<1x32xf32> to vector<16x32xf32>
    %164 = arith.addf %161, %163 : vector<16x32xf32>
    %165 = arith.addf %150, %164 : vector<16x32xf32>
    %cst_68 = arith.constant dense<0.000000e+00> : vector<16xf32>
    %166 = vector.multi_reduction <add>, %165, %cst_68 [1] : vector<16x32xf32> to vector<16xf32>
    %167 = vector.shape_cast %166 : vector<16xf32> to vector<16x1xf32>
    %cst_69 = arith.constant 3.200000e+01 : f32
    %168 = vector.broadcast %cst_69 : f32 to vector<16x1xf32>
    %169 = arith.divf %167, %168 : vector<16x1xf32>
    %170 = vector.broadcast %169 : vector<16x1xf32> to vector<16x32xf32>
    %171 = arith.subf %165, %170 : vector<16x32xf32>
    %172 = arith.mulf %171, %171 : vector<16x32xf32>
    %cst_70 = arith.constant dense<0.000000e+00> : vector<16xf32>
    %173 = vector.multi_reduction <add>, %172, %cst_70 [1] : vector<16x32xf32> to vector<16xf32>
    %174 = vector.shape_cast %173 : vector<16xf32> to vector<16x1xf32>
    %cst_71 = arith.constant 3.200000e+01 : f32
    %175 = vector.broadcast %cst_71 : f32 to vector<16x1xf32>
    %176 = arith.divf %174, %175 : vector<16x1xf32>
    %177 = vector.broadcast %169 : vector<16x1xf32> to vector<16x32xf32>
    %178 = arith.subf %165, %177 : vector<16x32xf32>
    %cst_72 = arith.constant 9.99999974E-6 : f32
    %179 = vector.broadcast %cst_72 : f32 to vector<16x1xf32>
    %180 = arith.addf %176, %179 : vector<16x1xf32>
    %181 = math.rsqrt %180 : vector<16x1xf32>
    %182 = vector.broadcast %181 : vector<16x1xf32> to vector<16x32xf32>
    %183 = arith.mulf %178, %182 : vector<16x32xf32>
    %c0_73 = arith.constant 0 : index
    %c0_74 = arith.constant 0 : index
    %184 = vector.load %arg62[%c0_73, %c0_74] : memref<1x32xf32, #tpu.memory_space<vmem>>, vector<1x32xf32>
    %185 = vector.broadcast %184 : vector<1x32xf32> to vector<16x32xf32>
    %186 = arith.mulf %183, %185 : vector<16x32xf32>
    %c0_75 = arith.constant 0 : index
    %c0_76 = arith.constant 0 : index
    %187 = vector.load %arg61[%c0_75, %c0_76] : memref<1x32xf32, #tpu.memory_space<vmem>>, vector<1x32xf32>
    %188 = vector.broadcast %187 : vector<1x32xf32> to vector<16x32xf32>
    %189 = arith.addf %186, %188 : vector<16x32xf32>
    %190 = arith.addf %189, %3 : vector<16x32xf32>
    %c0_77 = arith.constant 0 : index
    %c0_78 = arith.constant 0 : index
    %191 = vector.load %arg66[%c0_77, %c0_78] : memref<32x96xbf16, #tpu.memory_space<vmem>>, vector<32x96xbf16>
    %c0_79 = arith.constant 0 : index
    %c0_80 = arith.constant 0 : index
    %192 = vector.load %arg64[%c0_79, %c0_80] : memref<1x96xf32, #tpu.memory_space<vmem>>, vector<1x96xf32>
    %193 = vector.extract_strided_slice %191 {offsets = [0, 0], sizes = [32, 64], strides = [1, 1]} : vector<32x96xbf16> to vector<32x64xbf16>
    %194 = arith.truncf %190 : vector<16x32xf32> to vector<16x32xbf16>
    %cst_81 = arith.constant dense<0.000000e+00> : vector<16x64xf32>
    %195 = tpu.matmul %194, %193, %cst_81 {dimension_numbers = #tpu.dot_dimension_numbers<[1], [0], [0], [1], [0, 0, 1, 1], [], []>} : vector<16x32xbf16>, vector<32x64xbf16>, vector<16x64xf32> -> vector<16x64xf32>
    %196 = vector.extract_strided_slice %192 {offsets = [0, 0], sizes = [1, 64], strides = [1, 1]} : vector<1x96xf32> to vector<1x64xf32>
    %197 = vector.broadcast %196 : vector<1x64xf32> to vector<16x64xf32>
    %198 = arith.addf %195, %197 : vector<16x64xf32>
    %199 = vector.extract_strided_slice %198 {offsets = [0, 0], sizes = [16, 32], strides = [1, 1]} : vector<16x64xf32> to vector<16x32xf32>
    %200 = vector.extract_strided_slice %198 {offsets = [0, 32], sizes = [16, 32], strides = [1, 1]} : vector<16x64xf32> to vector<16x32xf32>
    %201 = vector.extract_strided_slice %191 {offsets = [0, 64], sizes = [32, 32], strides = [1, 1]} : vector<32x96xbf16> to vector<32x32xbf16>
    %202 = arith.truncf %189 : vector<16x32xf32> to vector<16x32xbf16>
    %cst_82 = arith.constant dense<0.000000e+00> : vector<16x32xf32>
    %203 = tpu.matmul %202, %201, %cst_82 {dimension_numbers = #tpu.dot_dimension_numbers<[1], [0], [0], [1], [0, 0, 1, 1], [], []>} : vector<16x32xbf16>, vector<32x32xbf16>, vector<16x32xf32> -> vector<16x32xf32>
    %204 = vector.extract_strided_slice %192 {offsets = [0, 64], sizes = [1, 32], strides = [1, 1]} : vector<1x96xf32> to vector<1x32xf32>
    %205 = vector.broadcast %204 : vector<1x32xf32> to vector<16x32xf32>
    %206 = arith.addf %203, %205 : vector<16x32xf32>
    %207 = vector.extract_strided_slice %199 {offsets = [0, 0], sizes = [16, 8], strides = [1, 1]} : vector<16x32xf32> to vector<16x8xf32>
    %208 = arith.truncf %207 : vector<16x8xf32> to vector<16x8xbf16>
    %209 = vector.extract_strided_slice %200 {offsets = [0, 0], sizes = [16, 8], strides = [1, 1]} : vector<16x32xf32> to vector<16x8xf32>
    %210 = arith.truncf %209 : vector<16x8xf32> to vector<16x8xbf16>
    %211 = vector.extract_strided_slice %206 {offsets = [0, 0], sizes = [16, 8], strides = [1, 1]} : vector<16x32xf32> to vector<16x8xf32>
    %212 = arith.truncf %211 : vector<16x8xf32> to vector<16x8xbf16>
    %cst_83 = arith.constant dense<0.000000e+00> : vector<16x16xf32>
    %213 = tpu.matmul %208, %210, %cst_83 {dimension_numbers = #tpu.dot_dimension_numbers<[1], [1], [0], [0], [0, 0, 1, 0], [], []>} : vector<16x8xbf16>, vector<16x8xbf16>, vector<16x16xf32> -> vector<16x16xf32>
    %cst_84 = arith.constant 0.353553385 : f32
    %214 = vector.broadcast %cst_84 : f32 to vector<16x16xf32>
    %215 = arith.mulf %213, %214 : vector<16x16xf32>
    %cst_85 = arith.constant dense<0xFF800000> : vector<16xf32>
    %216 = vector.multi_reduction <maximumf>, %215, %cst_85 [1] : vector<16x16xf32> to vector<16xf32>
    %217 = vector.shape_cast %216 : vector<16xf32> to vector<16x1xf32>
    %218 = vector.broadcast %217 : vector<16x1xf32> to vector<16x16xf32>
    %219 = arith.subf %215, %218 : vector<16x16xf32>
    %220 = math.exp %219 : vector<16x16xf32>
    %cst_86 = arith.constant dense<0.000000e+00> : vector<16xf32>
    %221 = vector.multi_reduction <add>, %220, %cst_86 [1] : vector<16x16xf32> to vector<16xf32>
    %222 = vector.shape_cast %221 : vector<16xf32> to vector<16x1xf32>
    %223 = tpu.reciprocal %222 {approx = true} : vector<16x1xf32> -> vector<16x1xf32>
    %224 = vector.broadcast %223 : vector<16x1xf32> to vector<16x16xf32>
    %225 = arith.mulf %220, %224 : vector<16x16xf32>
    %226 = arith.truncf %225 : vector<16x16xf32> to vector<16x16xbf16>
    %cst_87 = arith.constant dense<0.000000e+00> : vector<16x8xf32>
    %227 = tpu.matmul %226, %212, %cst_87 {dimension_numbers = #tpu.dot_dimension_numbers<[1], [0], [0], [1], [0, 0, 1, 1], [], []>} : vector<16x16xbf16>, vector<16x8xbf16>, vector<16x8xf32> -> vector<16x8xf32>
    %228 = vector.extract_strided_slice %199 {offsets = [0, 8], sizes = [16, 8], strides = [1, 1]} : vector<16x32xf32> to vector<16x8xf32>
    %229 = arith.truncf %228 : vector<16x8xf32> to vector<16x8xbf16>
    %230 = vector.extract_strided_slice %200 {offsets = [0, 8], sizes = [16, 8], strides = [1, 1]} : vector<16x32xf32> to vector<16x8xf32>
    %231 = arith.truncf %230 : vector<16x8xf32> to vector<16x8xbf16>
    %232 = vector.extract_strided_slice %206 {offsets = [0, 8], sizes = [16, 8], strides = [1, 1]} : vector<16x32xf32> to vector<16x8xf32>
    %233 = arith.truncf %232 : vector<16x8xf32> to vector<16x8xbf16>
    %cst_88 = arith.constant dense<0.000000e+00> : vector<16x16xf32>
    %234 = tpu.matmul %229, %231, %cst_88 {dimension_numbers = #tpu.dot_dimension_numbers<[1], [1], [0], [0], [0, 0, 1, 0], [], []>} : vector<16x8xbf16>, vector<16x8xbf16>, vector<16x16xf32> -> vector<16x16xf32>
    %cst_89 = arith.constant 0.353553385 : f32
    %235 = vector.broadcast %cst_89 : f32 to vector<16x16xf32>
    %236 = arith.mulf %234, %235 : vector<16x16xf32>
    %cst_90 = arith.constant dense<0xFF800000> : vector<16xf32>
    %237 = vector.multi_reduction <maximumf>, %236, %cst_90 [1] : vector<16x16xf32> to vector<16xf32>
    %238 = vector.shape_cast %237 : vector<16xf32> to vector<16x1xf32>
    %239 = vector.broadcast %238 : vector<16x1xf32> to vector<16x16xf32>
    %240 = arith.subf %236, %239 : vector<16x16xf32>
    %241 = math.exp %240 : vector<16x16xf32>
    %cst_91 = arith.constant dense<0.000000e+00> : vector<16xf32>
    %242 = vector.multi_reduction <add>, %241, %cst_91 [1] : vector<16x16xf32> to vector<16xf32>
    %243 = vector.shape_cast %242 : vector<16xf32> to vector<16x1xf32>
    %244 = tpu.reciprocal %243 {approx = true} : vector<16x1xf32> -> vector<16x1xf32>
    %245 = vector.broadcast %244 : vector<16x1xf32> to vector<16x16xf32>
    %246 = arith.mulf %241, %245 : vector<16x16xf32>
    %247 = arith.truncf %246 : vector<16x16xf32> to vector<16x16xbf16>
    %cst_92 = arith.constant dense<0.000000e+00> : vector<16x8xf32>
    %248 = tpu.matmul %247, %233, %cst_92 {dimension_numbers = #tpu.dot_dimension_numbers<[1], [0], [0], [1], [0, 0, 1, 1], [], []>} : vector<16x16xbf16>, vector<16x8xbf16>, vector<16x8xf32> -> vector<16x8xf32>
    %249 = vector.extract_strided_slice %199 {offsets = [0, 16], sizes = [16, 8], strides = [1, 1]} : vector<16x32xf32> to vector<16x8xf32>
    %250 = arith.truncf %249 : vector<16x8xf32> to vector<16x8xbf16>
    %251 = vector.extract_strided_slice %200 {offsets = [0, 16], sizes = [16, 8], strides = [1, 1]} : vector<16x32xf32> to vector<16x8xf32>
    %252 = arith.truncf %251 : vector<16x8xf32> to vector<16x8xbf16>
    %253 = vector.extract_strided_slice %206 {offsets = [0, 16], sizes = [16, 8], strides = [1, 1]} : vector<16x32xf32> to vector<16x8xf32>
    %254 = arith.truncf %253 : vector<16x8xf32> to vector<16x8xbf16>
    %cst_93 = arith.constant dense<0.000000e+00> : vector<16x16xf32>
    %255 = tpu.matmul %250, %252, %cst_93 {dimension_numbers = #tpu.dot_dimension_numbers<[1], [1], [0], [0], [0, 0, 1, 0], [], []>} : vector<16x8xbf16>, vector<16x8xbf16>, vector<16x16xf32> -> vector<16x16xf32>
    %cst_94 = arith.constant 0.353553385 : f32
    %256 = vector.broadcast %cst_94 : f32 to vector<16x16xf32>
    %257 = arith.mulf %255, %256 : vector<16x16xf32>
    %cst_95 = arith.constant dense<0xFF800000> : vector<16xf32>
    %258 = vector.multi_reduction <maximumf>, %257, %cst_95 [1] : vector<16x16xf32> to vector<16xf32>
    %259 = vector.shape_cast %258 : vector<16xf32> to vector<16x1xf32>
    %260 = vector.broadcast %259 : vector<16x1xf32> to vector<16x16xf32>
    %261 = arith.subf %257, %260 : vector<16x16xf32>
    %262 = math.exp %261 : vector<16x16xf32>
    %cst_96 = arith.constant dense<0.000000e+00> : vector<16xf32>
    %263 = vector.multi_reduction <add>, %262, %cst_96 [1] : vector<16x16xf32> to vector<16xf32>
    %264 = vector.shape_cast %263 : vector<16xf32> to vector<16x1xf32>
    %265 = tpu.reciprocal %264 {approx = true} : vector<16x1xf32> -> vector<16x1xf32>
    %266 = vector.broadcast %265 : vector<16x1xf32> to vector<16x16xf32>
    %267 = arith.mulf %262, %266 : vector<16x16xf32>
    %268 = arith.truncf %267 : vector<16x16xf32> to vector<16x16xbf16>
    %cst_97 = arith.constant dense<0.000000e+00> : vector<16x8xf32>
    %269 = tpu.matmul %268, %254, %cst_97 {dimension_numbers = #tpu.dot_dimension_numbers<[1], [0], [0], [1], [0, 0, 1, 1], [], []>} : vector<16x16xbf16>, vector<16x8xbf16>, vector<16x8xf32> -> vector<16x8xf32>
    %270 = vector.extract_strided_slice %199 {offsets = [0, 24], sizes = [16, 8], strides = [1, 1]} : vector<16x32xf32> to vector<16x8xf32>
    %271 = arith.truncf %270 : vector<16x8xf32> to vector<16x8xbf16>
    %272 = vector.extract_strided_slice %200 {offsets = [0, 24], sizes = [16, 8], strides = [1, 1]} : vector<16x32xf32> to vector<16x8xf32>
    %273 = arith.truncf %272 : vector<16x8xf32> to vector<16x8xbf16>
    %274 = vector.extract_strided_slice %206 {offsets = [0, 24], sizes = [16, 8], strides = [1, 1]} : vector<16x32xf32> to vector<16x8xf32>
    %275 = arith.truncf %274 : vector<16x8xf32> to vector<16x8xbf16>
    %cst_98 = arith.constant dense<0.000000e+00> : vector<16x16xf32>
    %276 = tpu.matmul %271, %273, %cst_98 {dimension_numbers = #tpu.dot_dimension_numbers<[1], [1], [0], [0], [0, 0, 1, 0], [], []>} : vector<16x8xbf16>, vector<16x8xbf16>, vector<16x16xf32> -> vector<16x16xf32>
    %cst_99 = arith.constant 0.353553385 : f32
    %277 = vector.broadcast %cst_99 : f32 to vector<16x16xf32>
    %278 = arith.mulf %276, %277 : vector<16x16xf32>
    %cst_100 = arith.constant dense<0xFF800000> : vector<16xf32>
    %279 = vector.multi_reduction <maximumf>, %278, %cst_100 [1] : vector<16x16xf32> to vector<16xf32>
    %280 = vector.shape_cast %279 : vector<16xf32> to vector<16x1xf32>
    %281 = vector.broadcast %280 : vector<16x1xf32> to vector<16x16xf32>
    %282 = arith.subf %278, %281 : vector<16x16xf32>
    %283 = math.exp %282 : vector<16x16xf32>
    %cst_101 = arith.constant dense<0.000000e+00> : vector<16xf32>
    %284 = vector.multi_reduction <add>, %283, %cst_101 [1] : vector<16x16xf32> to vector<16xf32>
    %285 = vector.shape_cast %284 : vector<16xf32> to vector<16x1xf32>
    %286 = tpu.reciprocal %285 {approx = true} : vector<16x1xf32> -> vector<16x1xf32>
    %287 = vector.broadcast %286 : vector<16x1xf32> to vector<16x16xf32>
    %288 = arith.mulf %283, %287 : vector<16x16xf32>
    %289 = arith.truncf %288 : vector<16x16xf32> to vector<16x16xbf16>
    %cst_102 = arith.constant dense<0.000000e+00> : vector<16x8xf32>
    %290 = tpu.matmul %289, %275, %cst_102 {dimension_numbers = #tpu.dot_dimension_numbers<[1], [0], [0], [1], [0, 0, 1, 1], [], []>} : vector<16x16xbf16>, vector<16x8xbf16>, vector<16x8xf32> -> vector<16x8xf32>
    %291 = tpu.concatenate %227, %248, %269, %290 in 1 : vector<16x8xf32>, vector<16x8xf32>, vector<16x8xf32>, vector<16x8xf32> -> vector<16x32xf32>
    %c0_103 = arith.constant 0 : index
    %c0_104 = arith.constant 0 : index
    %292 = vector.load %arg65[%c0_103, %c0_104] : memref<32x32xbf16, #tpu.memory_space<vmem>>, vector<32x32xbf16>
    %293 = arith.truncf %291 : vector<16x32xf32> to vector<16x32xbf16>
    %cst_105 = arith.constant dense<0.000000e+00> : vector<16x32xf32>
    %294 = tpu.matmul %293, %292, %cst_105 {dimension_numbers = #tpu.dot_dimension_numbers<[1], [0], [0], [1], [0, 0, 1, 1], [], []>} : vector<16x32xbf16>, vector<32x32xbf16>, vector<16x32xf32> -> vector<16x32xf32>
    %c0_106 = arith.constant 0 : index
    %c0_107 = arith.constant 0 : index
    %295 = vector.load %arg63[%c0_106, %c0_107] : memref<1x32xf32, #tpu.memory_space<vmem>>, vector<1x32xf32>
    %296 = vector.broadcast %295 : vector<1x32xf32> to vector<16x32xf32>
    %297 = arith.addf %294, %296 : vector<16x32xf32>
    %298 = arith.addf %189, %297 : vector<16x32xf32>
    %cst_108 = arith.constant dense<0.000000e+00> : vector<16xf32>
    %299 = vector.multi_reduction <add>, %298, %cst_108 [1] : vector<16x32xf32> to vector<16xf32>
    %300 = vector.shape_cast %299 : vector<16xf32> to vector<16x1xf32>
    %cst_109 = arith.constant 3.200000e+01 : f32
    %301 = vector.broadcast %cst_109 : f32 to vector<16x1xf32>
    %302 = arith.divf %300, %301 : vector<16x1xf32>
    %303 = vector.broadcast %302 : vector<16x1xf32> to vector<16x32xf32>
    %304 = arith.subf %298, %303 : vector<16x32xf32>
    %305 = arith.mulf %304, %304 : vector<16x32xf32>
    %cst_110 = arith.constant dense<0.000000e+00> : vector<16xf32>
    %306 = vector.multi_reduction <add>, %305, %cst_110 [1] : vector<16x32xf32> to vector<16xf32>
    %307 = vector.shape_cast %306 : vector<16xf32> to vector<16x1xf32>
    %cst_111 = arith.constant 3.200000e+01 : f32
    %308 = vector.broadcast %cst_111 : f32 to vector<16x1xf32>
    %309 = arith.divf %307, %308 : vector<16x1xf32>
    %310 = vector.broadcast %302 : vector<16x1xf32> to vector<16x32xf32>
    %311 = arith.subf %298, %310 : vector<16x32xf32>
    %cst_112 = arith.constant 9.99999974E-6 : f32
    %312 = vector.broadcast %cst_112 : f32 to vector<16x1xf32>
    %313 = arith.addf %309, %312 : vector<16x1xf32>
    %314 = math.rsqrt %313 : vector<16x1xf32>
    %315 = vector.broadcast %314 : vector<16x1xf32> to vector<16x32xf32>
    %316 = arith.mulf %311, %315 : vector<16x32xf32>
    %c0_113 = arith.constant 0 : index
    %c0_114 = arith.constant 0 : index
    %317 = vector.load %arg72[%c0_113, %c0_114] : memref<1x32xf32, #tpu.memory_space<vmem>>, vector<1x32xf32>
    %318 = vector.broadcast %317 : vector<1x32xf32> to vector<16x32xf32>
    %319 = arith.mulf %316, %318 : vector<16x32xf32>
    %c0_115 = arith.constant 0 : index
    %c0_116 = arith.constant 0 : index
    %320 = vector.load %arg71[%c0_115, %c0_116] : memref<1x32xf32, #tpu.memory_space<vmem>>, vector<1x32xf32>
    %321 = vector.broadcast %320 : vector<1x32xf32> to vector<16x32xf32>
    %322 = arith.addf %319, %321 : vector<16x32xf32>
    %c0_117 = arith.constant 0 : index
    %c0_118 = arith.constant 0 : index
    %323 = vector.load %arg68[%c0_117, %c0_118] : memref<32x64xbf16, #tpu.memory_space<vmem>>, vector<32x64xbf16>
    %324 = arith.truncf %322 : vector<16x32xf32> to vector<16x32xbf16>
    %cst_119 = arith.constant dense<0.000000e+00> : vector<16x64xf32>
    %325 = tpu.matmul %324, %323, %cst_119 {dimension_numbers = #tpu.dot_dimension_numbers<[1], [0], [0], [1], [0, 0, 1, 1], [], []>} : vector<16x32xbf16>, vector<32x64xbf16>, vector<16x64xf32> -> vector<16x64xf32>
    %c0_120 = arith.constant 0 : index
    %c0_121 = arith.constant 0 : index
    %326 = vector.load %arg67[%c0_120, %c0_121] : memref<1x64xf32, #tpu.memory_space<vmem>>, vector<1x64xf32>
    %327 = vector.broadcast %326 : vector<1x64xf32> to vector<16x64xf32>
    %328 = arith.addf %325, %327 : vector<16x64xf32>
    %cst_122 = arith.constant 0.000000e+00 : f32
    %329 = vector.broadcast %cst_122 : f32 to vector<16x64xf32>
    %330 = arith.maximumf %328, %329 : vector<16x64xf32>
    %c0_123 = arith.constant 0 : index
    %c0_124 = arith.constant 0 : index
    %331 = vector.load %arg70[%c0_123, %c0_124] : memref<64x32xbf16, #tpu.memory_space<vmem>>, vector<64x32xbf16>
    %332 = arith.truncf %330 : vector<16x64xf32> to vector<16x64xbf16>
    %cst_125 = arith.constant dense<0.000000e+00> : vector<16x32xf32>
    %333 = tpu.matmul %332, %331, %cst_125 {dimension_numbers = #tpu.dot_dimension_numbers<[1], [0], [0], [1], [0, 0, 1, 1], [], []>} : vector<16x64xbf16>, vector<64x32xbf16>, vector<16x32xf32> -> vector<16x32xf32>
    %c0_126 = arith.constant 0 : index
    %c0_127 = arith.constant 0 : index
    %334 = vector.load %arg69[%c0_126, %c0_127] : memref<1x32xf32, #tpu.memory_space<vmem>>, vector<1x32xf32>
    %335 = vector.broadcast %334 : vector<1x32xf32> to vector<16x32xf32>
    %336 = arith.addf %333, %335 : vector<16x32xf32>
    %337 = arith.addf %322, %336 : vector<16x32xf32>
    %cst_128 = arith.constant dense<0.000000e+00> : vector<16xf32>
    %338 = vector.multi_reduction <add>, %337, %cst_128 [1] : vector<16x32xf32> to vector<16xf32>
    %339 = vector.shape_cast %338 : vector<16xf32> to vector<16x1xf32>
    %cst_129 = arith.constant 3.200000e+01 : f32
    %340 = vector.broadcast %cst_129 : f32 to vector<16x1xf32>
    %341 = arith.divf %339, %340 : vector<16x1xf32>
    %342 = vector.broadcast %341 : vector<16x1xf32> to vector<16x32xf32>
    %343 = arith.subf %337, %342 : vector<16x32xf32>
    %344 = arith.mulf %343, %343 : vector<16x32xf32>
    %cst_130 = arith.constant dense<0.000000e+00> : vector<16xf32>
    %345 = vector.multi_reduction <add>, %344, %cst_130 [1] : vector<16x32xf32> to vector<16xf32>
    %346 = vector.shape_cast %345 : vector<16xf32> to vector<16x1xf32>
    %cst_131 = arith.constant 3.200000e+01 : f32
    %347 = vector.broadcast %cst_131 : f32 to vector<16x1xf32>
    %348 = arith.divf %346, %347 : vector<16x1xf32>
    %349 = vector.broadcast %341 : vector<16x1xf32> to vector<16x32xf32>
    %350 = arith.subf %337, %349 : vector<16x32xf32>
    %cst_132 = arith.constant 9.99999974E-6 : f32
    %351 = vector.broadcast %cst_132 : f32 to vector<16x1xf32>
    %352 = arith.addf %348, %351 : vector<16x1xf32>
    %353 = math.rsqrt %352 : vector<16x1xf32>
    %354 = vector.broadcast %353 : vector<16x1xf32> to vector<16x32xf32>
    %355 = arith.mulf %350, %354 : vector<16x32xf32>
    %c0_133 = arith.constant 0 : index
    %c0_134 = arith.constant 0 : index
    %356 = vector.load %arg74[%c0_133, %c0_134] : memref<1x32xf32, #tpu.memory_space<vmem>>, vector<1x32xf32>
    %357 = vector.broadcast %356 : vector<1x32xf32> to vector<16x32xf32>
    %358 = arith.mulf %355, %357 : vector<16x32xf32>
    %c0_135 = arith.constant 0 : index
    %c0_136 = arith.constant 0 : index
    %359 = vector.load %arg73[%c0_135, %c0_136] : memref<1x32xf32, #tpu.memory_space<vmem>>, vector<1x32xf32>
    %360 = vector.broadcast %359 : vector<1x32xf32> to vector<16x32xf32>
    %361 = arith.addf %358, %360 : vector<16x32xf32>
    %362 = arith.addf %361, %3 : vector<16x32xf32>
    %cst_137 = arith.constant 0.000000e+00 : f32
    %363 = vector.broadcast %cst_137 : f32 to vector<20x32xf32>
    %364 = arith.addf %363, %4 : vector<20x32xf32>
    %c0_138 = arith.constant 0 : index
    %c0_139 = arith.constant 0 : index
    %365 = vector.load %arg30[%c0_138, %c0_139] : memref<32x96xbf16, #tpu.memory_space<vmem>>, vector<32x96xbf16>
    %c0_140 = arith.constant 0 : index
    %c0_141 = arith.constant 0 : index
    %366 = vector.load %arg28[%c0_140, %c0_141] : memref<1x96xf32, #tpu.memory_space<vmem>>, vector<1x96xf32>
    %367 = vector.extract_strided_slice %365 {offsets = [0, 0], sizes = [32, 64], strides = [1, 1]} : vector<32x96xbf16> to vector<32x64xbf16>
    %368 = arith.truncf %364 : vector<20x32xf32> to vector<20x32xbf16>
    %cst_142 = arith.constant dense<0.000000e+00> : vector<20x64xf32>
    %369 = tpu.matmul %368, %367, %cst_142 {dimension_numbers = #tpu.dot_dimension_numbers<[1], [0], [0], [1], [0, 0, 1, 1], [], []>} : vector<20x32xbf16>, vector<32x64xbf16>, vector<20x64xf32> -> vector<20x64xf32>
    %370 = vector.extract_strided_slice %366 {offsets = [0, 0], sizes = [1, 64], strides = [1, 1]} : vector<1x96xf32> to vector<1x64xf32>
    %371 = vector.broadcast %370 : vector<1x64xf32> to vector<20x64xf32>
    %372 = arith.addf %369, %371 : vector<20x64xf32>
    %373 = vector.extract_strided_slice %372 {offsets = [0, 0], sizes = [20, 32], strides = [1, 1]} : vector<20x64xf32> to vector<20x32xf32>
    %374 = vector.extract_strided_slice %372 {offsets = [0, 32], sizes = [20, 32], strides = [1, 1]} : vector<20x64xf32> to vector<20x32xf32>
    %375 = vector.extract_strided_slice %365 {offsets = [0, 64], sizes = [32, 32], strides = [1, 1]} : vector<32x96xbf16> to vector<32x32xbf16>
    %376 = arith.truncf %363 : vector<20x32xf32> to vector<20x32xbf16>
    %cst_143 = arith.constant dense<0.000000e+00> : vector<20x32xf32>
    %377 = tpu.matmul %376, %375, %cst_143 {dimension_numbers = #tpu.dot_dimension_numbers<[1], [0], [0], [1], [0, 0, 1, 1], [], []>} : vector<20x32xbf16>, vector<32x32xbf16>, vector<20x32xf32> -> vector<20x32xf32>
    %378 = vector.extract_strided_slice %366 {offsets = [0, 64], sizes = [1, 32], strides = [1, 1]} : vector<1x96xf32> to vector<1x32xf32>
    %379 = vector.broadcast %378 : vector<1x32xf32> to vector<20x32xf32>
    %380 = arith.addf %377, %379 : vector<20x32xf32>
    %381 = vector.extract_strided_slice %373 {offsets = [0, 0], sizes = [20, 8], strides = [1, 1]} : vector<20x32xf32> to vector<20x8xf32>
    %382 = arith.truncf %381 : vector<20x8xf32> to vector<20x8xbf16>
    %383 = vector.extract_strided_slice %374 {offsets = [0, 0], sizes = [20, 8], strides = [1, 1]} : vector<20x32xf32> to vector<20x8xf32>
    %384 = arith.truncf %383 : vector<20x8xf32> to vector<20x8xbf16>
    %385 = vector.extract_strided_slice %380 {offsets = [0, 0], sizes = [20, 8], strides = [1, 1]} : vector<20x32xf32> to vector<20x8xf32>
    %386 = arith.truncf %385 : vector<20x8xf32> to vector<20x8xbf16>
    %cst_144 = arith.constant dense<0.000000e+00> : vector<20x20xf32>
    %387 = tpu.matmul %382, %384, %cst_144 {dimension_numbers = #tpu.dot_dimension_numbers<[1], [1], [0], [0], [0, 0, 1, 0], [], []>} : vector<20x8xbf16>, vector<20x8xbf16>, vector<20x20xf32> -> vector<20x20xf32>
    %cst_145 = arith.constant 0.353553385 : f32
    %388 = vector.broadcast %cst_145 : f32 to vector<20x20xf32>
    %389 = arith.mulf %387, %388 : vector<20x20xf32>
    %cst_146 = arith.constant dense<0xFF800000> : vector<20xf32>
    %390 = vector.multi_reduction <maximumf>, %389, %cst_146 [1] : vector<20x20xf32> to vector<20xf32>
    %391 = vector.shape_cast %390 : vector<20xf32> to vector<20x1xf32>
    %392 = vector.broadcast %391 : vector<20x1xf32> to vector<20x20xf32>
    %393 = arith.subf %389, %392 : vector<20x20xf32>
    %394 = math.exp %393 : vector<20x20xf32>
    %cst_147 = arith.constant dense<0.000000e+00> : vector<20xf32>
    %395 = vector.multi_reduction <add>, %394, %cst_147 [1] : vector<20x20xf32> to vector<20xf32>
    %396 = vector.shape_cast %395 : vector<20xf32> to vector<20x1xf32>
    %397 = tpu.reciprocal %396 {approx = true} : vector<20x1xf32> -> vector<20x1xf32>
    %398 = vector.broadcast %397 : vector<20x1xf32> to vector<20x20xf32>
    %399 = arith.mulf %394, %398 : vector<20x20xf32>
    %400 = arith.truncf %399 : vector<20x20xf32> to vector<20x20xbf16>
    %cst_148 = arith.constant dense<0.000000e+00> : vector<20x8xf32>
    %401 = tpu.matmul %400, %386, %cst_148 {dimension_numbers = #tpu.dot_dimension_numbers<[1], [0], [0], [1], [0, 0, 1, 1], [], []>} : vector<20x20xbf16>, vector<20x8xbf16>, vector<20x8xf32> -> vector<20x8xf32>
    %402 = vector.extract_strided_slice %373 {offsets = [0, 8], sizes = [20, 8], strides = [1, 1]} : vector<20x32xf32> to vector<20x8xf32>
    %403 = arith.truncf %402 : vector<20x8xf32> to vector<20x8xbf16>
    %404 = vector.extract_strided_slice %374 {offsets = [0, 8], sizes = [20, 8], strides = [1, 1]} : vector<20x32xf32> to vector<20x8xf32>
    %405 = arith.truncf %404 : vector<20x8xf32> to vector<20x8xbf16>
    %406 = vector.extract_strided_slice %380 {offsets = [0, 8], sizes = [20, 8], strides = [1, 1]} : vector<20x32xf32> to vector<20x8xf32>
    %407 = arith.truncf %406 : vector<20x8xf32> to vector<20x8xbf16>
    %cst_149 = arith.constant dense<0.000000e+00> : vector<20x20xf32>
    %408 = tpu.matmul %403, %405, %cst_149 {dimension_numbers = #tpu.dot_dimension_numbers<[1], [1], [0], [0], [0, 0, 1, 0], [], []>} : vector<20x8xbf16>, vector<20x8xbf16>, vector<20x20xf32> -> vector<20x20xf32>
    %cst_150 = arith.constant 0.353553385 : f32
    %409 = vector.broadcast %cst_150 : f32 to vector<20x20xf32>
    %410 = arith.mulf %408, %409 : vector<20x20xf32>
    %cst_151 = arith.constant dense<0xFF800000> : vector<20xf32>
    %411 = vector.multi_reduction <maximumf>, %410, %cst_151 [1] : vector<20x20xf32> to vector<20xf32>
    %412 = vector.shape_cast %411 : vector<20xf32> to vector<20x1xf32>
    %413 = vector.broadcast %412 : vector<20x1xf32> to vector<20x20xf32>
    %414 = arith.subf %410, %413 : vector<20x20xf32>
    %415 = math.exp %414 : vector<20x20xf32>
    %cst_152 = arith.constant dense<0.000000e+00> : vector<20xf32>
    %416 = vector.multi_reduction <add>, %415, %cst_152 [1] : vector<20x20xf32> to vector<20xf32>
    %417 = vector.shape_cast %416 : vector<20xf32> to vector<20x1xf32>
    %418 = tpu.reciprocal %417 {approx = true} : vector<20x1xf32> -> vector<20x1xf32>
    %419 = vector.broadcast %418 : vector<20x1xf32> to vector<20x20xf32>
    %420 = arith.mulf %415, %419 : vector<20x20xf32>
    %421 = arith.truncf %420 : vector<20x20xf32> to vector<20x20xbf16>
    %cst_153 = arith.constant dense<0.000000e+00> : vector<20x8xf32>
    %422 = tpu.matmul %421, %407, %cst_153 {dimension_numbers = #tpu.dot_dimension_numbers<[1], [0], [0], [1], [0, 0, 1, 1], [], []>} : vector<20x20xbf16>, vector<20x8xbf16>, vector<20x8xf32> -> vector<20x8xf32>
    %423 = vector.extract_strided_slice %373 {offsets = [0, 16], sizes = [20, 8], strides = [1, 1]} : vector<20x32xf32> to vector<20x8xf32>
    %424 = arith.truncf %423 : vector<20x8xf32> to vector<20x8xbf16>
    %425 = vector.extract_strided_slice %374 {offsets = [0, 16], sizes = [20, 8], strides = [1, 1]} : vector<20x32xf32> to vector<20x8xf32>
    %426 = arith.truncf %425 : vector<20x8xf32> to vector<20x8xbf16>
    %427 = vector.extract_strided_slice %380 {offsets = [0, 16], sizes = [20, 8], strides = [1, 1]} : vector<20x32xf32> to vector<20x8xf32>
    %428 = arith.truncf %427 : vector<20x8xf32> to vector<20x8xbf16>
    %cst_154 = arith.constant dense<0.000000e+00> : vector<20x20xf32>
    %429 = tpu.matmul %424, %426, %cst_154 {dimension_numbers = #tpu.dot_dimension_numbers<[1], [1], [0], [0], [0, 0, 1, 0], [], []>} : vector<20x8xbf16>, vector<20x8xbf16>, vector<20x20xf32> -> vector<20x20xf32>
    %cst_155 = arith.constant 0.353553385 : f32
    %430 = vector.broadcast %cst_155 : f32 to vector<20x20xf32>
    %431 = arith.mulf %429, %430 : vector<20x20xf32>
    %cst_156 = arith.constant dense<0xFF800000> : vector<20xf32>
    %432 = vector.multi_reduction <maximumf>, %431, %cst_156 [1] : vector<20x20xf32> to vector<20xf32>
    %433 = vector.shape_cast %432 : vector<20xf32> to vector<20x1xf32>
    %434 = vector.broadcast %433 : vector<20x1xf32> to vector<20x20xf32>
    %435 = arith.subf %431, %434 : vector<20x20xf32>
    %436 = math.exp %435 : vector<20x20xf32>
    %cst_157 = arith.constant dense<0.000000e+00> : vector<20xf32>
    %437 = vector.multi_reduction <add>, %436, %cst_157 [1] : vector<20x20xf32> to vector<20xf32>
    %438 = vector.shape_cast %437 : vector<20xf32> to vector<20x1xf32>
    %439 = tpu.reciprocal %438 {approx = true} : vector<20x1xf32> -> vector<20x1xf32>
    %440 = vector.broadcast %439 : vector<20x1xf32> to vector<20x20xf32>
    %441 = arith.mulf %436, %440 : vector<20x20xf32>
    %442 = arith.truncf %441 : vector<20x20xf32> to vector<20x20xbf16>
    %cst_158 = arith.constant dense<0.000000e+00> : vector<20x8xf32>
    %443 = tpu.matmul %442, %428, %cst_158 {dimension_numbers = #tpu.dot_dimension_numbers<[1], [0], [0], [1], [0, 0, 1, 1], [], []>} : vector<20x20xbf16>, vector<20x8xbf16>, vector<20x8xf32> -> vector<20x8xf32>
    %444 = vector.extract_strided_slice %373 {offsets = [0, 24], sizes = [20, 8], strides = [1, 1]} : vector<20x32xf32> to vector<20x8xf32>
    %445 = arith.truncf %444 : vector<20x8xf32> to vector<20x8xbf16>
    %446 = vector.extract_strided_slice %374 {offsets = [0, 24], sizes = [20, 8], strides = [1, 1]} : vector<20x32xf32> to vector<20x8xf32>
    %447 = arith.truncf %446 : vector<20x8xf32> to vector<20x8xbf16>
    %448 = vector.extract_strided_slice %380 {offsets = [0, 24], sizes = [20, 8], strides = [1, 1]} : vector<20x32xf32> to vector<20x8xf32>
    %449 = arith.truncf %448 : vector<20x8xf32> to vector<20x8xbf16>
    %cst_159 = arith.constant dense<0.000000e+00> : vector<20x20xf32>
    %450 = tpu.matmul %445, %447, %cst_159 {dimension_numbers = #tpu.dot_dimension_numbers<[1], [1], [0], [0], [0, 0, 1, 0], [], []>} : vector<20x8xbf16>, vector<20x8xbf16>, vector<20x20xf32> -> vector<20x20xf32>
    %cst_160 = arith.constant 0.353553385 : f32
    %451 = vector.broadcast %cst_160 : f32 to vector<20x20xf32>
    %452 = arith.mulf %450, %451 : vector<20x20xf32>
    %cst_161 = arith.constant dense<0xFF800000> : vector<20xf32>
    %453 = vector.multi_reduction <maximumf>, %452, %cst_161 [1] : vector<20x20xf32> to vector<20xf32>
    %454 = vector.shape_cast %453 : vector<20xf32> to vector<20x1xf32>
    %455 = vector.broadcast %454 : vector<20x1xf32> to vector<20x20xf32>
    %456 = arith.subf %452, %455 : vector<20x20xf32>
    %457 = math.exp %456 : vector<20x20xf32>
    %cst_162 = arith.constant dense<0.000000e+00> : vector<20xf32>
    %458 = vector.multi_reduction <add>, %457, %cst_162 [1] : vector<20x20xf32> to vector<20xf32>
    %459 = vector.shape_cast %458 : vector<20xf32> to vector<20x1xf32>
    %460 = tpu.reciprocal %459 {approx = true} : vector<20x1xf32> -> vector<20x1xf32>
    %461 = vector.broadcast %460 : vector<20x1xf32> to vector<20x20xf32>
    %462 = arith.mulf %457, %461 : vector<20x20xf32>
    %463 = arith.truncf %462 : vector<20x20xf32> to vector<20x20xbf16>
    %cst_163 = arith.constant dense<0.000000e+00> : vector<20x8xf32>
    %464 = tpu.matmul %463, %449, %cst_163 {dimension_numbers = #tpu.dot_dimension_numbers<[1], [0], [0], [1], [0, 0, 1, 1], [], []>} : vector<20x20xbf16>, vector<20x8xbf16>, vector<20x8xf32> -> vector<20x8xf32>
    %465 = tpu.concatenate %401, %422, %443, %464 in 1 : vector<20x8xf32>, vector<20x8xf32>, vector<20x8xf32>, vector<20x8xf32> -> vector<20x32xf32>
    %c0_164 = arith.constant 0 : index
    %c0_165 = arith.constant 0 : index
    %466 = vector.load %arg29[%c0_164, %c0_165] : memref<32x32xbf16, #tpu.memory_space<vmem>>, vector<32x32xbf16>
    %467 = arith.truncf %465 : vector<20x32xf32> to vector<20x32xbf16>
    %cst_166 = arith.constant dense<0.000000e+00> : vector<20x32xf32>
    %468 = tpu.matmul %467, %466, %cst_166 {dimension_numbers = #tpu.dot_dimension_numbers<[1], [0], [0], [1], [0, 0, 1, 1], [], []>} : vector<20x32xbf16>, vector<32x32xbf16>, vector<20x32xf32> -> vector<20x32xf32>
    %c0_167 = arith.constant 0 : index
    %c0_168 = arith.constant 0 : index
    %469 = vector.load %arg27[%c0_167, %c0_168] : memref<1x32xf32, #tpu.memory_space<vmem>>, vector<1x32xf32>
    %470 = vector.broadcast %469 : vector<1x32xf32> to vector<20x32xf32>
    %471 = arith.addf %468, %470 : vector<20x32xf32>
    %472 = arith.addf %363, %471 : vector<20x32xf32>
    %cst_169 = arith.constant dense<0.000000e+00> : vector<20xf32>
    %473 = vector.multi_reduction <add>, %472, %cst_169 [1] : vector<20x32xf32> to vector<20xf32>
    %474 = vector.shape_cast %473 : vector<20xf32> to vector<20x1xf32>
    %cst_170 = arith.constant 3.200000e+01 : f32
    %475 = vector.broadcast %cst_170 : f32 to vector<20x1xf32>
    %476 = arith.divf %474, %475 : vector<20x1xf32>
    %477 = vector.broadcast %476 : vector<20x1xf32> to vector<20x32xf32>
    %478 = arith.subf %472, %477 : vector<20x32xf32>
    %479 = arith.mulf %478, %478 : vector<20x32xf32>
    %cst_171 = arith.constant dense<0.000000e+00> : vector<20xf32>
    %480 = vector.multi_reduction <add>, %479, %cst_171 [1] : vector<20x32xf32> to vector<20xf32>
    %481 = vector.shape_cast %480 : vector<20xf32> to vector<20x1xf32>
    %cst_172 = arith.constant 3.200000e+01 : f32
    %482 = vector.broadcast %cst_172 : f32 to vector<20x1xf32>
    %483 = arith.divf %481, %482 : vector<20x1xf32>
    %484 = vector.broadcast %476 : vector<20x1xf32> to vector<20x32xf32>
    %485 = arith.subf %472, %484 : vector<20x32xf32>
    %cst_173 = arith.constant 9.99999974E-6 : f32
    %486 = vector.broadcast %cst_173 : f32 to vector<20x1xf32>
    %487 = arith.addf %483, %486 : vector<20x1xf32>
    %488 = math.rsqrt %487 : vector<20x1xf32>
    %489 = vector.broadcast %488 : vector<20x1xf32> to vector<20x32xf32>
    %490 = arith.mulf %485, %489 : vector<20x32xf32>
    %c0_174 = arith.constant 0 : index
    %c0_175 = arith.constant 0 : index
    %491 = vector.load %arg22[%c0_174, %c0_175] : memref<1x32xf32, #tpu.memory_space<vmem>>, vector<1x32xf32>
    %492 = vector.broadcast %491 : vector<1x32xf32> to vector<20x32xf32>
    %493 = arith.mulf %490, %492 : vector<20x32xf32>
    %c0_176 = arith.constant 0 : index
    %c0_177 = arith.constant 0 : index
    %494 = vector.load %arg21[%c0_176, %c0_177] : memref<1x32xf32, #tpu.memory_space<vmem>>, vector<1x32xf32>
    %495 = vector.broadcast %494 : vector<1x32xf32> to vector<20x32xf32>
    %496 = arith.addf %493, %495 : vector<20x32xf32>
    %497 = arith.addf %496, %4 : vector<20x32xf32>
    %c0_178 = arith.constant 0 : index
    %c0_179 = arith.constant 0 : index
    %498 = vector.load %arg16[%c0_178, %c0_179] : memref<32x96xbf16, #tpu.memory_space<vmem>>, vector<32x96xbf16>
    %c0_180 = arith.constant 0 : index
    %c0_181 = arith.constant 0 : index
    %499 = vector.load %arg14[%c0_180, %c0_181] : memref<1x96xf32, #tpu.memory_space<vmem>>, vector<1x96xf32>
    %500 = vector.extract_strided_slice %498 {offsets = [0, 0], sizes = [32, 32], strides = [1, 1]} : vector<32x96xbf16> to vector<32x32xbf16>
    %501 = arith.truncf %497 : vector<20x32xf32> to vector<20x32xbf16>
    %cst_182 = arith.constant dense<0.000000e+00> : vector<20x32xf32>
    %502 = tpu.matmul %501, %500, %cst_182 {dimension_numbers = #tpu.dot_dimension_numbers<[1], [0], [0], [1], [0, 0, 1, 1], [], []>} : vector<20x32xbf16>, vector<32x32xbf16>, vector<20x32xf32> -> vector<20x32xf32>
    %503 = vector.extract_strided_slice %499 {offsets = [0, 0], sizes = [1, 32], strides = [1, 1]} : vector<1x96xf32> to vector<1x32xf32>
    %504 = vector.broadcast %503 : vector<1x32xf32> to vector<20x32xf32>
    %505 = arith.addf %502, %504 : vector<20x32xf32>
    %506 = vector.extract_strided_slice %498 {offsets = [0, 32], sizes = [32, 32], strides = [1, 1]} : vector<32x96xbf16> to vector<32x32xbf16>
    %507 = arith.truncf %362 : vector<16x32xf32> to vector<16x32xbf16>
    %cst_183 = arith.constant dense<0.000000e+00> : vector<16x32xf32>
    %508 = tpu.matmul %507, %506, %cst_183 {dimension_numbers = #tpu.dot_dimension_numbers<[1], [0], [0], [1], [0, 0, 1, 1], [], []>} : vector<16x32xbf16>, vector<32x32xbf16>, vector<16x32xf32> -> vector<16x32xf32>
    %509 = vector.extract_strided_slice %499 {offsets = [0, 32], sizes = [1, 32], strides = [1, 1]} : vector<1x96xf32> to vector<1x32xf32>
    %510 = vector.broadcast %509 : vector<1x32xf32> to vector<16x32xf32>
    %511 = arith.addf %508, %510 : vector<16x32xf32>
    %512 = vector.extract_strided_slice %498 {offsets = [0, 64], sizes = [32, 32], strides = [1, 1]} : vector<32x96xbf16> to vector<32x32xbf16>
    %513 = arith.truncf %361 : vector<16x32xf32> to vector<16x32xbf16>
    %cst_184 = arith.constant dense<0.000000e+00> : vector<16x32xf32>
    %514 = tpu.matmul %513, %512, %cst_184 {dimension_numbers = #tpu.dot_dimension_numbers<[1], [0], [0], [1], [0, 0, 1, 1], [], []>} : vector<16x32xbf16>, vector<32x32xbf16>, vector<16x32xf32> -> vector<16x32xf32>
    %515 = vector.extract_strided_slice %499 {offsets = [0, 64], sizes = [1, 32], strides = [1, 1]} : vector<1x96xf32> to vector<1x32xf32>
    %516 = vector.broadcast %515 : vector<1x32xf32> to vector<16x32xf32>
    %517 = arith.addf %514, %516 : vector<16x32xf32>
    %518 = vector.extract_strided_slice %505 {offsets = [0, 0], sizes = [20, 8], strides = [1, 1]} : vector<20x32xf32> to vector<20x8xf32>
    %519 = arith.truncf %518 : vector<20x8xf32> to vector<20x8xbf16>
    %520 = vector.extract_strided_slice %511 {offsets = [0, 0], sizes = [16, 8], strides = [1, 1]} : vector<16x32xf32> to vector<16x8xf32>
    %521 = arith.truncf %520 : vector<16x8xf32> to vector<16x8xbf16>
    %522 = vector.extract_strided_slice %517 {offsets = [0, 0], sizes = [16, 8], strides = [1, 1]} : vector<16x32xf32> to vector<16x8xf32>
    %523 = arith.truncf %522 : vector<16x8xf32> to vector<16x8xbf16>
    %cst_185 = arith.constant dense<0.000000e+00> : vector<20x16xf32>
    %524 = tpu.matmul %519, %521, %cst_185 {dimension_numbers = #tpu.dot_dimension_numbers<[1], [1], [0], [0], [0, 0, 1, 0], [], []>} : vector<20x8xbf16>, vector<16x8xbf16>, vector<20x16xf32> -> vector<20x16xf32>
    %cst_186 = arith.constant 0.353553385 : f32
    %525 = vector.broadcast %cst_186 : f32 to vector<20x16xf32>
    %526 = arith.mulf %524, %525 : vector<20x16xf32>
    %cst_187 = arith.constant dense<0xFF800000> : vector<20xf32>
    %527 = vector.multi_reduction <maximumf>, %526, %cst_187 [1] : vector<20x16xf32> to vector<20xf32>
    %528 = vector.shape_cast %527 : vector<20xf32> to vector<20x1xf32>
    %529 = vector.broadcast %528 : vector<20x1xf32> to vector<20x16xf32>
    %530 = arith.subf %526, %529 : vector<20x16xf32>
    %531 = math.exp %530 : vector<20x16xf32>
    %cst_188 = arith.constant dense<0.000000e+00> : vector<20xf32>
    %532 = vector.multi_reduction <add>, %531, %cst_188 [1] : vector<20x16xf32> to vector<20xf32>
    %533 = vector.shape_cast %532 : vector<20xf32> to vector<20x1xf32>
    %534 = tpu.reciprocal %533 {approx = true} : vector<20x1xf32> -> vector<20x1xf32>
    %535 = vector.broadcast %534 : vector<20x1xf32> to vector<20x16xf32>
    %536 = arith.mulf %531, %535 : vector<20x16xf32>
    %537 = arith.truncf %536 : vector<20x16xf32> to vector<20x16xbf16>
    %cst_189 = arith.constant dense<0.000000e+00> : vector<20x8xf32>
    %538 = tpu.matmul %537, %523, %cst_189 {dimension_numbers = #tpu.dot_dimension_numbers<[1], [0], [0], [1], [0, 0, 1, 1], [], []>} : vector<20x16xbf16>, vector<16x8xbf16>, vector<20x8xf32> -> vector<20x8xf32>
    %539 = vector.extract_strided_slice %505 {offsets = [0, 8], sizes = [20, 8], strides = [1, 1]} : vector<20x32xf32> to vector<20x8xf32>
    %540 = arith.truncf %539 : vector<20x8xf32> to vector<20x8xbf16>
    %541 = vector.extract_strided_slice %511 {offsets = [0, 8], sizes = [16, 8], strides = [1, 1]} : vector<16x32xf32> to vector<16x8xf32>
    %542 = arith.truncf %541 : vector<16x8xf32> to vector<16x8xbf16>
    %543 = vector.extract_strided_slice %517 {offsets = [0, 8], sizes = [16, 8], strides = [1, 1]} : vector<16x32xf32> to vector<16x8xf32>
    %544 = arith.truncf %543 : vector<16x8xf32> to vector<16x8xbf16>
    %cst_190 = arith.constant dense<0.000000e+00> : vector<20x16xf32>
    %545 = tpu.matmul %540, %542, %cst_190 {dimension_numbers = #tpu.dot_dimension_numbers<[1], [1], [0], [0], [0, 0, 1, 0], [], []>} : vector<20x8xbf16>, vector<16x8xbf16>, vector<20x16xf32> -> vector<20x16xf32>
    %cst_191 = arith.constant 0.353553385 : f32
    %546 = vector.broadcast %cst_191 : f32 to vector<20x16xf32>
    %547 = arith.mulf %545, %546 : vector<20x16xf32>
    %cst_192 = arith.constant dense<0xFF800000> : vector<20xf32>
    %548 = vector.multi_reduction <maximumf>, %547, %cst_192 [1] : vector<20x16xf32> to vector<20xf32>
    %549 = vector.shape_cast %548 : vector<20xf32> to vector<20x1xf32>
    %550 = vector.broadcast %549 : vector<20x1xf32> to vector<20x16xf32>
    %551 = arith.subf %547, %550 : vector<20x16xf32>
    %552 = math.exp %551 : vector<20x16xf32>
    %cst_193 = arith.constant dense<0.000000e+00> : vector<20xf32>
    %553 = vector.multi_reduction <add>, %552, %cst_193 [1] : vector<20x16xf32> to vector<20xf32>
    %554 = vector.shape_cast %553 : vector<20xf32> to vector<20x1xf32>
    %555 = tpu.reciprocal %554 {approx = true} : vector<20x1xf32> -> vector<20x1xf32>
    %556 = vector.broadcast %555 : vector<20x1xf32> to vector<20x16xf32>
    %557 = arith.mulf %552, %556 : vector<20x16xf32>
    %558 = arith.truncf %557 : vector<20x16xf32> to vector<20x16xbf16>
    %cst_194 = arith.constant dense<0.000000e+00> : vector<20x8xf32>
    %559 = tpu.matmul %558, %544, %cst_194 {dimension_numbers = #tpu.dot_dimension_numbers<[1], [0], [0], [1], [0, 0, 1, 1], [], []>} : vector<20x16xbf16>, vector<16x8xbf16>, vector<20x8xf32> -> vector<20x8xf32>
    %560 = vector.extract_strided_slice %505 {offsets = [0, 16], sizes = [20, 8], strides = [1, 1]} : vector<20x32xf32> to vector<20x8xf32>
    %561 = arith.truncf %560 : vector<20x8xf32> to vector<20x8xbf16>
    %562 = vector.extract_strided_slice %511 {offsets = [0, 16], sizes = [16, 8], strides = [1, 1]} : vector<16x32xf32> to vector<16x8xf32>
    %563 = arith.truncf %562 : vector<16x8xf32> to vector<16x8xbf16>
    %564 = vector.extract_strided_slice %517 {offsets = [0, 16], sizes = [16, 8], strides = [1, 1]} : vector<16x32xf32> to vector<16x8xf32>
    %565 = arith.truncf %564 : vector<16x8xf32> to vector<16x8xbf16>
    %cst_195 = arith.constant dense<0.000000e+00> : vector<20x16xf32>
    %566 = tpu.matmul %561, %563, %cst_195 {dimension_numbers = #tpu.dot_dimension_numbers<[1], [1], [0], [0], [0, 0, 1, 0], [], []>} : vector<20x8xbf16>, vector<16x8xbf16>, vector<20x16xf32> -> vector<20x16xf32>
    %cst_196 = arith.constant 0.353553385 : f32
    %567 = vector.broadcast %cst_196 : f32 to vector<20x16xf32>
    %568 = arith.mulf %566, %567 : vector<20x16xf32>
    %cst_197 = arith.constant dense<0xFF800000> : vector<20xf32>
    %569 = vector.multi_reduction <maximumf>, %568, %cst_197 [1] : vector<20x16xf32> to vector<20xf32>
    %570 = vector.shape_cast %569 : vector<20xf32> to vector<20x1xf32>
    %571 = vector.broadcast %570 : vector<20x1xf32> to vector<20x16xf32>
    %572 = arith.subf %568, %571 : vector<20x16xf32>
    %573 = math.exp %572 : vector<20x16xf32>
    %cst_198 = arith.constant dense<0.000000e+00> : vector<20xf32>
    %574 = vector.multi_reduction <add>, %573, %cst_198 [1] : vector<20x16xf32> to vector<20xf32>
    %575 = vector.shape_cast %574 : vector<20xf32> to vector<20x1xf32>
    %576 = tpu.reciprocal %575 {approx = true} : vector<20x1xf32> -> vector<20x1xf32>
    %577 = vector.broadcast %576 : vector<20x1xf32> to vector<20x16xf32>
    %578 = arith.mulf %573, %577 : vector<20x16xf32>
    %579 = arith.truncf %578 : vector<20x16xf32> to vector<20x16xbf16>
    %cst_199 = arith.constant dense<0.000000e+00> : vector<20x8xf32>
    %580 = tpu.matmul %579, %565, %cst_199 {dimension_numbers = #tpu.dot_dimension_numbers<[1], [0], [0], [1], [0, 0, 1, 1], [], []>} : vector<20x16xbf16>, vector<16x8xbf16>, vector<20x8xf32> -> vector<20x8xf32>
    %581 = vector.extract_strided_slice %505 {offsets = [0, 24], sizes = [20, 8], strides = [1, 1]} : vector<20x32xf32> to vector<20x8xf32>
    %582 = arith.truncf %581 : vector<20x8xf32> to vector<20x8xbf16>
    %583 = vector.extract_strided_slice %511 {offsets = [0, 24], sizes = [16, 8], strides = [1, 1]} : vector<16x32xf32> to vector<16x8xf32>
    %584 = arith.truncf %583 : vector<16x8xf32> to vector<16x8xbf16>
    %585 = vector.extract_strided_slice %517 {offsets = [0, 24], sizes = [16, 8], strides = [1, 1]} : vector<16x32xf32> to vector<16x8xf32>
    %586 = arith.truncf %585 : vector<16x8xf32> to vector<16x8xbf16>
    %cst_200 = arith.constant dense<0.000000e+00> : vector<20x16xf32>
    %587 = tpu.matmul %582, %584, %cst_200 {dimension_numbers = #tpu.dot_dimension_numbers<[1], [1], [0], [0], [0, 0, 1, 0], [], []>} : vector<20x8xbf16>, vector<16x8xbf16>, vector<20x16xf32> -> vector<20x16xf32>
    %cst_201 = arith.constant 0.353553385 : f32
    %588 = vector.broadcast %cst_201 : f32 to vector<20x16xf32>
    %589 = arith.mulf %587, %588 : vector<20x16xf32>
    %cst_202 = arith.constant dense<0xFF800000> : vector<20xf32>
    %590 = vector.multi_reduction <maximumf>, %589, %cst_202 [1] : vector<20x16xf32> to vector<20xf32>
    %591 = vector.shape_cast %590 : vector<20xf32> to vector<20x1xf32>
    %592 = vector.broadcast %591 : vector<20x1xf32> to vector<20x16xf32>
    %593 = arith.subf %589, %592 : vector<20x16xf32>
    %594 = math.exp %593 : vector<20x16xf32>
    %cst_203 = arith.constant dense<0.000000e+00> : vector<20xf32>
    %595 = vector.multi_reduction <add>, %594, %cst_203 [1] : vector<20x16xf32> to vector<20xf32>
    %596 = vector.shape_cast %595 : vector<20xf32> to vector<20x1xf32>
    %597 = tpu.reciprocal %596 {approx = true} : vector<20x1xf32> -> vector<20x1xf32>
    %598 = vector.broadcast %597 : vector<20x1xf32> to vector<20x16xf32>
    %599 = arith.mulf %594, %598 : vector<20x16xf32>
    %600 = arith.truncf %599 : vector<20x16xf32> to vector<20x16xbf16>
    %cst_204 = arith.constant dense<0.000000e+00> : vector<20x8xf32>
    %601 = tpu.matmul %600, %586, %cst_204 {dimension_numbers = #tpu.dot_dimension_numbers<[1], [0], [0], [1], [0, 0, 1, 1], [], []>} : vector<20x16xbf16>, vector<16x8xbf16>, vector<20x8xf32> -> vector<20x8xf32>
    %602 = tpu.concatenate %538, %559, %580, %601 in 1 : vector<20x8xf32>, vector<20x8xf32>, vector<20x8xf32>, vector<20x8xf32> -> vector<20x32xf32>
    %c0_205 = arith.constant 0 : index
    %c0_206 = arith.constant 0 : index
    %603 = vector.load %arg15[%c0_205, %c0_206] : memref<32x32xbf16, #tpu.memory_space<vmem>>, vector<32x32xbf16>
    %604 = arith.truncf %602 : vector<20x32xf32> to vector<20x32xbf16>
    %cst_207 = arith.constant dense<0.000000e+00> : vector<20x32xf32>
    %605 = tpu.matmul %604, %603, %cst_207 {dimension_numbers = #tpu.dot_dimension_numbers<[1], [0], [0], [1], [0, 0, 1, 1], [], []>} : vector<20x32xbf16>, vector<32x32xbf16>, vector<20x32xf32> -> vector<20x32xf32>
    %c0_208 = arith.constant 0 : index
    %c0_209 = arith.constant 0 : index
    %606 = vector.load %arg13[%c0_208, %c0_209] : memref<1x32xf32, #tpu.memory_space<vmem>>, vector<1x32xf32>
    %607 = vector.broadcast %606 : vector<1x32xf32> to vector<20x32xf32>
    %608 = arith.addf %605, %607 : vector<20x32xf32>
    %609 = arith.addf %496, %608 : vector<20x32xf32>
    %cst_210 = arith.constant dense<0.000000e+00> : vector<20xf32>
    %610 = vector.multi_reduction <add>, %609, %cst_210 [1] : vector<20x32xf32> to vector<20xf32>
    %611 = vector.shape_cast %610 : vector<20xf32> to vector<20x1xf32>
    %cst_211 = arith.constant 3.200000e+01 : f32
    %612 = vector.broadcast %cst_211 : f32 to vector<20x1xf32>
    %613 = arith.divf %611, %612 : vector<20x1xf32>
    %614 = vector.broadcast %613 : vector<20x1xf32> to vector<20x32xf32>
    %615 = arith.subf %609, %614 : vector<20x32xf32>
    %616 = arith.mulf %615, %615 : vector<20x32xf32>
    %cst_212 = arith.constant dense<0.000000e+00> : vector<20xf32>
    %617 = vector.multi_reduction <add>, %616, %cst_212 [1] : vector<20x32xf32> to vector<20xf32>
    %618 = vector.shape_cast %617 : vector<20xf32> to vector<20x1xf32>
    %cst_213 = arith.constant 3.200000e+01 : f32
    %619 = vector.broadcast %cst_213 : f32 to vector<20x1xf32>
    %620 = arith.divf %618, %619 : vector<20x1xf32>
    %621 = vector.broadcast %613 : vector<20x1xf32> to vector<20x32xf32>
    %622 = arith.subf %609, %621 : vector<20x32xf32>
    %cst_214 = arith.constant 9.99999974E-6 : f32
    %623 = vector.broadcast %cst_214 : f32 to vector<20x1xf32>
    %624 = arith.addf %620, %623 : vector<20x1xf32>
    %625 = math.rsqrt %624 : vector<20x1xf32>
    %626 = vector.broadcast %625 : vector<20x1xf32> to vector<20x32xf32>
    %627 = arith.mulf %622, %626 : vector<20x32xf32>
    %c0_215 = arith.constant 0 : index
    %c0_216 = arith.constant 0 : index
    %628 = vector.load %arg24[%c0_215, %c0_216] : memref<1x32xf32, #tpu.memory_space<vmem>>, vector<1x32xf32>
    %629 = vector.broadcast %628 : vector<1x32xf32> to vector<20x32xf32>
    %630 = arith.mulf %627, %629 : vector<20x32xf32>
    %c0_217 = arith.constant 0 : index
    %c0_218 = arith.constant 0 : index
    %631 = vector.load %arg23[%c0_217, %c0_218] : memref<1x32xf32, #tpu.memory_space<vmem>>, vector<1x32xf32>
    %632 = vector.broadcast %631 : vector<1x32xf32> to vector<20x32xf32>
    %633 = arith.addf %630, %632 : vector<20x32xf32>
    %c0_219 = arith.constant 0 : index
    %c0_220 = arith.constant 0 : index
    %634 = vector.load %arg18[%c0_219, %c0_220] : memref<32x64xbf16, #tpu.memory_space<vmem>>, vector<32x64xbf16>
    %635 = arith.truncf %633 : vector<20x32xf32> to vector<20x32xbf16>
    %cst_221 = arith.constant dense<0.000000e+00> : vector<20x64xf32>
    %636 = tpu.matmul %635, %634, %cst_221 {dimension_numbers = #tpu.dot_dimension_numbers<[1], [0], [0], [1], [0, 0, 1, 1], [], []>} : vector<20x32xbf16>, vector<32x64xbf16>, vector<20x64xf32> -> vector<20x64xf32>
    %c0_222 = arith.constant 0 : index
    %c0_223 = arith.constant 0 : index
    %637 = vector.load %arg17[%c0_222, %c0_223] : memref<1x64xf32, #tpu.memory_space<vmem>>, vector<1x64xf32>
    %638 = vector.broadcast %637 : vector<1x64xf32> to vector<20x64xf32>
    %639 = arith.addf %636, %638 : vector<20x64xf32>
    %cst_224 = arith.constant 0.000000e+00 : f32
    %640 = vector.broadcast %cst_224 : f32 to vector<20x64xf32>
    %641 = arith.maximumf %639, %640 : vector<20x64xf32>
    %c0_225 = arith.constant 0 : index
    %c0_226 = arith.constant 0 : index
    %642 = vector.load %arg20[%c0_225, %c0_226] : memref<64x32xbf16, #tpu.memory_space<vmem>>, vector<64x32xbf16>
    %643 = arith.truncf %641 : vector<20x64xf32> to vector<20x64xbf16>
    %cst_227 = arith.constant dense<0.000000e+00> : vector<20x32xf32>
    %644 = tpu.matmul %643, %642, %cst_227 {dimension_numbers = #tpu.dot_dimension_numbers<[1], [0], [0], [1], [0, 0, 1, 1], [], []>} : vector<20x64xbf16>, vector<64x32xbf16>, vector<20x32xf32> -> vector<20x32xf32>
    %c0_228 = arith.constant 0 : index
    %c0_229 = arith.constant 0 : index
    %645 = vector.load %arg19[%c0_228, %c0_229] : memref<1x32xf32, #tpu.memory_space<vmem>>, vector<1x32xf32>
    %646 = vector.broadcast %645 : vector<1x32xf32> to vector<20x32xf32>
    %647 = arith.addf %644, %646 : vector<20x32xf32>
    %648 = arith.addf %633, %647 : vector<20x32xf32>
    %cst_230 = arith.constant dense<0.000000e+00> : vector<20xf32>
    %649 = vector.multi_reduction <add>, %648, %cst_230 [1] : vector<20x32xf32> to vector<20xf32>
    %650 = vector.shape_cast %649 : vector<20xf32> to vector<20x1xf32>
    %cst_231 = arith.constant 3.200000e+01 : f32
    %651 = vector.broadcast %cst_231 : f32 to vector<20x1xf32>
    %652 = arith.divf %650, %651 : vector<20x1xf32>
    %653 = vector.broadcast %652 : vector<20x1xf32> to vector<20x32xf32>
    %654 = arith.subf %648, %653 : vector<20x32xf32>
    %655 = arith.mulf %654, %654 : vector<20x32xf32>
    %cst_232 = arith.constant dense<0.000000e+00> : vector<20xf32>
    %656 = vector.multi_reduction <add>, %655, %cst_232 [1] : vector<20x32xf32> to vector<20xf32>
    %657 = vector.shape_cast %656 : vector<20xf32> to vector<20x1xf32>
    %cst_233 = arith.constant 3.200000e+01 : f32
    %658 = vector.broadcast %cst_233 : f32 to vector<20x1xf32>
    %659 = arith.divf %657, %658 : vector<20x1xf32>
    %660 = vector.broadcast %652 : vector<20x1xf32> to vector<20x32xf32>
    %661 = arith.subf %648, %660 : vector<20x32xf32>
    %cst_234 = arith.constant 9.99999974E-6 : f32
    %662 = vector.broadcast %cst_234 : f32 to vector<20x1xf32>
    %663 = arith.addf %659, %662 : vector<20x1xf32>
    %664 = math.rsqrt %663 : vector<20x1xf32>
    %665 = vector.broadcast %664 : vector<20x1xf32> to vector<20x32xf32>
    %666 = arith.mulf %661, %665 : vector<20x32xf32>
    %c0_235 = arith.constant 0 : index
    %c0_236 = arith.constant 0 : index
    %667 = vector.load %arg26[%c0_235, %c0_236] : memref<1x32xf32, #tpu.memory_space<vmem>>, vector<1x32xf32>
    %668 = vector.broadcast %667 : vector<1x32xf32> to vector<20x32xf32>
    %669 = arith.mulf %666, %668 : vector<20x32xf32>
    %c0_237 = arith.constant 0 : index
    %c0_238 = arith.constant 0 : index
    %670 = vector.load %arg25[%c0_237, %c0_238] : memref<1x32xf32, #tpu.memory_space<vmem>>, vector<1x32xf32>
    %671 = vector.broadcast %670 : vector<1x32xf32> to vector<20x32xf32>
    %672 = arith.addf %669, %671 : vector<20x32xf32>
    %673 = arith.addf %672, %4 : vector<20x32xf32>
    %c0_239 = arith.constant 0 : index
    %c0_240 = arith.constant 0 : index
    %674 = vector.load %arg48[%c0_239, %c0_240] : memref<32x96xbf16, #tpu.memory_space<vmem>>, vector<32x96xbf16>
    %c0_241 = arith.constant 0 : index
    %c0_242 = arith.constant 0 : index
    %675 = vector.load %arg46[%c0_241, %c0_242] : memref<1x96xf32, #tpu.memory_space<vmem>>, vector<1x96xf32>
    %676 = vector.extract_strided_slice %674 {offsets = [0, 0], sizes = [32, 64], strides = [1, 1]} : vector<32x96xbf16> to vector<32x64xbf16>
    %677 = arith.truncf %673 : vector<20x32xf32> to vector<20x32xbf16>
    %cst_243 = arith.constant dense<0.000000e+00> : vector<20x64xf32>
    %678 = tpu.matmul %677, %676, %cst_243 {dimension_numbers = #tpu.dot_dimension_numbers<[1], [0], [0], [1], [0, 0, 1, 1], [], []>} : vector<20x32xbf16>, vector<32x64xbf16>, vector<20x64xf32> -> vector<20x64xf32>
    %679 = vector.extract_strided_slice %675 {offsets = [0, 0], sizes = [1, 64], strides = [1, 1]} : vector<1x96xf32> to vector<1x64xf32>
    %680 = vector.broadcast %679 : vector<1x64xf32> to vector<20x64xf32>
    %681 = arith.addf %678, %680 : vector<20x64xf32>
    %682 = vector.extract_strided_slice %681 {offsets = [0, 0], sizes = [20, 32], strides = [1, 1]} : vector<20x64xf32> to vector<20x32xf32>
    %683 = vector.extract_strided_slice %681 {offsets = [0, 32], sizes = [20, 32], strides = [1, 1]} : vector<20x64xf32> to vector<20x32xf32>
    %684 = vector.extract_strided_slice %674 {offsets = [0, 64], sizes = [32, 32], strides = [1, 1]} : vector<32x96xbf16> to vector<32x32xbf16>
    %685 = arith.truncf %672 : vector<20x32xf32> to vector<20x32xbf16>
    %cst_244 = arith.constant dense<0.000000e+00> : vector<20x32xf32>
    %686 = tpu.matmul %685, %684, %cst_244 {dimension_numbers = #tpu.dot_dimension_numbers<[1], [0], [0], [1], [0, 0, 1, 1], [], []>} : vector<20x32xbf16>, vector<32x32xbf16>, vector<20x32xf32> -> vector<20x32xf32>
    %687 = vector.extract_strided_slice %675 {offsets = [0, 64], sizes = [1, 32], strides = [1, 1]} : vector<1x96xf32> to vector<1x32xf32>
    %688 = vector.broadcast %687 : vector<1x32xf32> to vector<20x32xf32>
    %689 = arith.addf %686, %688 : vector<20x32xf32>
    %690 = vector.extract_strided_slice %682 {offsets = [0, 0], sizes = [20, 8], strides = [1, 1]} : vector<20x32xf32> to vector<20x8xf32>
    %691 = arith.truncf %690 : vector<20x8xf32> to vector<20x8xbf16>
    %692 = vector.extract_strided_slice %683 {offsets = [0, 0], sizes = [20, 8], strides = [1, 1]} : vector<20x32xf32> to vector<20x8xf32>
    %693 = arith.truncf %692 : vector<20x8xf32> to vector<20x8xbf16>
    %694 = vector.extract_strided_slice %689 {offsets = [0, 0], sizes = [20, 8], strides = [1, 1]} : vector<20x32xf32> to vector<20x8xf32>
    %695 = arith.truncf %694 : vector<20x8xf32> to vector<20x8xbf16>
    %cst_245 = arith.constant dense<0.000000e+00> : vector<20x20xf32>
    %696 = tpu.matmul %691, %693, %cst_245 {dimension_numbers = #tpu.dot_dimension_numbers<[1], [1], [0], [0], [0, 0, 1, 0], [], []>} : vector<20x8xbf16>, vector<20x8xbf16>, vector<20x20xf32> -> vector<20x20xf32>
    %cst_246 = arith.constant 0.353553385 : f32
    %697 = vector.broadcast %cst_246 : f32 to vector<20x20xf32>
    %698 = arith.mulf %696, %697 : vector<20x20xf32>
    %cst_247 = arith.constant dense<0xFF800000> : vector<20xf32>
    %699 = vector.multi_reduction <maximumf>, %698, %cst_247 [1] : vector<20x20xf32> to vector<20xf32>
    %700 = vector.shape_cast %699 : vector<20xf32> to vector<20x1xf32>
    %701 = vector.broadcast %700 : vector<20x1xf32> to vector<20x20xf32>
    %702 = arith.subf %698, %701 : vector<20x20xf32>
    %703 = math.exp %702 : vector<20x20xf32>
    %cst_248 = arith.constant dense<0.000000e+00> : vector<20xf32>
    %704 = vector.multi_reduction <add>, %703, %cst_248 [1] : vector<20x20xf32> to vector<20xf32>
    %705 = vector.shape_cast %704 : vector<20xf32> to vector<20x1xf32>
    %706 = tpu.reciprocal %705 {approx = true} : vector<20x1xf32> -> vector<20x1xf32>
    %707 = vector.broadcast %706 : vector<20x1xf32> to vector<20x20xf32>
    %708 = arith.mulf %703, %707 : vector<20x20xf32>
    %709 = arith.truncf %708 : vector<20x20xf32> to vector<20x20xbf16>
    %cst_249 = arith.constant dense<0.000000e+00> : vector<20x8xf32>
    %710 = tpu.matmul %709, %695, %cst_249 {dimension_numbers = #tpu.dot_dimension_numbers<[1], [0], [0], [1], [0, 0, 1, 1], [], []>} : vector<20x20xbf16>, vector<20x8xbf16>, vector<20x8xf32> -> vector<20x8xf32>
    %711 = vector.extract_strided_slice %682 {offsets = [0, 8], sizes = [20, 8], strides = [1, 1]} : vector<20x32xf32> to vector<20x8xf32>
    %712 = arith.truncf %711 : vector<20x8xf32> to vector<20x8xbf16>
    %713 = vector.extract_strided_slice %683 {offsets = [0, 8], sizes = [20, 8], strides = [1, 1]} : vector<20x32xf32> to vector<20x8xf32>
    %714 = arith.truncf %713 : vector<20x8xf32> to vector<20x8xbf16>
    %715 = vector.extract_strided_slice %689 {offsets = [0, 8], sizes = [20, 8], strides = [1, 1]} : vector<20x32xf32> to vector<20x8xf32>
    %716 = arith.truncf %715 : vector<20x8xf32> to vector<20x8xbf16>
    %cst_250 = arith.constant dense<0.000000e+00> : vector<20x20xf32>
    %717 = tpu.matmul %712, %714, %cst_250 {dimension_numbers = #tpu.dot_dimension_numbers<[1], [1], [0], [0], [0, 0, 1, 0], [], []>} : vector<20x8xbf16>, vector<20x8xbf16>, vector<20x20xf32> -> vector<20x20xf32>
    %cst_251 = arith.constant 0.353553385 : f32
    %718 = vector.broadcast %cst_251 : f32 to vector<20x20xf32>
    %719 = arith.mulf %717, %718 : vector<20x20xf32>
    %cst_252 = arith.constant dense<0xFF800000> : vector<20xf32>
    %720 = vector.multi_reduction <maximumf>, %719, %cst_252 [1] : vector<20x20xf32> to vector<20xf32>
    %721 = vector.shape_cast %720 : vector<20xf32> to vector<20x1xf32>
    %722 = vector.broadcast %721 : vector<20x1xf32> to vector<20x20xf32>
    %723 = arith.subf %719, %722 : vector<20x20xf32>
    %724 = math.exp %723 : vector<20x20xf32>
    %cst_253 = arith.constant dense<0.000000e+00> : vector<20xf32>
    %725 = vector.multi_reduction <add>, %724, %cst_253 [1] : vector<20x20xf32> to vector<20xf32>
    %726 = vector.shape_cast %725 : vector<20xf32> to vector<20x1xf32>
    %727 = tpu.reciprocal %726 {approx = true} : vector<20x1xf32> -> vector<20x1xf32>
    %728 = vector.broadcast %727 : vector<20x1xf32> to vector<20x20xf32>
    %729 = arith.mulf %724, %728 : vector<20x20xf32>
    %730 = arith.truncf %729 : vector<20x20xf32> to vector<20x20xbf16>
    %cst_254 = arith.constant dense<0.000000e+00> : vector<20x8xf32>
    %731 = tpu.matmul %730, %716, %cst_254 {dimension_numbers = #tpu.dot_dimension_numbers<[1], [0], [0], [1], [0, 0, 1, 1], [], []>} : vector<20x20xbf16>, vector<20x8xbf16>, vector<20x8xf32> -> vector<20x8xf32>
    %732 = vector.extract_strided_slice %682 {offsets = [0, 16], sizes = [20, 8], strides = [1, 1]} : vector<20x32xf32> to vector<20x8xf32>
    %733 = arith.truncf %732 : vector<20x8xf32> to vector<20x8xbf16>
    %734 = vector.extract_strided_slice %683 {offsets = [0, 16], sizes = [20, 8], strides = [1, 1]} : vector<20x32xf32> to vector<20x8xf32>
    %735 = arith.truncf %734 : vector<20x8xf32> to vector<20x8xbf16>
    %736 = vector.extract_strided_slice %689 {offsets = [0, 16], sizes = [20, 8], strides = [1, 1]} : vector<20x32xf32> to vector<20x8xf32>
    %737 = arith.truncf %736 : vector<20x8xf32> to vector<20x8xbf16>
    %cst_255 = arith.constant dense<0.000000e+00> : vector<20x20xf32>
    %738 = tpu.matmul %733, %735, %cst_255 {dimension_numbers = #tpu.dot_dimension_numbers<[1], [1], [0], [0], [0, 0, 1, 0], [], []>} : vector<20x8xbf16>, vector<20x8xbf16>, vector<20x20xf32> -> vector<20x20xf32>
    %cst_256 = arith.constant 0.353553385 : f32
    %739 = vector.broadcast %cst_256 : f32 to vector<20x20xf32>
    %740 = arith.mulf %738, %739 : vector<20x20xf32>
    %cst_257 = arith.constant dense<0xFF800000> : vector<20xf32>
    %741 = vector.multi_reduction <maximumf>, %740, %cst_257 [1] : vector<20x20xf32> to vector<20xf32>
    %742 = vector.shape_cast %741 : vector<20xf32> to vector<20x1xf32>
    %743 = vector.broadcast %742 : vector<20x1xf32> to vector<20x20xf32>
    %744 = arith.subf %740, %743 : vector<20x20xf32>
    %745 = math.exp %744 : vector<20x20xf32>
    %cst_258 = arith.constant dense<0.000000e+00> : vector<20xf32>
    %746 = vector.multi_reduction <add>, %745, %cst_258 [1] : vector<20x20xf32> to vector<20xf32>
    %747 = vector.shape_cast %746 : vector<20xf32> to vector<20x1xf32>
    %748 = tpu.reciprocal %747 {approx = true} : vector<20x1xf32> -> vector<20x1xf32>
    %749 = vector.broadcast %748 : vector<20x1xf32> to vector<20x20xf32>
    %750 = arith.mulf %745, %749 : vector<20x20xf32>
    %751 = arith.truncf %750 : vector<20x20xf32> to vector<20x20xbf16>
    %cst_259 = arith.constant dense<0.000000e+00> : vector<20x8xf32>
    %752 = tpu.matmul %751, %737, %cst_259 {dimension_numbers = #tpu.dot_dimension_numbers<[1], [0], [0], [1], [0, 0, 1, 1], [], []>} : vector<20x20xbf16>, vector<20x8xbf16>, vector<20x8xf32> -> vector<20x8xf32>
    %753 = vector.extract_strided_slice %682 {offsets = [0, 24], sizes = [20, 8], strides = [1, 1]} : vector<20x32xf32> to vector<20x8xf32>
    %754 = arith.truncf %753 : vector<20x8xf32> to vector<20x8xbf16>
    %755 = vector.extract_strided_slice %683 {offsets = [0, 24], sizes = [20, 8], strides = [1, 1]} : vector<20x32xf32> to vector<20x8xf32>
    %756 = arith.truncf %755 : vector<20x8xf32> to vector<20x8xbf16>
    %757 = vector.extract_strided_slice %689 {offsets = [0, 24], sizes = [20, 8], strides = [1, 1]} : vector<20x32xf32> to vector<20x8xf32>
    %758 = arith.truncf %757 : vector<20x8xf32> to vector<20x8xbf16>
    %cst_260 = arith.constant dense<0.000000e+00> : vector<20x20xf32>
    %759 = tpu.matmul %754, %756, %cst_260 {dimension_numbers = #tpu.dot_dimension_numbers<[1], [1], [0], [0], [0, 0, 1, 0], [], []>} : vector<20x8xbf16>, vector<20x8xbf16>, vector<20x20xf32> -> vector<20x20xf32>
    %cst_261 = arith.constant 0.353553385 : f32
    %760 = vector.broadcast %cst_261 : f32 to vector<20x20xf32>
    %761 = arith.mulf %759, %760 : vector<20x20xf32>
    %cst_262 = arith.constant dense<0xFF800000> : vector<20xf32>
    %762 = vector.multi_reduction <maximumf>, %761, %cst_262 [1] : vector<20x20xf32> to vector<20xf32>
    %763 = vector.shape_cast %762 : vector<20xf32> to vector<20x1xf32>
    %764 = vector.broadcast %763 : vector<20x1xf32> to vector<20x20xf32>
    %765 = arith.subf %761, %764 : vector<20x20xf32>
    %766 = math.exp %765 : vector<20x20xf32>
    %cst_263 = arith.constant dense<0.000000e+00> : vector<20xf32>
    %767 = vector.multi_reduction <add>, %766, %cst_263 [1] : vector<20x20xf32> to vector<20xf32>
    %768 = vector.shape_cast %767 : vector<20xf32> to vector<20x1xf32>
    %769 = tpu.reciprocal %768 {approx = true} : vector<20x1xf32> -> vector<20x1xf32>
    %770 = vector.broadcast %769 : vector<20x1xf32> to vector<20x20xf32>
    %771 = arith.mulf %766, %770 : vector<20x20xf32>
    %772 = arith.truncf %771 : vector<20x20xf32> to vector<20x20xbf16>
    %cst_264 = arith.constant dense<0.000000e+00> : vector<20x8xf32>
    %773 = tpu.matmul %772, %758, %cst_264 {dimension_numbers = #tpu.dot_dimension_numbers<[1], [0], [0], [1], [0, 0, 1, 1], [], []>} : vector<20x20xbf16>, vector<20x8xbf16>, vector<20x8xf32> -> vector<20x8xf32>
    %774 = tpu.concatenate %710, %731, %752, %773 in 1 : vector<20x8xf32>, vector<20x8xf32>, vector<20x8xf32>, vector<20x8xf32> -> vector<20x32xf32>
    %c0_265 = arith.constant 0 : index
    %c0_266 = arith.constant 0 : index
    %775 = vector.load %arg47[%c0_265, %c0_266] : memref<32x32xbf16, #tpu.memory_space<vmem>>, vector<32x32xbf16>
    %776 = arith.truncf %774 : vector<20x32xf32> to vector<20x32xbf16>
    %cst_267 = arith.constant dense<0.000000e+00> : vector<20x32xf32>
    %777 = tpu.matmul %776, %775, %cst_267 {dimension_numbers = #tpu.dot_dimension_numbers<[1], [0], [0], [1], [0, 0, 1, 1], [], []>} : vector<20x32xbf16>, vector<32x32xbf16>, vector<20x32xf32> -> vector<20x32xf32>
    %c0_268 = arith.constant 0 : index
    %c0_269 = arith.constant 0 : index
    %778 = vector.load %arg45[%c0_268, %c0_269] : memref<1x32xf32, #tpu.memory_space<vmem>>, vector<1x32xf32>
    %779 = vector.broadcast %778 : vector<1x32xf32> to vector<20x32xf32>
    %780 = arith.addf %777, %779 : vector<20x32xf32>
    %781 = arith.addf %672, %780 : vector<20x32xf32>
    %cst_270 = arith.constant dense<0.000000e+00> : vector<20xf32>
    %782 = vector.multi_reduction <add>, %781, %cst_270 [1] : vector<20x32xf32> to vector<20xf32>
    %783 = vector.shape_cast %782 : vector<20xf32> to vector<20x1xf32>
    %cst_271 = arith.constant 3.200000e+01 : f32
    %784 = vector.broadcast %cst_271 : f32 to vector<20x1xf32>
    %785 = arith.divf %783, %784 : vector<20x1xf32>
    %786 = vector.broadcast %785 : vector<20x1xf32> to vector<20x32xf32>
    %787 = arith.subf %781, %786 : vector<20x32xf32>
    %788 = arith.mulf %787, %787 : vector<20x32xf32>
    %cst_272 = arith.constant dense<0.000000e+00> : vector<20xf32>
    %789 = vector.multi_reduction <add>, %788, %cst_272 [1] : vector<20x32xf32> to vector<20xf32>
    %790 = vector.shape_cast %789 : vector<20xf32> to vector<20x1xf32>
    %cst_273 = arith.constant 3.200000e+01 : f32
    %791 = vector.broadcast %cst_273 : f32 to vector<20x1xf32>
    %792 = arith.divf %790, %791 : vector<20x1xf32>
    %793 = vector.broadcast %785 : vector<20x1xf32> to vector<20x32xf32>
    %794 = arith.subf %781, %793 : vector<20x32xf32>
    %cst_274 = arith.constant 9.99999974E-6 : f32
    %795 = vector.broadcast %cst_274 : f32 to vector<20x1xf32>
    %796 = arith.addf %792, %795 : vector<20x1xf32>
    %797 = math.rsqrt %796 : vector<20x1xf32>
    %798 = vector.broadcast %797 : vector<20x1xf32> to vector<20x32xf32>
    %799 = arith.mulf %794, %798 : vector<20x32xf32>
    %c0_275 = arith.constant 0 : index
    %c0_276 = arith.constant 0 : index
    %800 = vector.load %arg40[%c0_275, %c0_276] : memref<1x32xf32, #tpu.memory_space<vmem>>, vector<1x32xf32>
    %801 = vector.broadcast %800 : vector<1x32xf32> to vector<20x32xf32>
    %802 = arith.mulf %799, %801 : vector<20x32xf32>
    %c0_277 = arith.constant 0 : index
    %c0_278 = arith.constant 0 : index
    %803 = vector.load %arg39[%c0_277, %c0_278] : memref<1x32xf32, #tpu.memory_space<vmem>>, vector<1x32xf32>
    %804 = vector.broadcast %803 : vector<1x32xf32> to vector<20x32xf32>
    %805 = arith.addf %802, %804 : vector<20x32xf32>
    %806 = arith.addf %805, %4 : vector<20x32xf32>
    %c0_279 = arith.constant 0 : index
    %c0_280 = arith.constant 0 : index
    %807 = vector.load %arg34[%c0_279, %c0_280] : memref<32x96xbf16, #tpu.memory_space<vmem>>, vector<32x96xbf16>
    %c0_281 = arith.constant 0 : index
    %c0_282 = arith.constant 0 : index
    %808 = vector.load %arg32[%c0_281, %c0_282] : memref<1x96xf32, #tpu.memory_space<vmem>>, vector<1x96xf32>
    %809 = vector.extract_strided_slice %807 {offsets = [0, 0], sizes = [32, 32], strides = [1, 1]} : vector<32x96xbf16> to vector<32x32xbf16>
    %810 = arith.truncf %806 : vector<20x32xf32> to vector<20x32xbf16>
    %cst_283 = arith.constant dense<0.000000e+00> : vector<20x32xf32>
    %811 = tpu.matmul %810, %809, %cst_283 {dimension_numbers = #tpu.dot_dimension_numbers<[1], [0], [0], [1], [0, 0, 1, 1], [], []>} : vector<20x32xbf16>, vector<32x32xbf16>, vector<20x32xf32> -> vector<20x32xf32>
    %812 = vector.extract_strided_slice %808 {offsets = [0, 0], sizes = [1, 32], strides = [1, 1]} : vector<1x96xf32> to vector<1x32xf32>
    %813 = vector.broadcast %812 : vector<1x32xf32> to vector<20x32xf32>
    %814 = arith.addf %811, %813 : vector<20x32xf32>
    %815 = vector.extract_strided_slice %807 {offsets = [0, 32], sizes = [32, 32], strides = [1, 1]} : vector<32x96xbf16> to vector<32x32xbf16>
    %816 = arith.truncf %362 : vector<16x32xf32> to vector<16x32xbf16>
    %cst_284 = arith.constant dense<0.000000e+00> : vector<16x32xf32>
    %817 = tpu.matmul %816, %815, %cst_284 {dimension_numbers = #tpu.dot_dimension_numbers<[1], [0], [0], [1], [0, 0, 1, 1], [], []>} : vector<16x32xbf16>, vector<32x32xbf16>, vector<16x32xf32> -> vector<16x32xf32>
    %818 = vector.extract_strided_slice %808 {offsets = [0, 32], sizes = [1, 32], strides = [1, 1]} : vector<1x96xf32> to vector<1x32xf32>
    %819 = vector.broadcast %818 : vector<1x32xf32> to vector<16x32xf32>
    %820 = arith.addf %817, %819 : vector<16x32xf32>
    %821 = vector.extract_strided_slice %807 {offsets = [0, 64], sizes = [32, 32], strides = [1, 1]} : vector<32x96xbf16> to vector<32x32xbf16>
    %822 = arith.truncf %361 : vector<16x32xf32> to vector<16x32xbf16>
    %cst_285 = arith.constant dense<0.000000e+00> : vector<16x32xf32>
    %823 = tpu.matmul %822, %821, %cst_285 {dimension_numbers = #tpu.dot_dimension_numbers<[1], [0], [0], [1], [0, 0, 1, 1], [], []>} : vector<16x32xbf16>, vector<32x32xbf16>, vector<16x32xf32> -> vector<16x32xf32>
    %824 = vector.extract_strided_slice %808 {offsets = [0, 64], sizes = [1, 32], strides = [1, 1]} : vector<1x96xf32> to vector<1x32xf32>
    %825 = vector.broadcast %824 : vector<1x32xf32> to vector<16x32xf32>
    %826 = arith.addf %823, %825 : vector<16x32xf32>
    %827 = vector.extract_strided_slice %814 {offsets = [0, 0], sizes = [20, 8], strides = [1, 1]} : vector<20x32xf32> to vector<20x8xf32>
    %828 = arith.truncf %827 : vector<20x8xf32> to vector<20x8xbf16>
    %829 = vector.extract_strided_slice %820 {offsets = [0, 0], sizes = [16, 8], strides = [1, 1]} : vector<16x32xf32> to vector<16x8xf32>
    %830 = arith.truncf %829 : vector<16x8xf32> to vector<16x8xbf16>
    %831 = vector.extract_strided_slice %826 {offsets = [0, 0], sizes = [16, 8], strides = [1, 1]} : vector<16x32xf32> to vector<16x8xf32>
    %832 = arith.truncf %831 : vector<16x8xf32> to vector<16x8xbf16>
    %cst_286 = arith.constant dense<0.000000e+00> : vector<20x16xf32>
    %833 = tpu.matmul %828, %830, %cst_286 {dimension_numbers = #tpu.dot_dimension_numbers<[1], [1], [0], [0], [0, 0, 1, 0], [], []>} : vector<20x8xbf16>, vector<16x8xbf16>, vector<20x16xf32> -> vector<20x16xf32>
    %cst_287 = arith.constant 0.353553385 : f32
    %834 = vector.broadcast %cst_287 : f32 to vector<20x16xf32>
    %835 = arith.mulf %833, %834 : vector<20x16xf32>
    %cst_288 = arith.constant dense<0xFF800000> : vector<20xf32>
    %836 = vector.multi_reduction <maximumf>, %835, %cst_288 [1] : vector<20x16xf32> to vector<20xf32>
    %837 = vector.shape_cast %836 : vector<20xf32> to vector<20x1xf32>
    %838 = vector.broadcast %837 : vector<20x1xf32> to vector<20x16xf32>
    %839 = arith.subf %835, %838 : vector<20x16xf32>
    %840 = math.exp %839 : vector<20x16xf32>
    %cst_289 = arith.constant dense<0.000000e+00> : vector<20xf32>
    %841 = vector.multi_reduction <add>, %840, %cst_289 [1] : vector<20x16xf32> to vector<20xf32>
    %842 = vector.shape_cast %841 : vector<20xf32> to vector<20x1xf32>
    %843 = tpu.reciprocal %842 {approx = true} : vector<20x1xf32> -> vector<20x1xf32>
    %844 = vector.broadcast %843 : vector<20x1xf32> to vector<20x16xf32>
    %845 = arith.mulf %840, %844 : vector<20x16xf32>
    %846 = arith.truncf %845 : vector<20x16xf32> to vector<20x16xbf16>
    %cst_290 = arith.constant dense<0.000000e+00> : vector<20x8xf32>
    %847 = tpu.matmul %846, %832, %cst_290 {dimension_numbers = #tpu.dot_dimension_numbers<[1], [0], [0], [1], [0, 0, 1, 1], [], []>} : vector<20x16xbf16>, vector<16x8xbf16>, vector<20x8xf32> -> vector<20x8xf32>
    %848 = vector.extract_strided_slice %814 {offsets = [0, 8], sizes = [20, 8], strides = [1, 1]} : vector<20x32xf32> to vector<20x8xf32>
    %849 = arith.truncf %848 : vector<20x8xf32> to vector<20x8xbf16>
    %850 = vector.extract_strided_slice %820 {offsets = [0, 8], sizes = [16, 8], strides = [1, 1]} : vector<16x32xf32> to vector<16x8xf32>
    %851 = arith.truncf %850 : vector<16x8xf32> to vector<16x8xbf16>
    %852 = vector.extract_strided_slice %826 {offsets = [0, 8], sizes = [16, 8], strides = [1, 1]} : vector<16x32xf32> to vector<16x8xf32>
    %853 = arith.truncf %852 : vector<16x8xf32> to vector<16x8xbf16>
    %cst_291 = arith.constant dense<0.000000e+00> : vector<20x16xf32>
    %854 = tpu.matmul %849, %851, %cst_291 {dimension_numbers = #tpu.dot_dimension_numbers<[1], [1], [0], [0], [0, 0, 1, 0], [], []>} : vector<20x8xbf16>, vector<16x8xbf16>, vector<20x16xf32> -> vector<20x16xf32>
    %cst_292 = arith.constant 0.353553385 : f32
    %855 = vector.broadcast %cst_292 : f32 to vector<20x16xf32>
    %856 = arith.mulf %854, %855 : vector<20x16xf32>
    %cst_293 = arith.constant dense<0xFF800000> : vector<20xf32>
    %857 = vector.multi_reduction <maximumf>, %856, %cst_293 [1] : vector<20x16xf32> to vector<20xf32>
    %858 = vector.shape_cast %857 : vector<20xf32> to vector<20x1xf32>
    %859 = vector.broadcast %858 : vector<20x1xf32> to vector<20x16xf32>
    %860 = arith.subf %856, %859 : vector<20x16xf32>
    %861 = math.exp %860 : vector<20x16xf32>
    %cst_294 = arith.constant dense<0.000000e+00> : vector<20xf32>
    %862 = vector.multi_reduction <add>, %861, %cst_294 [1] : vector<20x16xf32> to vector<20xf32>
    %863 = vector.shape_cast %862 : vector<20xf32> to vector<20x1xf32>
    %864 = tpu.reciprocal %863 {approx = true} : vector<20x1xf32> -> vector<20x1xf32>
    %865 = vector.broadcast %864 : vector<20x1xf32> to vector<20x16xf32>
    %866 = arith.mulf %861, %865 : vector<20x16xf32>
    %867 = arith.truncf %866 : vector<20x16xf32> to vector<20x16xbf16>
    %cst_295 = arith.constant dense<0.000000e+00> : vector<20x8xf32>
    %868 = tpu.matmul %867, %853, %cst_295 {dimension_numbers = #tpu.dot_dimension_numbers<[1], [0], [0], [1], [0, 0, 1, 1], [], []>} : vector<20x16xbf16>, vector<16x8xbf16>, vector<20x8xf32> -> vector<20x8xf32>
    %869 = vector.extract_strided_slice %814 {offsets = [0, 16], sizes = [20, 8], strides = [1, 1]} : vector<20x32xf32> to vector<20x8xf32>
    %870 = arith.truncf %869 : vector<20x8xf32> to vector<20x8xbf16>
    %871 = vector.extract_strided_slice %820 {offsets = [0, 16], sizes = [16, 8], strides = [1, 1]} : vector<16x32xf32> to vector<16x8xf32>
    %872 = arith.truncf %871 : vector<16x8xf32> to vector<16x8xbf16>
    %873 = vector.extract_strided_slice %826 {offsets = [0, 16], sizes = [16, 8], strides = [1, 1]} : vector<16x32xf32> to vector<16x8xf32>
    %874 = arith.truncf %873 : vector<16x8xf32> to vector<16x8xbf16>
    %cst_296 = arith.constant dense<0.000000e+00> : vector<20x16xf32>
    %875 = tpu.matmul %870, %872, %cst_296 {dimension_numbers = #tpu.dot_dimension_numbers<[1], [1], [0], [0], [0, 0, 1, 0], [], []>} : vector<20x8xbf16>, vector<16x8xbf16>, vector<20x16xf32> -> vector<20x16xf32>
    %cst_297 = arith.constant 0.353553385 : f32
    %876 = vector.broadcast %cst_297 : f32 to vector<20x16xf32>
    %877 = arith.mulf %875, %876 : vector<20x16xf32>
    %cst_298 = arith.constant dense<0xFF800000> : vector<20xf32>
    %878 = vector.multi_reduction <maximumf>, %877, %cst_298 [1] : vector<20x16xf32> to vector<20xf32>
    %879 = vector.shape_cast %878 : vector<20xf32> to vector<20x1xf32>
    %880 = vector.broadcast %879 : vector<20x1xf32> to vector<20x16xf32>
    %881 = arith.subf %877, %880 : vector<20x16xf32>
    %882 = math.exp %881 : vector<20x16xf32>
    %cst_299 = arith.constant dense<0.000000e+00> : vector<20xf32>
    %883 = vector.multi_reduction <add>, %882, %cst_299 [1] : vector<20x16xf32> to vector<20xf32>
    %884 = vector.shape_cast %883 : vector<20xf32> to vector<20x1xf32>
    %885 = tpu.reciprocal %884 {approx = true} : vector<20x1xf32> -> vector<20x1xf32>
    %886 = vector.broadcast %885 : vector<20x1xf32> to vector<20x16xf32>
    %887 = arith.mulf %882, %886 : vector<20x16xf32>
    %888 = arith.truncf %887 : vector<20x16xf32> to vector<20x16xbf16>
    %cst_300 = arith.constant dense<0.000000e+00> : vector<20x8xf32>
    %889 = tpu.matmul %888, %874, %cst_300 {dimension_numbers = #tpu.dot_dimension_numbers<[1], [0], [0], [1], [0, 0, 1, 1], [], []>} : vector<20x16xbf16>, vector<16x8xbf16>, vector<20x8xf32> -> vector<20x8xf32>
    %890 = vector.extract_strided_slice %814 {offsets = [0, 24], sizes = [20, 8], strides = [1, 1]} : vector<20x32xf32> to vector<20x8xf32>
    %891 = arith.truncf %890 : vector<20x8xf32> to vector<20x8xbf16>
    %892 = vector.extract_strided_slice %820 {offsets = [0, 24], sizes = [16, 8], strides = [1, 1]} : vector<16x32xf32> to vector<16x8xf32>
    %893 = arith.truncf %892 : vector<16x8xf32> to vector<16x8xbf16>
    %894 = vector.extract_strided_slice %826 {offsets = [0, 24], sizes = [16, 8], strides = [1, 1]} : vector<16x32xf32> to vector<16x8xf32>
    %895 = arith.truncf %894 : vector<16x8xf32> to vector<16x8xbf16>
    %cst_301 = arith.constant dense<0.000000e+00> : vector<20x16xf32>
    %896 = tpu.matmul %891, %893, %cst_301 {dimension_numbers = #tpu.dot_dimension_numbers<[1], [1], [0], [0], [0, 0, 1, 0], [], []>} : vector<20x8xbf16>, vector<16x8xbf16>, vector<20x16xf32> -> vector<20x16xf32>
    %cst_302 = arith.constant 0.353553385 : f32
    %897 = vector.broadcast %cst_302 : f32 to vector<20x16xf32>
    %898 = arith.mulf %896, %897 : vector<20x16xf32>
    %cst_303 = arith.constant dense<0xFF800000> : vector<20xf32>
    %899 = vector.multi_reduction <maximumf>, %898, %cst_303 [1] : vector<20x16xf32> to vector<20xf32>
    %900 = vector.shape_cast %899 : vector<20xf32> to vector<20x1xf32>
    %901 = vector.broadcast %900 : vector<20x1xf32> to vector<20x16xf32>
    %902 = arith.subf %898, %901 : vector<20x16xf32>
    %903 = math.exp %902 : vector<20x16xf32>
    %cst_304 = arith.constant dense<0.000000e+00> : vector<20xf32>
    %904 = vector.multi_reduction <add>, %903, %cst_304 [1] : vector<20x16xf32> to vector<20xf32>
    %905 = vector.shape_cast %904 : vector<20xf32> to vector<20x1xf32>
    %906 = tpu.reciprocal %905 {approx = true} : vector<20x1xf32> -> vector<20x1xf32>
    %907 = vector.broadcast %906 : vector<20x1xf32> to vector<20x16xf32>
    %908 = arith.mulf %903, %907 : vector<20x16xf32>
    %909 = arith.truncf %908 : vector<20x16xf32> to vector<20x16xbf16>
    %cst_305 = arith.constant dense<0.000000e+00> : vector<20x8xf32>
    %910 = tpu.matmul %909, %895, %cst_305 {dimension_numbers = #tpu.dot_dimension_numbers<[1], [0], [0], [1], [0, 0, 1, 1], [], []>} : vector<20x16xbf16>, vector<16x8xbf16>, vector<20x8xf32> -> vector<20x8xf32>
    %911 = tpu.concatenate %847, %868, %889, %910 in 1 : vector<20x8xf32>, vector<20x8xf32>, vector<20x8xf32>, vector<20x8xf32> -> vector<20x32xf32>
    %c0_306 = arith.constant 0 : index
    %c0_307 = arith.constant 0 : index
    %912 = vector.load %arg33[%c0_306, %c0_307] : memref<32x32xbf16, #tpu.memory_space<vmem>>, vector<32x32xbf16>
    %913 = arith.truncf %911 : vector<20x32xf32> to vector<20x32xbf16>
    %cst_308 = arith.constant dense<0.000000e+00> : vector<20x32xf32>
    %914 = tpu.matmul %913, %912, %cst_308 {dimension_numbers = #tpu.dot_dimension_numbers<[1], [0], [0], [1], [0, 0, 1, 1], [], []>} : vector<20x32xbf16>, vector<32x32xbf16>, vector<20x32xf32> -> vector<20x32xf32>
    %c0_309 = arith.constant 0 : index
    %c0_310 = arith.constant 0 : index
    %915 = vector.load %arg31[%c0_309, %c0_310] : memref<1x32xf32, #tpu.memory_space<vmem>>, vector<1x32xf32>
    %916 = vector.broadcast %915 : vector<1x32xf32> to vector<20x32xf32>
    %917 = arith.addf %914, %916 : vector<20x32xf32>
    %918 = arith.addf %805, %917 : vector<20x32xf32>
    %cst_311 = arith.constant dense<0.000000e+00> : vector<20xf32>
    %919 = vector.multi_reduction <add>, %918, %cst_311 [1] : vector<20x32xf32> to vector<20xf32>
    %920 = vector.shape_cast %919 : vector<20xf32> to vector<20x1xf32>
    %cst_312 = arith.constant 3.200000e+01 : f32
    %921 = vector.broadcast %cst_312 : f32 to vector<20x1xf32>
    %922 = arith.divf %920, %921 : vector<20x1xf32>
    %923 = vector.broadcast %922 : vector<20x1xf32> to vector<20x32xf32>
    %924 = arith.subf %918, %923 : vector<20x32xf32>
    %925 = arith.mulf %924, %924 : vector<20x32xf32>
    %cst_313 = arith.constant dense<0.000000e+00> : vector<20xf32>
    %926 = vector.multi_reduction <add>, %925, %cst_313 [1] : vector<20x32xf32> to vector<20xf32>
    %927 = vector.shape_cast %926 : vector<20xf32> to vector<20x1xf32>
    %cst_314 = arith.constant 3.200000e+01 : f32
    %928 = vector.broadcast %cst_314 : f32 to vector<20x1xf32>
    %929 = arith.divf %927, %928 : vector<20x1xf32>
    %930 = vector.broadcast %922 : vector<20x1xf32> to vector<20x32xf32>
    %931 = arith.subf %918, %930 : vector<20x32xf32>
    %cst_315 = arith.constant 9.99999974E-6 : f32
    %932 = vector.broadcast %cst_315 : f32 to vector<20x1xf32>
    %933 = arith.addf %929, %932 : vector<20x1xf32>
    %934 = math.rsqrt %933 : vector<20x1xf32>
    %935 = vector.broadcast %934 : vector<20x1xf32> to vector<20x32xf32>
    %936 = arith.mulf %931, %935 : vector<20x32xf32>
    %c0_316 = arith.constant 0 : index
    %c0_317 = arith.constant 0 : index
    %937 = vector.load %arg42[%c0_316, %c0_317] : memref<1x32xf32, #tpu.memory_space<vmem>>, vector<1x32xf32>
    %938 = vector.broadcast %937 : vector<1x32xf32> to vector<20x32xf32>
    %939 = arith.mulf %936, %938 : vector<20x32xf32>
    %c0_318 = arith.constant 0 : index
    %c0_319 = arith.constant 0 : index
    %940 = vector.load %arg41[%c0_318, %c0_319] : memref<1x32xf32, #tpu.memory_space<vmem>>, vector<1x32xf32>
    %941 = vector.broadcast %940 : vector<1x32xf32> to vector<20x32xf32>
    %942 = arith.addf %939, %941 : vector<20x32xf32>
    %c0_320 = arith.constant 0 : index
    %c0_321 = arith.constant 0 : index
    %943 = vector.load %arg36[%c0_320, %c0_321] : memref<32x64xbf16, #tpu.memory_space<vmem>>, vector<32x64xbf16>
    %944 = arith.truncf %942 : vector<20x32xf32> to vector<20x32xbf16>
    %cst_322 = arith.constant dense<0.000000e+00> : vector<20x64xf32>
    %945 = tpu.matmul %944, %943, %cst_322 {dimension_numbers = #tpu.dot_dimension_numbers<[1], [0], [0], [1], [0, 0, 1, 1], [], []>} : vector<20x32xbf16>, vector<32x64xbf16>, vector<20x64xf32> -> vector<20x64xf32>
    %c0_323 = arith.constant 0 : index
    %c0_324 = arith.constant 0 : index
    %946 = vector.load %arg35[%c0_323, %c0_324] : memref<1x64xf32, #tpu.memory_space<vmem>>, vector<1x64xf32>
    %947 = vector.broadcast %946 : vector<1x64xf32> to vector<20x64xf32>
    %948 = arith.addf %945, %947 : vector<20x64xf32>
    %cst_325 = arith.constant 0.000000e+00 : f32
    %949 = vector.broadcast %cst_325 : f32 to vector<20x64xf32>
    %950 = arith.maximumf %948, %949 : vector<20x64xf32>
    %c0_326 = arith.constant 0 : index
    %c0_327 = arith.constant 0 : index
    %951 = vector.load %arg38[%c0_326, %c0_327] : memref<64x32xbf16, #tpu.memory_space<vmem>>, vector<64x32xbf16>
    %952 = arith.truncf %950 : vector<20x64xf32> to vector<20x64xbf16>
    %cst_328 = arith.constant dense<0.000000e+00> : vector<20x32xf32>
    %953 = tpu.matmul %952, %951, %cst_328 {dimension_numbers = #tpu.dot_dimension_numbers<[1], [0], [0], [1], [0, 0, 1, 1], [], []>} : vector<20x64xbf16>, vector<64x32xbf16>, vector<20x32xf32> -> vector<20x32xf32>
    %c0_329 = arith.constant 0 : index
    %c0_330 = arith.constant 0 : index
    %954 = vector.load %arg37[%c0_329, %c0_330] : memref<1x32xf32, #tpu.memory_space<vmem>>, vector<1x32xf32>
    %955 = vector.broadcast %954 : vector<1x32xf32> to vector<20x32xf32>
    %956 = arith.addf %953, %955 : vector<20x32xf32>
    %957 = arith.addf %942, %956 : vector<20x32xf32>
    %cst_331 = arith.constant dense<0.000000e+00> : vector<20xf32>
    %958 = vector.multi_reduction <add>, %957, %cst_331 [1] : vector<20x32xf32> to vector<20xf32>
    %959 = vector.shape_cast %958 : vector<20xf32> to vector<20x1xf32>
    %cst_332 = arith.constant 3.200000e+01 : f32
    %960 = vector.broadcast %cst_332 : f32 to vector<20x1xf32>
    %961 = arith.divf %959, %960 : vector<20x1xf32>
    %962 = vector.broadcast %961 : vector<20x1xf32> to vector<20x32xf32>
    %963 = arith.subf %957, %962 : vector<20x32xf32>
    %964 = arith.mulf %963, %963 : vector<20x32xf32>
    %cst_333 = arith.constant dense<0.000000e+00> : vector<20xf32>
    %965 = vector.multi_reduction <add>, %964, %cst_333 [1] : vector<20x32xf32> to vector<20xf32>
    %966 = vector.shape_cast %965 : vector<20xf32> to vector<20x1xf32>
    %cst_334 = arith.constant 3.200000e+01 : f32
    %967 = vector.broadcast %cst_334 : f32 to vector<20x1xf32>
    %968 = arith.divf %966, %967 : vector<20x1xf32>
    %969 = vector.broadcast %961 : vector<20x1xf32> to vector<20x32xf32>
    %970 = arith.subf %957, %969 : vector<20x32xf32>
    %cst_335 = arith.constant 9.99999974E-6 : f32
    %971 = vector.broadcast %cst_335 : f32 to vector<20x1xf32>
    %972 = arith.addf %968, %971 : vector<20x1xf32>
    %973 = math.rsqrt %972 : vector<20x1xf32>
    %974 = vector.broadcast %973 : vector<20x1xf32> to vector<20x32xf32>
    %975 = arith.mulf %970, %974 : vector<20x32xf32>
    %c0_336 = arith.constant 0 : index
    %c0_337 = arith.constant 0 : index
    %976 = vector.load %arg44[%c0_336, %c0_337] : memref<1x32xf32, #tpu.memory_space<vmem>>, vector<1x32xf32>
    %977 = vector.broadcast %976 : vector<1x32xf32> to vector<20x32xf32>
    %978 = arith.mulf %975, %977 : vector<20x32xf32>
    %c0_338 = arith.constant 0 : index
    %c0_339 = arith.constant 0 : index
    %979 = vector.load %arg43[%c0_338, %c0_339] : memref<1x32xf32, #tpu.memory_space<vmem>>, vector<1x32xf32>
    %980 = vector.broadcast %979 : vector<1x32xf32> to vector<20x32xf32>
    %981 = arith.addf %978, %980 : vector<20x32xf32>
    %cst_340 = arith.constant dense<0.000000e+00> : vector<20xf32>
    %982 = vector.multi_reduction <add>, %981, %cst_340 [1] : vector<20x32xf32> to vector<20xf32>
    %983 = vector.shape_cast %982 : vector<20xf32> to vector<20x1xf32>
    %cst_341 = arith.constant 3.200000e+01 : f32
    %984 = vector.broadcast %cst_341 : f32 to vector<20x1xf32>
    %985 = arith.divf %983, %984 : vector<20x1xf32>
    %986 = vector.broadcast %985 : vector<20x1xf32> to vector<20x32xf32>
    %987 = arith.subf %981, %986 : vector<20x32xf32>
    %988 = arith.mulf %987, %987 : vector<20x32xf32>
    %cst_342 = arith.constant dense<0.000000e+00> : vector<20xf32>
    %989 = vector.multi_reduction <add>, %988, %cst_342 [1] : vector<20x32xf32> to vector<20xf32>
    %990 = vector.shape_cast %989 : vector<20xf32> to vector<20x1xf32>
    %cst_343 = arith.constant 3.200000e+01 : f32
    %991 = vector.broadcast %cst_343 : f32 to vector<20x1xf32>
    %992 = arith.divf %990, %991 : vector<20x1xf32>
    %993 = vector.broadcast %985 : vector<20x1xf32> to vector<20x32xf32>
    %994 = arith.subf %981, %993 : vector<20x32xf32>
    %cst_344 = arith.constant 9.99999974E-6 : f32
    %995 = vector.broadcast %cst_344 : f32 to vector<20x1xf32>
    %996 = arith.addf %992, %995 : vector<20x1xf32>
    %997 = math.rsqrt %996 : vector<20x1xf32>
    %998 = vector.broadcast %997 : vector<20x1xf32> to vector<20x32xf32>
    %999 = arith.mulf %994, %998 : vector<20x32xf32>
    %c0_345 = arith.constant 0 : index
    %c0_346 = arith.constant 0 : index
    %1000 = vector.load %arg50[%c0_345, %c0_346] : memref<1x32xf32, #tpu.memory_space<vmem>>, vector<1x32xf32>
    %1001 = vector.broadcast %1000 : vector<1x32xf32> to vector<20x32xf32>
    %1002 = arith.mulf %999, %1001 : vector<20x32xf32>
    %c0_347 = arith.constant 0 : index
    %c0_348 = arith.constant 0 : index
    %1003 = vector.load %arg49[%c0_347, %c0_348] : memref<1x32xf32, #tpu.memory_space<vmem>>, vector<1x32xf32>
    %1004 = vector.broadcast %1003 : vector<1x32xf32> to vector<20x32xf32>
    %1005 = arith.addf %1002, %1004 : vector<20x32xf32>
    %c0_349 = arith.constant 0 : index
    %c0_350 = arith.constant 0 : index
    %1006 = vector.load %arg12[%c0_349, %c0_350] : memref<32x2xbf16, #tpu.memory_space<vmem>>, vector<32x2xbf16>
    %1007 = arith.truncf %1005 : vector<20x32xf32> to vector<20x32xbf16>
    %cst_351 = arith.constant dense<0.000000e+00> : vector<20x2xf32>
    %1008 = tpu.matmul %1007, %1006, %cst_351 {dimension_numbers = #tpu.dot_dimension_numbers<[1], [0], [0], [1], [0, 0, 1, 1], [], []>} : vector<20x32xbf16>, vector<32x2xbf16>, vector<20x2xf32> -> vector<20x2xf32>
    %c0_352 = arith.constant 0 : index
    %c0_353 = arith.constant 0 : index
    %1009 = vector.load %arg11[%c0_352, %c0_353] : memref<1x2xf32, #tpu.memory_space<vmem>>, vector<1x2xf32>
    %1010 = vector.broadcast %1009 : vector<1x2xf32> to vector<20x2xf32>
    %1011 = arith.addf %1008, %1010 : vector<20x2xf32>
    %c0_354 = arith.constant 0 : index
    %c0_355 = arith.constant 0 : index
    %1012 = vector.load %arg6[%c0_354, %c0_355] : memref<32x32xbf16, #tpu.memory_space<vmem>>, vector<32x32xbf16>
    %1013 = arith.truncf %1005 : vector<20x32xf32> to vector<20x32xbf16>
    %cst_356 = arith.constant dense<0.000000e+00> : vector<20x32xf32>
    %1014 = tpu.matmul %1013, %1012, %cst_356 {dimension_numbers = #tpu.dot_dimension_numbers<[1], [0], [0], [1], [0, 0, 1, 1], [], []>} : vector<20x32xbf16>, vector<32x32xbf16>, vector<20x32xf32> -> vector<20x32xf32>
    %c0_357 = arith.constant 0 : index
    %c0_358 = arith.constant 0 : index
    %1015 = vector.load %arg5[%c0_357, %c0_358] : memref<1x32xf32, #tpu.memory_space<vmem>>, vector<1x32xf32>
    %1016 = vector.broadcast %1015 : vector<1x32xf32> to vector<20x32xf32>
    %1017 = arith.addf %1014, %1016 : vector<20x32xf32>
    %cst_359 = arith.constant 0.000000e+00 : f32
    %1018 = vector.broadcast %cst_359 : f32 to vector<20x32xf32>
    %1019 = arith.maximumf %1017, %1018 : vector<20x32xf32>
    %c0_360 = arith.constant 0 : index
    %c0_361 = arith.constant 0 : index
    %1020 = vector.load %arg8[%c0_360, %c0_361] : memref<32x32xbf16, #tpu.memory_space<vmem>>, vector<32x32xbf16>
    %1021 = arith.truncf %1019 : vector<20x32xf32> to vector<20x32xbf16>
    %cst_362 = arith.constant dense<0.000000e+00> : vector<20x32xf32>
    %1022 = tpu.matmul %1021, %1020, %cst_362 {dimension_numbers = #tpu.dot_dimension_numbers<[1], [0], [0], [1], [0, 0, 1, 1], [], []>} : vector<20x32xbf16>, vector<32x32xbf16>, vector<20x32xf32> -> vector<20x32xf32>
    %c0_363 = arith.constant 0 : index
    %c0_364 = arith.constant 0 : index
    %1023 = vector.load %arg7[%c0_363, %c0_364] : memref<1x32xf32, #tpu.memory_space<vmem>>, vector<1x32xf32>
    %1024 = vector.broadcast %1023 : vector<1x32xf32> to vector<20x32xf32>
    %1025 = arith.addf %1022, %1024 : vector<20x32xf32>
    %cst_365 = arith.constant 0.000000e+00 : f32
    %1026 = vector.broadcast %cst_365 : f32 to vector<20x32xf32>
    %1027 = arith.maximumf %1025, %1026 : vector<20x32xf32>
    %c0_366 = arith.constant 0 : index
    %c0_367 = arith.constant 0 : index
    %1028 = vector.load %arg10[%c0_366, %c0_367] : memref<32x4xbf16, #tpu.memory_space<vmem>>, vector<32x4xbf16>
    %1029 = arith.truncf %1027 : vector<20x32xf32> to vector<20x32xbf16>
    %cst_368 = arith.constant dense<0.000000e+00> : vector<20x4xf32>
    %1030 = tpu.matmul %1029, %1028, %cst_368 {dimension_numbers = #tpu.dot_dimension_numbers<[1], [0], [0], [1], [0, 0, 1, 1], [], []>} : vector<20x32xbf16>, vector<32x4xbf16>, vector<20x4xf32> -> vector<20x4xf32>
    %c0_369 = arith.constant 0 : index
    %c0_370 = arith.constant 0 : index
    %1031 = vector.load %arg9[%c0_369, %c0_370] : memref<1x4xf32, #tpu.memory_space<vmem>>, vector<1x4xf32>
    %1032 = vector.broadcast %1031 : vector<1x4xf32> to vector<20x4xf32>
    %1033 = arith.addf %1030, %1032 : vector<20x4xf32>
    %1034 = arith.negf %1033 : vector<20x4xf32>
    %1035 = math.exp %1034 : vector<20x4xf32>
    %cst_371 = arith.constant 1.000000e+00 : f32
    %1036 = vector.broadcast %cst_371 : f32 to vector<20x4xf32>
    %1037 = arith.addf %1036, %1035 : vector<20x4xf32>
    %1038 = arith.divf %1036, %1037 : vector<20x4xf32>
    %cst_372 = arith.constant 0.000000e+00 : f32
    %1039 = vector.broadcast %cst_372 : f32 to vector<20x122xf32>
    %1040 = tpu.concatenate %1011, %1038, %1039 in 1 : vector<20x2xf32>, vector<20x4xf32>, vector<20x122xf32> -> vector<20x128xf32>
    %c0_373 = arith.constant 0 : index
    %c0_374 = arith.constant 0 : index
    %c0_375 = arith.constant 0 : index
    %1041 = vector.load %arg78[%c0_373, %c0_374, %c0_375] : memref<1x20x128xf32, #tpu.memory_space<vmem>>, vector<1x20x128xf32>
    %1042 = vector.shape_cast %1041 : vector<1x20x128xf32> to vector<20x128xf32>
    %1043 = vector.shape_cast %1040 : vector<20x128xf32> to vector<1x20x128xf32>
    tpu.vector_store %arg78[%c0_373, %c0_374, %c0_375], %1043 {strides = array<i32>} : memref<1x20x128xf32, #tpu.memory_space<vmem>>, vector<1x20x128xf32>,
    return
  }
  func.func @transform_0(%arg0: i32) -> (i32, i32, i32) {
    %c0_i32 = arith.constant 0 : i32
    %c0_i32_0 = arith.constant 0 : i32
    %c0_i32_1 = arith.constant 0 : i32
    return %arg0, %c0_i32, %c0_i32_0 : i32, i32, i32
  }
  func.func @transform_1(%arg0: i32) -> (i32, i32, i32) {
    %c0_i32 = arith.constant 0 : i32
    %c0_i32_0 = arith.constant 0 : i32
    %c0_i32_1 = arith.constant 0 : i32
    %c0_i32_2 = arith.constant 0 : i32
    return %c0_i32, %c0_i32_0, %c0_i32_1 : i32, i32, i32
  }
  func.func @transform_2(%arg0: i32) -> (i32, i32) {
    %c0_i32 = arith.constant 0 : i32
    %c0_i32_0 = arith.constant 0 : i32
    %c0_i32_1 = arith.constant 0 : i32
    return %c0_i32, %c0_i32_0 : i32, i32
  }
  func.func @transform_3(%arg0: i32) -> (i32, i32) {
    %c0_i32 = arith.constant 0 : i32
    %c0_i32_0 = arith.constant 0 : i32
    %c0_i32_1 = arith.constant 0 : i32
    return %c0_i32, %c0_i32_0 : i32, i32
  }
  func.func @transform_4(%arg0: i32) -> (i32, i32) {
    %c0_i32 = arith.constant 0 : i32
    %c0_i32_0 = arith.constant 0 : i32
    %c0_i32_1 = arith.constant 0 : i32
    return %c0_i32, %c0_i32_0 : i32, i32
  }
  func.func @transform_5(%arg0: i32) -> (i32, i32) {
    %c0_i32 = arith.constant 0 : i32
    %c0_i32_0 = arith.constant 0 : i32
    %c0_i32_1 = arith.constant 0 : i32
    return %c0_i32, %c0_i32_0 : i32, i32
  }
  func.func @transform_6(%arg0: i32) -> (i32, i32) {
    %c0_i32 = arith.constant 0 : i32
    %c0_i32_0 = arith.constant 0 : i32
    %c0_i32_1 = arith.constant 0 : i32
    return %c0_i32, %c0_i32_0 : i32, i32
  }
  func.func @transform_7(%arg0: i32) -> (i32, i32) {
    %c0_i32 = arith.constant 0 : i32
    %c0_i32_0 = arith.constant 0 : i32
    %c0_i32_1 = arith.constant 0 : i32
    return %c0_i32, %c0_i32_0 : i32, i32
  }
  func.func @transform_8(%arg0: i32) -> (i32, i32) {
    %c0_i32 = arith.constant 0 : i32
    %c0_i32_0 = arith.constant 0 : i32
    %c0_i32_1 = arith.constant 0 : i32
    return %c0_i32, %c0_i32_0 : i32, i32
  }
  func.func @transform_9(%arg0: i32) -> (i32, i32) {
    %c0_i32 = arith.constant 0 : i32
    %c0_i32_0 = arith.constant 0 : i32
    %c0_i32_1 = arith.constant 0 : i32
    return %c0_i32, %c0_i32_0 : i32, i32
  }
  func.func @transform_10(%arg0: i32) -> (i32, i32) {
    %c0_i32 = arith.constant 0 : i32
    %c0_i32_0 = arith.constant 0 : i32
    %c0_i32_1 = arith.constant 0 : i32
    return %c0_i32, %c0_i32_0 : i32, i32
  }
  func.func @transform_11(%arg0: i32) -> (i32, i32) {
    %c0_i32 = arith.constant 0 : i32
    %c0_i32_0 = arith.constant 0 : i32
    %c0_i32_1 = arith.constant 0 : i32
    return %c0_i32, %c0_i32_0 : i32, i32
  }
  func.func @transform_12(%arg0: i32) -> (i32, i32) {
    %c0_i32 = arith.constant 0 : i32
    %c0_i32_0 = arith.constant 0 : i32
    %c0_i32_1 = arith.constant 0 : i32
    return %c0_i32, %c0_i32_0 : i32, i32
  }
  func.func @transform_13(%arg0: i32) -> (i32, i32) {
    %c0_i32 = arith.constant 0 : i32
    %c0_i32_0 = arith.constant 0 : i32
    %c0_i32_1 = arith.constant 0 : i32
    return %c0_i32, %c0_i32_0 : i32, i32
  }
  func.func @transform_14(%arg0: i32) -> (i32, i32) {
    %c0_i32 = arith.constant 0 : i32
    %c0_i32_0 = arith.constant 0 : i32
    %c0_i32_1 = arith.constant 0 : i32
    return %c0_i32, %c0_i32_0 : i32, i32
  }
  func.func @transform_15(%arg0: i32) -> (i32, i32) {
    %c0_i32 = arith.constant 0 : i32
    %c0_i32_0 = arith.constant 0 : i32
    %c0_i32_1 = arith.constant 0 : i32
    return %c0_i32, %c0_i32_0 : i32, i32
  }
  func.func @transform_16(%arg0: i32) -> (i32, i32) {
    %c0_i32 = arith.constant 0 : i32
    %c0_i32_0 = arith.constant 0 : i32
    %c0_i32_1 = arith.constant 0 : i32
    return %c0_i32, %c0_i32_0 : i32, i32
  }
  func.func @transform_17(%arg0: i32) -> (i32, i32) {
    %c0_i32 = arith.constant 0 : i32
    %c0_i32_0 = arith.constant 0 : i32
    %c0_i32_1 = arith.constant 0 : i32
    return %c0_i32, %c0_i32_0 : i32, i32
  }
  func.func @transform_18(%arg0: i32) -> (i32, i32) {
    %c0_i32 = arith.constant 0 : i32
    %c0_i32_0 = arith.constant 0 : i32
    %c0_i32_1 = arith.constant 0 : i32
    return %c0_i32, %c0_i32_0 : i32, i32
  }
  func.func @transform_19(%arg0: i32) -> (i32, i32) {
    %c0_i32 = arith.constant 0 : i32
    %c0_i32_0 = arith.constant 0 : i32
    %c0_i32_1 = arith.constant 0 : i32
    return %c0_i32, %c0_i32_0 : i32, i32
  }
  func.func @transform_20(%arg0: i32) -> (i32, i32) {
    %c0_i32 = arith.constant 0 : i32
    %c0_i32_0 = arith.constant 0 : i32
    %c0_i32_1 = arith.constant 0 : i32
    return %c0_i32, %c0_i32_0 : i32, i32
  }
  func.func @transform_21(%arg0: i32) -> (i32, i32) {
    %c0_i32 = arith.constant 0 : i32
    %c0_i32_0 = arith.constant 0 : i32
    %c0_i32_1 = arith.constant 0 : i32
    return %c0_i32, %c0_i32_0 : i32, i32
  }
  func.func @transform_22(%arg0: i32) -> (i32, i32) {
    %c0_i32 = arith.constant 0 : i32
    %c0_i32_0 = arith.constant 0 : i32
    %c0_i32_1 = arith.constant 0 : i32
    return %c0_i32, %c0_i32_0 : i32, i32
  }
  func.func @transform_23(%arg0: i32) -> (i32, i32) {
    %c0_i32 = arith.constant 0 : i32
    %c0_i32_0 = arith.constant 0 : i32
    %c0_i32_1 = arith.constant 0 : i32
    return %c0_i32, %c0_i32_0 : i32, i32
  }
  func.func @transform_24(%arg0: i32) -> (i32, i32) {
    %c0_i32 = arith.constant 0 : i32
    %c0_i32_0 = arith.constant 0 : i32
    %c0_i32_1 = arith.constant 0 : i32
    return %c0_i32, %c0_i32_0 : i32, i32
  }
  func.func @transform_25(%arg0: i32) -> (i32, i32) {
    %c0_i32 = arith.constant 0 : i32
    %c0_i32_0 = arith.constant 0 : i32
    %c0_i32_1 = arith.constant 0 : i32
    return %c0_i32, %c0_i32_0 : i32, i32
  }
  func.func @transform_26(%arg0: i32) -> (i32, i32) {
    %c0_i32 = arith.constant 0 : i32
    %c0_i32_0 = arith.constant 0 : i32
    %c0_i32_1 = arith.constant 0 : i32
    return %c0_i32, %c0_i32_0 : i32, i32
  }
  func.func @transform_27(%arg0: i32) -> (i32, i32) {
    %c0_i32 = arith.constant 0 : i32
    %c0_i32_0 = arith.constant 0 : i32
    %c0_i32_1 = arith.constant 0 : i32
    return %c0_i32, %c0_i32_0 : i32, i32
  }
  func.func @transform_28(%arg0: i32) -> (i32, i32) {
    %c0_i32 = arith.constant 0 : i32
    %c0_i32_0 = arith.constant 0 : i32
    %c0_i32_1 = arith.constant 0 : i32
    return %c0_i32, %c0_i32_0 : i32, i32
  }
  func.func @transform_29(%arg0: i32) -> (i32, i32) {
    %c0_i32 = arith.constant 0 : i32
    %c0_i32_0 = arith.constant 0 : i32
    %c0_i32_1 = arith.constant 0 : i32
    return %c0_i32, %c0_i32_0 : i32, i32
  }
  func.func @transform_30(%arg0: i32) -> (i32, i32) {
    %c0_i32 = arith.constant 0 : i32
    %c0_i32_0 = arith.constant 0 : i32
    %c0_i32_1 = arith.constant 0 : i32
    return %c0_i32, %c0_i32_0 : i32, i32
  }
  func.func @transform_31(%arg0: i32) -> (i32, i32) {
    %c0_i32 = arith.constant 0 : i32
    %c0_i32_0 = arith.constant 0 : i32
    %c0_i32_1 = arith.constant 0 : i32
    return %c0_i32, %c0_i32_0 : i32, i32
  }
  func.func @transform_32(%arg0: i32) -> (i32, i32) {
    %c0_i32 = arith.constant 0 : i32
    %c0_i32_0 = arith.constant 0 : i32
    %c0_i32_1 = arith.constant 0 : i32
    return %c0_i32, %c0_i32_0 : i32, i32
  }
  func.func @transform_33(%arg0: i32) -> (i32, i32) {
    %c0_i32 = arith.constant 0 : i32
    %c0_i32_0 = arith.constant 0 : i32
    %c0_i32_1 = arith.constant 0 : i32
    return %c0_i32, %c0_i32_0 : i32, i32
  }
  func.func @transform_34(%arg0: i32) -> (i32, i32) {
    %c0_i32 = arith.constant 0 : i32
    %c0_i32_0 = arith.constant 0 : i32
    %c0_i32_1 = arith.constant 0 : i32
    return %c0_i32, %c0_i32_0 : i32, i32
  }
  func.func @transform_35(%arg0: i32) -> (i32, i32) {
    %c0_i32 = arith.constant 0 : i32
    %c0_i32_0 = arith.constant 0 : i32
    %c0_i32_1 = arith.constant 0 : i32
    return %c0_i32, %c0_i32_0 : i32, i32
  }
  func.func @transform_36(%arg0: i32) -> (i32, i32) {
    %c0_i32 = arith.constant 0 : i32
    %c0_i32_0 = arith.constant 0 : i32
    %c0_i32_1 = arith.constant 0 : i32
    return %c0_i32, %c0_i32_0 : i32, i32
  }
  func.func @transform_37(%arg0: i32) -> (i32, i32) {
    %c0_i32 = arith.constant 0 : i32
    %c0_i32_0 = arith.constant 0 : i32
    %c0_i32_1 = arith.constant 0 : i32
    return %c0_i32, %c0_i32_0 : i32, i32
  }
  func.func @transform_38(%arg0: i32) -> (i32, i32) {
    %c0_i32 = arith.constant 0 : i32
    %c0_i32_0 = arith.constant 0 : i32
    %c0_i32_1 = arith.constant 0 : i32
    return %c0_i32, %c0_i32_0 : i32, i32
  }
  func.func @transform_39(%arg0: i32) -> (i32, i32) {
    %c0_i32 = arith.constant 0 : i32
    %c0_i32_0 = arith.constant 0 : i32
    %c0_i32_1 = arith.constant 0 : i32
    return %c0_i32, %c0_i32_0 : i32, i32
  }
  func.func @transform_40(%arg0: i32) -> (i32, i32) {
    %c0_i32 = arith.constant 0 : i32
    %c0_i32_0 = arith.constant 0 : i32
    %c0_i32_1 = arith.constant 0 : i32
    return %c0_i32, %c0_i32_0 : i32, i32
  }
  func.func @transform_41(%arg0: i32) -> (i32, i32) {
    %c0_i32 = arith.constant 0 : i32
    %c0_i32_0 = arith.constant 0 : i32
    %c0_i32_1 = arith.constant 0 : i32
    return %c0_i32, %c0_i32_0 : i32, i32
  }
  func.func @transform_42(%arg0: i32) -> (i32, i32) {
    %c0_i32 = arith.constant 0 : i32
    %c0_i32_0 = arith.constant 0 : i32
    %c0_i32_1 = arith.constant 0 : i32
    return %c0_i32, %c0_i32_0 : i32, i32
  }
  func.func @transform_43(%arg0: i32) -> (i32, i32) {
    %c0_i32 = arith.constant 0 : i32
    %c0_i32_0 = arith.constant 0 : i32
    %c0_i32_1 = arith.constant 0 : i32
    return %c0_i32, %c0_i32_0 : i32, i32
  }
  func.func @transform_44(%arg0: i32) -> (i32, i32) {
    %c0_i32 = arith.constant 0 : i32
    %c0_i32_0 = arith.constant 0 : i32
    %c0_i32_1 = arith.constant 0 : i32
    return %c0_i32, %c0_i32_0 : i32, i32
  }
  func.func @transform_45(%arg0: i32) -> (i32, i32) {
    %c0_i32 = arith.constant 0 : i32
    %c0_i32_0 = arith.constant 0 : i32
    %c0_i32_1 = arith.constant 0 : i32
    return %c0_i32, %c0_i32_0 : i32, i32
  }
  func.func @transform_46(%arg0: i32) -> (i32, i32) {
    %c0_i32 = arith.constant 0 : i32
    %c0_i32_0 = arith.constant 0 : i32
    %c0_i32_1 = arith.constant 0 : i32
    return %c0_i32, %c0_i32_0 : i32, i32
  }
  func.func @transform_47(%arg0: i32) -> (i32, i32) {
    %c0_i32 = arith.constant 0 : i32
    %c0_i32_0 = arith.constant 0 : i32
    %c0_i32_1 = arith.constant 0 : i32
    return %c0_i32, %c0_i32_0 : i32, i32
  }
  func.func @transform_48(%arg0: i32) -> (i32, i32) {
    %c0_i32 = arith.constant 0 : i32
    %c0_i32_0 = arith.constant 0 : i32
    %c0_i32_1 = arith.constant 0 : i32
    return %c0_i32, %c0_i32_0 : i32, i32
  }
  func.func @transform_49(%arg0: i32) -> (i32, i32) {
    %c0_i32 = arith.constant 0 : i32
    %c0_i32_0 = arith.constant 0 : i32
    %c0_i32_1 = arith.constant 0 : i32
    return %c0_i32, %c0_i32_0 : i32, i32
  }
  func.func @transform_50(%arg0: i32) -> (i32, i32) {
    %c0_i32 = arith.constant 0 : i32
    %c0_i32_0 = arith.constant 0 : i32
    %c0_i32_1 = arith.constant 0 : i32
    return %c0_i32, %c0_i32_0 : i32, i32
  }
  func.func @transform_51(%arg0: i32) -> (i32, i32) {
    %c0_i32 = arith.constant 0 : i32
    %c0_i32_0 = arith.constant 0 : i32
    %c0_i32_1 = arith.constant 0 : i32
    return %c0_i32, %c0_i32_0 : i32, i32
  }
  func.func @transform_52(%arg0: i32) -> (i32, i32) {
    %c0_i32 = arith.constant 0 : i32
    %c0_i32_0 = arith.constant 0 : i32
    %c0_i32_1 = arith.constant 0 : i32
    return %c0_i32, %c0_i32_0 : i32, i32
  }
  func.func @transform_53(%arg0: i32) -> (i32, i32) {
    %c0_i32 = arith.constant 0 : i32
    %c0_i32_0 = arith.constant 0 : i32
    %c0_i32_1 = arith.constant 0 : i32
    return %c0_i32, %c0_i32_0 : i32, i32
  }
  func.func @transform_54(%arg0: i32) -> (i32, i32) {
    %c0_i32 = arith.constant 0 : i32
    %c0_i32_0 = arith.constant 0 : i32
    %c0_i32_1 = arith.constant 0 : i32
    return %c0_i32, %c0_i32_0 : i32, i32
  }
  func.func @transform_55(%arg0: i32) -> (i32, i32) {
    %c0_i32 = arith.constant 0 : i32
    %c0_i32_0 = arith.constant 0 : i32
    %c0_i32_1 = arith.constant 0 : i32
    return %c0_i32, %c0_i32_0 : i32, i32
  }
  func.func @transform_56(%arg0: i32) -> (i32, i32) {
    %c0_i32 = arith.constant 0 : i32
    %c0_i32_0 = arith.constant 0 : i32
    %c0_i32_1 = arith.constant 0 : i32
    return %c0_i32, %c0_i32_0 : i32, i32
  }
  func.func @transform_57(%arg0: i32) -> (i32, i32) {
    %c0_i32 = arith.constant 0 : i32
    %c0_i32_0 = arith.constant 0 : i32
    %c0_i32_1 = arith.constant 0 : i32
    return %c0_i32, %c0_i32_0 : i32, i32
  }
  func.func @transform_58(%arg0: i32) -> (i32, i32) {
    %c0_i32 = arith.constant 0 : i32
    %c0_i32_0 = arith.constant 0 : i32
    %c0_i32_1 = arith.constant 0 : i32
    return %c0_i32, %c0_i32_0 : i32, i32
  }
  func.func @transform_59(%arg0: i32) -> (i32, i32) {
    %c0_i32 = arith.constant 0 : i32
    %c0_i32_0 = arith.constant 0 : i32
    %c0_i32_1 = arith.constant 0 : i32
    return %c0_i32, %c0_i32_0 : i32, i32
  }
  func.func @transform_60(%arg0: i32) -> (i32, i32) {
    %c0_i32 = arith.constant 0 : i32
    %c0_i32_0 = arith.constant 0 : i32
    %c0_i32_1 = arith.constant 0 : i32
    return %c0_i32, %c0_i32_0 : i32, i32
  }
  func.func @transform_61(%arg0: i32) -> (i32, i32) {
    %c0_i32 = arith.constant 0 : i32
    %c0_i32_0 = arith.constant 0 : i32
    %c0_i32_1 = arith.constant 0 : i32
    return %c0_i32, %c0_i32_0 : i32, i32
  }
  func.func @transform_62(%arg0: i32) -> (i32, i32) {
    %c0_i32 = arith.constant 0 : i32
    %c0_i32_0 = arith.constant 0 : i32
    %c0_i32_1 = arith.constant 0 : i32
    return %c0_i32, %c0_i32_0 : i32, i32
  }
  func.func @transform_63(%arg0: i32) -> (i32, i32) {
    %c0_i32 = arith.constant 0 : i32
    %c0_i32_0 = arith.constant 0 : i32
    %c0_i32_1 = arith.constant 0 : i32
    return %c0_i32, %c0_i32_0 : i32, i32
  }
  func.func @transform_64(%arg0: i32) -> (i32, i32) {
    %c0_i32 = arith.constant 0 : i32
    %c0_i32_0 = arith.constant 0 : i32
    %c0_i32_1 = arith.constant 0 : i32
    return %c0_i32, %c0_i32_0 : i32, i32
  }
  func.func @transform_65(%arg0: i32) -> (i32, i32) {
    %c0_i32 = arith.constant 0 : i32
    %c0_i32_0 = arith.constant 0 : i32
    %c0_i32_1 = arith.constant 0 : i32
    return %c0_i32, %c0_i32_0 : i32, i32
  }
  func.func @transform_66(%arg0: i32) -> (i32, i32) {
    %c0_i32 = arith.constant 0 : i32
    %c0_i32_0 = arith.constant 0 : i32
    %c0_i32_1 = arith.constant 0 : i32
    return %c0_i32, %c0_i32_0 : i32, i32
  }
  func.func @transform_67(%arg0: i32) -> (i32, i32) {
    %c0_i32 = arith.constant 0 : i32
    %c0_i32_0 = arith.constant 0 : i32
    %c0_i32_1 = arith.constant 0 : i32
    return %c0_i32, %c0_i32_0 : i32, i32
  }
  func.func @transform_68(%arg0: i32) -> (i32, i32) {
    %c0_i32 = arith.constant 0 : i32
    %c0_i32_0 = arith.constant 0 : i32
    %c0_i32_1 = arith.constant 0 : i32
    return %c0_i32, %c0_i32_0 : i32, i32
  }
  func.func @transform_69(%arg0: i32) -> (i32, i32) {
    %c0_i32 = arith.constant 0 : i32
    %c0_i32_0 = arith.constant 0 : i32
    %c0_i32_1 = arith.constant 0 : i32
    return %c0_i32, %c0_i32_0 : i32, i32
  }
  func.func @transform_70(%arg0: i32) -> (i32, i32) {
    %c0_i32 = arith.constant 0 : i32
    %c0_i32_0 = arith.constant 0 : i32
    %c0_i32_1 = arith.constant 0 : i32
    return %c0_i32, %c0_i32_0 : i32, i32
  }
  func.func @transform_71(%arg0: i32) -> (i32, i32) {
    %c0_i32 = arith.constant 0 : i32
    %c0_i32_0 = arith.constant 0 : i32
    %c0_i32_1 = arith.constant 0 : i32
    return %c0_i32, %c0_i32_0 : i32, i32
  }
  func.func @transform_72(%arg0: i32) -> (i32, i32) {
    %c0_i32 = arith.constant 0 : i32
    %c0_i32_0 = arith.constant 0 : i32
    %c0_i32_1 = arith.constant 0 : i32
    return %c0_i32, %c0_i32_0 : i32, i32
  }
  func.func @transform_73(%arg0: i32) -> (i32, i32) {
    %c0_i32 = arith.constant 0 : i32
    %c0_i32_0 = arith.constant 0 : i32
    %c0_i32_1 = arith.constant 0 : i32
    return %c0_i32, %c0_i32_0 : i32, i32
  }
  func.func @transform_74(%arg0: i32) -> (i32, i32) {
    %c0_i32 = arith.constant 0 : i32
    %c0_i32_0 = arith.constant 0 : i32
    %c0_i32_1 = arith.constant 0 : i32
    return %c0_i32, %c0_i32_0 : i32, i32
  }
  func.func @transform_75(%arg0: i32) -> (i32, i32) {
    %c0_i32 = arith.constant 0 : i32
    %c0_i32_0 = arith.constant 0 : i32
    %c0_i32_1 = arith.constant 0 : i32
    return %c0_i32, %c0_i32_0 : i32, i32
  }
  func.func @transform_76(%arg0: i32) -> (i32, i32) {
    %c0_i32 = arith.constant 0 : i32
    %c0_i32_0 = arith.constant 0 : i32
    %c0_i32_1 = arith.constant 0 : i32
    return %c0_i32, %c0_i32_0 : i32, i32
  }
  func.func @transform_77(%arg0: i32) -> (i32, i32, i32) {
    %c0_i32 = arith.constant 0 : i32
    %c0_i32_0 = arith.constant 0 : i32
    %c0_i32_1 = arith.constant 0 : i32
    return %arg0, %c0_i32, %c0_i32_0 : i32, i32, i32
  }
}

</mosaic_0001>

<bundles_post_ra>
// kernel: detr_forward.1
= control target key start
LH: loop header
LB: loop body
LE: loop exit
PB: predicated region body
PF: predicated region fallthrough
CT: control target
= control target key end

     0   :  { %s15850_s6 = smov 1   ;;  %s15851_s10 = smov 2   ;;  %s18133_s0 = inlined_call_operand.smem [shape: u32[78], index: -1, kind: input, shape index: {}] }
   0x1   :  { %s15984_s5 = sld [smem:[%s18133_s0]]   ;;  %s15852_s14 = smov 3  }
   0x2   :  { %s15989_s9 = sld [smem:[%s18133_s0 + %s15850_s6]]   ;;  %s15853_s18 = smov 4  }
   0x3   :  { %s15994_s13 = sld [smem:[%s18133_s0 + %s15851_s10]]   ;;  %s15854_s22 = smov 5  }
   0x4   :  { %s15999_s17 = sld [smem:[%s18133_s0 + %s15852_s14]]   ;;  %s15855_s26 = smov 6  }
   0x5   :  { %s16004_s21 = sld [smem:[%s18133_s0 + %s15853_s18]]   ;;  %s15856_s30 = smov 7  }
   0x6   :  { %s16009_s25 = sld [smem:[%s18133_s0 + %s15854_s22]]   ;;  %s15857_s4 = smov 8  }
   0x7   :  { %18195 = sst [smem:[#allocation72_spill]] %s15984_s5  ;;  %s15858_s10 = smov 9  }
   0x8   :  { %18196 = sst [smem:[#allocation73_spill]] %s15989_s9  ;;  %s15859_s15 = smov 10  }
   0x9   :  { %18197 = sst [smem:[#allocation74_spill]] %s15994_s13  ;;  %s15860_s20 = smov 11  }
   0xa   :  { %18198 = sst [smem:[#allocation75_spill]] %s15999_s17  ;;  %s15862_s1 = smov 13  }
   0xb   :  { %18199 = sst [smem:[#allocation76_spill]] %s16004_s21  ;;  %s15863_s7 = smov 14  }
   0xc   :  { %18200 = sst [smem:[#allocation77_spill]] %s16009_s25  ;;  %s15865_s22 = smov 16  }
   0xd   :  { %s16014_s29 = sld [smem:[%s18133_s0 + %s15855_s26]]   ;;  %s15861_s26 = smov 12  }
   0xe   :  { %s16019_s3 = sld [smem:[%s18133_s0 + %s15856_s30]]   ;;  %s15866_s28 = smov 17  }
   0xf   :  { %s16024_s8 = sld [smem:[%s18133_s0 + %s15857_s4]]  }
  0x10   :  { %s16029_s14 = sld [smem:[%s18133_s0 + %s15858_s10]]  }
  0x11   :  { %s16034_s19 = sld [smem:[%s18133_s0 + %s15859_s15]]   ;;  %s15864_s15 = smov 15  }
  0x12   :  { %s16039_s24 = sld [smem:[%s18133_s0 + %s15860_s20]]  }
  0x13   :  { %18201 = sst [smem:[#allocation78_spill]] %s16014_s29 }
  0x14   :  { %18202 = sst [smem:[#allocation79_spill]] %s16019_s3 }
  0x15   :  { %18203 = sst [smem:[#allocation80_spill]] %s16024_s8 }
  0x16   :  { %18204 = sst [smem:[#allocation81_spill]] %s16029_s14 }
  0x17   :  { %18205 = sst [smem:[#allocation82_spill]] %s16034_s19 }
  0x18   :  { %18206 = sst [smem:[#allocation83_spill]] %s16039_s24 }
  0x19   :  { %s16044_s30 = sld [smem:[%s18133_s0 + %s15861_s26]]  }
  0x1a   :  { %s16049_s6 = sld [smem:[%s18133_s0 + %s15862_s1]]  }
  0x1b   :  { %s16054_s12 = sld [smem:[%s18133_s0 + %s15863_s7]]   ;;  %s15867_s7 = smov 18  }
  0x1c   :  { %s16059_s20 = sld [smem:[%s18133_s0 + %s15864_s15]]   ;;  %s15868_s15 = smov 19  }
  0x1d   :  { %s16064_s27 = sld [smem:[%s18133_s0 + %s15865_s22]]   ;;  %s15869_s22 = smov 20  }
  0x1e   :  { %s16069_s4 = sld [smem:[%s18133_s0 + %s15866_s28]]   ;;  %s15870_s28 = smov 21  }
  0x1f   :  { %18207 = sst [smem:[#allocation84_spill]] %s16044_s30 }
  0x20   :  { %18208 = sst [smem:[#allocation85_spill]] %s16049_s6 }
  0x21   :  { %18209 = sst [smem:[#allocation86_spill]] %s16054_s12 }
  0x22   :  { %18210 = sst [smem:[#allocation87_spill]] %s16059_s20 }
  0x23   :  { %18211 = sst [smem:[#allocation88_spill]] %s16064_s27 }
  0x24   :  { %18212 = sst [smem:[#allocation89_spill]] %s16069_s4 }
  0x25   :  { %s16074_s19 = sld [smem:[%s18133_s0 + %s15867_s7]]   ;;  %s15871_s7 = smov 22  }
  0x26   :  { %s16079_s8 = sld [smem:[%s18133_s0 + %s15868_s15]]   ;;  %s15872_s15 = smov 23  }
  0x27   :  { %s16084_s29 = sld [smem:[%s18133_s0 + %s15869_s22]]   ;;  %s15873_s22 = smov 24  }
  0x28   :  { %s16089_s14 = sld [smem:[%s18133_s0 + %s15870_s28]]   ;;  %s15874_s28 = smov 25  }
  0x29   :  { %s16094_s21 = sld [smem:[%s18133_s0 + %s15871_s7]]   ;;  %s15875_s7 = smov 26  }
  0x2a   :  { %s16099_s3 = sld [smem:[%s18133_s0 + %s15872_s15]]   ;;  %s15876_s15 = smov 27  }
  0x2b   :  { %18213 = sst [smem:[#allocation90_spill]] %s16074_s19 }
  0x2c   :  { %18214 = sst [smem:[#allocation91_spill]] %s16079_s8 }
  0x2d   :  { %18215 = sst [smem:[#allocation92_spill]] %s16084_s29 }
  0x2e   :  { %18216 = sst [smem:[#allocation93_spill]] %s16089_s14 }
  0x2f   :  { %18217 = sst [smem:[#allocation94_spill]] %s16094_s21 }
  0x30   :  { %18218 = sst [smem:[#allocation95_spill]] %s16099_s3 }
  0x31   :  { %s16104_s25 = sld [smem:[%s18133_s0 + %s15873_s22]]   ;;  %s15877_s22 = smov 28  }
  0x32   :  { %s16109_s24 = sld [smem:[%s18133_s0 + %s15874_s28]]   ;;  %s15878_s28 = smov 29  }
  0x33   :  { %s16114_s19 = sld [smem:[%s18133_s0 + %s15875_s7]]   ;;  %s15879_s7 = smov 30  }
  0x34   :  { %s16119_s27 = sld [smem:[%s18133_s0 + %s15876_s15]]   ;;  %s15880_s15 = smov 31  }
  0x35   :  { %s16129_s21 = sld [smem:[%s18133_s0 + %s15878_s28]]   ;;  %s15882_s28 = smov 33  }
  0x36   :  { %s16134_s3 = sld [smem:[%s18133_s0 + %s15879_s7]]   ;;  %s15883_s7 = smov 34  }
  0x37   :  { %18219 = sst [smem:[#allocation96_spill]] %s16104_s25 }
  0x38   :  { %18220 = sst [smem:[#allocation97_spill]] %s16109_s24 }
  0x39   :  { %s16124_s25 = sld [smem:[%s18133_s0 + %s15877_s22]]   ;;  %s15881_s22 = smov 32  }
  0x3a   :  { %18221 = sst [smem:[#allocation98_spill]] %s16119_s27 }
  0x3b   :  { %18223 = sst [smem:[#allocation100_spill]] %s16129_s21 }
  0x3c   :  { %18224 = sst [smem:[#allocation101_spill]] %s16134_s3 }
  0x3d   :  { %s16139_s8 = sld [smem:[%s18133_s0 + %s15880_s15]]   ;;  %s15884_s15 = smov 35  }
  0x3e   :  { %s16144_s4 = sld [smem:[%s18133_s0 + %s15881_s22]]   ;;  %s15885_s22 = smov 36  }
  0x3f   :  { %18222 = sst [smem:[#allocation99_spill]] %s16124_s25 }
  0x40   :  { %s16149_s30 = sld [smem:[%s18133_s0 + %s15882_s28]]   ;;  %s15886_s28 = smov 37  }
  0x41   :  { %s16154_s12 = sld [smem:[%s18133_s0 + %s15883_s7]]   ;;  %s15887_s7 = smov 38  }
  0x42   :  { %s16159_s29 = sld [smem:[%s18133_s0 + %s15884_s15]]   ;;  %s15888_s15 = smov 39  }
  0x43   :  { %18225 = sst [smem:[#allocation102_spill]] %s16139_s8 }
  0x44   :  { %18226 = sst [smem:[#allocation103_spill]] %s16144_s4 }
  0x45   :  { %s16164_s4 = sld [smem:[%s18133_s0 + %s15885_s22]]   ;;  %s15889_s22 = smov 40  }
  0x46   :  { %18227 = sst [smem:[#allocation104_spill]] %s16149_s30 }
  0x47   :  { %18228 = sst [smem:[#allocation105_spill]] %s16154_s12 }
  0x48   :  { %18229 = sst [smem:[#allocation106_spill]] %s16159_s29 }
  0x49   :  { %s16169_s30 = sld [smem:[%s18133_s0 + %s15886_s28]]   ;;  %s15890_s28 = smov 41  }
  0x4a   :  { %s16174_s14 = sld [smem:[%s18133_s0 + %s15887_s7]]   ;;  %s15891_s7 = smov 42  }
  0x4b   :  { %18230 = sst [smem:[#allocation107_spill]] %s16164_s4 }
  0x4c   :  { %s16179_s29 = sld [smem:[%s18133_s0 + %s15888_s15]]   ;;  %s15892_s15 = smov 43  }
  0x4d   :  { %s16184_s6 = sld [smem:[%s18133_s0 + %s15889_s22]]   ;;  %s15893_s22 = smov 44  }
  0x4e   :  { %s16194_s20 = sld [smem:[%s18133_s0 + %s15891_s7]]   ;;  %s15895_s7 = smov 46  }
  0x4f   :  { %18231 = sst [smem:[#allocation108_spill]] %s16169_s30 }
  0x50   :  { %18232 = sst [smem:[#allocation109_spill]] %s16174_s14 }
  0x51   :  { %s16189_s30 = sld [smem:[%s18133_s0 + %s15890_s28]]   ;;  %s15894_s28 = smov 45  }
  0x52   :  { %18233 = sst [smem:[#allocation110_spill]] %s16179_s29 }
  0x53   :  { %18234 = sst [smem:[#allocation111_spill]] %s16184_s6 }
  0x54   :  { %s16199_s25 = sld [smem:[%s18133_s0 + %s15892_s15]]   ;;  %s15896_s15 = smov 47  }
  0x55   :  { %s16204_s21 = sld [smem:[%s18133_s0 + %s15893_s22]]   ;;  %s15897_s22 = smov 48  }
  0x56   :  { %s16209_s9 = sld [smem:[%s18133_s0 + %s15894_s28]]   ;;  %s15898_s28 = smov 49  }
  0x57   :  { %18235 = sst [smem:[#allocation112_spill]] %s16189_s30 }
  0x58   :  { %s16214_s13 = sld [smem:[%s18133_s0 + %s15895_s7]]   ;;  %s15899_s7 = smov 50  }
  0x59   :  { %s16219_s5 = sld [smem:[%s18133_s0 + %s15896_s15]]   ;;  %s15900_s15 = smov 51  }
  0x5a   :  { %18236 = sst [smem:[#allocation113_spill]] %s16199_s25 }
  0x5b   :  { %s16224_s17 = sld [smem:[%s18133_s0 + %s15897_s22]]   ;;  %s15901_s22 = smov 52  }
  0x5c   :  { %18237 = sst [smem:[#allocation114_spill]] %s16209_s9 }
  0x5d   :  { %s16229_s9 = sld [smem:[%s18133_s0 + %s15898_s28]]   ;;  %s15902_s28 = smov 53  }
  0x5e   :  { %18238 = sst [smem:[#allocation115_spill]] %s16214_s13 }
  0x5f   :  { %18239 = sst [smem:[#allocation116_spill]] %s16219_s5 }
  0x60   :  { %s16234_s13 = sld [smem:[%s18133_s0 + %s15899_s7]]   ;;  %s15903_s7 = smov 54  }
  0x61   :  { %s16239_s5 = sld [smem:[%s18133_s0 + %s15900_s15]]   ;;  %s15904_s15 = smov 55  }
  0x62   :  { %s16244_s25 = sld [smem:[%s18133_s0 + %s15901_s22]]   ;;  %s15905_s22 = smov 56  }
  0x63   :  { %18240 = sst [smem:[#allocation117_spill]] %s16229_s9 }
  0x64   :  { %s16249_s9 = sld [smem:[%s18133_s0 + %s15902_s28]]   ;;  %s15906_s28 = smov 57  }
  0x65   :  { %s16254_s30 = sld [smem:[%s18133_s0 + %s15903_s7]]   ;;  %s15907_s7 = smov 58  }
  0x66   :  { %18241 = sst [smem:[#allocation118_spill]] %s16234_s13 }
  0x67   :  { %18242 = sst [smem:[#allocation119_spill]] %s16239_s5 }
  0x68   :  { %18243 = sst [smem:[#allocation120_spill]] %s16244_s25 }
  0x69   :  { %s16259_s5 = sld [smem:[%s18133_s0 + %s15904_s15]]   ;;  %s15908_s15 = smov 59  }
  0x6a   :  { %18244 = sst [smem:[#allocation121_spill]] %s16249_s9 }
  0x6b   :  { %s16264_s25 = sld [smem:[%s18133_s0 + %s15905_s22]]   ;;  %s15909_s22 = smov 60  }
  0x6c   :  { %s16269_s9 = sld [smem:[%s18133_s0 + %s15906_s28]]   ;;  %s15910_s28 = smov 61  }
  0x6d   :  { %s16274_s29 = sld [smem:[%s18133_s0 + %s15907_s7]]   ;;  %s15911_s7 = smov 62  }
  0x6e   :  { %s16294_s4 = sld [smem:[%s18133_s0 + %s15911_s7]]   ;;  %s15915_s7 = smov 66  }
  0x6f   :  { %18245 = sst [smem:[#allocation122_spill]] %s16259_s5 }
  0x70   :  { %s16279_s5 = sld [smem:[%s18133_s0 + %s15908_s15]]   ;;  %s15912_s15 = smov 63  }
  0x71   :  { %18246 = sst [smem:[#allocation123_spill]] %s16264_s25 }
  0x72   :  { %18247 = sst [smem:[#allocation124_spill]] %s16269_s9 }
  0x73   :  { %s16284_s25 = sld [smem:[%s18133_s0 + %s15909_s22]]   ;;  %s15913_s22 = smov 64  }
  0x74   :  { %s16289_s9 = sld [smem:[%s18133_s0 + %s15910_s28]]   ;;  %s15914_s28 = smov 65  }
  0x75   :  { %18250 = sst [smem:[#allocation127_spill]] %s16294_s4 }
  0x76   :  { %18248 = sst [smem:[#allocation125_spill]] %s16279_s5 }
  0x77   :  { %s16299_s5 = sld [smem:[%s18133_s0 + %s15912_s15]]   ;;  %s15916_s15 = smov 67  }
  0x78   :  { %s16304_s8 = sld [smem:[%s18133_s0 + %s15913_s22]]   ;;  %s15917_s22 = smov 68  }
  0x79   :  { %s16314_s27 = sld [smem:[%s18133_s0 + %s15915_s7]]   ;;  %s15919_s7 = smov 70  }
  0x7a   :  { %18249 = sst [smem:[#allocation126_spill]] %s16289_s9 }
  0x7b   :  { %s16309_s9 = sld [smem:[%s18133_s0 + %s15914_s28]]   ;;  %s15918_s28 = smov 69  }
  0x7c   :  { %s16334_s24 = sld [smem:[%s18133_s0 + %s15919_s7]]   ;;  %s15923_s7 = smov 74  }
  0x7d   :  { %18251 = sst [smem:[#allocation128_spill]] %s16299_s5 }
  0x7e   :  { %18252 = sst [smem:[#allocation129_spill]] %s16304_s8 }
  0x7f   :  { %s16319_s5 = sld [smem:[%s18133_s0 + %s15916_s15]]   ;;  %s15920_s15 = smov 71  }
  0x80   :  { %s16324_s8 = sld [smem:[%s18133_s0 + %s15917_s22]]   ;;  %s15921_s22 = smov 72  }
  0x81   :  { %18253 = sst [smem:[#allocation130_spill]] %s16309_s9 }
  0x82   :  { %s16329_s9 = sld [smem:[%s18133_s0 + %s15918_s28]]   ;;  %s15922_s28 = smov 73  }
  0x83   :  { %18257 = sst [smem:[#allocation134_spill]] %s16334_s24 }
  0x84   :  { %s16354_s24 = sld [smem:[%s18133_s0 + %s15923_s7]]  }
  0x85   :  { %18254 = sst [smem:[#allocation131_spill]] %s16319_s5 }
  0x86   :  { %18255 = sst [smem:[#allocation132_spill]] %s16324_s8 }
  0x87   :  { %s16339_s5 = sld [smem:[%s18133_s0 + %s15920_s15]]   ;;  %s15924_s15 = smov 75  }
  0x88   :  { %18256 = sst [smem:[#allocation133_spill]] %s16329_s9 }
  0x89   :  { %s16344_s8 = sld [smem:[%s18133_s0 + %s15921_s22]]   ;;  %s15925_s22 = smov 76  }
  0x8a   :  { %s16349_s9 = sld [smem:[%s18133_s0 + %s15922_s28]]   ;;  %s15926_s28 = smov 77  }
  0x8d   :  { %18258 = sst [smem:[#allocation135_spill]] %s16339_s5 }
  0x8e   :  { %s16359_s5 = sld [smem:[%s18133_s0 + %s15924_s15]]  }
  0x8f   :  { %18259 = sst [smem:[#allocation136_spill]] %s16344_s8 }
  0x90   :  { %18260 = sst [smem:[#allocation137_spill]] %s16349_s9 }
  0x91   :  { %s16364_s8 = sld [smem:[%s18133_s0 + %s15925_s22]]  }
  0x92   :  { %s16369_s9 = sld [smem:[%s18133_s0 + %s15926_s28]]  }
  0x94   :  { %18261 = sst [smem:[#allocation138_spill]] %s16359_s5 }
  0x95   :  { %160 = vsyncpa [#allocation3], 0 }
  0x96   :  { %161 = vsyncpa [#allocation5], 0 }
  0x97   :  { %162 = vsyncpa [#allocation8], 0 }
  0x98   :  { %163 = vsyncpa [#allocation11], 0 }
  0x99   :  { %164 = vsyncpa [#allocation14], 0 }
  0x9a   :  { %165 = vsyncpa [#allocation17], 0 }
  0x9b   :  { %166 = vsyncpa [#allocation20], 0 }
  0x9c   :  { %167 = vsyncpa [#allocation23], 0 }
  0x9d   :  { %168 = vsyncpa [#allocation26], 0 }
  0x9e   :  { %169 = vsyncpa [#allocation29], 0 }
  0x9f   :  { %170 = vsyncpa [#allocation32], 0 }
  0xa0   :  { %171 = vsyncpa [#allocation35], 0 }
  0xa1   :  { %172 = vsyncpa [#allocation38], 0 }
  0xa2   :  { %173 = vsyncpa [#allocation41], 0 }
  0xa3   :  { %174 = vsyncpa [#allocation44], 0 }
  0xa4   :  { %175 = vsyncpa [#allocation47], 0 }
  0xa5   :  { %176 = vsyncpa [#allocation50], 0 }
  0xa6   :  { %177 = vsyncpa [#allocation53], 0  ;;  %s16371_s0 = smov 0  }
  0xa7 LB: > { %s18262_s5 = sld [smem:[#allocation138_spill]]  ;;  %s16377_s7 = sadd.s32 4294967295, %s15848_s0   ;;  %s15848_s0 = sphi %s16371_s0, %s183_s0  }
  0xa8   : > { %p12236_p0 = scmp.ge.s32.totalorder %s15848_s0, 1  ;;  %p1836_p1 = scmp.lt.s32.totalorder %s15848_s0, 3 }
  0xaa   : > { %p16381_p2 = pnand %p12236_p0, %p1836_p1 }
  0xab   : > { %p14076_p3 = scmp.eq.s32.totalorder (!%p16381_p2), %s16377_s7, 0  ;;  %s15927_s11 = smov (!%p16381_p2), [#allocation4]  }
  0xac   : > { %1840 = sbr.rel (%p16381_p2) target bundleno = 554 (0x22a), region = 12  ;;  %s1932_s15 = sshll.u32 (!%p16381_p2), %s15927_s11, 4  ;;  %s1933_s15 = int_to_ptr.vmem [resolvable:$true] %s1932_s15 }
  0xad   : > { %s15928_s16 = smov (!%p16381_p2), [#allocation7]   ;;  %s14964_s22 = scalar_lea.vmem (!%p16381_p2), %s1933_s15, 16 }
  0xae   : > { %s1960_s18 = sshll.u32 (!%p16381_p2), %s15928_s16, 4  ;;  %p14965_p4 = scmp.ne.s32.totalorder (!%p16381_p2), %s1933_s15, %s14964_s22  ;;  %s1961_s18 = int_to_ptr.vmem [resolvable:$true] %s1960_s18 }
  0xaf   : > { %s14970_s23 = scalar_lea.vmem (!%p16381_p2), %s1933_s15, 32  ;;  %p14971_p7 = scmp.lt.s32.totalorder (!%p16381_p2), %s1933_s15, %s1933_s15 }
  0xb0   : > { %p14966_p5 = pnand (!%p16381_p2), %p14965_p4, %p14076_p3  ;;  %p14972_p8 = scmp.lt.s32.totalorder (!%p16381_p2), %s14970_s23, %s14964_s22 }
  0xb2   : > { %p14967_p6 = pneg %p14966_p5  ;;  %p14973_p9 = por %p14972_p8, %p14971_p7 }
  0xb4   : > { %p14974_p10 = pnand %p14973_p9, %p14967_p6 }
  0xb6   : > { %14977 = shalt.err (!%p14974_p10)
}
  0xb7   : > { %13943 = dma.hbm_to_vmem [thread:$0]  (%p14076_p3), %s16114_s19, 16, %s1933_s15, [#allocation5]  }
  0xb8   : > { %s14988_s26 = scalar_lea.vmem %s1961_s18, 16  ;;  %s14994_s28 = scalar_lea.vmem %s1961_s18, 32 }
  0xb9   : > { %p14989_p11 = scmp.ne.s32.totalorder %s1961_s18, %s14988_s26  ;;  %p14995_p0 = scmp.lt.s32.totalorder %s1961_s18, %s1961_s18 }
  0xba   : > { %p14996_p1 = scmp.lt.s32.totalorder %s14994_s28, %s14988_s26 }
  0xbb   : > { %p14990_p12 = pnand %p14989_p11, %p14076_p3 }
  0xbc   : > { %p14997_p4 = por %p14996_p1, %p14995_p0 }
  0xbd   : > { %p14991_p13 = pneg %p14990_p12 }
  0xbf   : > { %p14998_p5 = pnand %p14997_p4, %p14991_p13 }
  0xc1   : > { %15001 = shalt.err (!%p14998_p5)
}
  0xc2   : > { %s18264_s3 = sld [smem:[#allocation101_spill]]  ;;  %s15929_s1 = smov [#allocation10]  }
  0xc3   : > { %s1988_s2 = sshll.u32 %s15929_s1, 4  ;;  %s15930_s11 = smov [#allocation13]   ;;  %s1989_s2 = int_to_ptr.vmem [resolvable:$true] %s1988_s2 }
  0xc4   : > { %s2016_s15 = sshll.u32 %s15930_s11, 4  ;;  %s15012_s16 = scalar_lea.vmem %s1989_s2, 16  ;;  %s2017_s15 = int_to_ptr.vmem [resolvable:$true] %s2016_s15 }
  0xc5   : > { %p15013_p6 = scmp.ne.s32.totalorder %s1989_s2, %s15012_s16  ;;  %s15018_s22 = scalar_lea.vmem %s1989_s2, 32 }
  0xc6   : > { %p15019_p9 = scmp.lt.s32.totalorder %s1989_s2, %s1989_s2  ;;  %p15020_p10 = scmp.lt.s32.totalorder %s15018_s22, %s15012_s16 }
  0xc7   : > { %p15014_p7 = pnand %p15013_p6, %p14076_p3 }
  0xc8   : > { %13947 = dma.hbm_to_vmem [thread:$0]  (%p14076_p3), %s18264_s3, 16, %s1961_s18, [#allocation8]  }
  0xc9   : > { %p15015_p8 = pneg %p15014_p7  ;;  %p15021_p11 = por %p15020_p10, %p15019_p9 }
  0xcb   : > { %p15022_p12 = pnand %p15021_p11, %p15015_p8 }
  0xcd   : > { %15025 = shalt.err (!%p15022_p12)
}
  0xce   : > { %s18265_s12 = sld [smem:[#allocation105_spill]]  ;;  %s15036_s18 = scalar_lea.vmem %s2017_s15, 16 }
  0xcf   : > { %p15037_p13 = scmp.ne.s32.totalorder %s2017_s15, %s15036_s18  ;;  %s15042_s23 = scalar_lea.vmem %s2017_s15, 32 }
  0xd0   : > { %p15043_p4 = scmp.lt.s32.totalorder %s2017_s15, %s2017_s15  ;;  %p15044_p5 = scmp.lt.s32.totalorder %s15042_s23, %s15036_s18 }
  0xd1   : > { %p15038_p0 = pnand %p15037_p13, %p14076_p3 }
  0xd2   : > { %p15045_p6 = por %p15044_p5, %p15043_p4 }
  0xd3   : > { %p15039_p1 = pneg %p15038_p0 }
  0xd4   : > { %13951 = dma.hbm_to_vmem [thread:$0]  (%p14076_p3), %s18265_s12, 16, %s1989_s2, [#allocation11]  }
  0xd5   : > { %p15046_p7 = pnand %p15045_p6, %p15039_p1 }
  0xd7   : > { %15049 = shalt.err (!%p15046_p7)
}
  0xd8   : > { %s18266_s14 = sld [smem:[#allocation109_spill]]  ;;  %s15931_s26 = smov [#allocation16]  }
  0xd9   : > { %s2038_s28 = sshll.u32 %s15931_s26, 4  ;;  %s15932_s1 = smov [#allocation19]   ;;  %s2039_s28 = int_to_ptr.vmem [resolvable:$true] %s2038_s28 }
  0xda   : > { %s2060_s2 = sshll.u32 %s15932_s1, 4  ;;  %s15060_s11 = scalar_lea.vmem %s2039_s28, 16  ;;  %s2061_s2 = int_to_ptr.vmem [resolvable:$true] %s2060_s2 }
  0xdb   : > { %p15061_p8 = scmp.ne.s32.totalorder %s2039_s28, %s15060_s11  ;;  %s15066_s16 = scalar_lea.vmem %s2039_s28, 32 }
  0xdc   : > { %p15067_p11 = scmp.lt.s32.totalorder %s2039_s28, %s2039_s28  ;;  %p15068_p12 = scmp.lt.s32.totalorder %s15066_s16, %s15060_s11 }
  0xdd   : > { %p15062_p9 = pnand %p15061_p8, %p14076_p3 }
  0xde   : > { %13955 = dma.hbm_to_vmem [thread:$0]  (%p14076_p3), %s18266_s14, 16, %s2017_s15, [#allocation14]  }
  0xdf   : > { %p15063_p10 = pneg %p15062_p9  ;;  %p15069_p13 = por %p15068_p12, %p15067_p11 }
  0xe1   : > { %p15070_p0 = pnand %p15069_p13, %p15063_p10 }
  0xe3   : > { %15073 = shalt.err (!%p15070_p0)
}
  0xe4   : > { %s18267_s6 = sld [smem:[#allocation111_spill]]  ;;  %s15084_s15 = scalar_lea.vmem %s2061_s2, 16 }
  0xe5   : > { %p15085_p1 = scmp.ne.s32.totalorder %s2061_s2, %s15084_s15  ;;  %s15090_s22 = scalar_lea.vmem %s2061_s2, 32 }
  0xe6   : > { %p15091_p6 = scmp.lt.s32.totalorder %s2061_s2, %s2061_s2  ;;  %p15092_p7 = scmp.lt.s32.totalorder %s15090_s22, %s15084_s15 }
  0xe7   : > { %p15086_p4 = pnand %p15085_p1, %p14076_p3 }
  0xe8   : > { %p15093_p8 = por %p15092_p7, %p15091_p6 }
  0xe9   : > { %p15087_p5 = pneg %p15086_p4 }
  0xea   : > { %13959 = dma.hbm_to_vmem [thread:$0]  (%p14076_p3), %s18267_s6, 16, %s2039_s28, [#allocation17]  }
  0xeb   : > { %p15094_p9 = pnand %p15093_p8, %p15087_p5 }
  0xed   : > { %15097 = shalt.err (!%p15094_p9)
}
  0xee   : > { %13963 = dma.hbm_to_vmem [thread:$0]  (%p14076_p3), %s16194_s20, 16, %s2061_s2, [#allocation20]  }
  0xef   : > { %s15933_s18 = smov [#allocation22]   ;;  %s15934_s26 = smov [#allocation25]  }
  0xf0   : > { %s2082_s23 = sshll.u32 %s15933_s18, 4  ;;  %s2110_s28 = sshll.u32 %s15934_s26, 4  ;;  %s2083_s23 = int_to_ptr.vmem [resolvable:$true] %s2082_s23  ;;  %s2111_s28 = int_to_ptr.vmem [resolvable:$true] %s2110_s28 }
  0xf1   : > { %s15108_s1 = scalar_lea.vmem %s2083_s23, 16  ;;  %s15114_s11 = scalar_lea.vmem %s2083_s23, 32 }
  0xf2   : > { %p15109_p10 = scmp.ne.s32.totalorder %s2083_s23, %s15108_s1  ;;  %p15115_p13 = scmp.lt.s32.totalorder %s2083_s23, %s2083_s23 }
  0xf3   : > { %p15116_p0 = scmp.lt.s32.totalorder %s15114_s11, %s15108_s1 }
  0xf4   : > { %p15110_p11 = pnand %p15109_p10, %p14076_p3 }
  0xf5   : > { %p15117_p1 = por %p15116_p0, %p15115_p13 }
  0xf6   : > { %p15111_p12 = pneg %p15110_p11 }
  0xf8   : > { %p15118_p4 = pnand %p15117_p1, %p15111_p12 }
  0xfa   : > { %15121 = shalt.err (!%p15118_p4)
}
  0xfb   : > { %13967 = dma.hbm_to_vmem [thread:$0]  (%p14076_p3), %s16204_s21, 16, %s2083_s23, [#allocation23]  }
  0xfc   : > { %s15132_s2 = scalar_lea.vmem %s2111_s28, 16  ;;  %s15138_s16 = scalar_lea.vmem %s2111_s28, 32 }
  0xfd   : > { %p15133_p5 = scmp.ne.s32.totalorder %s2111_s28, %s15132_s2  ;;  %p15139_p8 = scmp.lt.s32.totalorder %s2111_s28, %s2111_s28 }
  0xfe   : > { %p15140_p9 = scmp.lt.s32.totalorder %s15138_s16, %s15132_s2 }
  0xff   : > { %p15134_p6 = pnand %p15133_p5, %p14076_p3 }
 0x100   : > { %p15141_p10 = por %p15140_p9, %p15139_p8 }
 0x101   : > { %p15135_p7 = pneg %p15134_p6 }
 0x103   : > { %p15142_p11 = pnand %p15141_p10, %p15135_p7 }
 0x105   : > { %15145 = shalt.err (!%p15142_p11)
}
 0x106   : > { %13971 = dma.hbm_to_vmem [thread:$0]  (%p14076_p3), %s16224_s17, 16, %s2111_s28, [#allocation26]  }
 0x107   : > { %s15935_s15 = smov [#allocation28]   ;;  %s15936_s18 = smov [#allocation31]  }
 0x108   : > { %s2132_s22 = sshll.u32 %s15935_s15, 4  ;;  %s2160_s23 = sshll.u32 %s15936_s18, 4  ;;  %s2133_s22 = int_to_ptr.vmem [resolvable:$true] %s2132_s22  ;;  %s2161_s23 = int_to_ptr.vmem [resolvable:$true] %s2160_s23 }
 0x109   : > { %s15156_s26 = scalar_lea.vmem %s2133_s22, 16  ;;  %s15162_s1 = scalar_lea.vmem %s2133_s22, 32 }
 0x10a   : > { %p15157_p12 = scmp.ne.s32.totalorder %s2133_s22, %s15156_s26  ;;  %p15163_p1 = scmp.lt.s32.totalorder %s2133_s22, %s2133_s22 }
 0x10b   : > { %p15164_p4 = scmp.lt.s32.totalorder %s15162_s1, %s15156_s26 }
 0x10c   : > { %p15158_p13 = pnand %p15157_p12, %p14076_p3 }
 0x10d   : > { %p15165_p5 = por %p15164_p4, %p15163_p1 }
 0x10e   : > { %p15159_p0 = pneg %p15158_p13 }
 0x110   : > { %p15166_p6 = pnand %p15165_p5, %p15159_p0 }
 0x112   : > { %15169 = shalt.err (!%p15166_p6)
}
 0x113   : > { %s18268_s13 = sld [smem:[#allocation118_spill]]  ;;  %s15180_s28 = scalar_lea.vmem %s2161_s23, 16 }
 0x114   : > { %p15181_p7 = scmp.ne.s32.totalorder %s2161_s23, %s15180_s28  ;;  %s15186_s11 = scalar_lea.vmem %s2161_s23, 32 }
 0x115   : > { %p15187_p10 = scmp.lt.s32.totalorder %s2161_s23, %s2161_s23  ;;  %p15188_p11 = scmp.lt.s32.totalorder %s15186_s11, %s15180_s28 }
 0x116   : > { %p15182_p8 = pnand %p15181_p7, %p14076_p3 }
 0x117   : > { %p15189_p12 = por %p15188_p11, %p15187_p10 }
 0x118   : > { %p15183_p9 = pneg %p15182_p8 }
 0x119   : > { %13975 = dma.hbm_to_vmem [thread:$0]  (%p14076_p3), %s18268_s13, 16, %s2133_s22, [#allocation29]  }
 0x11a   : > { %p15190_p13 = pnand %p15189_p12, %p15183_p9 }
 0x11c   : > { %15193 = shalt.err (!%p15190_p13)
}
 0x11d   : > { %13979 = dma.hbm_to_vmem [thread:$0]  (%p14076_p3), %s16254_s30, 16, %s2161_s23, [#allocation32]  }
 0x11e   : > { %s15937_s2 = smov [#allocation34]   ;;  %s15938_s15 = smov [#allocation37]  }
 0x11f   : > { %s2188_s16 = sshll.u32 %s15937_s2, 4  ;;  %s2210_s22 = sshll.u32 %s15938_s15, 4  ;;  %s2189_s16 = int_to_ptr.vmem [resolvable:$true] %s2188_s16  ;;  %s2211_s22 = int_to_ptr.vmem [resolvable:$true] %s2210_s22 }
 0x120   : > { %s15204_s18 = scalar_lea.vmem %s2189_s16, 16  ;;  %s15210_s26 = scalar_lea.vmem %s2189_s16, 32 }
 0x121   : > { %p15205_p0 = scmp.ne.s32.totalorder %s2189_s16, %s15204_s18  ;;  %p15211_p5 = scmp.lt.s32.totalorder %s2189_s16, %s2189_s16 }
 0x122   : > { %p15212_p6 = scmp.lt.s32.totalorder %s15210_s26, %s15204_s18 }
 0x123   : > { %p15206_p1 = pnand %p15205_p0, %p14076_p3 }
 0x124   : > { %p15213_p7 = por %p15212_p6, %p15211_p5 }
 0x125   : > { %p15207_p4 = pneg %p15206_p1 }
 0x127   : > { %p15214_p8 = pnand %p15213_p7, %p15207_p4 }
 0x129   : > { %15217 = shalt.err (!%p15214_p8)
}
 0x12a   : > { %13983 = dma.hbm_to_vmem [thread:$0]  (%p14076_p3), %s16274_s29, 16, %s2189_s16, [#allocation35]  }
 0x12b   : > { %s15228_s23 = scalar_lea.vmem %s2211_s22, 16  ;;  %s15234_s1 = scalar_lea.vmem %s2211_s22, 32 }
 0x12c   : > { %p15229_p9 = scmp.ne.s32.totalorder %s2211_s22, %s15228_s23  ;;  %p15235_p12 = scmp.lt.s32.totalorder %s2211_s22, %s2211_s22 }
 0x12d   : > { %p15236_p13 = scmp.lt.s32.totalorder %s15234_s1, %s15228_s23 }
 0x12e   : > { %p15230_p10 = pnand %p15229_p9, %p14076_p3 }
 0x12f   : > { %p15237_p0 = por %p15236_p13, %p15235_p12 }
 0x130   : > { %p15231_p11 = pneg %p15230_p10 }
 0x132   : > { %p15238_p1 = pnand %p15237_p0, %p15231_p11 }
 0x134   : > { %15241 = shalt.err (!%p15238_p1)
}
 0x135   : > { %13987 = dma.hbm_to_vmem [thread:$0]  (%p14076_p3), %s16284_s25, 16, %s2211_s22, [#allocation38]  }
 0x136   : > { %s15939_s28 = smov [#allocation40]   ;;  %s15940_s2 = smov [#allocation43]  }
 0x137   : > { %s2232_s11 = sshll.u32 %s15939_s28, 4  ;;  %s2260_s16 = sshll.u32 %s15940_s2, 4  ;;  %s2233_s11 = int_to_ptr.vmem [resolvable:$true] %s2232_s11  ;;  %s2261_s16 = int_to_ptr.vmem [resolvable:$true] %s2260_s16 }
 0x138   : > { %s15252_s15 = scalar_lea.vmem %s2233_s11, 16  ;;  %s15258_s18 = scalar_lea.vmem %s2233_s11, 32 }
 0x139   : > { %p15253_p4 = scmp.ne.s32.totalorder %s2233_s11, %s15252_s15  ;;  %p15259_p7 = scmp.lt.s32.totalorder %s2233_s11, %s2233_s11 }
 0x13a   : > { %p15260_p8 = scmp.lt.s32.totalorder %s15258_s18, %s15252_s15 }
 0x13b   : > { %p15254_p5 = pnand %p15253_p4, %p14076_p3 }
 0x13c   : > { %p15261_p9 = por %p15260_p8, %p15259_p7 }
 0x13d   : > { %p15255_p6 = pneg %p15254_p5 }
 0x13f   : > { %p15262_p10 = pnand %p15261_p9, %p15255_p6 }
 0x141   : > { %15265 = shalt.err (!%p15262_p10)
}
 0x142   : > { %s18269_s4 = sld [smem:[#allocation127_spill]]  ;;  %s15276_s22 = scalar_lea.vmem %s2261_s16, 16 }
 0x143   : > { %p15277_p11 = scmp.ne.s32.totalorder %s2261_s16, %s15276_s22  ;;  %s15282_s26 = scalar_lea.vmem %s2261_s16, 32 }
 0x144   : > { %p15283_p0 = scmp.lt.s32.totalorder %s2261_s16, %s2261_s16  ;;  %p15284_p1 = scmp.lt.s32.totalorder %s15282_s26, %s15276_s22 }
 0x145   : > { %p15278_p12 = pnand %p15277_p11, %p14076_p3 }
 0x146   : > { %p15285_p4 = por %p15284_p1, %p15283_p0 }
 0x147   : > { %p15279_p13 = pneg %p15278_p12 }
 0x148   : > { %13991 = dma.hbm_to_vmem [thread:$0]  (%p14076_p3), %s18269_s4, 16, %s2233_s11, [#allocation41]  }
 0x149   : > { %p15286_p5 = pnand %p15285_p4, %p15279_p13 }
 0x14b   : > { %15289 = shalt.err (!%p15286_p5)
}
 0x14c   : > { %13995 = dma.hbm_to_vmem [thread:$0]  (%p14076_p3), %s16314_s27, 16, %s2261_s16, [#allocation44]  }
 0x14d   : > { %s15941_s23 = smov [#allocation46]   ;;  %s15942_s28 = smov [#allocation49]  }
 0x14e   : > { %s2288_s1 = sshll.u32 %s15941_s23, 4  ;;  %s2310_s11 = sshll.u32 %s15942_s28, 4  ;;  %s2289_s1 = int_to_ptr.vmem [resolvable:$true] %s2288_s1  ;;  %s2311_s11 = int_to_ptr.vmem [resolvable:$true] %s2310_s11 }
 0x14f   : > { %s15300_s2 = scalar_lea.vmem %s2289_s1, 16  ;;  %s15306_s15 = scalar_lea.vmem %s2289_s1, 32 }
 0x150   : > { %p15301_p6 = scmp.ne.s32.totalorder %s2289_s1, %s15300_s2  ;;  %p15307_p9 = scmp.lt.s32.totalorder %s2289_s1, %s2289_s1 }
 0x151   : > { %p15308_p10 = scmp.lt.s32.totalorder %s15306_s15, %s15300_s2 }
 0x152   : > { %p15302_p7 = pnand %p15301_p6, %p14076_p3 }
 0x153   : > { %p15309_p11 = por %p15308_p10, %p15307_p9 }
 0x154   : > { %p15303_p8 = pneg %p15302_p7 }
 0x156   : > { %p15310_p12 = pnand %p15309_p11, %p15303_p8 }
 0x158   : > { %15313 = shalt.err (!%p15310_p12)
}
 0x159   : > { %s18270_s18 = sld [smem:[#allocation134_spill]]  ;;  %s15324_s16 = scalar_lea.vmem %s2311_s11, 16 }
 0x15a   : > { %p15325_p13 = scmp.ne.s32.totalorder %s2311_s11, %s15324_s16  ;;  %s15330_s22 = scalar_lea.vmem %s2311_s11, 32 }
 0x15b   : > { %p15331_p4 = scmp.lt.s32.totalorder %s2311_s11, %s2311_s11  ;;  %p15332_p5 = scmp.lt.s32.totalorder %s15330_s22, %s15324_s16 }
 0x15c   : > { %p15326_p0 = pnand %p15325_p13, %p14076_p3 }
 0x15d   : > { %p15333_p6 = por %p15332_p5, %p15331_p4 }
 0x15e   : > { %p15327_p1 = pneg %p15326_p0 }
 0x15f   : > { %13999 = dma.hbm_to_vmem [thread:$0]  (%p14076_p3), %s18270_s18, 16, %s2289_s1, [#allocation47]  }
 0x160   : > { %p15334_p7 = pnand %p15333_p6, %p15327_p1 }
 0x162   : > { %15337 = shalt.err (!%p15334_p7)
}
 0x163   : > { %s18271_s26 = sld [smem:[#allocation136_spill]]  ;;  %s15943_s23 = smov [#allocation2]  }
 0x164   : > { %s1921_s28 = sshll.u32 %s15943_s23, 4  ;;  %s15944_s1 = smov [#allocation6]   ;;  %s1922_s28 = int_to_ptr.vmem [resolvable:$true] %s1921_s28 }
 0x165   : > { %s1943_s2 = sshll.u32 %s15944_s1, 4  ;;  %s15348_s15 = scalar_lea.vmem %s1922_s28, 16  ;;  %s1944_s2 = int_to_ptr.vmem [resolvable:$true] %s1943_s2 }
 0x166   : > { %p15349_p8 = scmp.ne.s32.totalorder %s1922_s28, %s15348_s15  ;;  %s15354_s18 = scalar_lea.vmem %s1922_s28, 32 }
 0x167   : > { %p15355_p11 = scmp.lt.s32.totalorder %s1922_s28, %s1922_s28  ;;  %p15356_p12 = scmp.lt.s32.totalorder %s15354_s18, %s15348_s15 }
 0x168   : > { %p15350_p9 = pnand %p15349_p8, %p14076_p3 }
 0x169   : > { %14003 = dma.hbm_to_vmem [thread:$0]  (%p14076_p3), %s18271_s26, 16, %s2311_s11, [#allocation50]  }
 0x16a   : > { %p15351_p10 = pneg %p15350_p9  ;;  %p15357_p13 = por %p15356_p12, %p15355_p11 }
 0x16c   : > { %p15358_p0 = pnand %p15357_p13, %p15351_p10 }
 0x16e   : > { %15361 = shalt.err (!%p15358_p0)
}
 0x16f   : > { %s18272_s11 = sld [smem:[#allocation97_spill]]  ;;  %s15372_s16 = scalar_lea.vmem %s1944_s2, 16 }
 0x170   : > { %p15373_p1 = scmp.ne.s32.totalorder %s1944_s2, %s15372_s16  ;;  %s15378_s22 = scalar_lea.vmem %s1944_s2, 32 }
 0x171   : > { %p15379_p6 = scmp.lt.s32.totalorder %s1944_s2, %s1944_s2  ;;  %p15380_p7 = scmp.lt.s32.totalorder %s15378_s22, %s15372_s16 }
 0x172   : > { %p15374_p4 = pnand %p15373_p1, %p14076_p3 }
 0x173   : > { %p15381_p8 = por %p15380_p7, %p15379_p6 }
 0x174   : > { %p15375_p5 = pneg %p15374_p4 }
 0x175   : > { %13941 = dma.hbm_to_vmem [thread:$0]  (%p14076_p3), %s18272_s11, 16, %s1922_s28, [#allocation3]  }
 0x176   : > { %p15382_p9 = pnand %p15381_p8, %p15375_p5 }
 0x178   : > { %15385 = shalt.err (!%p15382_p9)
}
 0x179   : > { %s18273_s26 = sld [smem:[#allocation98_spill]]  ;;  %s15945_s23 = smov [#allocation9]  }
 0x17a   : > { %s1971_s1 = sshll.u32 %s15945_s23, 4  ;;  %s15946_s15 = smov [#allocation12]   ;;  %s1972_s1 = int_to_ptr.vmem [resolvable:$true] %s1971_s1 }
 0x17b   : > { %s2002_s28 = sshll.u32 %s15946_s15, 4  ;;  %s15396_s18 = scalar_lea.vmem %s1972_s1, 16  ;;  %s2003_s28 = int_to_ptr.vmem [resolvable:$true] %s2002_s28 }
 0x17c   : > { %p15397_p10 = scmp.ne.s32.totalorder %s1972_s1, %s15396_s18  ;;  %s15402_s11 = scalar_lea.vmem %s1972_s1, 32 }
 0x17d   : > { %p15403_p13 = scmp.lt.s32.totalorder %s1972_s1, %s1972_s1  ;;  %p15404_p0 = scmp.lt.s32.totalorder %s15402_s11, %s15396_s18 }
 0x17e   : > { %p15398_p11 = pnand %p15397_p10, %p14076_p3 }
 0x17f   : > { %13945 = dma.hbm_to_vmem [thread:$0]  (%p14076_p3), %s18273_s26, 16, %s1944_s2, [#allocation5]  }
 0x180   : > { %p15399_p12 = pneg %p15398_p11  ;;  %p15405_p1 = por %p15404_p0, %p15403_p13 }
 0x182   : > { %p15406_p4 = pnand %p15405_p1, %p15399_p12 }
 0x184   : > { %15409 = shalt.err (!%p15406_p4)
}
 0x185   : > { %s18274_s2 = sld [smem:[#allocation102_spill]]  ;;  %s15420_s16 = scalar_lea.vmem %s2003_s28, 16 }
 0x186   : > { %p15421_p5 = scmp.ne.s32.totalorder %s2003_s28, %s15420_s16  ;;  %s15426_s22 = scalar_lea.vmem %s2003_s28, 32 }
 0x187   : > { %p15427_p8 = scmp.lt.s32.totalorder %s2003_s28, %s2003_s28  ;;  %p15428_p9 = scmp.lt.s32.totalorder %s15426_s22, %s15420_s16 }
 0x188   : > { %p15422_p6 = pnand %p15421_p5, %p14076_p3 }
 0x189   : > { %p15429_p10 = por %p15428_p9, %p15427_p8 }
 0x18a   : > { %p15423_p7 = pneg %p15422_p6 }
 0x18b   : > { %13949 = dma.hbm_to_vmem [thread:$0]  (%p14076_p3), %s18274_s2, 16, %s1972_s1, [#allocation8]  }
 0x18c   : > { %p15430_p11 = pnand %p15429_p10, %p15423_p7 }
 0x18e   : > { %15433 = shalt.err (!%p15430_p11)
}
 0x18f   : > { %s18275_s26 = sld [smem:[#allocation107_spill]]  ;;  %s15947_s23 = smov [#allocation15]  }
 0x190   : > { %s2027_s15 = sshll.u32 %s15947_s23, 4  ;;  %s15948_s18 = smov [#allocation18]   ;;  %s2028_s15 = int_to_ptr.vmem [resolvable:$true] %s2027_s15 }
 0x191   : > { %s2049_s1 = sshll.u32 %s15948_s18, 4  ;;  %s15444_s11 = scalar_lea.vmem %s2028_s15, 16  ;;  %s2050_s1 = int_to_ptr.vmem [resolvable:$true] %s2049_s1 }
 0x192   : > { %p15445_p12 = scmp.ne.s32.totalorder %s2028_s15, %s15444_s11  ;;  %s15450_s2 = scalar_lea.vmem %s2028_s15, 32 }
 0x193   : > { %p15451_p1 = scmp.lt.s32.totalorder %s2028_s15, %s2028_s15  ;;  %p15452_p4 = scmp.lt.s32.totalorder %s15450_s2, %s15444_s11 }
 0x194   : > { %p15446_p13 = pnand %p15445_p12, %p14076_p3 }
 0x195   : > { %13953 = dma.hbm_to_vmem [thread:$0]  (%p14076_p3), %s18275_s26, 16, %s2003_s28, [#allocation11]  }
 0x196   : > { %p15447_p0 = pneg %p15446_p13  ;;  %p15453_p5 = por %p15452_p4, %p15451_p1 }
 0x198   : > { %p15454_p6 = pnand %p15453_p5, %p15447_p0 }
 0x19a   : > { %15457 = shalt.err (!%p15454_p6)
}
 0x19b   : > { %s18276_s28 = sld [smem:[#allocation110_spill]]  ;;  %s15468_s16 = scalar_lea.vmem %s2050_s1, 16 }
 0x19c   : > { %p15469_p7 = scmp.ne.s32.totalorder %s2050_s1, %s15468_s16  ;;  %s15474_s22 = scalar_lea.vmem %s2050_s1, 32 }
 0x19d   : > { %p15475_p10 = scmp.lt.s32.totalorder %s2050_s1, %s2050_s1  ;;  %p15476_p11 = scmp.lt.s32.totalorder %s15474_s22, %s15468_s16 }
 0x19e   : > { %p15470_p8 = pnand %p15469_p7, %p14076_p3 }
 0x19f   : > { %p15477_p12 = por %p15476_p11, %p15475_p10 }
 0x1a0   : > { %p15471_p9 = pneg %p15470_p8 }
 0x1a1   : > { %13957 = dma.hbm_to_vmem [thread:$0]  (%p14076_p3), %s18276_s28, 16, %s2028_s15, [#allocation14]  }
 0x1a2   : > { %p15478_p13 = pnand %p15477_p12, %p15471_p9 }
 0x1a4   : > { %15481 = shalt.err (!%p15478_p13)
}
 0x1a5   : > { %s18277_s26 = sld [smem:[#allocation112_spill]]  ;;  %s15949_s23 = smov [#allocation21]  }
 0x1a6   : > { %s2071_s18 = sshll.u32 %s15949_s23, 4  ;;  %s15950_s11 = smov [#allocation24]   ;;  %s2072_s18 = int_to_ptr.vmem [resolvable:$true] %s2071_s18 }
 0x1a7   : > { %s2093_s15 = sshll.u32 %s15950_s11, 4  ;;  %s15492_s2 = scalar_lea.vmem %s2072_s18, 16  ;;  %s2094_s15 = int_to_ptr.vmem [resolvable:$true] %s2093_s15 }
 0x1a8   : > { %p15493_p0 = scmp.ne.s32.totalorder %s2072_s18, %s15492_s2  ;;  %s15498_s28 = scalar_lea.vmem %s2072_s18, 32 }
 0x1a9   : > { %p15499_p5 = scmp.lt.s32.totalorder %s2072_s18, %s2072_s18  ;;  %p15500_p6 = scmp.lt.s32.totalorder %s15498_s28, %s15492_s2 }
 0x1aa   : > { %p15494_p1 = pnand %p15493_p0, %p14076_p3 }
 0x1ab   : > { %13961 = dma.hbm_to_vmem [thread:$0]  (%p14076_p3), %s18277_s26, 16, %s2050_s1, [#allocation17]  }
 0x1ac   : > { %p15495_p4 = pneg %p15494_p1  ;;  %p15501_p7 = por %p15500_p6, %p15499_p5 }
 0x1ae   : > { %p15502_p8 = pnand %p15501_p7, %p15495_p4 }
 0x1b0   : > { %15505 = shalt.err (!%p15502_p8)
}
 0x1b1   : > { %s18278_s1 = sld [smem:[#allocation113_spill]]  ;;  %s15516_s16 = scalar_lea.vmem %s2094_s15, 16 }
 0x1b2   : > { %p15517_p9 = scmp.ne.s32.totalorder %s2094_s15, %s15516_s16  ;;  %s15522_s22 = scalar_lea.vmem %s2094_s15, 32 }
 0x1b3   : > { %p15523_p12 = scmp.lt.s32.totalorder %s2094_s15, %s2094_s15  ;;  %p15524_p13 = scmp.lt.s32.totalorder %s15522_s22, %s15516_s16 }
 0x1b4   : > { %p15518_p10 = pnand %p15517_p9, %p14076_p3 }
 0x1b5   : > { %p15525_p0 = por %p15524_p13, %p15523_p12 }
 0x1b6   : > { %p15519_p11 = pneg %p15518_p10 }
 0x1b7   : > { %13965 = dma.hbm_to_vmem [thread:$0]  (%p14076_p3), %s18278_s1, 16, %s2072_s18, [#allocation20]  }
 0x1b8   : > { %p15526_p1 = pnand %p15525_p0, %p15519_p11 }
 0x1ba   : > { %15529 = shalt.err (!%p15526_p1)
}
 0x1bb   : > { %s18279_s26 = sld [smem:[#allocation114_spill]]  ;;  %s15951_s23 = smov [#allocation27]  }
 0x1bc   : > { %s2121_s11 = sshll.u32 %s15951_s23, 4  ;;  %s15952_s2 = smov [#allocation30]   ;;  %s2122_s11 = int_to_ptr.vmem [resolvable:$true] %s2121_s11 }
 0x1bd   : > { %s2143_s18 = sshll.u32 %s15952_s2, 4  ;;  %s15540_s28 = scalar_lea.vmem %s2122_s11, 16  ;;  %s2144_s18 = int_to_ptr.vmem [resolvable:$true] %s2143_s18 }
 0x1be   : > { %p15541_p4 = scmp.ne.s32.totalorder %s2122_s11, %s15540_s28  ;;  %s15546_s1 = scalar_lea.vmem %s2122_s11, 32 }
 0x1bf   : > { %p15547_p7 = scmp.lt.s32.totalorder %s2122_s11, %s2122_s11  ;;  %p15548_p8 = scmp.lt.s32.totalorder %s15546_s1, %s15540_s28 }
 0x1c0   : > { %p15542_p5 = pnand %p15541_p4, %p14076_p3 }
 0x1c1   : > { %13969 = dma.hbm_to_vmem [thread:$0]  (%p14076_p3), %s18279_s26, 16, %s2094_s15, [#allocation23]  }
 0x1c2   : > { %p15543_p6 = pneg %p15542_p5  ;;  %p15549_p9 = por %p15548_p8, %p15547_p7 }
 0x1c4   : > { %p15550_p10 = pnand %p15549_p9, %p15543_p6 }
 0x1c6   : > { %15553 = shalt.err (!%p15550_p10)
}
 0x1c7   : > { %s18280_s15 = sld [smem:[#allocation117_spill]]  ;;  %s15564_s16 = scalar_lea.vmem %s2144_s18, 16 }
 0x1c8   : > { %p15565_p11 = scmp.ne.s32.totalorder %s2144_s18, %s15564_s16  ;;  %s15570_s22 = scalar_lea.vmem %s2144_s18, 32 }
 0x1c9   : > { %p15571_p0 = scmp.lt.s32.totalorder %s2144_s18, %s2144_s18  ;;  %p15572_p1 = scmp.lt.s32.totalorder %s15570_s22, %s15564_s16 }
 0x1ca   : > { %p15566_p12 = pnand %p15565_p11, %p14076_p3 }
 0x1cb   : > { %p15573_p4 = por %p15572_p1, %p15571_p0 }
 0x1cc   : > { %p15567_p13 = pneg %p15566_p12 }
 0x1cd   : > { %13973 = dma.hbm_to_vmem [thread:$0]  (%p14076_p3), %s18280_s15, 16, %s2122_s11, [#allocation26]  }
 0x1ce   : > { %p15574_p5 = pnand %p15573_p4, %p15567_p13 }
 0x1d0   : > { %15577 = shalt.err (!%p15574_p5)
}
 0x1d1   : > { %s18281_s26 = sld [smem:[#allocation119_spill]]  ;;  %s15953_s23 = smov [#allocation33]  }
 0x1d2   : > { %s2174_s2 = sshll.u32 %s15953_s23, 4  ;;  %s15954_s28 = smov [#allocation36]   ;;  %s2175_s2 = int_to_ptr.vmem [resolvable:$true] %s2174_s2 }
 0x1d3   : > { %s2199_s11 = sshll.u32 %s15954_s28, 4  ;;  %s15588_s1 = scalar_lea.vmem %s2175_s2, 16  ;;  %s2200_s11 = int_to_ptr.vmem [resolvable:$true] %s2199_s11 }
 0x1d4   : > { %p15589_p6 = scmp.ne.s32.totalorder %s2175_s2, %s15588_s1  ;;  %s15594_s15 = scalar_lea.vmem %s2175_s2, 32 }
 0x1d5   : > { %p15595_p9 = scmp.lt.s32.totalorder %s2175_s2, %s2175_s2  ;;  %p15596_p10 = scmp.lt.s32.totalorder %s15594_s15, %s15588_s1 }
 0x1d6   : > { %p15590_p7 = pnand %p15589_p6, %p14076_p3 }
 0x1d7   : > { %13977 = dma.hbm_to_vmem [thread:$0]  (%p14076_p3), %s18281_s26, 16, %s2144_s18, [#allocation29]  }
 0x1d8   : > { %p15591_p8 = pneg %p15590_p7  ;;  %p15597_p11 = por %p15596_p10, %p15595_p9 }
 0x1da   : > { %p15598_p12 = pnand %p15597_p11, %p15591_p8 }
 0x1dc   : > { %15601 = shalt.err (!%p15598_p12)
}
 0x1dd   : > { %s18282_s18 = sld [smem:[#allocation123_spill]]  ;;  %s15612_s16 = scalar_lea.vmem %s2200_s11, 16 }
 0x1de   : > { %p15613_p13 = scmp.ne.s32.totalorder %s2200_s11, %s15612_s16  ;;  %s15618_s22 = scalar_lea.vmem %s2200_s11, 32 }
 0x1df   : > { %p15619_p4 = scmp.lt.s32.totalorder %s2200_s11, %s2200_s11  ;;  %p15620_p5 = scmp.lt.s32.totalorder %s15618_s22, %s15612_s16 }
 0x1e0   : > { %p15614_p0 = pnand %p15613_p13, %p14076_p3 }
 0x1e1   : > { %p15621_p6 = por %p15620_p5, %p15619_p4 }
 0x1e2   : > { %p15615_p1 = pneg %p15614_p0 }
 0x1e3   : > { %13981 = dma.hbm_to_vmem [thread:$0]  (%p14076_p3), %s18282_s18, 16, %s2175_s2, [#allocation32]  }
 0x1e4   : > { %p15622_p7 = pnand %p15621_p6, %p15615_p1 }
 0x1e6   : > { %15625 = shalt.err (!%p15622_p7)
}
 0x1e7   : > { %s18283_s26 = sld [smem:[#allocation125_spill]]  ;;  %s15955_s23 = smov [#allocation39]  }
 0x1e8   : > { %s2221_s28 = sshll.u32 %s15955_s23, 4  ;;  %s15956_s1 = smov [#allocation42]   ;;  %s2222_s28 = int_to_ptr.vmem [resolvable:$true] %s2221_s28 }
 0x1e9   : > { %s2243_s2 = sshll.u32 %s15956_s1, 4  ;;  %s15636_s15 = scalar_lea.vmem %s2222_s28, 16  ;;  %s2244_s2 = int_to_ptr.vmem [resolvable:$true] %s2243_s2 }
 0x1ea   : > { %p15637_p8 = scmp.ne.s32.totalorder %s2222_s28, %s15636_s15  ;;  %s15642_s18 = scalar_lea.vmem %s2222_s28, 32 }
 0x1eb   : > { %p15643_p11 = scmp.lt.s32.totalorder %s2222_s28, %s2222_s28  ;;  %p15644_p12 = scmp.lt.s32.totalorder %s15642_s18, %s15636_s15 }
 0x1ec   : > { %p15638_p9 = pnand %p15637_p8, %p14076_p3 }
 0x1ed   : > { %13985 = dma.hbm_to_vmem [thread:$0]  (%p14076_p3), %s18283_s26, 16, %s2200_s11, [#allocation35]  }
 0x1ee   : > { %p15639_p10 = pneg %p15638_p9  ;;  %p15645_p13 = por %p15644_p12, %p15643_p11 }
 0x1f0   : > { %p15646_p0 = pnand %p15645_p13, %p15639_p10 }
 0x1f2   : > { %15649 = shalt.err (!%p15646_p0)
}
 0x1f3   : > { %s18284_s11 = sld [smem:[#allocation126_spill]]  ;;  %s15660_s16 = scalar_lea.vmem %s2244_s2, 16 }
 0x1f4   : > { %p15661_p1 = scmp.ne.s32.totalorder %s2244_s2, %s15660_s16  ;;  %s15666_s22 = scalar_lea.vmem %s2244_s2, 32 }
 0x1f5   : > { %p15667_p6 = scmp.lt.s32.totalorder %s2244_s2, %s2244_s2  ;;  %p15668_p7 = scmp.lt.s32.totalorder %s15666_s22, %s15660_s16 }
 0x1f6   : > { %p15662_p4 = pnand %p15661_p1, %p14076_p3 }
 0x1f7   : > { %p15669_p8 = por %p15668_p7, %p15667_p6 }
 0x1f8   : > { %p15663_p5 = pneg %p15662_p4 }
 0x1f9   : > { %13989 = dma.hbm_to_vmem [thread:$0]  (%p14076_p3), %s18284_s11, 16, %s2222_s28, [#allocation38]  }
 0x1fa   : > { %p15670_p9 = pnand %p15669_p8, %p15663_p5 }
 0x1fc   : > { %15673 = shalt.err (!%p15670_p9)
}
 0x1fd   : > { %s18285_s26 = sld [smem:[#allocation128_spill]]  ;;  %s15957_s23 = smov [#allocation45]  }
 0x1fe   : > { %s2274_s1 = sshll.u32 %s15957_s23, 4  ;;  %s15958_s15 = smov [#allocation48]   ;;  %s2275_s1 = int_to_ptr.vmem [resolvable:$true] %s2274_s1 }
 0x1ff   : > { %s2299_s28 = sshll.u32 %s15958_s15, 4  ;;  %s15684_s18 = scalar_lea.vmem %s2275_s1, 16  ;;  %s2300_s28 = int_to_ptr.vmem [resolvable:$true] %s2299_s28 }
 0x200   : > { %p15685_p10 = scmp.ne.s32.totalorder %s2275_s1, %s15684_s18  ;;  %s15690_s11 = scalar_lea.vmem %s2275_s1, 32 }
 0x201   : > { %p15691_p13 = scmp.lt.s32.totalorder %s2275_s1, %s2275_s1  ;;  %p15692_p0 = scmp.lt.s32.totalorder %s15690_s11, %s15684_s18 }
 0x202   : > { %p15686_p11 = pnand %p15685_p10, %p14076_p3 }
 0x203   : > { %13993 = dma.hbm_to_vmem [thread:$0]  (%p14076_p3), %s18285_s26, 16, %s2244_s2, [#allocation41]  }
 0x204   : > { %p15687_p12 = pneg %p15686_p11  ;;  %p15693_p1 = por %p15692_p0, %p15691_p13 }
 0x206   : > { %p15694_p4 = pnand %p15693_p1, %p15687_p12 }
 0x208   : > { %15697 = shalt.err (!%p15694_p4)
}
 0x209   : > { %s18286_s2 = sld [smem:[#allocation132_spill]]  ;;  %s15708_s16 = scalar_lea.vmem %s2300_s28, 16 }
 0x20a   : > { %p15709_p5 = scmp.ne.s32.totalorder %s2300_s28, %s15708_s16  ;;  %s15714_s22 = scalar_lea.vmem %s2300_s28, 32 }
 0x20b   : > { %p15715_p8 = scmp.lt.s32.totalorder %s2300_s28, %s2300_s28  ;;  %p15716_p9 = scmp.lt.s32.totalorder %s15714_s22, %s15708_s16 }
 0x20c   : > { %p15710_p6 = pnand %p15709_p5, %p14076_p3 }
 0x20d   : > { %p15717_p10 = por %p15716_p9, %p15715_p8 }
 0x20e   : > { %p15711_p7 = pneg %p15710_p6 }
 0x20f   : > { %13997 = dma.hbm_to_vmem [thread:$0]  (%p14076_p3), %s18286_s2, 16, %s2275_s1, [#allocation44]  }
 0x210   : > { %p15718_p11 = pnand %p15717_p10, %p15711_p7 }
 0x212   : > { %15721 = shalt.err (!%p15718_p11)
}
 0x213   : > { %s18287_s26 = sld [smem:[#allocation135_spill]]  ;;  %s15959_s23 = smov [#allocation51]  }
 0x214   : > { %s2321_s15 = sshll.u32 %s15959_s23, 4  ;;  %s15960_s18 = smov [#allocation52]   ;;  %s2322_s15 = int_to_ptr.vmem [resolvable:$true] %s2321_s15 }
 0x215   : > { %s2332_s1 = sshll.u32 %s15960_s18, 4  ;;  %s15732_s11 = scalar_lea.vmem %s2322_s15, 16  ;;  %s2333_s1 = int_to_ptr.vmem [resolvable:$true] %s2332_s1 }
 0x216   : > { %p15733_p12 = scmp.ne.s32.totalorder %s2322_s15, %s15732_s11  ;;  %s15738_s2 = scalar_lea.vmem %s2322_s15, 32 }
 0x217   : > { %p15739_p1 = scmp.lt.s32.totalorder %s2322_s15, %s2322_s15  ;;  %p15740_p4 = scmp.lt.s32.totalorder %s15738_s2, %s15732_s11 }
 0x218   : > { %p15734_p13 = pnand %p15733_p12, %p14076_p3 }
 0x219   : > { %14001 = dma.hbm_to_vmem [thread:$0]  (%p14076_p3), %s18287_s26, 16, %s2300_s28, [#allocation47]  }
 0x21a   : > { %p15735_p0 = pneg %p15734_p13  ;;  %p15741_p5 = por %p15740_p4, %p15739_p1 }
 0x21c   : > { %p15742_p6 = pnand %p15741_p5, %p15735_p0 }
 0x21e   : > { %15745 = shalt.err (!%p15742_p6)
}
 0x21f   : > { %s18288_s28 = sld [smem:[#allocation137_spill]]  ;;  %s15756_s16 = scalar_lea.vmem %s2333_s1, 16 }
 0x220   : > { %p15757_p7 = scmp.ne.s32.totalorder %s2333_s1, %s15756_s16  ;;  %s15762_s22 = scalar_lea.vmem %s2333_s1, 32 }
 0x221   : > { %p15763_p10 = scmp.lt.s32.totalorder %s2333_s1, %s2333_s1  ;;  %p15764_p11 = scmp.lt.s32.totalorder %s15762_s22, %s15756_s16 }
 0x222   : > { %p15758_p8 = pnand %p15757_p7, %p14076_p3 }
 0x223   : > { %p15765_p12 = por %p15764_p11, %p15763_p10 }
 0x224   : > { %p15759_p9 = pneg %p15758_p8 }
 0x225   : > { %14005 = dma.hbm_to_vmem [thread:$0]  (%p14076_p3), %s18288_s28, 16, %s2322_s15, [#allocation50]  }
 0x226   : > { %p15766_p13 = pnand %p15765_p12, %p15759_p9 }
 0x228   : > { %15769 = shalt.err (!%p15766_p13)
}
 0x229   : > { %14007 = dma.hbm_to_vmem [thread:$0]  (%p14076_p3), %s16354_s24, 16, %s2333_s1, [#allocation53]  }
 0x22a PF: > { %2359 = sbr.rel (%p16381_p2) target bundleno = 18046 (0x467e), region = 328  ;;  %p14110_p0 = scmp.eq.s32.totalorder (!%p16381_p2), %s16377_s7, 0 }
 0x22f   : > { %15775 = dma.done.wait (%p14110_p0), [#allocation3], 16  }
 0x230   : > { %15777 = vsyncadd (%p14110_p0), [#allocation3], 4294967280 }
 0x231   : > { %15779 = dma.done.wait (%p14110_p0), [#allocation5], 32  }
 0x232   : > { %15781 = vsyncadd (%p14110_p0), [#allocation5], 4294967264 }
 0x233   : > { %15783 = dma.done.wait (%p14110_p0), [#allocation8], 32  }
 0x234   : > { %15785 = vsyncadd (%p14110_p0), [#allocation8], 4294967264 }
 0x235   : > { %15787 = dma.done.wait (%p14110_p0), [#allocation11], 32  }
 0x236   : > { %15789 = vsyncadd (%p14110_p0), [#allocation11], 4294967264 }
 0x237   : > { %15791 = dma.done.wait (%p14110_p0), [#allocation14], 32  }
 0x238   : > { %15793 = vsyncadd (%p14110_p0), [#allocation14], 4294967264 }
 0x239   : > { %15795 = dma.done.wait (%p14110_p0), [#allocation17], 32  }
 0x23a   : > { %15797 = vsyncadd (%p14110_p0), [#allocation17], 4294967264 }
 0x23b   : > { %15799 = dma.done.wait (%p14110_p0), [#allocation20], 32  }
 0x23c   : > { %15801 = vsyncadd (%p14110_p0), [#allocation20], 4294967264 }
 0x23d   : > { %15803 = dma.done.wait (%p14110_p0), [#allocation23], 32  }
 0x23e   : > { %15805 = vsyncadd (%p14110_p0), [#allocation23], 4294967264 }
 0x23f   : > { %15807 = dma.done.wait (%p14110_p0), [#allocation26], 32  }
 0x240   : > { %15809 = vsyncadd (%p14110_p0), [#allocation26], 4294967264 }
 0x241   : > { %15811 = dma.done.wait (%p14110_p0), [#allocation29], 32  }
 0x242   : > { %15813 = vsyncadd (%p14110_p0), [#allocation29], 4294967264 }
 0x243   : > { %15815 = dma.done.wait (%p14110_p0), [#allocation32], 32  }
 0x244   : > { %15817 = vsyncadd (%p14110_p0), [#allocation32], 4294967264 }
 0x245   : > { %15819 = dma.done.wait (%p14110_p0), [#allocation35], 32  }
 0x246   : > { %15821 = vsyncadd (%p14110_p0), [#allocation35], 4294967264 }
 0x247   : > { %15823 = dma.done.wait (%p14110_p0), [#allocation38], 32  }
 0x248   : > { %15825 = vsyncadd (%p14110_p0), [#allocation38], 4294967264 }
 0x249   : > { %15827 = dma.done.wait (%p14110_p0), [#allocation41], 32  }
 0x24a   : > { %15829 = vsyncadd (%p14110_p0), [#allocation41], 4294967264 }
 0x24b   : > { %15831 = dma.done.wait (%p14110_p0), [#allocation44], 32  }
 0x24c   : > { %15833 = vsyncadd (%p14110_p0), [#allocation44], 4294967264 }
 0x24d   : > { %15835 = dma.done.wait (%p14110_p0), [#allocation47], 32  }
 0x24e   : > { %15837 = vsyncadd (%p14110_p0), [#allocation47], 4294967264 }
 0x24f   : > { %15839 = dma.done.wait (%p14110_p0), [#allocation50], 32  }
 0x250   : > { %15841 = vsyncadd (%p14110_p0), [#allocation50], 4294967264 }
 0x251   : > { %15843 = dma.done.wait (%p14110_p0), [#allocation53], 16  }
 0x252   : > { %15845 = vsyncadd (%p14110_p0), [#allocation53], 4294967280  ;;  %s18289_s10 = sld [smem:[#allocation75_spill]]  ;;  %p2663_p2 = scmp.lt.s32.totalorder %s16377_s7, 1  ;;  %vm15962_vm0 = vmmov 0   ;;  %vm4900_vm1 = vcmask 523264  }
 0x253   : > { %s18290_s26 = sld [smem:[#allocation72_spill]]  ;;  %vm4971_vm2 = vcmask 261120   ;;  %s18178_s2 = smov 120   ;;  %vm5075_vm3 = vcmask 64512   ;;  %vm5125_vm4 = vcmask 130048   ;;  %vm5591_vm5 = vcmask 195584  }
 0x254   : > { %s18342_s7 = smov (!%p2663_p2, %s16377_s7), 1  ;;  %s18291_s18 = sld [smem:[#allocation74_spill]]  ;;  %vm7085_vm6 = vcmask 162816   ;;  %vm7092_vm7 = vcmask 158720   ;;  %vm7128_vm8 = vcmask 1041408   ;;  %vm7819_vm9 = vcmask 257024  }
 0x255   : > { %s13938_s23 = smul.u32 192, %s18342_s7  ;;  %s18292_s1 = sld [smem:[#allocation121_spill]]  ;;  %vm8133_vm10 = vcmask 125952   ;;  %vm11765_vm11 = vcmask 15360   ;;  %vm11769_vm12 = vcmask 48128  }
 0x256   : > { %s18293_s11 = sld [smem:[#allocation73_spill]]  ;;  %s18182_s28 = smov 96  }
 0x257   : > { %s18172_s16 = smov 80   ;;  %s18180_s22 = smov 88  }
 0x258   : > { %v14368_v0 = vld [vmem:[%s18289_s10 + $0x78] sm:$0xff]   ;;  %v14372_v4 = vld [vmem:[%s18289_s10 + $0x70] sm:$0xff]   ;;  %v14376_v8 = vld [vmem:[%s18289_s10 + $0x68] sm:$0xff]   ;;  %s18299_s3 = smov 104   ;;  %s18300_s4 = smov 72  }
 0x259   : > { %v14369_v1 = vld [vmem:[%s18289_s10 + $0xf8] sm:$0xff]   ;;  %12767 = vmatprep.subr.bf16.mxu0 %v14368_v0  ;;  %v14373_v5 = vld [vmem:[%s18289_s10 + $0xf0] sm:$0xff]   ;;  %v14377_v9 = vld [vmem:[%s18289_s10 + $0xe8] sm:$0xff]   ;;  %s16669_s15 = scalar_lea.vmem %s18290_s26, %s13938_s23  ;;  %s18162_s26 = smov 72  }
 0x25a   : > { %v14370_v2 = vld [vmem:[%s18289_s10 + $0x38] sm:$0xff]   ;;  %12789 = vmatprep.subr.bf16.mxu1 %v14369_v1  ;;  %v14374_v6 = vld [vmem:[%s18289_s10 + $0x30] sm:$0xff]   ;;  %v14378_v10 = vld [vmem:[%s18289_s10 + $0x28] sm:$0xff]   ;;  %s18176_s23 = smov 112   ;;  %s18306_s6 = sld [smem:[#allocation131_spill]] }
 0x25b   : > { %v14371_v3 = vld [vmem:[%s18289_s10 + $0xb8] sm:$0xff]   ;;  %12768 = vmatpush3.bf16.msra.mxu0 %v14370_v2  ;;  %v14375_v7 = vld [vmem:[%s18289_s10 + $0xb0] sm:$0xff]   ;;  %v14379_v11 = vld [vmem:[%s18289_s10 + $0xa8] sm:$0xff]   ;;  %s18308_s12 = sld [smem:[#allocation133_spill]]  ;;  %s18312_s13 = smov 112  }
 0x25c   : > { %12790 = vmatpush3.bf16.msra.mxu1 %v14371_v3  ;;  %12769 = vmatprep.subr.bf16.mxu0 %v14372_v4  ;;  %v14380_v12 = vld [vmem:[%s18289_s10 + $0x60] sm:$0xff]   ;;  %v14384_v16 = vld [vmem:[%s18289_s10 + $0x58] sm:$0xff]   ;;  %v14388_v20 = vld [vmem:[%s18289_s10 + $0x50] sm:$0xff]   ;;  %s18313_s14 = sld [smem:[#allocation99_spill]] }
 0x25d   : > { %12791 = vmatprep.subr.bf16.mxu1 %v14373_v5  ;;  %v14381_v13 = vld [vmem:[%s18289_s10 + $0xe0] sm:$0xff]   ;;  %v14385_v17 = vld [vmem:[%s18289_s10 + $0xd8] sm:$0xff]   ;;  %v14389_v21 = vld [vmem:[%s18289_s10 + $0xd0] sm:$0xff]  }
 0x25e   : > { %v14382_v14 = vld [vmem:[%s18289_s10 + $0x20] sm:$0xff]   ;;  %v14386_v18 = vld [vmem:[%s18289_s10 + $0x18] sm:$0xff]   ;;  %v14390_v22 = vld [vmem:[%s18289_s10 + $0x10] sm:$0xff]  }
 0x25f   : > { %12770 = vmatpush3.bf16.msra.mxu0 %v14374_v6  ;;  %v14383_v15 = vld [vmem:[%s18289_s10 + $0xa0] sm:$0xff]   ;;  %v14387_v19 = vld [vmem:[%s18289_s10 + $0x98] sm:$0xff]   ;;  %v14391_v23 = vld [vmem:[%s18289_s10 + $0x90] sm:$0xff]  }
 0x260   : > { %12792 = vmatpush3.bf16.msra.mxu1 %v14375_v7  ;;  %12771 = vmatprep.subr.bf16.mxu0 %v14376_v8  ;;  %v14392_v24 = vld [vmem:[%s18289_s10 + $0x48] sm:$0xff]   ;;  %v14396_v28 = vld [vmem:[%s18289_s10 + $0x40] sm:$0xff]   ;;  %v14400_v40 = vld [vmem:[%s18289_s10 + $0x178] sm:$0xff]  }
 0x261   : > { %12793 = vmatprep.subr.bf16.mxu1 %v14377_v9  ;;  %v14393_v25 = vld [vmem:[%s18289_s10 + $0xc8] sm:$0xff]   ;;  %v14397_v29 = vld [vmem:[%s18289_s10 + $0xc0] sm:$0xff]   ;;  %v14401_v41 = vld [vmem:[%s18289_s10 + $0x1f8] sm:$0xff]  }
 0x262   : > { %v14394_v26 = vld [vmem:[%s18289_s10 + $0x8] sm:$0xff]   ;;  %v14398_v30 = vld [vmem:[%s18289_s10] sm:$0xff]   ;;  %v14402_v42 = vld [vmem:[%s18289_s10 + $0x138] sm:$0xff]  }
 0x263   : > { %12772 = vmatpush3.bf16.msra.mxu0 %v14378_v10  ;;  %v14395_v27 = vld [vmem:[%s18289_s10 + $0x88] sm:$0xff]   ;;  %v14399_v31 = vld [vmem:[%s18289_s10 + $0x80] sm:$0xff]   ;;  %v14403_v43 = vld [vmem:[%s18289_s10 + $0x1b8] sm:$0xff]  }
 0x264   : > { %12794 = vmatpush3.bf16.msra.mxu1 %v14379_v11  ;;  %12773 = vmatprep.subr.bf16.mxu0 %v14380_v12  ;;  %v2674_v32 = vld [vmem:[%s16669_s15] sm:$0xff]  ;;  %v2675_v34 = vld [vmem:[%s16669_s15 + $0x8] sm:$0xff]  ;;  %v14404_v44 = vld [vmem:[%s18289_s10 + $0x170] sm:$0xff]  }
 0x265   : > { %12795 = vmatprep.subr.bf16.mxu1 %v14381_v13  ;;  %v2686_v33 = vld [vmem:[%s16669_s15 + $0x60] sm:$0xff]  ;;  %v2687_v37 = vld [vmem:[%s16669_s15 + $0x68] sm:$0xff]  ;;  %v14405_v45 = vld [vmem:[%s18289_s10 + $0x1f0] sm:$0xff]  }
 0x266   : > { %v12310_v35 = vcombine.low %v2674_v32, %v2686_v33  ;;  %v12311_v36 = vcombine.high %v2674_v32, %v2686_v33  ;;  %v12312_v38 = vcombine.low %v2675_v34, %v2687_v37  ;;  %v12313_v39 = vcombine.high %v2675_v34, %v2687_v37  ;;  %v14406_v46 = vld [vmem:[%s18289_s10 + $0x130] sm:$0xff]   ;;  %v14408_v48 = vld [vmem:[%s18289_s10 + $0x168] sm:$0xff]   ;;  %v14412_v52 = vld [vmem:[%s18289_s10 + $0x160] sm:$0xff]  }
 0x267   : > { %12774 = vmatpush3.bf16.msra.mxu0 %v14382_v14  ;;  %v14407_v47 = vld [vmem:[%s18289_s10 + $0x1b0] sm:$0xff]   ;;  %v14409_v49 = vld [vmem:[%s18289_s10 + $0x1e8] sm:$0xff]   ;;  %v14413_v53 = vld [vmem:[%s18289_s10 + $0x1e0] sm:$0xff]  }
 0x268   : > { %12796 = vmatpush3.bf16.msra.mxu1 %v14383_v15  ;;  %12775 = vmatprep.subr.bf16.mxu0 %v14384_v16  ;;  %v14410_v50 = vld [vmem:[%s18289_s10 + $0x128] sm:$0xff]   ;;  %v14414_v54 = vld [vmem:[%s18289_s10 + $0x120] sm:$0xff]   ;;  %v14416_v56 = vld [vmem:[%s18289_s10 + $0x158] sm:$0xff]  }
 0x269   : > { %12797 = vmatprep.subr.bf16.mxu1 %v14385_v17  ;;  %4398 = vmatprep.mubr.bf16.mxu0 %v12311_v36  ;;  %v14411_v51 = vld [vmem:[%s18289_s10 + $0x1a8] sm:$0xff]   ;;  %v14415_v55 = vld [vmem:[%s18289_s10 + $0x1a0] sm:$0xff]   ;;  %v14417_v57 = vld [vmem:[%s18289_s10 + $0x1d8] sm:$0xff]  }
 0x26a   : > { %4439 = vmatprep.mubr.bf16.mxu1 %v12313_v39  ;;  %v14418_v58 = vld [vmem:[%s18289_s10 + $0x118] sm:$0xff]   ;;  %v14420_v60 = vld [vmem:[%s18289_s10 + $0x150] sm:$0xff]   ;;  %v14424_v0 = vld [vmem:[%s18289_s10 + $0x148] sm:$0xff]  }
 0x26b   : > { %12776 = vmatpush3.bf16.msra.mxu0 %v14386_v18  ;;  %v14419_v59 = vld [vmem:[%s18289_s10 + $0x198] sm:$0xff]   ;;  %v14421_v61 = vld [vmem:[%s18289_s10 + $0x1d0] sm:$0xff]   ;;  %v14425_v1 = vld [vmem:[%s18289_s10 + $0x1c8] sm:$0xff]  }
 0x26c   : > { %12798 = vmatpush3.bf16.msra.mxu1 %v14387_v19  ;;  %12777 = vmatprep.subr.bf16.mxu0 %v14388_v20  ;;  %v14422_v62 = vld [vmem:[%s18289_s10 + $0x110] sm:$0xff]   ;;  %v14426_v2 = vld [vmem:[%s18289_s10 + $0x108] sm:$0xff]   ;;  %v14428_v4 = vld [vmem:[%s18289_s10 + $0x140] sm:$0xff]  }
 0x26d   : > { %12799 = vmatprep.subr.bf16.mxu1 %v14389_v21  ;;  %v14423_v63 = vld [vmem:[%s18289_s10 + $0x190] sm:$0xff]   ;;  %v14427_v3 = vld [vmem:[%s18289_s10 + $0x188] sm:$0xff]   ;;  %v14429_v5 = vld [vmem:[%s18289_s10 + $0x1c0] sm:$0xff]  }
 0x26e   : > { %v14430_v6 = vld [vmem:[%s18289_s10 + $0x100] sm:$0xff]   ;;  %v2676_v8 = vld [vmem:[%s16669_s15 + $0x10] sm:$0xff]  ;;  %v2677_v12 = vld [vmem:[%s16669_s15 + $0x18] sm:$0xff] }
 0x26f   : > { %12778 = vmatpush3.bf16.msra.mxu0 %v14390_v22  ;;  %v14431_v7 = vld [vmem:[%s18289_s10 + $0x180] sm:$0xff]   ;;  %v2688_v9 = vld [vmem:[%s16669_s15 + $0x70] sm:$0xff]  ;;  %v2689_v13 = vld [vmem:[%s16669_s15 + $0x78] sm:$0xff] }
 0x270   : > { %12800 = vmatpush3.bf16.msra.mxu1 %v14391_v23  ;;  %12779 = vmatprep.subr.bf16.mxu0 %v14392_v24  ;;  %v12314_v10 = vcombine.low %v2676_v8, %v2688_v9  ;;  %v12315_v11 = vcombine.high %v2676_v8, %v2688_v9  ;;  %v12316_v14 = vcombine.low %v2677_v12, %v2689_v13  ;;  %v14432_v16 = vld [vmem:[%s18289_s10 + $0x278] sm:$0xff]   ;;  %v14436_v20 = vld [vmem:[%s18289_s10 + $0x270] sm:$0xff]   ;;  %v14440_v24 = vld [vmem:[%s18289_s10 + $0x268] sm:$0xff]  }
 0x271   : > { %12801 = vmatprep.subr.bf16.mxu1 %v14393_v25  ;;  %v12317_v15 = vcombine.high %v2677_v12, %v2689_v13  ;;  %v14433_v17 = vld [vmem:[%s18289_s10 + $0x2f8] sm:$0xff]   ;;  %v14437_v21 = vld [vmem:[%s18289_s10 + $0x2f0] sm:$0xff]   ;;  %v14441_v25 = vld [vmem:[%s18289_s10 + $0x2e8] sm:$0xff]  }
 0x272   : > { %v14434_v18 = vld [vmem:[%s18289_s10 + $0x238] sm:$0xff]   ;;  %v14438_v22 = vld [vmem:[%s18289_s10 + $0x230] sm:$0xff]  }
 0x273   : > { %12780 = vmatpush3.bf16.msra.mxu0 %v14394_v26  ;;  %v14435_v19 = vld [vmem:[%s18289_s10 + $0x2b8] sm:$0xff]   ;;  %v14439_v23 = vld [vmem:[%s18289_s10 + $0x2b0] sm:$0xff]   ;;  %v14442_v26 = vld [vmem:[%s18289_s10 + $0x228] sm:$0xff]  }
 0x274   : > { %12802 = vmatpush3.bf16.msra.mxu1 %v14395_v27  ;;  %12781 = vmatprep.subr.bf16.mxu0 %v14396_v28  ;;  %v14443_v27 = vld [vmem:[%s18289_s10 + $0x2a8] sm:$0xff]   ;;  %v14444_v28 = vld [vmem:[%s18289_s10 + $0x260] sm:$0xff]   ;;  %v14448_v32 = vld [vmem:[%s18289_s10 + $0x258] sm:$0xff]  }
 0x275   : > { %12803 = vmatprep.subr.bf16.mxu1 %v14397_v29  ;;  %v14445_v29 = vld [vmem:[%s18289_s10 + $0x2e0] sm:$0xff]   ;;  %v14449_v33 = vld [vmem:[%s18289_s10 + $0x2d8] sm:$0xff]   ;;  %v14452_v36 = vld [vmem:[%s18289_s10 + $0x250] sm:$0xff]  }
 0x276   : > { %v14450_v34 = vld [vmem:[%s18289_s10 + $0x218] sm:$0xff]   ;;  %v14453_v37 = vld [vmem:[%s18289_s10 + $0x2d0] sm:$0xff]  }
 0x277   : > { %12782 = vmatpush3.bf16.msra.mxu0 %v14398_v30  ;;  %v14446_v30 = vld [vmem:[%s18289_s10 + $0x220] sm:$0xff]   ;;  %v14455_v39 = vld [vmem:[%s18289_s10 + $0x290] sm:$0xff]   ;;  %v14480_v8 = vld [vmem:[%s18289_s10 + $0x358] sm:$0xff]  }
 0x278   : > { %12804 = vmatpush3.bf16.msra.mxu1 %v14399_v31  ;;  %12811 = vmatprep.subr.bf16.mxu0 %v14400_v40  ;;  %v14447_v31 = vld [vmem:[%s18289_s10 + $0x2a0] sm:$0xff]   ;;  %v14456_v40 = vld [vmem:[%s18289_s10 + $0x248] sm:$0xff]   ;;  %v14481_v9 = vld [vmem:[%s18289_s10 + $0x3d8] sm:$0xff]  }
 0x279   : > { %12833 = vmatprep.subr.bf16.mxu1 %v14401_v41  ;;  %v14457_v41 = vld [vmem:[%s18289_s10 + $0x2c8] sm:$0xff]   ;;  %v14484_v12 = vld [vmem:[%s18289_s10 + $0x350] sm:$0xff]  }
 0x27a   : > { %4399 = vmatmul.mubr.bf16.vlgmr.msra.gmra.mxu0 %v12310_v35  ;;  %v14451_v35 = vld [vmem:[%s18289_s10 + $0x298] sm:$0xff]   ;;  %v14485_v13 = vld [vmem:[%s18289_s10 + $0x3d0] sm:$0xff]  }
 0x27b   : > { %4440 = vmatmul.mubr.bf16.vlgmr.msra.gmra.mxu1 %v12312_v38  ;;  %12812 = vmatpush3.bf16.msra.mxu0 %v14402_v42  ;;  %v14454_v38 = vld [vmem:[%s18289_s10 + $0x210] sm:$0xff]   ;;  %v14458_v42 = vld [vmem:[%s18289_s10 + $0x208] sm:$0xff]  }
 0x27c   : > { %12834 = vmatpush3.bf16.msra.mxu1 %v14403_v43  ;;  %12813 = vmatprep.subr.bf16.mxu0 %v14404_v44  ;;  %v14459_v43 = vld [vmem:[%s18289_s10 + $0x288] sm:$0xff]   ;;  %v14460_v44 = vld [vmem:[%s18289_s10 + $0x240] sm:$0xff]  }
 0x27d   : > { %12835 = vmatprep.subr.bf16.mxu1 %v14405_v45  ;;  %4480 = vmatprep.mubr.bf16.mxu0 %v12315_v11  ;;  %v14461_v45 = vld [vmem:[%s18289_s10 + $0x2c0] sm:$0xff]   ;;  %v14483_v11 = vld [vmem:[%s18289_s10 + $0x398] sm:$0xff]  }
 0x27e   : > { %4521 = vmatprep.mubr.bf16.mxu1 %v12317_v15  ;;  %v14487_v15 = vld [vmem:[%s18289_s10 + $0x390] sm:$0xff]  }
 0x27f   : > { %12814 = vmatpush3.bf16.msra.mxu0 %v14406_v46  ;;  %v14462_v46 = vld [vmem:[%s18289_s10 + $0x200] sm:$0xff]  }
 0x280   : > { %12836 = vmatpush3.bf16.msra.mxu1 %v14407_v47  ;;  %12815 = vmatprep.subr.bf16.mxu0 %v14408_v48  ;;  %v14463_v47 = vld [vmem:[%s18289_s10 + $0x280] sm:$0xff]  }
 0x281   : > { %12837 = vmatprep.subr.bf16.mxu1 %v14409_v49  ;;  %v2678_v48 = vld [vmem:[%s16669_s15 + $0x20] sm:$0xff] }
 0x282   : > { %v2690_v49 = vld [vmem:[%s16669_s15 + $0x80] sm:$0xff] }
 0x283   : > { %12816 = vmatpush3.bf16.msra.mxu0 %v14410_v50  ;;  %v2679_v50 = vld [vmem:[%s16669_s15 + $0x28] sm:$0xff] }
 0x284   : > { %12838 = vmatpush3.bf16.msra.mxu1 %v14411_v51  ;;  %12817 = vmatprep.subr.bf16.mxu0 %v14412_v52  ;;  %v2691_v51 = vld [vmem:[%s16669_s15 + $0x88] sm:$0xff]  ;;  %v12318_v52 = vcombine.low %v2678_v48, %v2690_v49 }
 0x285   : > { %12839 = vmatprep.subr.bf16.mxu1 %v14413_v53  ;;  %v12319_v53 = vcombine.high %v2678_v48, %v2690_v49  ;;  %v14512_v48 = vld [vmem:[%s18289_s10 + $0x458] sm:$0xff]  }
 0x286   : > { %v14513_v49 = vld [vmem:[%s18289_s10 + $0x4d8] sm:$0xff]  }
 0x287   : > { %12818 = vmatpush3.bf16.msra.mxu0 %v14414_v54  ;;  %v12320_v54 = vcombine.low %v2679_v50, %v2691_v51 }
 0x288   : > { %12840 = vmatpush3.bf16.msra.mxu1 %v14415_v55  ;;  %12819 = vmatprep.subr.bf16.mxu0 %v14416_v56  ;;  %v12321_v55 = vcombine.high %v2679_v50, %v2691_v51  ;;  %v14464_v56 = vld [vmem:[%s18289_s10 + $0x378] sm:$0xff]  }
 0x289   : > { %12841 = vmatprep.subr.bf16.mxu1 %v14417_v57  ;;  %v14465_v57 = vld [vmem:[%s18289_s10 + $0x3f8] sm:$0xff]  }
 0x28a   : > { %v14514_v50 = vld [vmem:[%s18289_s10 + $0x418] sm:$0xff]  }
 0x28b   : > { %12820 = vmatpush3.bf16.msra.mxu0 %v14418_v58  ;;  %v14466_v58 = vld [vmem:[%s18289_s10 + $0x338] sm:$0xff]  }
 0x28c   : > { %12842 = vmatpush3.bf16.msra.mxu1 %v14419_v59  ;;  %12821 = vmatprep.subr.bf16.mxu0 %v14420_v60  ;;  %v14467_v59 = vld [vmem:[%s18289_s10 + $0x3b8] sm:$0xff]   ;;  %v14468_v60 = vld [vmem:[%s18289_s10 + $0x370] sm:$0xff]  }
 0x28d   : > { %12843 = vmatprep.subr.bf16.mxu1 %v14421_v61  ;;  %v14469_v61 = vld [vmem:[%s18289_s10 + $0x3f0] sm:$0xff]   ;;  %v14515_v51 = vld [vmem:[%s18289_s10 + $0x498] sm:$0xff]  }
 0x28f   : > { %12822 = vmatpush3.bf16.msra.mxu0 %v14422_v62  ;;  %v14470_v62 = vld [vmem:[%s18289_s10 + $0x330] sm:$0xff]  }
 0x290   : > { %12844 = vmatpush3.bf16.msra.mxu1 %v14423_v63  ;;  %12823 = vmatprep.subr.bf16.mxu0 %v14424_v0  ;;  %v14471_v63 = vld [vmem:[%s18289_s10 + $0x3b0] sm:$0xff]   ;;  %v14472_v0 = vld [vmem:[%s18289_s10 + $0x368] sm:$0xff]  }
 0x291   : > { %12845 = vmatprep.subr.bf16.mxu1 %v14425_v1  ;;  %v14473_v1 = vld [vmem:[%s18289_s10 + $0x3e8] sm:$0xff]  }
 0x293   : > { %12824 = vmatpush3.bf16.msra.mxu0 %v14426_v2  ;;  %v14474_v2 = vld [vmem:[%s18289_s10 + $0x328] sm:$0xff]  }
 0x294   : > { %12846 = vmatpush3.bf16.msra.mxu1 %v14427_v3  ;;  %12825 = vmatprep.subr.bf16.mxu0 %v14428_v4  ;;  %v14475_v3 = vld [vmem:[%s18289_s10 + $0x3a8] sm:$0xff]   ;;  %v14476_v4 = vld [vmem:[%s18289_s10 + $0x360] sm:$0xff]  }
 0x295   : > { %12847 = vmatprep.subr.bf16.mxu1 %v14429_v5  ;;  %v14477_v5 = vld [vmem:[%s18289_s10 + $0x3e0] sm:$0xff]  }
 0x297   : > { %12826 = vmatpush3.bf16.msra.mxu0 %v14430_v6  ;;  %v14478_v6 = vld [vmem:[%s18289_s10 + $0x320] sm:$0xff]  }
 0x298   : > { %12848 = vmatpush3.bf16.msra.mxu1 %v14431_v7  ;;  %12855 = vmatprep.subr.bf16.mxu0 %v14432_v16  ;;  %v14479_v7 = vld [vmem:[%s18289_s10 + $0x3a0] sm:$0xff]   ;;  %v14488_v16 = vld [vmem:[%s18289_s10 + $0x348] sm:$0xff]  }
 0x299   : > { %12877 = vmatprep.subr.bf16.mxu1 %v14433_v17  ;;  %v14489_v17 = vld [vmem:[%s18289_s10 + $0x3c8] sm:$0xff]  }
 0x29a   : > { %4481 = vmatmul.mubr.bf16.vlgmr.msra.gmra.mxu0 %v12314_v10  ;;  %v14482_v10 = vld [vmem:[%s18289_s10 + $0x318] sm:$0xff]  }
 0x29b   : > { %4522 = vmatmul.mubr.bf16.vlgmr.msra.gmra.mxu1 %v12316_v14  ;;  %12856 = vmatpush3.bf16.msra.mxu0 %v14434_v18  ;;  %v14486_v14 = vld [vmem:[%s18289_s10 + $0x310] sm:$0xff]   ;;  %v14490_v18 = vld [vmem:[%s18289_s10 + $0x308] sm:$0xff]  }
 0x29c   : > { %12878 = vmatpush3.bf16.msra.mxu1 %v14435_v19  ;;  %12857 = vmatprep.subr.bf16.mxu0 %v14436_v20  ;;  %v14491_v19 = vld [vmem:[%s18289_s10 + $0x388] sm:$0xff]   ;;  %v14492_v20 = vld [vmem:[%s18289_s10 + $0x340] sm:$0xff]  }
 0x29d   : > { %12879 = vmatprep.subr.bf16.mxu1 %v14437_v21  ;;  %4562 = vmatprep.mubr.bf16.mxu0 %v12319_v53  ;;  %v14493_v21 = vld [vmem:[%s18289_s10 + $0x3c0] sm:$0xff]   ;;  %v14517_v53 = vld [vmem:[%s18289_s10 + $0x4d0] sm:$0xff]  }
 0x29e   : > { %4603 = vmatprep.mubr.bf16.mxu1 %v12321_v55  ;;  %v14519_v55 = vld [vmem:[%s18289_s10 + $0x490] sm:$0xff]  }
 0x29f   : > { %12858 = vmatpush3.bf16.msra.mxu0 %v14438_v22  ;;  %v14494_v22 = vld [vmem:[%s18289_s10 + $0x300] sm:$0xff]  }
 0x2a0   : > { %12880 = vmatpush3.bf16.msra.mxu1 %v14439_v23  ;;  %12859 = vmatprep.subr.bf16.mxu0 %v14440_v24  ;;  %v14495_v23 = vld [vmem:[%s18289_s10 + $0x380] sm:$0xff]   ;;  %v2680_v24 = vld [vmem:[%s16669_s15 + $0x30] sm:$0xff] }
 0x2a1   : > { %12881 = vmatprep.subr.bf16.mxu1 %v14441_v25  ;;  %v2692_v25 = vld [vmem:[%s16669_s15 + $0x90] sm:$0xff] }
 0x2a3   : > { %12860 = vmatpush3.bf16.msra.mxu0 %v14442_v26  ;;  %v2681_v26 = vld [vmem:[%s16669_s15 + $0x38] sm:$0xff] }
 0x2a4   : > { %12882 = vmatpush3.bf16.msra.mxu1 %v14443_v27  ;;  %12861 = vmatprep.subr.bf16.mxu0 %v14444_v28  ;;  %v12322_v27 = vcombine.low %v2680_v24, %v2692_v25  ;;  %v12323_v28 = vcombine.high %v2680_v24, %v2692_v25  ;;  %v14544_v24 = vld [vmem:[%s18289_s10 + $0x558] sm:$0xff]  }
 0x2a5   : > { %12883 = vmatprep.subr.bf16.mxu1 %v14445_v29  ;;  %v2693_v29 = vld [vmem:[%s16669_s15 + $0x98] sm:$0xff] }
 0x2a6   : > { %v14545_v25 = vld [vmem:[%s18289_s10 + $0x5d8] sm:$0xff]  }
 0x2a7   : > { %12862 = vmatpush3.bf16.msra.mxu0 %v14446_v30  ;;  %v12324_v30 = vcombine.low %v2681_v26, %v2693_v29 }
 0x2a8   : > { %12884 = vmatpush3.bf16.msra.mxu1 %v14447_v31  ;;  %12863 = vmatprep.subr.bf16.mxu0 %v14448_v32  ;;  %v12325_v31 = vcombine.high %v2681_v26, %v2693_v29  ;;  %v14496_v32 = vld [vmem:[%s18289_s10 + $0x478] sm:$0xff]   ;;  %v14549_v29 = vld [vmem:[%s18289_s10 + $0x5d0] sm:$0xff]  }
 0x2a9   : > { %12885 = vmatprep.subr.bf16.mxu1 %v14449_v33  ;;  %v14497_v33 = vld [vmem:[%s18289_s10 + $0x4f8] sm:$0xff]  }
 0x2aa   : > { %v14546_v26 = vld [vmem:[%s18289_s10 + $0x518] sm:$0xff]  }
 0x2ab   : > { %12864 = vmatpush3.bf16.msra.mxu0 %v14450_v34  ;;  %v14498_v34 = vld [vmem:[%s18289_s10 + $0x438] sm:$0xff]  }
 0x2ac   : > { %12886 = vmatpush3.bf16.msra.mxu1 %v14451_v35  ;;  %12865 = vmatprep.subr.bf16.mxu0 %v14452_v36  ;;  %v14499_v35 = vld [vmem:[%s18289_s10 + $0x4b8] sm:$0xff]   ;;  %v14500_v36 = vld [vmem:[%s18289_s10 + $0x470] sm:$0xff]  }
 0x2ad   : > { %12887 = vmatprep.subr.bf16.mxu1 %v14453_v37  ;;  %v14501_v37 = vld [vmem:[%s18289_s10 + $0x4f0] sm:$0xff]  }
 0x2af   : > { %12866 = vmatpush3.bf16.msra.mxu0 %v14454_v38  ;;  %v14502_v38 = vld [vmem:[%s18289_s10 + $0x430] sm:$0xff]  }
 0x2b0   : > { %12888 = vmatpush3.bf16.msra.mxu1 %v14455_v39  ;;  %12867 = vmatprep.subr.bf16.mxu0 %v14456_v40  ;;  %v14503_v39 = vld [vmem:[%s18289_s10 + $0x4b0] sm:$0xff]   ;;  %v14504_v40 = vld [vmem:[%s18289_s10 + $0x468] sm:$0xff]  }
 0x2b1   : > { %12889 = vmatprep.subr.bf16.mxu1 %v14457_v41  ;;  %v14505_v41 = vld [vmem:[%s18289_s10 + $0x4e8] sm:$0xff]  }
 0x2b3   : > { %12868 = vmatpush3.bf16.msra.mxu0 %v14458_v42  ;;  %v14506_v42 = vld [vmem:[%s18289_s10 + $0x428] sm:$0xff]  }
 0x2b4   : > { %12890 = vmatpush3.bf16.msra.mxu1 %v14459_v43  ;;  %12869 = vmatprep.subr.bf16.mxu0 %v14460_v44  ;;  %v14507_v43 = vld [vmem:[%s18289_s10 + $0x4a8] sm:$0xff]   ;;  %v14508_v44 = vld [vmem:[%s18289_s10 + $0x460] sm:$0xff]  }
 0x2b5   : > { %12891 = vmatprep.subr.bf16.mxu1 %v14461_v45  ;;  %v14509_v45 = vld [vmem:[%s18289_s10 + $0x4e0] sm:$0xff]  }
 0x2b7   : > { %12870 = vmatpush3.bf16.msra.mxu0 %v14462_v46  ;;  %v14510_v46 = vld [vmem:[%s18289_s10 + $0x420] sm:$0xff]  }
 0x2b8   : > { %12892 = vmatpush3.bf16.msra.mxu1 %v14463_v47  ;;  %12899 = vmatprep.subr.bf16.mxu0 %v14464_v56  ;;  %v14511_v47 = vld [vmem:[%s18289_s10 + $0x4a0] sm:$0xff]   ;;  %v14520_v56 = vld [vmem:[%s18289_s10 + $0x448] sm:$0xff]  }
 0x2b9   : > { %12921 = vmatprep.subr.bf16.mxu1 %v14465_v57  ;;  %v14521_v57 = vld [vmem:[%s18289_s10 + $0x4c8] sm:$0xff]  }
 0x2ba   : > { %4563 = vmatmul.mubr.bf16.vlgmr.msra.gmra.mxu0 %v12318_v52  ;;  %v14516_v52 = vld [vmem:[%s18289_s10 + $0x450] sm:$0xff]  }
 0x2bb   : > { %4604 = vmatmul.mubr.bf16.vlgmr.msra.gmra.mxu1 %v12320_v54  ;;  %12900 = vmatpush3.bf16.msra.mxu0 %v14466_v58  ;;  %v14518_v54 = vld [vmem:[%s18289_s10 + $0x410] sm:$0xff]   ;;  %v14522_v58 = vld [vmem:[%s18289_s10 + $0x408] sm:$0xff]  }
 0x2bc   : > { %12922 = vmatpush3.bf16.msra.mxu1 %v14467_v59  ;;  %12901 = vmatprep.subr.bf16.mxu0 %v14468_v60  ;;  %v14523_v59 = vld [vmem:[%s18289_s10 + $0x488] sm:$0xff]   ;;  %v14524_v60 = vld [vmem:[%s18289_s10 + $0x440] sm:$0xff]  }
 0x2bd   : > { %12923 = vmatprep.subr.bf16.mxu1 %v14469_v61  ;;  %4644 = vmatprep.mubr.bf16.mxu0 %v12323_v28  ;;  %v14525_v61 = vld [vmem:[%s18289_s10 + $0x4c0] sm:$0xff]   ;;  %v14548_v28 = vld [vmem:[%s18289_s10 + $0x550] sm:$0xff]  }
 0x2be   : > { %4685 = vmatprep.mubr.bf16.mxu1 %v12325_v31  ;;  %v14551_v31 = vld [vmem:[%s18289_s10 + $0x590] sm:$0xff]  }
 0x2bf   : > { %12902 = vmatpush3.bf16.msra.mxu0 %v14470_v62  ;;  %v14526_v62 = vld [vmem:[%s18289_s10 + $0x400] sm:$0xff]  }
 0x2c0   : > { %12924 = vmatpush3.bf16.msra.mxu1 %v14471_v63  ;;  %12903 = vmatprep.subr.bf16.mxu0 %v14472_v0  ;;  %v14527_v63 = vld [vmem:[%s18289_s10 + $0x480] sm:$0xff]  }
 0x2c1   : > { %12925 = vmatprep.subr.bf16.mxu1 %v14473_v1  ;;  %v2682_v0 = vld [vmem:[%s16669_s15 + $0x40] sm:$0xff] }
 0x2c2   : > { %v2694_v1 = vld [vmem:[%s16669_s15 + $0xa0] sm:$0xff] }
 0x2c3   : > { %12904 = vmatpush3.bf16.msra.mxu0 %v14474_v2  ;;  %v12326_v2 = vcombine.low %v2682_v0, %v2694_v1 }
 0x2c4   : > { %12926 = vmatpush3.bf16.msra.mxu1 %v14475_v3  ;;  %12905 = vmatprep.subr.bf16.mxu0 %v14476_v4  ;;  %v12327_v3 = vcombine.high %v2682_v0, %v2694_v1  ;;  %v2683_v4 = vld [vmem:[%s16669_s15 + $0x48] sm:$0xff] }
 0x2c5   : > { %12927 = vmatprep.subr.bf16.mxu1 %v14477_v5  ;;  %v2695_v5 = vld [vmem:[%s16669_s15 + $0xa8] sm:$0xff] }
 0x2c7   : > { %12906 = vmatpush3.bf16.msra.mxu0 %v14478_v6  ;;  %v12328_v6 = vcombine.low %v2683_v4, %v2695_v5 }
 0x2c8   : > { %12928 = vmatpush3.bf16.msra.mxu1 %v14479_v7  ;;  %12907 = vmatprep.subr.bf16.mxu0 %v14480_v8  ;;  %v12329_v7 = vcombine.high %v2683_v4, %v2695_v5  ;;  %v14528_v8 = vld [vmem:[%s18289_s10 + $0x578] sm:$0xff]  }
 0x2c9   : > { %12929 = vmatprep.subr.bf16.mxu1 %v14481_v9  ;;  %v14529_v9 = vld [vmem:[%s18289_s10 + $0x5f8] sm:$0xff]  }
 0x2cb   : > { %12908 = vmatpush3.bf16.msra.mxu0 %v14482_v10  ;;  %v14530_v10 = vld [vmem:[%s18289_s10 + $0x538] sm:$0xff]  }
 0x2cc   : > { %12930 = vmatpush3.bf16.msra.mxu1 %v14483_v11  ;;  %12909 = vmatprep.subr.bf16.mxu0 %v14484_v12  ;;  %v14531_v11 = vld [vmem:[%s18289_s10 + $0x5b8] sm:$0xff]   ;;  %v14532_v12 = vld [vmem:[%s18289_s10 + $0x570] sm:$0xff]  }
 0x2cd   : > { %12931 = vmatprep.subr.bf16.mxu1 %v14485_v13  ;;  %v14533_v13 = vld [vmem:[%s18289_s10 + $0x5f0] sm:$0xff]  }
 0x2cf   : > { %12910 = vmatpush3.bf16.msra.mxu0 %v14486_v14  ;;  %v14534_v14 = vld [vmem:[%s18289_s10 + $0x530] sm:$0xff]  }
 0x2d0   : > { %12932 = vmatpush3.bf16.msra.mxu1 %v14487_v15  ;;  %12911 = vmatprep.subr.bf16.mxu0 %v14488_v16  ;;  %v14535_v15 = vld [vmem:[%s18289_s10 + $0x5b0] sm:$0xff]   ;;  %v14536_v16 = vld [vmem:[%s18289_s10 + $0x568] sm:$0xff]  }
 0x2d1   : > { %12933 = vmatprep.subr.bf16.mxu1 %v14489_v17  ;;  %v14537_v17 = vld [vmem:[%s18289_s10 + $0x5e8] sm:$0xff]  }
 0x2d3   : > { %12912 = vmatpush3.bf16.msra.mxu0 %v14490_v18  ;;  %v14538_v18 = vld [vmem:[%s18289_s10 + $0x528] sm:$0xff]  }
 0x2d4   : > { %12934 = vmatpush3.bf16.msra.mxu1 %v14491_v19  ;;  %12913 = vmatprep.subr.bf16.mxu0 %v14492_v20  ;;  %v14539_v19 = vld [vmem:[%s18289_s10 + $0x5a8] sm:$0xff]   ;;  %v14540_v20 = vld [vmem:[%s18289_s10 + $0x560] sm:$0xff]  }
 0x2d5   : > { %12935 = vmatprep.subr.bf16.mxu1 %v14493_v21  ;;  %v14541_v21 = vld [vmem:[%s18289_s10 + $0x5e0] sm:$0xff]  }
 0x2d7   : > { %12914 = vmatpush3.bf16.msra.mxu0 %v14494_v22  ;;  %v14542_v22 = vld [vmem:[%s18289_s10 + $0x520] sm:$0xff]  }
 0x2d8   : > { %12936 = vmatpush3.bf16.msra.mxu1 %v14495_v23  ;;  %12943 = vmatprep.subr.bf16.mxu0 %v14496_v32  ;;  %v14543_v23 = vld [vmem:[%s18289_s10 + $0x5a0] sm:$0xff]   ;;  %v14552_v32 = vld [vmem:[%s18289_s10 + $0x548] sm:$0xff]  }
 0x2d9   : > { %12965 = vmatprep.subr.bf16.mxu1 %v14497_v33  ;;  %v14553_v33 = vld [vmem:[%s18289_s10 + $0x5c8] sm:$0xff]  }
 0x2da   : > { %4645 = vmatmul.mubr.bf16.vlgmr.msra.gmra.mxu0 %v12322_v27  ;;  %v14547_v27 = vld [vmem:[%s18289_s10 + $0x598] sm:$0xff]  }
 0x2db   : > { %4686 = vmatmul.mubr.bf16.vlgmr.msra.gmra.mxu1 %v12324_v30  ;;  %12944 = vmatpush3.bf16.msra.mxu0 %v14498_v34  ;;  %v14550_v30 = vld [vmem:[%s18289_s10 + $0x510] sm:$0xff]   ;;  %v14554_v34 = vld [vmem:[%s18289_s10 + $0x508] sm:$0xff]  }
 0x2dc   : > { %12966 = vmatpush3.bf16.msra.mxu1 %v14499_v35  ;;  %12945 = vmatprep.subr.bf16.mxu0 %v14500_v36  ;;  %v14555_v35 = vld [vmem:[%s18289_s10 + $0x588] sm:$0xff]   ;;  %v14556_v36 = vld [vmem:[%s18289_s10 + $0x540] sm:$0xff]  }
 0x2dd   : > { %12967 = vmatprep.subr.bf16.mxu1 %v14501_v37  ;;  %4726 = vmatprep.mubr.bf16.mxu0 %v12327_v3  ;;  %v14557_v37 = vld [vmem:[%s18289_s10 + $0x5c0] sm:$0xff]  }
 0x2de   : > { %4767 = vmatprep.mubr.bf16.mxu1 %v12329_v7 }
 0x2df   : > { %12946 = vmatpush3.bf16.msra.mxu0 %v14502_v38  ;;  %v14558_v38 = vld [vmem:[%s18289_s10 + $0x500] sm:$0xff]  }
 0x2e0   : > { %12968 = vmatpush3.bf16.msra.mxu1 %v14503_v39  ;;  %12947 = vmatprep.subr.bf16.mxu0 %v14504_v40  ;;  %v14559_v39 = vld [vmem:[%s18289_s10 + $0x580] sm:$0xff]   ;;  %v2684_v40 = vld [vmem:[%s16669_s15 + $0x50] sm:$0xff]  ;;  %s18307_s10 = sld [smem:[#allocation100_spill]] }
 0x2e1   : > { %12969 = vmatprep.subr.bf16.mxu1 %v14505_v41  ;;  %v2696_v41 = vld [vmem:[%s16669_s15 + $0xb0] sm:$0xff] }
 0x2e3   : > { %12948 = vmatpush3.bf16.msra.mxu0 %v14506_v42  ;;  %v2685_v42 = vld [vmem:[%s16669_s15 + $0x58] sm:$0xff] }
 0x2e4   : > { %12970 = vmatpush3.bf16.msra.mxu1 %v14507_v43  ;;  %12949 = vmatprep.subr.bf16.mxu0 %v14508_v44  ;;  %v2697_v43 = vld [vmem:[%s16669_s15 + $0xb8] sm:$0xff]  ;;  %v12330_v44 = vcombine.low %v2684_v40, %v2696_v41  ;;  %s18160_s15 = smov 64  }
 0x2e5   : > { %12971 = vmatprep.subr.bf16.mxu1 %v14509_v45  ;;  %v12331_v45 = vcombine.high %v2684_v40, %v2696_v41 }
 0x2e7   : > { %12950 = vmatpush3.bf16.msra.mxu0 %v14510_v46  ;;  %v12332_v46 = vcombine.low %v2685_v42, %v2697_v43 }
 0x2e8   : > { %12972 = vmatpush3.bf16.msra.mxu1 %v14511_v47  ;;  %12951 = vmatprep.subr.bf16.mxu0 %v14512_v48  ;;  %v12333_v47 = vcombine.high %v2685_v42, %v2697_v43  ;;  %v14560_v48 = vld [vmem:[%s18262_s5 + $0x18] sm:$0xff]  }
 0x2e9   : > { %12973 = vmatprep.subr.bf16.mxu1 %v14513_v49  ;;  %v15961_v49 = vmov 0.0  }
 0x2eb   : > { %12952 = vmatpush3.bf16.msra.mxu0 %v14514_v50  ;;  %v14561_v50 = vld [vmem:[%s18262_s5 + $0x10] sm:$0xff]  }
 0x2ec   : > { %12974 = vmatpush3.bf16.msra.mxu1 %v14515_v51  ;;  %12953 = vmatprep.subr.bf16.mxu0 %v14516_v52  ;;  %v14562_v51 = vld [vmem:[%s18262_s5 + $0x8] sm:$0xff]   ;;  %v14563_v52 = vld [vmem:[%s18262_s5] sm:$0xff]   ;;  %s18301_s5 = smov 64  }
 0x2ed   : > { %12975 = vmatprep.subr.bf16.mxu1 %v14517_v53 }
 0x2ef   : > { %12954 = vmatpush3.bf16.msra.mxu0 %v14518_v54 }
 0x2f0   : > { %12976 = vmatpush3.bf16.msra.mxu1 %v14519_v55  ;;  %12955 = vmatprep.subr.bf16.mxu0 %v14520_v56 }
 0x2f1   : > { %12977 = vmatprep.subr.bf16.mxu1 %v14521_v57 }
 0x2f3   : > { %12956 = vmatpush3.bf16.msra.mxu0 %v14522_v58 }
 0x2f4   : > { %12978 = vmatpush3.bf16.msra.mxu1 %v14523_v59  ;;  %12957 = vmatprep.subr.bf16.mxu0 %v14524_v60 }
 0x2f5   : > { %12979 = vmatprep.subr.bf16.mxu1 %v14525_v61 }
 0x2f7   : > { %12958 = vmatpush3.bf16.msra.mxu0 %v14526_v62 }
 0x2f8   : > { %12980 = vmatpush3.bf16.msra.mxu1 %v14527_v63  ;;  %12987 = vmatprep.subr.bf16.mxu0 %v14528_v8 }
 0x2f9   : > { %13009 = vmatprep.subr.bf16.mxu1 %v14529_v9 }
 0x2fa   : > { %4727 = vmatmul.mubr.bf16.vlgmr.msra.gmra.mxu0 %v12326_v2 }
 0x2fb   : > { %4768 = vmatmul.mubr.bf16.vlgmr.msra.gmra.mxu1 %v12328_v6  ;;  %12988 = vmatpush3.bf16.msra.mxu0 %v14530_v10 }
 0x2fc   : > { %13010 = vmatpush3.bf16.msra.mxu1 %v14531_v11  ;;  %12989 = vmatprep.subr.bf16.mxu0 %v14532_v12 }
 0x2fd   : > { %13011 = vmatprep.subr.bf16.mxu1 %v14533_v13  ;;  %4808 = vmatprep.mubr.bf16.mxu0 %v12331_v45 }
 0x2fe   : > { %4849 = vmatprep.mubr.bf16.mxu1 %v12333_v47 }
 0x2ff   : > { %12990 = vmatpush3.bf16.msra.mxu0 %v14534_v14 }
 0x300   : > { %13012 = vmatpush3.bf16.msra.mxu1 %v14535_v15  ;;  %12991 = vmatprep.subr.bf16.mxu0 %v14536_v16  ;;  %v12309_v15 = vld [vmem:[%s18291_s18] ss:$0 sm:$0xff]  ;;  %s18164_s18 = smov 104  }
 0x301   : > { %13013 = vmatprep.subr.bf16.mxu1 %v14537_v17 }
 0x303   : > { %12992 = vmatpush3.bf16.msra.mxu0 %v14538_v18 }
 0x304   : > { %13014 = vmatpush3.bf16.msra.mxu1 %v14539_v19  ;;  %12993 = vmatprep.subr.bf16.mxu0 %v14540_v20 }
 0x305   : > { %13015 = vmatprep.subr.bf16.mxu1 %v14541_v21 }
 0x307   : > { %12994 = vmatpush3.bf16.msra.mxu0 %v14542_v22 }
 0x308   : > { %13016 = vmatpush3.bf16.msra.mxu1 %v14543_v23  ;;  %12995 = vmatprep.subr.bf16.mxu0 %v14544_v24 }
 0x309   : > { %13017 = vmatprep.subr.bf16.mxu1 %v14545_v25 }
 0x30b   : > { %12996 = vmatpush3.bf16.msra.mxu0 %v14546_v26 }
 0x30c   : > { %13018 = vmatpush3.bf16.msra.mxu1 %v14547_v27  ;;  %12997 = vmatprep.subr.bf16.mxu0 %v14548_v28 }
 0x30d   : > { %13019 = vmatprep.subr.bf16.mxu1 %v14549_v29 }
 0x30f   : > { %12998 = vmatpush3.bf16.msra.mxu0 %v14550_v30 }
 0x310   : > { %13020 = vmatpush3.bf16.msra.mxu1 %v14551_v31  ;;  %12999 = vmatprep.subr.bf16.mxu0 %v14552_v32 }
 0x311   : > { %13021 = vmatprep.subr.bf16.mxu1 %v14553_v33 }
 0x313   : > { %13000 = vmatpush3.bf16.msra.mxu0 %v14554_v34 }
 0x314   : > { %13022 = vmatpush3.bf16.msra.mxu1 %v14555_v35  ;;  %13001 = vmatprep.subr.bf16.mxu0 %v14556_v36 }
 0x315   : > { %13023 = vmatprep.subr.bf16.mxu1 %v14557_v37 }
 0x317   : > { %13002 = vmatpush3.bf16.msra.mxu0 %v14558_v38 }
 0x318   : > { %13024 = vmatpush3.bf16.msra.mxu1 %v14559_v39  ;;  %13302 = vmatprep.subr.bf16.mxu0 %v15961_v49 }
 0x319   : > { %13314 = vmatprep.subr.bf16.mxu1 %v15961_v49 }
 0x31a   : > { %4809 = vmatmul.mubr.bf16.vlgmr.msra.gmra.mxu0 %v12330_v44 }
 0x31b   : > { %4850 = vmatmul.mubr.bf16.vlgmr.msra.gmra.mxu1 %v12332_v46  ;;  %13303 = vmatpush3.bf16.msra.mxu0 %v14560_v48 }
 0x31c   : > { %13304 = vmatprep.subr.bf16.mxu0 %v15961_v49  ;;  %13310 = vmatprep.mubr.msk.bf16.mxu0 %vm15962_vm0, %v15961_v49 }
 0x31d   : > { %13318 = vmatprep.mubr.msk.bf16.mxu1 %vm15962_vm0, %v15961_v49 }
 0x31f   : > { %13305 = vmatpush3.bf16.msra.mxu0 %v14561_v50 }
 0x320   : > { %13306 = vmatprep.subr.bf16.mxu0 %v15961_v49 }
 0x323   : > { %13307 = vmatpush3.bf16.msra.mxu0 %v14562_v51 }
 0x324   : > { %13308 = vmatprep.subr.bf16.mxu0 %v15961_v49 }
 0x327   : > { %13309 = vmatpush3.bf16.msra.mxu0 %v14563_v52 }
 0x328   : > { %13330 = vmatprep.subr.bf16.mxu0 %v15961_v49 }
 0x33a   : > { %v12783_v53 = vpop.f32.mrf.mxu0 }
 0x33b   : > { %v12805_v54 = vpop.f32.mrf.mxu1 }
 0x33c   : > { %v12784_v55 = vpop.f32.mrf.mxu0 }
 0x33d   : > { %v12806_v56 = vpop.f32.mrf.mxu1  ;;  %v12785_v14 = vadd.f32 %v12784_v55, %v12783_v53 }
 0x33e   : > { %v12786_v57 = vpop.f32.mrf.mxu0  ;;  %v12807_v19 = vadd.f32 %v12806_v56, %v12805_v54 }
 0x33f   : > { %v12808_v58 = vpop.f32.mrf.mxu1  ;;  %v4401_v18 = vadd.f32 %v12785_v14, %v12309_v15 }
 0x340   : > { %v12787_v59 = vpop.f32.mrf.mxu0 }
 0x341   : > { %v12809_v60 = vpop.f32.mrf.mxu1  ;;  %v12788_v20 = vadd.f32 %v12787_v59, %v12786_v57  ;;  %v4442_v24 = vadd.f32 %v12807_v19, %v4401_v18 }
 0x342   : > { %v12810_v27 = vadd.f32 %v12809_v60, %v12808_v58 }
 0x343   : > { %v4404_v25 = vadd.f32 %v12788_v20, %v12309_v15 }
 0x345   : > { %v4445_v32 = vadd.f32 %v12810_v27, %v4404_v25  ;;  %v14565_v27 = vld [vmem:[%s18292_s1] sm:$0xff]  }
 0x35a   : > { %v12827_v61 = vpop.f32.mrf.mxu0 }
 0x35b   : > { %v12849_v62 = vpop.f32.mrf.mxu1 }
 0x35c   : > { %v12828_v63 = vpop.f32.mrf.mxu0 }
 0x35d   : > { %v12850_v0 = vpop.f32.mrf.mxu1  ;;  %v12829_v22 = vadd.f32 %v12828_v63, %v12827_v61 }
 0x35e   : > { %v12830_v1 = vpop.f32.mrf.mxu0  ;;  %v12851_v29 = vadd.f32 %v12850_v0, %v12849_v62 }
 0x35f   : > { %v12852_v2 = vpop.f32.mrf.mxu1  ;;  %v4483_v28 = vadd.f32 %v12829_v22, %v4442_v24 }
 0x360   : > { %v12831_v3 = vpop.f32.mrf.mxu0 }
 0x361   : > { %v12853_v4 = vpop.f32.mrf.mxu1  ;;  %v12832_v30 = vadd.f32 %v12831_v3, %v12830_v1  ;;  %v4524_v36 = vadd.f32 %v12851_v29, %v4483_v28  ;;  %v12526_v28 = vld [vmem:[#allocation52] ss:$0 sm:$0xff] }
 0x362   : > { %v12854_v39 = vadd.f32 %v12853_v4, %v12852_v2 }
 0x363   : > { %v4486_v37 = vadd.f32 %v12832_v30, %v4445_v32  ;;  %v16882_v32 = vld [vmem:[%s18293_s11] sm:$0xff] }
 0x365   : > { %v4527_v44 = vadd.f32 %v12854_v39, %v4486_v37 }
 0x37a   : > { %v12871_v5 = vpop.f32.mrf.mxu0 }
 0x37b   : > { %v12893_v6 = vpop.f32.mrf.mxu1 }
 0x37c   : > { %v12872_v7 = vpop.f32.mrf.mxu0 }
 0x37d   : > { %v12894_v8 = vpop.f32.mrf.mxu1  ;;  %v12873_v33 = vadd.f32 %v12872_v7, %v12871_v5 }
 0x37e   : > { %v12874_v9 = vpop.f32.mrf.mxu0  ;;  %v12895_v41 = vadd.f32 %v12894_v8, %v12893_v6 }
 0x37f   : > { %v12896_v10 = vpop.f32.mrf.mxu1  ;;  %v4565_v40 = vadd.f32 %v12873_v33, %v4524_v36  ;;  %v16885_v33 = vld [vmem:[%s18293_s11 + $0x8] sm:$0xff] }
 0x380   : > { %v12875_v11 = vpop.f32.mrf.mxu0 }
 0x381   : > { %v12897_v12 = vpop.f32.mrf.mxu1  ;;  %v12876_v42 = vadd.f32 %v12875_v11, %v12874_v9  ;;  %v4606_v47 = vadd.f32 %v12895_v41, %v4565_v40  ;;  %v16896_v41 = vld [vmem:[#allocation30] ss:$0 sm:$0xff] }
 0x382   : > { %v12898_v51 = vadd.f32 %v12897_v12, %v12896_v10 }
 0x383   : > { %v4568_v48 = vadd.f32 %v12876_v42, %v4527_v44 }
 0x385   : > { %v4609_v56 = vadd.f32 %v12898_v51, %v4568_v48 }
 0x39a   : > { %v12915_v13 = vpop.f32.mrf.mxu0 }
 0x39b   : > { %v12937_v16 = vpop.f32.mrf.mxu1 }
 0x39c   : > { %v12916_v17 = vpop.f32.mrf.mxu0 }
 0x39d   : > { %v12938_v21 = vpop.f32.mrf.mxu1  ;;  %v12917_v45 = vadd.f32 %v12916_v17, %v12915_v13 }
 0x39e   : > { %v12918_v23 = vpop.f32.mrf.mxu0  ;;  %v12939_v53 = vadd.f32 %v12938_v21, %v12937_v16 }
 0x39f   : > { %v12940_v26 = vpop.f32.mrf.mxu1  ;;  %v4647_v52 = vadd.f32 %v12917_v45, %v4606_v47 }
 0x3a0   : > { %v12919_v31 = vpop.f32.mrf.mxu0 }
 0x3a1   : > { %v12941_v34 = vpop.f32.mrf.mxu1  ;;  %v12920_v54 = vadd.f32 %v12919_v31, %v12918_v23  ;;  %v4688_v59 = vadd.f32 %v12939_v53, %v4647_v52 }
 0x3a2   : > { %v12942_v62 = vadd.f32 %v12941_v34, %v12940_v26  ;;  %v14564_v26 = vld [vmem:[%s18292_s1 + $0x8] sm:$0xff]   ;;  %s18298_s1 = smov 80  }
 0x3a3   : > { %v4650_v60 = vadd.f32 %v12920_v54, %v4609_v56  ;;  %13315 = vmatpush3.bf16.msra.mxu1 %v14564_v26 }
 0x3a4   : > { %13316 = vmatprep.subr.bf16.mxu1 %v15961_v49 }
 0x3a5   : > { %v4691_v4 = vadd.f32 %v12942_v62, %v4650_v60 }
 0x3a7   : > { %13317 = vmatpush3.bf16.msra.mxu1 %v14565_v27 }
 0x3a8   : > { %13322 = vmatprep.subr.bf16.mxu1 %v15961_v49 }
 0x3ba   : > { %v12959_v35 = vpop.f32.mrf.mxu0 }
 0x3bb   : > { %v12981_v38 = vpop.f32.mrf.mxu1 }
 0x3bc   : > { %v12960_v43 = vpop.f32.mrf.mxu0 }
 0x3bd   : > { %v12982_v46 = vpop.f32.mrf.mxu1  ;;  %v12961_v57 = vadd.f32 %v12960_v43, %v12959_v35 }
 0x3be   : > { %v12962_v50 = vpop.f32.mrf.mxu0  ;;  %v12983_v0 = vadd.f32 %v12982_v46, %v12981_v38 }
 0x3bf   : > { %v12984_v55 = vpop.f32.mrf.mxu1  ;;  %v4729_v63 = vadd.f32 %v12961_v57, %v4688_v59 }
 0x3c0   : > { %v12963_v58 = vpop.f32.mrf.mxu0 }
 0x3c1   : > { %v12985_v61 = vpop.f32.mrf.mxu1  ;;  %v12964_v1 = vadd.f32 %v12963_v58, %v12962_v50  ;;  %v4770_v7 = vadd.f32 %v12983_v0, %v4729_v63 }
 0x3c2   : > { %v12986_v12 = vadd.f32 %v12985_v61, %v12984_v55 }
 0x3c3   : > { %v4732_v8 = vadd.f32 %v12964_v1, %v4691_v4 }
 0x3c5   : > { %v4773_v16 = vadd.f32 %v12986_v12, %v4732_v8 }
 0x3da   : > { %v13003_v2 = vpop.f32.mrf.mxu0 }
 0x3db   : > { %v13025_v3 = vpop.f32.mrf.mxu1 }
 0x3dc   : > { %v13004_v5 = vpop.f32.mrf.mxu0 }
 0x3dd   : > { %v13026_v6 = vpop.f32.mrf.mxu1  ;;  %v13005_v9 = vadd.f32 %v13004_v5, %v13003_v2 }
 0x3de   : > { %v13006_v10 = vpop.f32.mrf.mxu0  ;;  %v13027_v17 = vadd.f32 %v13026_v6, %v13025_v3 }
 0x3df   : > { %v13028_v11 = vpop.f32.mrf.mxu1  ;;  %v4811_v13 = vadd.f32 %v13005_v9, %v4770_v7 }
 0x3e0   : > { %v13007_v14 = vpop.f32.mrf.mxu0 }
 0x3e1   : > { %v13029_v15 = vpop.f32.mrf.mxu1  ;;  %v13008_v18 = vadd.f32 %v13007_v14, %v13006_v10  ;;  %v4852_v19 = vadd.f32 %v13027_v17, %v4811_v13 }
 0x3e2   : > { %v13030_v21 = vadd.f32 %v13029_v15, %v13028_v11 }
 0x3e3   : > { %v4814_v20 = vadd.f32 %v13008_v18, %v4773_v16  ;;  %v4858_v23 = vmax.f32 %v4852_v19, 0.0 }
 0x3e5   : > { %v4855_v22 = vadd.f32 %v13030_v21, %v4814_v20 }
 0x3e7   : > { %v4859_v24 = vmax.f32 %v4855_v22, 0.0 }
 0x3e9   : > { %v4868_v25 = vpack.c.bf16 %v4859_v24, %v4858_v23 }
 0x3eb   : > { %13311 = vmatmul.mubr.msk.bf16.vlgmr.msra.gmra.mxu0 %vm4900_vm1, %v4868_v25 }
 0x3ec   : > { %13332 = vmatprep.mubr.msk.bf16.mxu0 %vm15962_vm0, %v15961_v49 }
 0x4ab   : > { %v4938_v29 = vpop.f32.mrf.mxu0 }
 0x4ac   : > { %v16879_v31 = vadd.f32 %v12526_v28, %v4938_v29 }
 0x4ad   : > { %v13312_v30 = vpop.f32.mrf.mxu0 }
 0x4ae   : > { %v4945_v37 = vadd.f32 %v16879_v31, %v16882_v32 }
 0x4af   : > { %v4941_v34 = vpop.f32.mrf.mxu0 }
 0x4b0   : > { %v16887_v35 = vadd.f32 %v12526_v28, %v4941_v34 }
 0x4b1   : > { %v13313_v36 = vpop.f32.mrf.mxu0 }
 0x4b2   : > { %v4946_v38 = vadd.f32 %v16887_v35, %v16885_v33  ;;  %v5016_v61 = vpack.c.bf16 %v16887_v35, %v16879_v31 }
 0x4b4   : > { %v4952_v39 = vpack.c.bf16 %v4946_v38, %v4945_v37 }
 0x4b6   : > { %13319 = vmatmul.mubr.msk.bf16.vlgmr.msra.gmra.mxu1 %vm4971_vm2, %v4952_v39 }
 0x4b7   : > { %13326 = vmatprep.mubr.msk.bf16.mxu1 %vm15962_vm0, %v15961_v49 }
 0x576   : > { %v5009_v40 = vpop.f32.mrf.mxu1 }
 0x577   : > { %v5010_v44 = vadd.f32 %v16896_v41, %v5009_v40 }
 0x578   : > { %v13320_v42 = vpop.f32.mrf.mxu1 }
 0x57a   : > { %v5012_v43 = vpop.f32.mrf.mxu1 }
 0x57b   : > { %v5013_v45 = vadd.f32 %v16896_v41, %v5012_v43 }
 0x57c   : > { %v13321_v46 = vpop.f32.mrf.mxu1 }
 0x57d   : > { %v5070_v47 = vpack.c.bf16 %v5013_v45, %v5010_v44 }
 0x57f   : > { %5193 = vrot.lane.b32.xlu1 %v5070_v47, %s18178_s2  ;;  %5073 = vrot.lane.b32.xlu0 %v5070_v47, %s18182_s28 }
 0x583   : > { %5319 = vrot.lane.b32.xlu1 %v5070_v47, %s18172_s16  ;;  %5195 = vrot.lane.b32.xlu0 %v5070_v47, %s18180_s22  ;;  %s18297_s16 = sld [smem:[#allocation130_spill]] }
 0x587   : > { %5442 = vrot.lane.b32.xlu1 %v5070_v47, %s18162_s26  ;;  %5317 = vrot.lane.b32.xlu0 %v5070_v47, %s18176_s23  ;;  %s18166_s26 = smov 8  }
 0x58b   : > { %5019 = vrot.lane.b32.xlu1 %v14564_v26, %s18160_s15  ;;  %5440 = vrot.lane.b32.xlu0 %v5070_v47, %s18164_s18 }
 0x58f   : > { %5017 = vrot.lane.b32.xlu0 %v14565_v27, %s18160_s15 }
 0x5f1   : > { %v5194_v48 = vpop.permute.xlu1 %5193  ;;  %v5074_v50 = vpop.permute.xlu0 %5073 }
 0x5f2   : > { %v5080_v51 = vsel %vm5075_vm3, %v5074_v50, 0 }
 0x5f3   : > { %13331 = vmatpush3.bf16.xpose.msra.mxu0 %v5080_v51 }
 0x5f4   : > { %13342 = vmatprep.subr.bf16.mxu0 %v15961_v49 }
 0x5f5   : > { %v5320_v52 = vpop.permute.xlu1 %5319  ;;  %v5196_v53 = vpop.permute.xlu0 %5195 }
 0x5f6   : > { %v5201_v56 = vsel %vm5075_vm3, %v5196_v53, 0  ;;  %v5325_v60 = vsel %vm5075_vm3, %v5320_v52, 0 }
 0x5f9   : > { %v5443_v54 = vpop.permute.xlu1 %5442  ;;  %v5318_v55 = vpop.permute.xlu0 %5317 }
 0x5fa   : > { %13333 = vmatmul.mubr.msk.bf16.vlgmr.msra.gmra.mxu0 %vm5075_vm3, %v5070_v47  ;;  %v5448_v62 = vsel %vm5075_vm3, %v5443_v54, 0 }
 0x5fb   : > { %13343 = vmatpush3.bf16.xpose.msra.mxu0 %v5201_v56  ;;  %13344 = vmatprep.mubr.msk.bf16.mxu0 %vm15962_vm0, %v15961_v49 }
 0x5fc   : > { %13354 = vmatprep.subr.bf16.mxu0 %v15961_v49 }
 0x5fd   : > { %v5020_v57 = vpop.permute.xlu1 %5019  ;;  %v5441_v58 = vpop.permute.xlu0 %5440 }
 0x5fe   : > { %13323 = vmatpush3.bf16.msra.mxu1 %v5020_v57 }
 0x5ff   : > { %13324 = vmatprep.subr.bf16.mxu1 %v15961_v49 }
 0x601   : > { %v5018_v59 = vpop.permute.xlu0 %5017 }
 0x602   : > { %13325 = vmatpush3.bf16.msra.mxu1 %v5018_v59  ;;  %13345 = vmatmul.mubr.msk.bf16.vlgmr.msra.gmra.mxu0 %vm5075_vm3, %v5194_v48 }
 0x603   : > { %13355 = vmatpush3.bf16.xpose.msra.mxu0 %v5325_v60  ;;  %13356 = vmatprep.mubr.msk.bf16.mxu0 %vm15962_vm0, %v15961_v49 }
 0x604   : > { %13366 = vmatprep.subr.bf16.mxu0 %v15961_v49  ;;  %13336 = vmatprep.subr.bf16.mxu1 %v15961_v49 }
 0x605   : > { %13327 = vmatmul.mubr.msk.bf16.vlgmr.msra.gmra.mxu1 %vm4971_vm2, %v5016_v61 }
 0x606   : > { %13338 = vmatprep.mubr.msk.bf16.mxu1 %vm15962_vm0, %v15961_v49 }
 0x60a   : > { %13357 = vmatmul.mubr.msk.bf16.vlgmr.msra.gmra.mxu0 %vm5075_vm3, %v5318_v55 }
 0x60b   : > { %13367 = vmatpush3.bf16.xpose.msra.mxu0 %v5448_v62  ;;  %13368 = vmatprep.mubr.msk.bf16.mxu0 %vm15962_vm0, %v15961_v49 }
 0x60c   : > { %13378 = vmatprep.subr.bf16.mxu0 %v15961_v49 }
 0x612   : > { %13369 = vmatmul.mubr.msk.bf16.vlgmr.msra.gmra.mxu0 %vm5075_vm3, %v5441_v58 }
 0x613   : > { %13382 = vmatprep.mubr.msk.bf16.mxu0 %vm15962_vm0, %v15961_v49 }
 0x6ba   : > { %v5116_v63 = vpop.f32.mrf.mxu0 }
 0x6bb   : > { %v5123_v0 = vmul.f32 0.35355338, %v5116_v63 }
 0x6bc   : > { %v13334_v1 = vpop.f32.mrf.mxu0 }
 0x6bd   : > { %v5126_v2 = vsel %vm5125_vm4, %v5123_v0, -inf }
 0x6be   : > { %5127 = vmax.xlane.f32.xlu1 %v5126_v2  ;;  %v5119_v3 = vpop.f32.mrf.mxu0 }
 0x6bf   : > { %v5124_v4 = vmul.f32 0.35355338, %v5119_v3 }
 0x6c0   : > { %v13335_v5 = vpop.f32.mrf.mxu0 }
 0x6c1   : > { %v5129_v6 = vsel %vm5125_vm4, %v5124_v4, -inf }
 0x6c2   : > { %5130 = vmax.xlane.f32.xlu0 %v5129_v6  ;;  %v5237_v7 = vpop.f32.mrf.mxu0 }
 0x6c3   : > { %v5244_v8 = vmul.f32 0.35355338, %v5237_v7 }
 0x6c4   : > { %v13346_v9 = vpop.f32.mrf.mxu0 }
 0x6c5   : > { %v16938_v10 = vpop.f32.mrf.mxu1  ;;  %v5246_v11 = vsel %vm5125_vm4, %v5244_v8, -inf }
 0x6c6   : > { %5247 = vmax.xlane.f32.xlu0 %v5246_v11  ;;  %v5240_v12 = vpop.f32.mrf.mxu0 }
 0x6c7   : > { %v5245_v13 = vmul.f32 0.35355338, %v5240_v12  ;;  %v13328_v14 = vpop.f32.mrf.mxu1 }
 0x6c8   : > { %v13347_v15 = vpop.f32.mrf.mxu0 }
 0x6c9   : > { %v16941_v16 = vpop.f32.mrf.mxu1  ;;  %v5249_v17 = vsel %vm5125_vm4, %v5245_v13, -inf }
 0x6ca   : > { %5250 = vmax.xlane.f32.xlu1 %v5249_v17  ;;  %v5361_v18 = vpop.f32.mrf.mxu0 }
 0x6cb   : > { %v5368_v19 = vmul.f32 0.35355338, %v5361_v18  ;;  %v13329_v20 = vpop.f32.mrf.mxu1 }
 0x6cc   : > { %v13358_v21 = vpop.f32.mrf.mxu0 }
 0x6cd   : > { %v5370_v22 = vsel %vm5125_vm4, %v5368_v19, -inf }
 0x6ce   : > { %5371 = vmax.xlane.f32.xlu0 %v5370_v22  ;;  %v5364_v23 = vpop.f32.mrf.mxu0 }
 0x6cf   : > { %v5369_v24 = vmul.f32 0.35355338, %v5364_v23 }
 0x6d0   : > { %v13359_v25 = vpop.f32.mrf.mxu0 }
 0x6d1   : > { %v5373_v26 = vsel %vm5125_vm4, %v5369_v24, -inf }
 0x6d2   : > { %5374 = vmax.xlane.f32.xlu1 %v5373_v26  ;;  %v5484_v27 = vpop.f32.mrf.mxu0 }
 0x6d3   : > { %v5491_v28 = vmul.f32 0.35355338, %v5484_v27 }
 0x6d4   : > { %v13370_v29 = vpop.f32.mrf.mxu0 }
 0x6d5   : > { %v5493_v30 = vsel %vm5125_vm4, %v5491_v28, -inf }
 0x6d6   : > { %5494 = vmax.xlane.f32.xlu0 %v5493_v30  ;;  %v5487_v34 = vpop.f32.mrf.mxu0 }
 0x6d7   : > { %v16947_v36 = vmul.f32 0.35355338, %v5487_v34 }
 0x6d8   : > { %v13371_v37 = vpop.f32.mrf.mxu0 }
 0x6d9   : > { %v5496_v38 = vsel %vm5125_vm4, %v16947_v36, -inf }
 0x6da   : > { %5497 = vmax.xlane.f32.xlu1 %v5496_v38 }
 0x6ec   : > { %5023 = vrot.lane.b32.xlu0 %v16896_v41, %s18160_s15  ;;  %s18294_s15 = sld [smem:[#allocation120_spill]] }
 0x747   : > { %v5128_v39 = vpop.xlane.xlu1 %5127 }
 0x748   : > { %v5132_v40 = vsub.f32 %v5123_v0, %v5128_v39 }
 0x74a   : > { %v5134_v42 = vmul.f32 1.442695, %v5132_v40 }
 0x74b   : > { %v5131_v43 = vpop.xlane.xlu0 %5130 }
 0x74c   : > { %14620 = vpow2.f32 %v5134_v42  ;;  %v5133_v44 = vsub.f32 %v5124_v4, %v5131_v43 }
 0x74e   : > { %v5136_v45 = vmul.f32 1.442695, %v5133_v44 }
 0x74f   : > { %v5248_v46 = vpop.xlane.xlu0 %5247 }
 0x750   : > { %14622 = vpow2.f32 %v5136_v45  ;;  %v5252_v47 = vsub.f32 %v5244_v8, %v5248_v46 }
 0x752   : > { %v5254_v48 = vmul.f32 1.442695, %v5252_v47 }
 0x753   : > { %v5251_v50 = vpop.xlane.xlu1 %5250 }
 0x754   : > { %14624 = vpow2.f32 %v5254_v48  ;;  %v5253_v51 = vsub.f32 %v5245_v13, %v5251_v50 }
 0x756   : > { %v5256_v52 = vmul.f32 1.442695, %v5253_v51 }
 0x757   : > { %v5372_v53 = vpop.xlane.xlu0 %5371 }
 0x758   : > { %14626 = vpow2.f32 %v5256_v52  ;;  %v5376_v54 = vsub.f32 %v5368_v19, %v5372_v53 }
 0x759   : > { %v14621_v55 = vpop.eup %14620 }
 0x75a   : > { %v5378_v41 = vmul.f32 1.442695, %v5376_v54  ;;  %v5138_v56 = vsel %vm5125_vm4, %v14621_v55, 0.0 }
 0x75b   : > { %v5375_v57 = vpop.xlane.xlu1 %5374  ;;  %5139 = vadd.xlane.f32.xlu1 %v5138_v56 }
 0x75c   : > { %14628 = vpow2.f32 %v5378_v41  ;;  %v5377_v58 = vsub.f32 %v5369_v24, %v5375_v57 }
 0x75d   : > { %v14623_v59 = vpop.eup %14622 }
 0x75e   : > { %v5380_v60 = vmul.f32 1.442695, %v5377_v58  ;;  %v5141_v61 = vsel %vm5125_vm4, %v14623_v59, 0.0 }
 0x75f   : > { %v5495_v62 = vpop.xlane.xlu0 %5494  ;;  %5142 = vadd.xlane.f32.xlu1 %v5141_v61 }
 0x760   : > { %14630 = vpow2.f32 %v5380_v60  ;;  %v5499_v63 = vsub.f32 %v5491_v28, %v5495_v62 }
 0x761   : > { %v14625_v0 = vpop.eup %14624 }
 0x762   : > { %v5501_v1 = vmul.f32 1.442695, %v5499_v63  ;;  %v5258_v2 = vsel %vm5125_vm4, %v14625_v0, 0.0  ;;  %v14566_v63 = vld [vmem:[%s18294_s15 + $0x8] sm:$0xff]  }
 0x763   : > { %v5024_v3 = vpop.permute.xlu0 %5023  ;;  %5259 = vadd.xlane.f32.xlu1 %v5258_v2  ;;  %v5498_v15 = vpop.xlane.xlu1 %5497  ;;  %13379 = vmatpush3.bf16.msra.mxu0 %v14566_v63 }
 0x764   : > { %14632 = vpow2.f32 %v5501_v1  ;;  %v5064_v4 = vadd.f32 %v16938_v10, %v5024_v3  ;;  %v5067_v5 = vadd.f32 %v16941_v16, %v5024_v3  ;;  %v5500_v16 = vsub.f32 %v16947_v36, %v5498_v15  ;;  %13380 = vmatprep.subr.bf16.mxu0 %v15961_v49 }
 0x765   : > { %v14627_v6 = vpop.eup %14626 }
 0x766   : > { %v5071_v7 = vpack.c.bf16 %v5067_v5, %v5064_v4  ;;  %v5261_v8 = vsel %vm5125_vm4, %v14627_v6, 0.0  ;;  %v5503_v17 = vmul.f32 1.442695, %v5500_v16 }
 0x767   : > { %5262 = vadd.xlane.f32.xlu1 %v5261_v8 }
 0x768   : > { %13337 = vmatpush3.bf16.msra.mxu1 %v5071_v7  ;;  %14634 = vpow2.f32 %v5503_v17 }
 0x769   : > { %v14629_v9 = vpop.eup %14628  ;;  %13348 = vmatprep.subr.bf16.mxu1 %v15961_v49 }
 0x76a   : > { %v5382_v11 = vsel %vm5125_vm4, %v14629_v9, 0.0 }
 0x76b   : > { %5383 = vadd.xlane.f32.xlu1 %v5382_v11 }
 0x76d   : > { %v14631_v12 = vpop.eup %14630 }
 0x76e   : > { %v5385_v13 = vsel %vm5125_vm4, %v14631_v12, 0.0 }
 0x76f   : > { %5386 = vadd.xlane.f32.xlu1 %v5385_v13 }
 0x771   : > { %v14633_v14 = vpop.eup %14632 }
 0x772   : > { %v5505_v10 = vsel %vm5125_vm4, %v14633_v14, 0.0 }
 0x773   : > { %5506 = vadd.xlane.f32.xlu0 %v5505_v10 }
 0x775   : > { %v14635_v18 = vpop.eup %14634 }
 0x776   : > { %v5508_v19 = vsel %vm5125_vm4, %v14635_v18, 0.0 }
 0x780   : > { %5270 = vrot.lane.b32.xlu1 %v5071_v7, %s18178_s2 }
 0x784   : > { %5393 = vrot.lane.b32.xlu1 %v5071_v7, %s18176_s23 }
 0x7a8   : > { %5509 = vadd.xlane.f32.xlu1 %v5508_v19 }
 0x7b9   : > { %5516 = vrot.lane.b32.xlu1 %v5071_v7, %s18164_s18  ;;  %s18170_s18 = smov 16   ;;  %v14567_v7 = vld [vmem:[%s18294_s15] sm:$0xff]   ;;  %s18316_s15 = sld [smem:[#allocation93_spill]] }
 0x7ba   : > { %13381 = vmatpush3.bf16.msra.mxu0 %v14567_v7 }
 0x7bb   : > { %13394 = vmatprep.subr.bf16.mxu0 %v15961_v49 }
 0x7e4   : > { %v5140_v20 = vpop.xlane.xlu1 %5139 }
 0x7e5   : > { %14636 = vrcp.f32 %v5140_v20 }
 0x7e8   : > { %v5143_v21 = vpop.xlane.xlu1 %5142 }
 0x7e9   : > { %14638 = vrcp.f32 %v5143_v21 }
 0x7ec   : > { %v5260_v22 = vpop.xlane.xlu1 %5259 }
 0x7ed   : > { %14640 = vrcp.f32 %v5260_v22 }
 0x7f0   : > { %v5263_v23 = vpop.xlane.xlu1 %5262 }
 0x7f1   : > { %14642 = vrcp.f32 %v5263_v23 }
 0x7f2   : > { %v14637_v24 = vpop.eup %14636 }
 0x7f3   : > { %v5146_v27 = vmul.f32 %v14637_v24, %v14621_v55 }
 0x7f4   : > { %v5384_v25 = vpop.xlane.xlu1 %5383 }
 0x7f5   : > { %14644 = vrcp.f32 %v5384_v25 }
 0x7f6   : > { %v14639_v26 = vpop.eup %14638 }
 0x7f7   : > { %v5147_v28 = vmul.f32 %v14639_v26, %v14623_v59 }
 0x7f8   : > { %v5387_v29 = vpop.xlane.xlu1 %5386 }
 0x7f9   : > { %14646 = vrcp.f32 %v5387_v29  ;;  %v5148_v30 = vpack.c.bf16 %v5147_v28, %v5146_v27  ;;  %v12545_v29 = vld [vmem:[#allocation28] ss:$0 sm:$0xff] }
 0x7fa   : > { %v14641_v34 = vpop.eup %14640 }
 0x7fb   : > { %13339 = vmatmul.mubr.msk.bf16.vlgmr.msra.gmra.mxu1 %vm5125_vm4, %v5148_v30  ;;  %v5266_v38 = vmul.f32 %v14641_v34, %v14625_v0 }
 0x7fc   : > { %v5271_v36 = vpop.permute.xlu1 %5270  ;;  %13350 = vmatprep.mubr.msk.bf16.mxu1 %vm15962_vm0, %v15961_v49  ;;  %v5507_v48 = vpop.xlane.xlu0 %5506 }
 0x7fd   : > { %13349 = vmatpush3.bf16.msra.mxu1 %v5271_v36  ;;  %14648 = vrcp.f32 %v5507_v48 }
 0x7fe   : > { %v14643_v37 = vpop.eup %14642  ;;  %13360 = vmatprep.subr.bf16.mxu1 %v15961_v49 }
 0x7ff   : > { %v5267_v39 = vmul.f32 %v14643_v37, %v14627_v6 }
 0x800   : > { %v5394_v42 = vpop.permute.xlu1 %5393 }
 0x801   : > { %v5268_v40 = vpack.c.bf16 %v5267_v39, %v5266_v38 }
 0x802   : > { %v14645_v43 = vpop.eup %14644 }
 0x803   : > { %13351 = vmatmul.mubr.msk.bf16.vlgmr.msra.gmra.mxu1 %vm5125_vm4, %v5268_v40  ;;  %v5390_v45 = vmul.f32 %v14645_v43, %v14629_v9 }
 0x804   : > { %13361 = vmatpush3.bf16.msra.mxu1 %v5394_v42  ;;  %13362 = vmatprep.mubr.msk.bf16.mxu1 %vm15962_vm0, %v15961_v49 }
 0x805   : > { %13372 = vmatprep.subr.bf16.mxu1 %v15961_v49 }
 0x806   : > { %v14647_v44 = vpop.eup %14646 }
 0x807   : > { %v5391_v46 = vmul.f32 %v14647_v44, %v14631_v12 }
 0x809   : > { %v5392_v47 = vpack.c.bf16 %v5391_v46, %v5390_v45 }
 0x80a   : > { %v14649_v52 = vpop.eup %14648 }
 0x80b   : > { %13363 = vmatmul.mubr.msk.bf16.vlgmr.msra.gmra.mxu1 %vm5125_vm4, %v5392_v47  ;;  %v5513_v54 = vmul.f32 %v14649_v52, %v14633_v14 }
 0x80c   : > { %13374 = vmatprep.mubr.msk.bf16.mxu1 %vm15962_vm0, %v15961_v49 }
 0x831   : > { %v5510_v50 = vpop.xlane.xlu1 %5509 }
 0x832   : > { %14650 = vrcp.f32 %v5510_v50 }
 0x835   : > { %v5517_v51 = vpop.permute.xlu1 %5516 }
 0x836   : > { %13373 = vmatpush3.bf16.msra.mxu1 %v5517_v51 }
 0x837   : > { %13386 = vmatprep.subr.bf16.mxu1 %v15961_v49 }
 0x83f   : > { %v14651_v53 = vpop.eup %14650 }
 0x840   : > { %v5514_v55 = vmul.f32 %v14651_v53, %v14635_v18 }
 0x842   : > { %v5515_v41 = vpack.c.bf16 %v5514_v55, %v5513_v54 }
 0x844   : > { %13375 = vmatmul.mubr.msk.bf16.vlgmr.msra.gmra.mxu1 %vm5125_vm4, %v5515_v41 }
 0x845   : > { %13390 = vmatprep.mubr.msk.bf16.mxu1 %vm15962_vm0, %v15961_v49 }
 0x8bb   : > { %v5186_v56 = vpop.f32.mrf.mxu1 }
 0x8bd   : > { %v13340_v57 = vpop.f32.mrf.mxu1 }
 0x8bf   : > { %v5189_v58 = vpop.f32.mrf.mxu1 }
 0x8c1   : > { %v13341_v59 = vpop.f32.mrf.mxu1 }
 0x8c3   : > { %v5310_v60 = vpop.f32.mrf.mxu1 }
 0x8c5   : > { %v13352_v61 = vpop.f32.mrf.mxu1 }
 0x8c7   : > { %v5313_v62 = vpop.f32.mrf.mxu1 }
 0x8c8   : > { %v14278_v0 = vpack.i.bf16 %v5313_v62, %v5310_v60 }
 0x8c9   : > { %v13353_v1 = vpop.f32.mrf.mxu1 }
 0x8ca   : > { %14279 = vrot.lane.b32.xlu0 %v14278_v0, %s18166_s26  ;;  %s18168_s26 = smov 24   ;;  %v12549_v0 = vld [vmem:[#allocation36] ss:$0 sm:$0xff] }
 0x8cb   : > { %v5433_v2 = vpop.f32.mrf.mxu1 }
 0x8cd   : > { %v13364_v3 = vpop.f32.mrf.mxu1 }
 0x8cf   : > { %v5436_v4 = vpop.f32.mrf.mxu1 }
 0x8d0   : > { %v14283_v5 = vpack.i.bf16 %v5436_v4, %v5433_v2  ;;  %v12550_v4 = vld [vmem:[#allocation34] ss:$0 sm:$0xff] }
 0x8d1   : > { %v13365_v6 = vpop.f32.mrf.mxu1 }
 0x8d2   : > { %14284 = vrot.lane.b32.xlu1 %v14283_v5, %s18170_s18  ;;  %s18296_s18 = sld [smem:[#allocation124_spill]] }
 0x8d8   : > { %v14570_v41 = vld [vmem:[%s18296_s18 + $0x18] sm:$0xff]  }
 0x904   : > { %v5556_v8 = vpop.f32.mrf.mxu1 }
 0x906   : > { %v13376_v9 = vpop.f32.mrf.mxu1 }
 0x907   : > { %v14571_v9 = vld [vmem:[%s18296_s18 + $0x10] sm:$0xff]  }
 0x908   : > { %v5559_v11 = vpop.f32.mrf.mxu1 }
 0x909   : > { %v14288_v12 = vpack.i.bf16 %v5559_v11, %v5556_v8  ;;  %v14572_v11 = vld [vmem:[%s18296_s18 + $0x8] sm:$0xff]  }
 0x90a   : > { %v13377_v13 = vpop.f32.mrf.mxu1 }
 0x90b   : > { %14289 = vrot.lane.b32.xlu1 %v14288_v12, %s18168_s26  ;;  %s18295_s26 = sld [smem:[#allocation122_spill]]  ;;  %v14573_v12 = vld [vmem:[%s18296_s18] sm:$0xff]  }
 0x90c   : > { %v12551_v13 = vld [vmem:[#allocation31] ss:$0 sm:$0xff] }
 0x911   : > { %v14569_v55 = vld [vmem:[%s18295_s26] sm:$0xff]  }
 0x93c   : > { %v14280_v14 = vpop.permute.xlu0 %14279 }
 0x93d   : > { %v14282_v15 = vunpack.i.h.bf16 %v14280_v14  ;;  %v14281_v16 = vunpack.i.l.bf16 %v14280_v14 }
 0x93f   : > { %v5588_v20 = vsel %vm5075_vm3, %v5189_v58, %v14282_v15  ;;  %v5587_v21 = vsel %vm5075_vm3, %v5186_v56, %v14281_v16 }
 0x944   : > { %v14285_v10 = vpop.permute.xlu1 %14284 }
 0x945   : > { %v14287_v17 = vunpack.i.h.bf16 %v14285_v10  ;;  %v14286_v18 = vunpack.i.l.bf16 %v14285_v10 }
 0x947   : > { %v5590_v24 = vsel %vm5125_vm4, %v5588_v20, %v14287_v17  ;;  %v5589_v25 = vsel %vm5125_vm4, %v5587_v21, %v14286_v18 }
 0x97d   : > { %v14290_v19 = vpop.permute.xlu1 %14289 }
 0x97e   : > { %v14292_v22 = vunpack.i.h.bf16 %v14290_v19  ;;  %v14291_v23 = vunpack.i.l.bf16 %v14290_v19 }
 0x980   : > { %v5592_v26 = vsel %vm5591_vm5, %v5589_v25, %v14291_v23  ;;  %v5593_v27 = vsel %vm5591_vm5, %v5590_v24, %v14292_v22  ;;  %v12555_v22 = vld [vmem:[#allocation33] ss:$0 sm:$0xff] }
 0x981   : > { %v5598_v28 = vpack.c.bf16 %v5593_v27, %v5592_v26 }
 0x983   : > { %13383 = vmatmul.mubr.msk.bf16.vlgmr.msra.gmra.mxu0 %vm4971_vm2, %v5598_v28 }
 0x984   : > { %13402 = vmatprep.mubr.msk.bf16.mxu0 %vm15962_vm0, %v15961_v49  ;;  %13395 = vmatpush3.bf16.msra.mxu0 %v14570_v41  ;;  %v12561_v41 = vld [vmem:[#allocation39] ss:$0 sm:$0xff] }
 0x985   : > { %13396 = vmatprep.subr.bf16.mxu0 %v15961_v49 }
 0x988   : > { %13397 = vmatpush3.bf16.msra.mxu0 %v14571_v9 }
 0x989   : > { %13398 = vmatprep.subr.bf16.mxu0 %v15961_v49 }
 0x98c   : > { %13399 = vmatpush3.bf16.msra.mxu0 %v14572_v11 }
 0x98d   : > { %13400 = vmatprep.subr.bf16.mxu0 %v15961_v49 }
 0x990   : > { %13401 = vmatpush3.bf16.msra.mxu0 %v14573_v12 }
 0x991   : > { %13422 = vmatprep.subr.bf16.mxu0 %v15961_v49 }
 0xa43   : > { %v5655_v30 = vpop.f32.mrf.mxu0 }
 0xa44   : > { %v5656_v34 = vadd.f32 %v12545_v29, %v5655_v30 }
 0xa45   : > { %v13384_v36 = vpop.f32.mrf.mxu0 }
 0xa46   : > { %v5662_v37 = vadd.f32 %v5656_v34, %v16879_v31 }
 0xa47   : > { %v5658_v38 = vpop.f32.mrf.mxu0 }
 0xa48   : > { %v5659_v39 = vadd.f32 %v12545_v29, %v5658_v38  ;;  %v5664_v40 = vsel %vm4971_vm2, %v5662_v37, 0.0 }
 0xa49   : > { %5665 = vadd.xlane.f32.xlu1 %v5664_v40  ;;  %v13385_v42 = vpop.f32.mrf.mxu0 }
 0xa4a   : > { %v5663_v43 = vadd.f32 %v5659_v39, %v16887_v35  ;;  %v14568_v35 = vld [vmem:[%s18295_s26 + $0x8] sm:$0xff]  }
 0xa4b   : > { %13387 = vmatpush3.bf16.msra.mxu1 %v14568_v35 }
 0xa4c   : > { %v5667_v44 = vsel %vm4971_vm2, %v5663_v43, 0.0  ;;  %13388 = vmatprep.subr.bf16.mxu1 %v15961_v49 }
 0xa4d   : > { %5668 = vadd.xlane.f32.xlu0 %v5667_v44 }
 0xa4f   : > { %13389 = vmatpush3.bf16.msra.mxu1 %v14569_v55 }
 0xa50   : > { %13406 = vmatprep.subr.bf16.mxu1 %v15961_v49 }
 0xad2   : > { %v5666_v45 = vpop.xlane.xlu1 %5665 }
 0xad3   : > { %v5671_v46 = vmul.f32 0.03125, %v5666_v45 }
 0xad5   : > { %v5673_v47 = vsub.f32 %v5662_v37, %v5671_v46 }
 0xad6   : > { %v5669_v48 = vpop.xlane.xlu0 %5668 }
 0xad7   : > { %v5672_v50 = vmul.f32 0.03125, %v5669_v48  ;;  %v5675_v31 = vmul.f32 %v5673_v47, %v5673_v47  ;;  %v14574_v48 = vld [vmem:[%s18297_s16 + $0x8] sm:$0xff]  }
 0xad9   : > { %v5674_v51 = vsub.f32 %v5663_v43, %v5672_v50  ;;  %v5677_v52 = vsel %vm4971_vm2, %v5675_v31, 0.0  ;;  %v14575_v50 = vld [vmem:[%s18297_s16] sm:$0xff]   ;;  %s18323_s16 = sld [smem:[#allocation94_spill]] }
 0xada   : > { %5678 = vadd.xlane.f32.xlu1 %v5677_v52 }
 0xadb   : > { %v5676_v53 = vmul.f32 %v5674_v51, %v5674_v51 }
 0xadd   : > { %v5680_v54 = vsel %vm4971_vm2, %v5676_v53, 0.0 }
 0xade   : > { %5681 = vadd.xlane.f32.xlu1 %v5680_v54 }
 0xb63   : > { %v5679_v56 = vpop.xlane.xlu1 %5678 }
 0xb64   : > { %v5683_v57 = vmul.f32 0.03125, %v5679_v56 }
 0xb66   : > { %v5685_v58 = vadd.f32 1e-05, %v5683_v57 }
 0xb67   : > { %v5682_v59 = vpop.xlane.xlu1 %5681 }
 0xb68   : > { %14652 = vrsqrt.f32 %v5685_v58  ;;  %v5684_v60 = vmul.f32 0.03125, %v5682_v59  ;;  %v12562_v59 = vld [vmem:[#allocation37] ss:$0 sm:$0xff] }
 0xb6a   : > { %v5686_v61 = vadd.f32 1e-05, %v5684_v60 }
 0xb6c   : > { %14654 = vrsqrt.f32 %v5686_v61 }
 0xb75   : > { %v14653_v62 = vpop.eup %14652 }
 0xb76   : > { %v5689_v63 = vmul.f32 %v14653_v62, %v5673_v47 }
 0xb78   : > { %v5698_v3 = vmul.f32 %v12549_v0, %v5689_v63 }
 0xb79   : > { %v14655_v1 = vpop.eup %14654 }
 0xb7a   : > { %v5690_v2 = vmul.f32 %v14655_v1, %v5674_v51  ;;  %v5707_v6 = vadd.f32 %v12550_v4, %v5698_v3 }
 0xb7c   : > { %v5699_v5 = vmul.f32 %v12549_v0, %v5690_v2 }
 0xb7e   : > { %v5708_v7 = vadd.f32 %v12550_v4, %v5699_v5  ;;  %v17042_v4 = vld [vmem:[#allocation42] ss:$0 sm:$0xff] }
 0xb80   : > { %v5713_v8 = vpack.c.bf16 %v5708_v7, %v5707_v6 }
 0xb82   : > { %13391 = vmatmul.mubr.msk.bf16.vlgmr.msra.gmra.mxu1 %vm4971_vm2, %v5713_v8 }
 0xb83   : > { %13410 = vmatprep.mubr.msk.bf16.mxu1 %vm15962_vm0, %v15961_v49  ;;  %13407 = vmatpush3.bf16.msra.mxu1 %v14574_v48 }
 0xb84   : > { %13408 = vmatprep.subr.bf16.mxu1 %v15961_v49 }
 0xb87   : > { %13409 = vmatpush3.bf16.msra.mxu1 %v14575_v50 }
 0xb88   : > { %13414 = vmatprep.subr.bf16.mxu1 %v15961_v49 }
 0xc42   : > { %v5770_v14 = vpop.f32.mrf.mxu1 }
 0xc43   : > { %v5771_v15 = vadd.f32 %v12551_v13, %v5770_v14 }
 0xc44   : > { %v13392_v10 = vpop.f32.mrf.mxu1 }
 0xc45   : > { %v5777_v19 = vmax.f32 %v5771_v15, 0.0 }
 0xc46   : > { %v5773_v16 = vpop.f32.mrf.mxu1 }
 0xc47   : > { %v5774_v17 = vadd.f32 %v12551_v13, %v5773_v16 }
 0xc48   : > { %v13393_v18 = vpop.f32.mrf.mxu1 }
 0xc49   : > { %v5778_v20 = vmax.f32 %v5774_v17, 0.0 }
 0xc4b   : > { %v5787_v21 = vpack.c.bf16 %v5778_v20, %v5777_v19 }
 0xc4d   : > { %13403 = vmatmul.mubr.msk.bf16.vlgmr.msra.gmra.mxu0 %vm4900_vm1, %v5787_v21 }
 0xc4e   : > { %13424 = vmatprep.mubr.msk.bf16.mxu0 %vm15962_vm0, %v15961_v49 }
 0xd0d   : > { %v5856_v23 = vpop.f32.mrf.mxu0 }
 0xd0e   : > { %v5857_v24 = vadd.f32 %v12555_v22, %v5856_v23 }
 0xd0f   : > { %v13404_v25 = vpop.f32.mrf.mxu0 }
 0xd10   : > { %v5863_v26 = vadd.f32 %v5857_v24, %v5707_v6 }
 0xd11   : > { %v5859_v27 = vpop.f32.mrf.mxu0 }
 0xd12   : > { %v5860_v28 = vadd.f32 %v12555_v22, %v5859_v27  ;;  %v5865_v29 = vsel %vm4971_vm2, %v5863_v26, 0.0 }
 0xd13   : > { %5866 = vadd.xlane.f32.xlu0 %v5865_v29  ;;  %v13405_v30 = vpop.f32.mrf.mxu0 }
 0xd14   : > { %v5864_v34 = vadd.f32 %v5860_v28, %v5708_v7 }
 0xd16   : > { %v5868_v36 = vsel %vm4971_vm2, %v5864_v34, 0.0 }
 0xd17   : > { %5869 = vadd.xlane.f32.xlu1 %v5868_v36 }
 0xd9c   : > { %v5867_v37 = vpop.xlane.xlu0 %5866 }
 0xd9d   : > { %v5871_v38 = vmul.f32 0.03125, %v5867_v37 }
 0xd9f   : > { %v5873_v39 = vsub.f32 %v5863_v26, %v5871_v38 }
 0xda0   : > { %v5870_v40 = vpop.xlane.xlu1 %5869 }
 0xda1   : > { %v5872_v42 = vmul.f32 0.03125, %v5870_v40  ;;  %v5875_v43 = vmul.f32 %v5873_v39, %v5873_v39 }
 0xda3   : > { %v5874_v44 = vsub.f32 %v5864_v34, %v5872_v42  ;;  %v5877_v45 = vsel %vm4971_vm2, %v5875_v43, 0.0 }
 0xda4   : > { %5878 = vadd.xlane.f32.xlu0 %v5877_v45 }
 0xda5   : > { %v5876_v46 = vmul.f32 %v5874_v44, %v5874_v44 }
 0xda7   : > { %v5880_v47 = vsel %vm4971_vm2, %v5876_v46, 0.0 }
 0xda8   : > { %5881 = vadd.xlane.f32.xlu1 %v5880_v47 }
 0xe2d   : > { %v5879_v31 = vpop.xlane.xlu0 %5878 }
 0xe2e   : > { %v5883_v51 = vmul.f32 0.03125, %v5879_v31 }
 0xe30   : > { %v5885_v52 = vadd.f32 1e-05, %v5883_v51 }
 0xe31   : > { %v5882_v53 = vpop.xlane.xlu1 %5881 }
 0xe32   : > { %14656 = vrsqrt.f32 %v5885_v52  ;;  %v5884_v54 = vmul.f32 0.03125, %v5882_v53 }
 0xe34   : > { %v5886_v35 = vadd.f32 1e-05, %v5884_v54 }
 0xe36   : > { %14658 = vrsqrt.f32 %v5886_v35 }
 0xe3f   : > { %v14657_v55 = vpop.eup %14656 }
 0xe40   : > { %v5889_v56 = vmul.f32 %v14657_v55, %v5873_v39 }
 0xe42   : > { %v5898_v57 = vmul.f32 %v12561_v41, %v5889_v56 }
 0xe43   : > { %v14659_v58 = vpop.eup %14658 }
 0xe44   : > { %v5890_v60 = vmul.f32 %v14659_v58, %v5874_v44  ;;  %v17031_v62 = vadd.f32 %v12562_v59, %v5898_v57 }
 0xe46   : > { %v5899_v61 = vmul.f32 %v12561_v41, %v5890_v60  ;;  %v5909_v0 = vadd.f32 %v17031_v62, %v16882_v32 }
 0xe48   : > { %v17033_v63 = vadd.f32 %v12562_v59, %v5899_v61 }
 0xe4a   : > { %v5910_v1 = vadd.f32 %v17033_v63, %v16885_v33  ;;  %v5979_v21 = vpack.c.bf16 %v17033_v63, %v17031_v62 }
 0xe4c   : > { %v5916_v2 = vpack.c.bf16 %v5910_v1, %v5909_v0 }
 0xe4e   : > { %13411 = vmatmul.mubr.msk.bf16.vlgmr.msra.gmra.mxu1 %vm4971_vm2, %v5916_v2 }
 0xe4f   : > { %13418 = vmatprep.mubr.msk.bf16.mxu1 %vm15962_vm0, %v15961_v49 }
 0xf0e   : > { %v5972_v3 = vpop.f32.mrf.mxu1 }
 0xf0f   : > { %v5973_v7 = vadd.f32 %v17042_v4, %v5972_v3 }
 0xf10   : > { %v13412_v5 = vpop.f32.mrf.mxu1 }
 0xf12   : > { %v5975_v6 = vpop.f32.mrf.mxu1 }
 0xf13   : > { %v5976_v8 = vadd.f32 %v17042_v4, %v5975_v6 }
 0xf14   : > { %v13413_v9 = vpop.f32.mrf.mxu1 }
 0xf15   : > { %v6033_v32 = vpack.c.bf16 %v5976_v8, %v5973_v7 }
 0xf17   : > { %6156 = vrot.lane.b32.xlu1 %v6033_v32, %s18180_s22  ;;  %6036 = vrot.lane.b32.xlu0 %v6033_v32, %s18182_s28  ;;  %s18304_s22 = smov 16   ;;  %s18305_s28 = smov 24  }
 0xf1b   : > { %6154 = vrot.lane.b32.xlu1 %v6033_v32, %s18178_s2  ;;  %6278 = vrot.lane.b32.xlu0 %v6033_v32, %s18176_s23 }
 0xf1f   : > { %6280 = vrot.lane.b32.xlu1 %v6033_v32, %s18298_s1  ;;  %6401 = vrot.lane.b32.xlu0 %v6033_v32, %s18299_s3 }
 0xf23   : > { %6403 = vrot.lane.b32.xlu1 %v6033_v32, %s18300_s4  ;;  %5980 = vrot.lane.b32.xlu0 %v14575_v50, %s18301_s5 }
 0xf27   : > { %5982 = vrot.lane.b32.xlu1 %v14574_v48, %s18301_s5 }
 0xf89   : > { %v6157_v33 = vpop.permute.xlu1 %6156  ;;  %v6037_v11 = vpop.permute.xlu0 %6036 }
 0xf8a   : > { %v6042_v12 = vsel %vm5075_vm3, %v6037_v11, 0  ;;  %v6162_v15 = vsel %vm5075_vm3, %v6157_v33, 0 }
 0xf8b   : > { %13423 = vmatpush3.bf16.xpose.msra.mxu0 %v6042_v12 }
 0xf8c   : > { %13434 = vmatprep.subr.bf16.mxu0 %v15961_v49 }
 0xf8d   : > { %v6155_v13 = vpop.permute.xlu1 %6154  ;;  %v6279_v14 = vpop.permute.xlu0 %6278 }
 0xf91   : > { %v6281_v10 = vpop.permute.xlu1 %6280  ;;  %v6402_v17 = vpop.permute.xlu0 %6401 }
 0xf92   : > { %13425 = vmatmul.mubr.msk.bf16.vlgmr.msra.gmra.mxu0 %vm5075_vm3, %v6033_v32  ;;  %v6286_v19 = vsel %vm5075_vm3, %v6281_v10, 0 }
 0xf93   : > { %13435 = vmatpush3.bf16.xpose.msra.mxu0 %v6162_v15  ;;  %13436 = vmatprep.mubr.msk.bf16.mxu0 %vm15962_vm0, %v15961_v49 }
 0xf94   : > { %13446 = vmatprep.subr.bf16.mxu0 %v15961_v49 }
 0xf95   : > { %v6404_v16 = vpop.permute.xlu1 %6403  ;;  %v5981_v20 = vpop.permute.xlu0 %5980 }
 0xf96   : > { %v6409_v22 = vsel %vm5075_vm3, %v6404_v16, 0 }
 0xf99   : > { %v5983_v18 = vpop.permute.xlu1 %5982 }
 0xf9a   : > { %13415 = vmatpush3.bf16.msra.mxu1 %v5983_v18  ;;  %13437 = vmatmul.mubr.msk.bf16.vlgmr.msra.gmra.mxu0 %vm5075_vm3, %v6155_v13 }
 0xf9b   : > { %13447 = vmatpush3.bf16.xpose.msra.mxu0 %v6286_v19  ;;  %13416 = vmatprep.subr.bf16.mxu1 %v15961_v49 }
 0xf9c   : > { %13448 = vmatprep.mubr.msk.bf16.mxu0 %vm15962_vm0, %v15961_v49  ;;  %13458 = vmatprep.subr.bf16.mxu0 %v15961_v49 }
 0xf9e   : > { %13417 = vmatpush3.bf16.msra.mxu1 %v5981_v20 }
 0xf9f   : > { %13428 = vmatprep.subr.bf16.mxu1 %v15961_v49 }
 0xfa1   : > { %13419 = vmatmul.mubr.msk.bf16.vlgmr.msra.gmra.mxu1 %vm4971_vm2, %v5979_v21 }
 0xfa2   : > { %13449 = vmatmul.mubr.msk.bf16.vlgmr.msra.gmra.mxu0 %vm5075_vm3, %v6279_v14  ;;  %13430 = vmatprep.mubr.msk.bf16.mxu1 %vm15962_vm0, %v15961_v49 }
 0xfa3   : > { %13459 = vmatpush3.bf16.xpose.msra.mxu0 %v6409_v22  ;;  %13460 = vmatprep.mubr.msk.bf16.mxu0 %vm15962_vm0, %v15961_v49 }
 0xfa4   : > { %13470 = vmatprep.subr.bf16.mxu0 %v15961_v49 }
 0xfaa   : > { %13461 = vmatmul.mubr.msk.bf16.vlgmr.msra.gmra.mxu0 %vm5075_vm3, %v6402_v17 }
 0xfab   : > { %13474 = vmatprep.mubr.msk.bf16.mxu0 %vm15962_vm0, %v15961_v49 }
0x1052   : > { %v6078_v23 = vpop.f32.mrf.mxu0 }
0x1053   : > { %v17082_v24 = vmul.f32 0.35355338, %v6078_v23 }
0x1054   : > { %v13426_v25 = vpop.f32.mrf.mxu0 }
0x1055   : > { %v6087_v26 = vsel %vm5125_vm4, %v17082_v24, -inf }
0x1056   : > { %6088 = vmax.xlane.f32.xlu1 %v6087_v26  ;;  %v6081_v27 = vpop.f32.mrf.mxu0 }
0x1057   : > { %v6086_v28 = vmul.f32 0.35355338, %v6081_v27 }
0x1058   : > { %v13427_v29 = vpop.f32.mrf.mxu0 }
0x1059   : > { %v6090_v30 = vsel %vm5125_vm4, %v6086_v28, -inf }
0x105a   : > { %6091 = vmax.xlane.f32.xlu0 %v6090_v30  ;;  %v6198_v34 = vpop.f32.mrf.mxu0 }
0x105b   : > { %v6205_v36 = vmul.f32 0.35355338, %v6198_v34 }
0x105c   : > { %v13438_v37 = vpop.f32.mrf.mxu0 }
0x105d   : > { %v6207_v38 = vsel %vm5125_vm4, %v6205_v36, -inf }
0x105e   : > { %6208 = vmax.xlane.f32.xlu0 %v6207_v38  ;;  %v6201_v39 = vpop.f32.mrf.mxu0 }
0x105f   : > { %v6206_v40 = vmul.f32 0.35355338, %v6201_v39 }
0x1060   : > { %v13439_v42 = vpop.f32.mrf.mxu0 }
0x1061   : > { %v6026_v43 = vpop.f32.mrf.mxu1  ;;  %v6210_v44 = vsel %vm5125_vm4, %v6206_v40, -inf }
0x1062   : > { %6211 = vmax.xlane.f32.xlu0 %v6210_v44  ;;  %v6322_v45 = vpop.f32.mrf.mxu0 }
0x1063   : > { %v6329_v46 = vmul.f32 0.35355338, %v6322_v45  ;;  %v13420_v47 = vpop.f32.mrf.mxu1 }
0x1064   : > { %v13450_v48 = vpop.f32.mrf.mxu0 }
0x1065   : > { %v6029_v50 = vpop.f32.mrf.mxu1  ;;  %v6331_v31 = vsel %vm5125_vm4, %v6329_v46, -inf }
0x1066   : > { %6332 = vmax.xlane.f32.xlu1 %v6331_v31  ;;  %v6325_v51 = vpop.f32.mrf.mxu0 }
0x1067   : > { %v6330_v52 = vmul.f32 0.35355338, %v6325_v51  ;;  %v13421_v53 = vpop.f32.mrf.mxu1 }
0x1068   : > { %v13451_v54 = vpop.f32.mrf.mxu0 }
0x1069   : > { %v6334_v35 = vsel %vm5125_vm4, %v6330_v52, -inf }
0x106a   : > { %6335 = vmax.xlane.f32.xlu0 %v6334_v35  ;;  %v6445_v55 = vpop.f32.mrf.mxu0 }
0x106b   : > { %v6452_v41 = vmul.f32 0.35355338, %v6445_v55 }
0x106c   : > { %v13462_v56 = vpop.f32.mrf.mxu0 }
0x106d   : > { %v6454_v57 = vsel %vm5125_vm4, %v6452_v41, -inf }
0x106e   : > { %6455 = vmax.xlane.f32.xlu1 %v6454_v57  ;;  %v6448_v58 = vpop.f32.mrf.mxu0 }
0x106f   : > { %v6453_v59 = vmul.f32 0.35355338, %v6448_v58 }
0x1070   : > { %v13463_v60 = vpop.f32.mrf.mxu0 }
0x1071   : > { %v6457_v61 = vsel %vm5125_vm4, %v6453_v59, -inf }
0x1072   : > { %6458 = vmax.xlane.f32.xlu0 %v6457_v61 }
0x107f   : > { %5986 = vrot.lane.b32.xlu1 %v17042_v4, %s18301_s5 }
0x10df   : > { %v6089_v0 = vpop.xlane.xlu1 %6088 }
0x10e0   : > { %v6093_v11 = vsub.f32 %v17082_v24, %v6089_v0 }
0x10e2   : > { %v6095_v13 = vmul.f32 1.442695, %v6093_v11 }
0x10e3   : > { %v6092_v33 = vpop.xlane.xlu0 %6091 }
0x10e4   : > { %v6094_v14 = vsub.f32 %v6086_v28, %v6092_v33 }
0x10e6   : > { %v6097_v10 = vmul.f32 1.442695, %v6094_v14 }
0x10e7   : > { %v6209_v12 = vpop.xlane.xlu0 %6208 }
0x10e8   : > { %v6213_v15 = vsub.f32 %v6205_v36, %v6209_v12 }
0x10ea   : > { %v6215_v17 = vmul.f32 1.442695, %v6213_v15 }
0x10eb   : > { %v6212_v16 = vpop.xlane.xlu0 %6211 }
0x10ec   : > { %v6214_v18 = vsub.f32 %v6206_v40, %v6212_v16 }
0x10ee   : > { %v6217_v20 = vmul.f32 1.442695, %v6214_v18 }
0x10ef   : > { %v6333_v1 = vpop.xlane.xlu1 %6332 }
0x10f0   : > { %v6337_v2 = vsub.f32 %v6329_v46, %v6333_v1 }
0x10f2   : > { %v6339_v3 = vmul.f32 1.442695, %v6337_v2 }
0x10f3   : > { %v6336_v19 = vpop.xlane.xlu0 %6335 }
0x10f4   : > { %14660 = vpow2.f32 %v6339_v3  ;;  %v6338_v21 = vsub.f32 %v6330_v52, %v6336_v19 }
0x10f5   : > { %14662 = vpow2.f32 %v6095_v13 }
0x10f6   : > { %14664 = vpow2.f32 %v6097_v10  ;;  %v6341_v22 = vmul.f32 1.442695, %v6338_v21 }
0x10f7   : > { %v6456_v5 = vpop.xlane.xlu1 %6455  ;;  %14666 = vpow2.f32 %v6215_v17 }
0x10f8   : > { %14668 = vpow2.f32 %v6217_v20  ;;  %v6460_v23 = vsub.f32 %v6452_v41, %v6456_v5 }
0x10f9   : > { %14670 = vpow2.f32 %v6341_v22 }
0x10fa   : > { %v6462_v26 = vmul.f32 1.442695, %v6460_v23 }
0x10fb   : > { %v5987_v6 = vpop.permute.xlu1 %5986  ;;  %v6459_v25 = vpop.xlane.xlu0 %6458 }
0x10fc   : > { %v6027_v7 = vadd.f32 %v6026_v43, %v5987_v6  ;;  %v6030_v8 = vadd.f32 %v6029_v50, %v5987_v6  ;;  %v6461_v27 = vsub.f32 %v6453_v59, %v6459_v25  ;;  %14672 = vpow2.f32 %v6462_v26 }
0x10fe   : > { %v6034_v9 = vpack.c.bf16 %v6030_v8, %v6027_v7  ;;  %v6464_v30 = vmul.f32 1.442695, %v6461_v27 }
0x1100   : > { %13429 = vmatpush3.bf16.msra.mxu1 %v6034_v9  ;;  %6231 = vrot.lane.b32.xlu0 %v6034_v9, %s18178_s2  ;;  %14674 = vpow2.f32 %v6464_v30  ;;  %s18303_s2 = smov 8  }
0x1101   : > { %v17096_v32 = vpop.eup %14660  ;;  %13440 = vmatprep.subr.bf16.mxu1 %v15961_v49 }
0x1102   : > { %v6343_v4 = vsel %vm5125_vm4, %v17096_v32, 0.0  ;;  %v14663_v24 = vpop.eup %14662 }
0x1103   : > { %6344 = vadd.xlane.f32.xlu1 %v6343_v4  ;;  %v6099_v28 = vsel %vm5125_vm4, %v14663_v24, 0.0  ;;  %v14665_v29 = vpop.eup %14664 }
0x1104   : > { %v6102_v34 = vsel %vm5125_vm4, %v14665_v29, 0.0  ;;  %v14667_v36 = vpop.eup %14666 }
0x1105   : > { %v6219_v37 = vsel %vm5125_vm4, %v14667_v36, 0.0  ;;  %v14669_v38 = vpop.eup %14668 }
0x1106   : > { %v6222_v39 = vsel %vm5125_vm4, %v14669_v38, 0.0  ;;  %v14671_v40 = vpop.eup %14670 }
0x1107   : > { %v6346_v42 = vsel %vm5125_vm4, %v14671_v40, 0.0 }
0x1109   : > { %v14673_v43 = vpop.eup %14672 }
0x110a   : > { %v6466_v44 = vsel %vm5125_vm4, %v14673_v43, 0.0 }
0x110d   : > { %v14675_v45 = vpop.eup %14674 }
0x110e   : > { %v6469_v46 = vsel %vm5125_vm4, %v14675_v45, 0.0 }
0x1114   : > { %6354 = vrot.lane.b32.xlu1 %v6034_v9, %s18176_s23  ;;  %s18302_s23 = sld [smem:[#allocation129_spill]] }
0x111a   : > { %v14576_v19 = vld [vmem:[%s18302_s23 + $0x8] sm:$0xff]  }
0x111b   : > { %13471 = vmatpush3.bf16.msra.mxu0 %v14576_v19  ;;  %v12580_v19 = vld [vmem:[#allocation48] ss:$0 sm:$0xff] }
0x111c   : > { %13472 = vmatprep.subr.bf16.mxu0 %v15961_v49 }
0x111f   : > { %6100 = vadd.xlane.f32.xlu0 %v6099_v28 }
0x1123   : > { %6103 = vadd.xlane.f32.xlu0 %v6102_v34 }
0x1127   : > { %6220 = vadd.xlane.f32.xlu0 %v6219_v37 }
0x112b   : > { %6223 = vadd.xlane.f32.xlu0 %v6222_v39 }
0x112f   : > { %6347 = vadd.xlane.f32.xlu0 %v6346_v42 }
0x1133   : > { %6467 = vadd.xlane.f32.xlu0 %v6466_v44 }
0x1137   : > { %6470 = vadd.xlane.f32.xlu0 %v6469_v46 }
0x114d   : > { %6477 = vrot.lane.b32.xlu0 %v6034_v9, %s18299_s3 }
0x1172   : > { %v6232_v47 = vpop.permute.xlu0 %6231 }
0x118c   : > { %v6345_v53 = vpop.xlane.xlu1 %6344 }
0x1190   : > { %v6355_v3 = vpop.permute.xlu1 %6354 }
0x11a8   : > { %v6101_v48 = vpop.xlane.xlu0 %6100 }
0x11a9   : > { %14676 = vrcp.f32 %v6101_v48 }
0x11ac   : > { %v6104_v50 = vpop.xlane.xlu0 %6103 }
0x11ad   : > { %14678 = vrcp.f32 %v6104_v50 }
0x11b0   : > { %v6221_v31 = vpop.xlane.xlu0 %6220 }
0x11b1   : > { %14680 = vrcp.f32 %v6221_v31 }
0x11b4   : > { %v6224_v51 = vpop.xlane.xlu0 %6223 }
0x11b5   : > { %14682 = vrcp.f32 %v6224_v51 }
0x11b6   : > { %v14677_v52 = vpop.eup %14676 }
0x11b7   : > { %v6107_v55 = vmul.f32 %v14677_v52, %v14663_v24  ;;  %v14577_v24 = vld [vmem:[%s18302_s23] sm:$0xff]  }
0x11b8   : > { %v6348_v54 = vpop.xlane.xlu0 %6347  ;;  %13473 = vmatpush3.bf16.msra.mxu0 %v14577_v24 }
0x11b9   : > { %14684 = vrcp.f32 %v6348_v54  ;;  %13486 = vmatprep.subr.bf16.mxu0 %v15961_v49  ;;  %v12576_v54 = vld [vmem:[#allocation40] ss:$0 sm:$0xff] }
0x11ba   : > { %v14679_v35 = vpop.eup %14678  ;;  %14686 = vrcp.f32 %v6345_v53 }
0x11bb   : > { %v6108_v41 = vmul.f32 %v14679_v35, %v14665_v29 }
0x11bc   : > { %v6468_v56 = vpop.xlane.xlu0 %6467 }
0x11bd   : > { %v6109_v57 = vpack.c.bf16 %v6108_v41, %v6107_v55 }
0x11be   : > { %v14681_v58 = vpop.eup %14680 }
0x11bf   : > { %13431 = vmatmul.mubr.msk.bf16.vlgmr.msra.gmra.mxu1 %vm5125_vm4, %v6109_v57  ;;  %v6227_v61 = vmul.f32 %v14681_v58, %v14667_v36 }
0x11c0   : > { %13441 = vmatpush3.bf16.msra.mxu1 %v6232_v47  ;;  %v6471_v59 = vpop.xlane.xlu0 %6470  ;;  %13442 = vmatprep.mubr.msk.bf16.mxu1 %vm15962_vm0, %v15961_v49 }
0x11c1   : > { %14688 = vrcp.f32 %v6471_v59  ;;  %13452 = vmatprep.subr.bf16.mxu1 %v15961_v49 }
0x11c2   : > { %v14683_v60 = vpop.eup %14682  ;;  %14690 = vrcp.f32 %v6468_v56 }
0x11c3   : > { %v6228_v0 = vmul.f32 %v14683_v60, %v14669_v38 }
0x11c4   : > { %v6478_v4 = vpop.permute.xlu0 %6477 }
0x11c5   : > { %v6229_v1 = vpack.c.bf16 %v6228_v0, %v6227_v61 }
0x11c6   : > { %v14685_v2 = vpop.eup %14684 }
0x11c7   : > { %13443 = vmatmul.mubr.msk.bf16.vlgmr.msra.gmra.mxu1 %vm5125_vm4, %v6229_v1  ;;  %v14687_v5 = vpop.eup %14686  ;;  %v6352_v6 = vmul.f32 %v14685_v2, %v14671_v40 }
0x11c8   : > { %13453 = vmatpush3.bf16.msra.mxu1 %v6355_v3  ;;  %13454 = vmatprep.mubr.msk.bf16.mxu1 %vm15962_vm0, %v15961_v49  ;;  %v6351_v7 = vmul.f32 %v14687_v5, %v17096_v32 }
0x11c9   : > { %13464 = vmatprep.subr.bf16.mxu1 %v15961_v49 }
0x11ca   : > { %v6353_v8 = vpack.c.bf16 %v6352_v6, %v6351_v7 }
0x11ce   : > { %v14689_v9 = vpop.eup %14688 }
0x11cf   : > { %13455 = vmatmul.mubr.msk.bf16.vlgmr.msra.gmra.mxu1 %vm5125_vm4, %v6353_v8  ;;  %v14691_v33 = vpop.eup %14690  ;;  %v6475_v11 = vmul.f32 %v14689_v9, %v14675_v45 }
0x11d0   : > { %13465 = vmatpush3.bf16.msra.mxu1 %v6478_v4  ;;  %13466 = vmatprep.mubr.msk.bf16.mxu1 %vm15962_vm0, %v15961_v49  ;;  %v6474_v12 = vmul.f32 %v14691_v33, %v14673_v43  ;;  %v14579_v33 = vld [vmem:[%s18306_s6] sm:$0xff]  }
0x11d1   : > { %13478 = vmatprep.subr.bf16.mxu1 %v15961_v49 }
0x11d2   : > { %v6476_v13 = vpack.c.bf16 %v6475_v11, %v6474_v12  ;;  %v17153_v11 = vld [vmem:[%s18307_s10 + $0x8] sm:$0xff]   ;;  %v14582_v12 = vld [vmem:[%s18308_s12 + $0x18] sm:$0xff]  }
0x11d7   : > { %13467 = vmatmul.mubr.msk.bf16.vlgmr.msra.gmra.mxu1 %vm5125_vm4, %v6476_v13 }
0x11d8   : > { %13482 = vmatprep.mubr.msk.bf16.mxu1 %vm15962_vm0, %v15961_v49 }
0x127f   : > { %v6147_v32 = vpop.f32.mrf.mxu1 }
0x1281   : > { %v13432_v14 = vpop.f32.mrf.mxu1 }
0x1283   : > { %v6150_v10 = vpop.f32.mrf.mxu1 }
0x1285   : > { %v13433_v15 = vpop.f32.mrf.mxu1 }
0x1287   : > { %v6271_v16 = vpop.f32.mrf.mxu1 }
0x1289   : > { %v13444_v17 = vpop.f32.mrf.mxu1 }
0x128b   : > { %v6274_v18 = vpop.f32.mrf.mxu1 }
0x128c   : > { %v14293_v20 = vpack.i.bf16 %v6274_v18, %v6271_v16 }
0x128d   : > { %v13445_v21 = vpop.f32.mrf.mxu1 }
0x128e   : > { %14294 = vrot.lane.b32.xlu0 %v14293_v20, %s18303_s2 }
0x128f   : > { %v6394_v22 = vpop.f32.mrf.mxu1 }
0x1291   : > { %v13456_v23 = vpop.f32.mrf.mxu1 }
0x1292   : > { %v12581_v23 = vld [vmem:[#allocation46] ss:$0 sm:$0xff] }
0x1293   : > { %v6397_v25 = vpop.f32.mrf.mxu1 }
0x1294   : > { %v14298_v26 = vpack.i.bf16 %v6397_v25, %v6394_v22  ;;  %v2700_v25 = vld [vmem:[%s16364_s8] sm:$0xff] }
0x1295   : > { %v13457_v27 = vpop.f32.mrf.mxu1 }
0x1296   : > { %14299 = vrot.lane.b32.xlu0 %v14298_v26, %s18304_s22  ;;  %v2701_v26 = vld [vmem:[%s16364_s8 + $0x8] sm:$0xff] }
0x1297   : > { %v6517_v28 = vpop.f32.mrf.mxu1 }
0x1299   : > { %v13468_v29 = vpop.f32.mrf.mxu1 }
0x129a   : > { %v6878_v29 = vpack.c.bf16 %v2701_v26, %v2700_v25 }
0x129b   : > { %v6520_v30 = vpop.f32.mrf.mxu1 }
0x129c   : > { %v14303_v34 = vpack.i.bf16 %v6520_v30, %v6517_v28 }
0x129d   : > { %v13469_v36 = vpop.f32.mrf.mxu1 }
0x129e   : > { %14304 = vrot.lane.b32.xlu0 %v14303_v34, %s18305_s28  ;;  %v14581_v34 = vld [vmem:[%s18307_s10] sm:$0xff]   ;;  %v2702_v36 = vld [vmem:[%s16364_s8 + $0x10] sm:$0xf]  ;;  %s18310_s10 = smov 88  }
0x1300   : > { %v14295_v37 = vpop.permute.xlu0 %14294 }
0x1301   : > { %v14297_v39 = vunpack.i.h.bf16 %v14295_v37  ;;  %v14296_v40 = vunpack.i.l.bf16 %v14295_v37  ;;  %v6879_v37 = vpack.c.bf16 %v2702_v36, %v2702_v36 }
0x1303   : > { %v6549_v45 = vsel %vm5075_vm3, %v6150_v10, %v14297_v39  ;;  %v6548_v46 = vsel %vm5075_vm3, %v6147_v32, %v14296_v40  ;;  %v14584_v39 = vld [vmem:[%s18308_s12 + $0x8] sm:$0xff]   ;;  %v14585_v40 = vld [vmem:[%s18308_s12] sm:$0xff]  }
0x1308   : > { %v14300_v38 = vpop.permute.xlu0 %14299 }
0x1309   : > { %v14302_v42 = vunpack.i.h.bf16 %v14300_v38  ;;  %v14301_v43 = vunpack.i.l.bf16 %v14300_v38  ;;  %v14583_v38 = vld [vmem:[%s18308_s12 + $0x10] sm:$0xff]   ;;  %s18311_s12 = smov 120  }
0x130b   : > { %v6550_v50 = vsel %vm5125_vm4, %v6548_v46, %v14301_v43  ;;  %v6551_v31 = vsel %vm5125_vm4, %v6549_v45, %v14302_v42  ;;  %v12582_v42 = vld [vmem:[#allocation43] ss:$0 sm:$0xff] }
0x1310   : > { %v14305_v44 = vpop.permute.xlu0 %14304 }
0x1311   : > { %v14307_v47 = vunpack.i.h.bf16 %v14305_v44  ;;  %v14306_v48 = vunpack.i.l.bf16 %v14305_v44 }
0x1313   : > { %v6552_v51 = vsel %vm5591_vm5, %v6550_v50, %v14306_v48  ;;  %v6553_v52 = vsel %vm5591_vm5, %v6551_v31, %v14307_v47  ;;  %v17177_v50 = vld [vmem:[#allocation6] ss:$0 sm:$0xff] }
0x1314   : > { %v6558_v53 = vpack.c.bf16 %v6553_v52, %v6552_v51 }
0x1316   : > { %13475 = vmatmul.mubr.msk.bf16.vlgmr.msra.gmra.mxu0 %vm4971_vm2, %v6558_v53 }
0x1317   : > { %13494 = vmatprep.mubr.msk.bf16.mxu0 %vm15962_vm0, %v15961_v49  ;;  %13487 = vmatpush3.bf16.msra.mxu0 %v14582_v12 }
0x1318   : > { %13488 = vmatprep.subr.bf16.mxu0 %v15961_v49 }
0x131b   : > { %13489 = vmatpush3.bf16.msra.mxu0 %v14583_v38 }
0x131c   : > { %13490 = vmatprep.subr.bf16.mxu0 %v15961_v49 }
0x131f   : > { %13491 = vmatpush3.bf16.msra.mxu0 %v14584_v39 }
0x1320   : > { %13492 = vmatprep.subr.bf16.mxu0 %v15961_v49 }
0x1323   : > { %13493 = vmatpush3.bf16.msra.mxu0 %v14585_v40 }
0x13d6   : > { %v6615_v35 = vpop.f32.mrf.mxu0 }
0x13d7   : > { %v6616_v55 = vadd.f32 %v12576_v54, %v6615_v35 }
0x13d8   : > { %v13476_v41 = vpop.f32.mrf.mxu0 }
0x13d9   : > { %v6622_v56 = vadd.f32 %v6616_v55, %v17031_v62 }
0x13da   : > { %v6618_v57 = vpop.f32.mrf.mxu0 }
0x13db   : > { %v6619_v58 = vadd.f32 %v12576_v54, %v6618_v57  ;;  %v6624_v59 = vsel %vm4971_vm2, %v6622_v56, 0.0 }
0x13dc   : > { %6625 = vadd.xlane.f32.xlu0 %v6624_v59  ;;  %v13477_v60 = vpop.f32.mrf.mxu0 }
0x13dd   : > { %v6623_v61 = vadd.f32 %v6619_v58, %v17033_v63  ;;  %v14578_v63 = vld [vmem:[%s18306_s6 + $0x8] sm:$0xff]   ;;  %s18309_s6 = smov 96  }
0x13de   : > { %13479 = vmatpush3.bf16.msra.mxu1 %v14578_v63 }
0x13df   : > { %v6627_v0 = vsel %vm4971_vm2, %v6623_v61, 0.0  ;;  %13480 = vmatprep.subr.bf16.mxu1 %v15961_v49 }
0x13e0   : > { %6628 = vadd.xlane.f32.xlu1 %v6627_v0 }
0x13e2   : > { %13481 = vmatpush3.bf16.msra.mxu1 %v14579_v33 }
0x13e3   : > { %13498 = vmatprep.subr.bf16.mxu1 %v17153_v11 }
0x1465   : > { %v6626_v1 = vpop.xlane.xlu0 %6625 }
0x1466   : > { %v6630_v2 = vmul.f32 0.03125, %v6626_v1 }
0x1468   : > { %v6632_v3 = vsub.f32 %v6622_v56, %v6630_v2 }
0x1469   : > { %v6629_v5 = vpop.xlane.xlu1 %6628 }
0x146a   : > { %v6631_v62 = vmul.f32 0.03125, %v6629_v5  ;;  %v6634_v6 = vmul.f32 %v6632_v3, %v6632_v3 }
0x146c   : > { %v6633_v7 = vsub.f32 %v6623_v61, %v6631_v62  ;;  %v6636_v8 = vsel %vm4971_vm2, %v6634_v6, 0.0 }
0x146d   : > { %6637 = vadd.xlane.f32.xlu0 %v6636_v8 }
0x146e   : > { %v6635_v9 = vmul.f32 %v6633_v7, %v6633_v7 }
0x1470   : > { %v6639_v4 = vsel %vm4971_vm2, %v6635_v9, 0.0 }
0x1471   : > { %6640 = vadd.xlane.f32.xlu0 %v6639_v4 }
0x14f6   : > { %v6638_v13 = vpop.xlane.xlu0 %6637 }
0x14f7   : > { %v6642_v32 = vmul.f32 0.03125, %v6638_v13 }
0x14f9   : > { %v6644_v14 = vadd.f32 1e-05, %v6642_v32 }
0x14fa   : > { %v6641_v10 = vpop.xlane.xlu0 %6640 }
0x14fb   : > { %14692 = vrsqrt.f32 %v6644_v14  ;;  %v6643_v15 = vmul.f32 0.03125, %v6641_v10 }
0x14fd   : > { %v6645_v16 = vadd.f32 1e-05, %v6643_v15 }
0x14ff   : > { %14694 = vrsqrt.f32 %v6645_v16 }
0x1508   : > { %v14693_v17 = vpop.eup %14692 }
0x1509   : > { %v6648_v18 = vmul.f32 %v14693_v17, %v6632_v3 }
0x150b   : > { %v6657_v22 = vmul.f32 %v12580_v19, %v6648_v18 }
0x150c   : > { %v14695_v20 = vpop.eup %14694 }
0x150d   : > { %v6649_v21 = vmul.f32 %v14695_v20, %v6633_v7  ;;  %v17160_v27 = vadd.f32 %v12581_v23, %v6657_v22  ;;  %v15974_v7 = vmov 0  }
0x150f   : > { %v6658_v24 = vmul.f32 %v12580_v19, %v6649_v21 }
0x1511   : > { %v17162_v28 = vadd.f32 %v12581_v23, %v6658_v24 }
0x1513   : > { %v6672_v30 = vpack.c.bf16 %v17162_v28, %v17160_v27 }
0x1515   : > { %13483 = vmatmul.mubr.msk.bf16.vlgmr.msra.gmra.mxu1 %vm4971_vm2, %v6672_v30 }
0x1516   : > { %13499 = vmatpush3.bf16.msra.mxu1 %v17153_v11  ;;  %13502 = vmatprep.mubr.msk.bf16.mxu1 %vm4971_vm2, %v6878_v29 }
0x1517   : > { %13500 = vmatprep.subr.bf16.mxu1 %v14581_v34 }
0x151a   : > { %13501 = vmatpush3.bf16.msra.mxu1 %v14581_v34 }
0x151d   : > { %13503 = vmatmul.mubr.msk.bf16.vlgmr.msra.gmra.mxu1 %vm4971_vm2, %v6879_v37 }
0x151e   : > { %13510 = vmatprep.mubr.bf16.mxu1 %v15974_v7 }
0x15d5   : > { %v6729_v43 = vpop.f32.mrf.mxu1 }
0x15d6   : > { %v6730_v45 = vadd.f32 %v12582_v42, %v6729_v43 }
0x15d7   : > { %v13484_v44 = vpop.f32.mrf.mxu1 }
0x15d8   : > { %v6736_v31 = vmax.f32 %v6730_v45, 0.0 }
0x15d9   : > { %v6732_v46 = vpop.f32.mrf.mxu1 }
0x15da   : > { %v6733_v47 = vadd.f32 %v12582_v42, %v6732_v46 }
0x15db   : > { %v13485_v48 = vpop.f32.mrf.mxu1 }
0x15dc   : > { %v6737_v51 = vmax.f32 %v6733_v47, 0.0 }
0x15dd   : > { %v13504_v52 = vpop.f32.mrf.mxu1 }
0x15de   : > { %v6746_v53 = vpack.c.bf16 %v6737_v51, %v6736_v31  ;;  %v6947_v54 = vadd.f32 %v13504_v52, %v17177_v50 }
0x15df   : > { %v6938_v35 = vpop.f32.mrf.mxu1 }
0x15e0   : > { %v17180_v55 = vpack.c.bf16 %v6947_v54, %v6947_v54  ;;  %13495 = vmatmul.mubr.msk.bf16.vlgmr.msra.gmra.mxu0 %vm4900_vm1, %v6746_v53  ;;  %v6939_v57 = vadd.f32 %v17177_v50, %v6938_v35 }
0x15e1   : > { %v13505_v41 = vpop.f32.mrf.mxu1 }
0x15e2   : > { %7020 = vrot.lane.b32.xlu1 %v17180_v55, %s18309_s6 }
0x15e3   : > { %v6941_v56 = vpop.f32.mrf.mxu1 }
0x15e4   : > { %v6942_v58 = vadd.f32 %v17177_v50, %v6941_v56 }
0x15e6   : > { %v17187_v59 = vpack.c.bf16 %v6942_v58, %v6939_v57  ;;  %6954 = vrot.lane.b32.xlu1 %v17153_v11, %s18301_s5 }
0x15e8   : > { %7018 = vrot.lane.b32.xlu0 %v17187_v59, %s18309_s6  ;;  %13518 = vmatprep.mubr.msk.bf16.mxu0 %vm5075_vm3, %v17187_v59 }
0x15ea   : > { %6952 = vrot.lane.b32.xlu1 %v14581_v34, %s18301_s5 }
0x1654   : > { %v7021_v60 = vpop.permute.xlu1 %7020 }
0x1655   : > { %13906 = vmatprep.subr.msk.bf16.mxu0 %vm5075_vm3, %v7021_v60  ;;  %v7032_v61 = vsel %vm5075_vm3, %v7021_v60, 0 }
0x1656   : > { %13515 = vmatpush3.bf16.xpose.msra.mxu0 %v7032_v61 }
0x1658   : > { %v6955_v6 = vpop.permute.xlu1 %6954 }
0x1659   : > { %13506 = vmatprep.subr.bf16.mxu1 %v6955_v6 }
0x165a   : > { %v7019_v0 = vpop.permute.xlu0 %7018  ;;  %13507 = vmatpush3.bf16.msra.mxu1 %v6955_v6 }
0x165b   : > { %13907 = vmatprep.subr.msk.bf16.mxu0 %vm5075_vm3, %v7019_v0  ;;  %v7029_v1 = vsel %vm5075_vm3, %v7019_v0, 0 }
0x165c   : > { %v6953_v8 = vpop.permute.xlu1 %6952 }
0x165d   : > { %13508 = vmatprep.subr.bf16.mxu1 %v6953_v8 }
0x165e   : > { %13517 = vmatpush3.bf16.xpose.msra.mxu0 %v7029_v1  ;;  %13509 = vmatpush3.bf16.msra.mxu1 %v6953_v8 }
0x1661   : > { %13511 = vmatmul.mubr.bf16.vlgmr.msra.gmra.mxu1 %v15974_v7 }
0x1665   : > { %13519 = vmatmul.mubr.msk.bf16.vlgmr.msra.gmra.mxu0 %vm5075_vm3, %v17180_v55 }
0x16a0   : > { %v17202_v2 = vpop.f32.mrf.mxu0 }
0x16a2   : > { %v13496_v3 = vpop.f32.mrf.mxu0 }
0x16a4   : > { %v17204_v5 = vpop.f32.mrf.mxu0 }
0x16a6   : > { %v13497_v62 = vpop.f32.mrf.mxu0 }
0x1721   : > { %v13512_v36 = vpop.f32.mrf.mxu1 }
0x1723   : > { %v6998_v37 = vpop.f32.mrf.mxu1 }
0x1725   : > { %v13520_v9 = vpop.f32.mrf.mxu0  ;;  %v13513_v38 = vpop.f32.mrf.mxu1 }
0x1726   : > { %v7084_v11 = vmul.f32 0.35355338, %v13520_v9 }
0x1727   : > { %v7068_v4 = vpop.f32.mrf.mxu0  ;;  %v7001_v42 = vpop.f32.mrf.mxu1 }
0x1728   : > { %v7082_v63 = vmul.f32 0.35355338, %v7068_v4  ;;  %v7093_v14 = vsel %vm7092_vm7, %v7084_v11, -inf }
0x1729   : > { %v13521_v33 = vpop.f32.mrf.mxu0 }
0x172a   : > { %v7086_v12 = vsel %vm7085_vm6, %v7082_v63, -inf }
0x172b   : > { %7087 = vmax.xlane.f32.xlu0 %v7086_v12  ;;  %v7071_v13 = vpop.f32.mrf.mxu0 }
0x172c   : > { %v7083_v32 = vmul.f32 0.35355338, %v7071_v13 }
0x172e   : > { %v7089_v10 = vsel %vm7085_vm6, %v7083_v32, -inf }
0x172f   : > { %7094 = vmax.xlane.f32.xlu0 %v7093_v14  ;;  %7090 = vmax.xlane.f32.xlu1 %v7089_v10 }
0x17b4   : > { %v7088_v15 = vpop.xlane.xlu0 %7087 }
0x17b5   : > { %v7096_v16 = vsub.f32 %v7082_v63, %v7088_v15 }
0x17b7   : > { %v7099_v21 = vmul.f32 1.442695, %v7096_v16 }
0x17b8   : > { %v7095_v17 = vpop.xlane.xlu0 %7094  ;;  %v7091_v18 = vpop.xlane.xlu1 %7090 }
0x17b9   : > { %v7098_v19 = vsub.f32 %v7084_v11, %v7095_v17  ;;  %v7097_v20 = vsub.f32 %v7083_v32, %v7091_v18 }
0x17bb   : > { %v7103_v22 = vmul.f32 1.442695, %v7098_v19  ;;  %v7101_v23 = vmul.f32 1.442695, %v7097_v20 }
0x17bd   : > { %14696 = vpow2.f32 %v7103_v22 }
0x17be   : > { %14698 = vpow2.f32 %v7101_v23 }
0x17bf   : > { %14700 = vpow2.f32 %v7099_v21 }
0x17ca   : > { %v14697_v24 = vpop.eup %14696 }
0x17cb   : > { %v14699_v25 = vpop.eup %14698  ;;  %v7111_v26 = vsel %vm7092_vm7, %v14697_v24, 0.0 }
0x17cc   : > { %v14701_v29 = vpop.eup %14700  ;;  %7112 = vadd.xlane.f32.xlu0 %v7111_v26  ;;  %v7108_v30 = vsel %vm7085_vm6, %v14699_v25, 0.0 }
0x17cd   : > { %7109 = vadd.xlane.f32.xlu1 %v7108_v30  ;;  %v7105_v34 = vsel %vm7085_vm6, %v14701_v29, 0.0 }
0x17d0   : > { %7106 = vadd.xlane.f32.xlu0 %v7105_v34 }
0x17de   : > { %6958 = vrot.lane.b32.xlu1 %v17177_v50, %s18301_s5 }
0x17e2   : > { %7184 = vrot.lane.b32.xlu1 %v17187_v59, %s18310_s10 }
0x17e6   : > { %7180 = vrot.lane.b32.xlu1 %v17187_v59, %s18311_s12  ;;  %7186 = vrot.lane.b32.xlu0 %v17180_v55, %s18310_s10 }
0x17ea   : > { %7182 = vrot.lane.b32.xlu0 %v17180_v55, %s18311_s12 }
0x1855   : > { %v7113_v39 = vpop.xlane.xlu0 %7112 }
0x1856   : > { %v7110_v40 = vpop.xlane.xlu1 %7109  ;;  %14702 = vrcp.f32 %v7113_v39 }
0x1857   : > { %14704 = vrcp.f32 %v7110_v40 }
0x1859   : > { %v7107_v43 = vpop.xlane.xlu0 %7106 }
0x185a   : > { %14706 = vrcp.f32 %v7107_v43  ;;  %v6959_v44 = vpop.permute.xlu1 %6958 }
0x185b   : > { %v7007_v45 = vadd.f32 %v13512_v36, %v6959_v44  ;;  %v6999_v46 = vadd.f32 %v6998_v37, %v6959_v44  ;;  %v7002_v47 = vadd.f32 %v7001_v42, %v6959_v44 }
0x185d   : > { %v17222_v48 = vpack.c.bf16 %v7007_v45, %v7007_v45  ;;  %v17224_v50 = vpack.c.bf16 %v7002_v47, %v6999_v46  ;;  %v7187_v52 = vpop.permute.xlu0 %7186 }
0x185e   : > { %v7185_v35 = vpop.permute.xlu1 %7184  ;;  %v7198_v0 = vsel %vm5075_vm3, %v7187_v52, 0 }
0x185f   : > { %13908 = vmatprep.subr.msk.bf16.mxu1 %vm7128_vm8, %v17222_v48  ;;  %v7130_v31 = vsel %vm7128_vm8, %v17222_v48, 0  ;;  %v7195_v1 = vsel %vm5075_vm3, %v7185_v35, 0 }
0x1860   : > { %13523 = vmatpush3.bf16.msra.mxu1 %v7130_v31 }
0x1861   : > { %13524 = vmatprep.subr.bf16.mxu1 %v17224_v50  ;;  %v7183_v3 = vpop.permute.xlu0 %7182 }
0x1862   : > { %v7181_v61 = vpop.permute.xlu1 %7180 }
0x1863   : > { %v14703_v51 = vpop.eup %14702 }
0x1864   : > { %13525 = vmatpush3.bf16.msra.mxu1 %v17224_v50  ;;  %v14705_v53 = vpop.eup %14704  ;;  %v7119_v41 = vmul.f32 %v14703_v51, %v14697_v24 }
0x1865   : > { %13909 = vmatprep.subr.msk.bf16.mxu1 %vm5075_vm3, %v7187_v52  ;;  %v7118_v57 = vmul.f32 %v14705_v53, %v14699_v25 }
0x1866   : > { %v7121_v60 = vpack.c.bf16 %v7119_v41, %v7119_v41 }
0x1867   : > { %v14707_v54 = vpop.eup %14706 }
0x1868   : > { %v7117_v56 = vmul.f32 %v14707_v54, %v14701_v29 }
0x186a   : > { %v7120_v58 = vpack.c.bf16 %v7118_v57, %v7117_v56 }
0x186c   : > { %13526 = vmatprep.mubr.msk.bf16.mxu1 %vm7085_vm6, %v7120_v58 }
0x186d   : > { %13527 = vmatmul.mubr.msk.bf16.vlgmr.msra.gmra.mxu1 %vm7085_vm6, %v7121_v60 }
0x186e   : > { %13531 = vmatpush3.bf16.xpose.msra.mxu1 %v7198_v0  ;;  %13534 = vmatprep.mubr.msk.bf16.mxu1 %vm5075_vm3, %v7181_v61 }
0x186f   : > { %13910 = vmatprep.subr.msk.bf16.mxu1 %vm5075_vm3, %v7185_v35 }
0x1876   : > { %13533 = vmatpush3.bf16.xpose.msra.mxu1 %v7195_v1 }
0x187d   : > { %13535 = vmatmul.mubr.msk.bf16.vlgmr.msra.gmra.mxu1 %vm5075_vm3, %v7183_v3 }
0x192d   : > { %v17240_v62 = vpop.f32.mrf.mxu1 }
0x192f   : > { %v17242_v6 = vpop.f32.mrf.mxu1 }
0x1931   : > { %v13529_v7 = vpop.f32.mrf.mxu1 }
0x1933   : > { %v17244_v8 = vpop.f32.mrf.mxu1 }
0x193d   : > { %v13536_v9 = vpop.f32.mrf.mxu1 }
0x193e   : > { %v7250_v32 = vmul.f32 0.35355338, %v13536_v9 }
0x193f   : > { %v7234_v4 = vpop.f32.mrf.mxu1 }
0x1940   : > { %v7248_v63 = vmul.f32 0.35355338, %v7234_v4  ;;  %v7257_v10 = vsel %vm7092_vm7, %v7250_v32, -inf }
0x1941   : > { %v13537_v33 = vpop.f32.mrf.mxu1 }
0x1942   : > { %v7251_v11 = vsel %vm7085_vm6, %v7248_v63, -inf }
0x1943   : > { %7252 = vmax.xlane.f32.xlu1 %v7251_v11  ;;  %v7237_v12 = vpop.f32.mrf.mxu1 }
0x1944   : > { %v7249_v13 = vmul.f32 0.35355338, %v7237_v12 }
0x1946   : > { %v7254_v14 = vsel %vm7085_vm6, %v7249_v13, -inf }
0x1947   : > { %7255 = vmax.xlane.f32.xlu0 %v7254_v14 }
0x194b   : > { %7258 = vmax.xlane.f32.xlu0 %v7257_v10 }
0x19cc   : > { %v7253_v15 = vpop.xlane.xlu1 %7252 }
0x19cd   : > { %v7260_v18 = vsub.f32 %v7248_v63, %v7253_v15 }
0x19cf   : > { %v7263_v22 = vmul.f32 1.442695, %v7260_v18 }
0x19d0   : > { %v7256_v16 = vpop.xlane.xlu0 %7255 }
0x19d1   : > { %v7261_v17 = vsub.f32 %v7249_v13, %v7256_v16 }
0x19d3   : > { %v7265_v19 = vmul.f32 1.442695, %v7261_v17 }
0x19d4   : > { %v7259_v20 = vpop.xlane.xlu0 %7258 }
0x19d5   : > { %14708 = vpow2.f32 %v7265_v19  ;;  %v7262_v21 = vsub.f32 %v7250_v32, %v7259_v20 }
0x19d7   : > { %v7267_v23 = vmul.f32 1.442695, %v7262_v21 }
0x19d9   : > { %14710 = vpow2.f32 %v7267_v23 }
0x19da   : > { %14712 = vpow2.f32 %v7263_v22 }
0x19e2   : > { %v14709_v24 = vpop.eup %14708 }
0x19e3   : > { %v7272_v25 = vsel %vm7085_vm6, %v14709_v24, 0.0 }
0x19e4   : > { %7273 = vadd.xlane.f32.xlu0 %v7272_v25 }
0x19e6   : > { %v14711_v26 = vpop.eup %14710 }
0x19e7   : > { %v7275_v29 = vsel %vm7092_vm7, %v14711_v26, 0.0  ;;  %v14713_v30 = vpop.eup %14712 }
0x19e8   : > { %7276 = vadd.xlane.f32.xlu1 %v7275_v29  ;;  %v7269_v34 = vsel %vm7085_vm6, %v14713_v30, 0.0 }
0x19ec   : > { %7270 = vadd.xlane.f32.xlu1 %v7269_v34 }
0x19fa   : > { %7290 = vrot.lane.b32.xlu0 %v17222_v48, %s18311_s12 }
0x19fd   : > { %7288 = vrot.lane.b32.xlu1 %v17224_v50, %s18311_s12 }
0x19fe   : > { %7354 = vrot.lane.b32.xlu0 %v17187_v59, %s18298_s1 }
0x1a01   : > { %7356 = vrot.lane.b32.xlu1 %v17180_v55, %s18298_s1 }
0x1a02   : > { %7352 = vrot.lane.b32.xlu0 %v17180_v55, %s18312_s13 }
0x1a05   : > { %7350 = vrot.lane.b32.xlu1 %v17187_v59, %s18312_s13 }
0x1a6d   : > { %v7274_v36 = vpop.xlane.xlu0 %7273 }
0x1a71   : > { %v7277_v37 = vpop.xlane.xlu1 %7276  ;;  %v7291_v38 = vpop.permute.xlu0 %7290 }
0x1a72   : > { %13911 = vmatprep.subr.msk.bf16.mxu0 %vm7128_vm8, %v7291_v38  ;;  %v7300_v39 = vsel %vm7128_vm8, %v7291_v38, 0  ;;  %14714 = vrcp.f32 %v7277_v37 }
0x1a73   : > { %13539 = vmatpush3.bf16.msra.mxu0 %v7300_v39  ;;  %14716 = vrcp.f32 %v7274_v36 }
0x1a75   : > { %v7271_v40 = vpop.xlane.xlu1 %7270  ;;  %v7355_v41 = vpop.permute.xlu0 %7354 }
0x1a76   : > { %14718 = vrcp.f32 %v7271_v40  ;;  %v7365_v56 = vsel %vm5075_vm3, %v7355_v41, 0 }
0x1a79   : > { %v7289_v42 = vpop.permute.xlu1 %7288  ;;  %v7353_v57 = vpop.permute.xlu0 %7352 }
0x1a7a   : > { %13540 = vmatprep.subr.bf16.mxu0 %v7289_v42 }
0x1a7b   : > { %13541 = vmatpush3.bf16.msra.mxu0 %v7289_v42 }
0x1a7d   : > { %v7357_v43 = vpop.permute.xlu1 %7356 }
0x1a7e   : > { %13912 = vmatprep.subr.msk.bf16.mxu0 %vm5075_vm3, %v7357_v43  ;;  %v7368_v35 = vsel %vm5075_vm3, %v7357_v43, 0 }
0x1a7f   : > { %v14715_v44 = vpop.eup %14714 }
0x1a80   : > { %v14717_v45 = vpop.eup %14716  ;;  %v7283_v47 = vmul.f32 %v14715_v44, %v14711_v26 }
0x1a81   : > { %v7282_v51 = vmul.f32 %v14717_v45, %v14709_v24  ;;  %v7351_v54 = vpop.permute.xlu1 %7350 }
0x1a82   : > { %v7285_v53 = vpack.c.bf16 %v7283_v47, %v7283_v47 }
0x1a83   : > { %v14719_v46 = vpop.eup %14718 }
0x1a84   : > { %v7281_v31 = vmul.f32 %v14719_v46, %v14713_v30 }
0x1a86   : > { %v7284_v52 = vpack.c.bf16 %v7282_v51, %v7281_v31 }
0x1a88   : > { %13542 = vmatprep.mubr.msk.bf16.mxu0 %vm7085_vm6, %v7284_v52 }
0x1a89   : > { %13543 = vmatmul.mubr.msk.bf16.vlgmr.msra.gmra.mxu0 %vm7085_vm6, %v7285_v53 }
0x1a8a   : > { %13547 = vmatpush3.bf16.xpose.msra.mxu0 %v7368_v35  ;;  %13550 = vmatprep.mubr.msk.bf16.mxu0 %vm5075_vm3, %v7351_v54 }
0x1a8b   : > { %13913 = vmatprep.subr.msk.bf16.mxu0 %vm5075_vm3, %v7355_v41 }
0x1a92   : > { %13549 = vmatpush3.bf16.xpose.msra.mxu0 %v7365_v56 }
0x1a99   : > { %13551 = vmatmul.mubr.msk.bf16.vlgmr.msra.gmra.mxu0 %vm5075_vm3, %v7353_v57 }
0x1b49   : > { %v17274_v58 = vpop.f32.mrf.mxu0 }
0x1b4b   : > { %v17276_v60 = vpop.f32.mrf.mxu0 }
0x1b4d   : > { %v13545_v61 = vpop.f32.mrf.mxu0 }
0x1b4f   : > { %v17278_v0 = vpop.f32.mrf.mxu0 }
0x1b50   : > { %v14308_v1 = vpack.i.bf16 %v17278_v0, %v17276_v60 }
0x1b59   : > { %v13552_v3 = vpop.f32.mrf.mxu0 }
0x1b5a   : > { %v7420_v12 = vmul.f32 0.35355338, %v13552_v3 }
0x1b5b   : > { %v7404_v7 = vpop.f32.mrf.mxu0 }
0x1b5c   : > { %v7418_v9 = vmul.f32 0.35355338, %v7404_v7  ;;  %v7427_v32 = vsel %vm7092_vm7, %v7420_v12, -inf }
0x1b5d   : > { %v13553_v4 = vpop.f32.mrf.mxu0 }
0x1b5e   : > { %v7421_v63 = vsel %vm7085_vm6, %v7418_v9, -inf }
0x1b5f   : > { %7422 = vmax.xlane.f32.xlu1 %v7421_v63  ;;  %v7407_v33 = vpop.f32.mrf.mxu0 }
0x1b60   : > { %v7419_v11 = vmul.f32 0.35355338, %v7407_v33 }
0x1b62   : > { %v7424_v13 = vsel %vm7085_vm6, %v7419_v11, -inf }
0x1b63   : > { %7425 = vmax.xlane.f32.xlu0 %v7424_v13 }
0x1b67   : > { %7428 = vmax.xlane.f32.xlu0 %v7427_v32 }
0x1be8   : > { %v7423_v14 = vpop.xlane.xlu1 %7422 }
0x1be9   : > { %v7430_v16 = vsub.f32 %v7418_v9, %v7423_v14 }
0x1beb   : > { %v7433_v20 = vmul.f32 1.442695, %v7430_v16 }
0x1bec   : > { %v7426_v10 = vpop.xlane.xlu0 %7425 }
0x1bed   : > { %v7431_v15 = vsub.f32 %v7419_v11, %v7426_v10 }
0x1bef   : > { %v7435_v17 = vmul.f32 1.442695, %v7431_v15 }
0x1bf0   : > { %v7429_v18 = vpop.xlane.xlu0 %7428 }
0x1bf1   : > { %14720 = vpow2.f32 %v7435_v17  ;;  %v7432_v19 = vsub.f32 %v7420_v12, %v7429_v18 }
0x1bf3   : > { %v7437_v21 = vmul.f32 1.442695, %v7432_v19 }
0x1bf5   : > { %14722 = vpow2.f32 %v7437_v21 }
0x1bf6   : > { %14724 = vpow2.f32 %v7433_v20 }
0x1bfe   : > { %v14721_v22 = vpop.eup %14720 }
0x1bff   : > { %v7442_v23 = vsel %vm7085_vm6, %v14721_v22, 0.0 }
0x1c00   : > { %7443 = vadd.xlane.f32.xlu0 %v7442_v23 }
0x1c02   : > { %v14723_v24 = vpop.eup %14722 }
0x1c03   : > { %v7445_v25 = vsel %vm7092_vm7, %v14723_v24, 0.0  ;;  %v14725_v26 = vpop.eup %14724 }
0x1c04   : > { %7446 = vadd.xlane.f32.xlu1 %v7445_v25  ;;  %v7439_v29 = vsel %vm7085_vm6, %v14725_v26, 0.0 }
0x1c08   : > { %7440 = vadd.xlane.f32.xlu1 %v7439_v29 }
0x1c16   : > { %7458 = vrot.lane.b32.xlu0 %v17222_v48, %s18312_s13 }
0x1c19   : > { %7456 = vrot.lane.b32.xlu1 %v17224_v50, %s18312_s13 }
0x1c1a   : > { %7522 = vrot.lane.b32.xlu0 %v17187_v59, %s18300_s4 }
0x1c1d   : > { %7524 = vrot.lane.b32.xlu1 %v17180_v55, %s18300_s4 }
0x1c1e   : > { %7520 = vrot.lane.b32.xlu0 %v17180_v55, %s18299_s3 }
0x1c21   : > { %7518 = vrot.lane.b32.xlu1 %v17187_v59, %s18299_s3 }
0x1c89   : > { %v7444_v30 = vpop.xlane.xlu0 %7443 }
0x1c8d   : > { %v7447_v34 = vpop.xlane.xlu1 %7446  ;;  %v7459_v36 = vpop.permute.xlu0 %7458 }
0x1c8e   : > { %13914 = vmatprep.subr.msk.bf16.mxu1 %vm7128_vm8, %v7459_v36  ;;  %v7468_v37 = vsel %vm7128_vm8, %v7459_v36, 0  ;;  %14726 = vrcp.f32 %v7447_v34 }
0x1c8f   : > { %13555 = vmatpush3.bf16.msra.mxu1 %v7468_v37  ;;  %14728 = vrcp.f32 %v7444_v30 }
0x1c91   : > { %v7441_v38 = vpop.xlane.xlu1 %7440  ;;  %v7523_v52 = vpop.permute.xlu0 %7522 }
0x1c92   : > { %14730 = vrcp.f32 %v7441_v38  ;;  %v7533_v53 = vsel %vm5075_vm3, %v7523_v52, 0 }
0x1c95   : > { %v7457_v39 = vpop.permute.xlu1 %7456  ;;  %v7521_v54 = vpop.permute.xlu0 %7520 }
0x1c96   : > { %13556 = vmatprep.subr.bf16.mxu1 %v7457_v39 }
0x1c97   : > { %13557 = vmatpush3.bf16.msra.mxu1 %v7457_v39 }
0x1c99   : > { %v7525_v40 = vpop.permute.xlu1 %7524 }
0x1c9a   : > { %13915 = vmatprep.subr.msk.bf16.mxu1 %vm5075_vm3, %v7525_v40  ;;  %v7536_v51 = vsel %vm5075_vm3, %v7525_v40, 0 }
0x1c9b   : > { %v14727_v55 = vpop.eup %14726 }
0x1c9c   : > { %v14729_v59 = vpop.eup %14728  ;;  %v7453_v43 = vmul.f32 %v14727_v55, %v14723_v24 }
0x1c9d   : > { %v7452_v45 = vmul.f32 %v14729_v59, %v14721_v22  ;;  %v7519_v31 = vpop.permute.xlu1 %7518  ;;  %v14586_v59 = vld [vmem:[%s18313_s14 + $0x8] sm:$0xff]  }
0x1c9e   : > { %v7455_v47 = vpack.c.bf16 %v7453_v43, %v7453_v43 }
0x1c9f   : > { %v14731_v42 = vpop.eup %14730 }
0x1ca0   : > { %v7451_v44 = vmul.f32 %v14731_v42, %v14725_v26  ;;  %v14587_v42 = vld [vmem:[%s18313_s14] sm:$0xff]   ;;  %s18314_s14 = sld [smem:[#allocation87_spill]] }
0x1ca2   : > { %v7454_v46 = vpack.c.bf16 %v7452_v45, %v7451_v44 }
0x1ca4   : > { %13558 = vmatprep.mubr.msk.bf16.mxu1 %vm7085_vm6, %v7454_v46 }
0x1ca5   : > { %13559 = vmatmul.mubr.msk.bf16.vlgmr.msra.gmra.mxu1 %vm7085_vm6, %v7455_v47 }
0x1ca6   : > { %13563 = vmatpush3.bf16.xpose.msra.mxu1 %v7536_v51  ;;  %13566 = vmatprep.mubr.msk.bf16.mxu1 %vm5075_vm3, %v7519_v31  ;;  %v12586_v31 = vld [vmem:[#allocation45] ss:$0 sm:$0xff] }
0x1ca7   : > { %13916 = vmatprep.subr.msk.bf16.mxu1 %vm5075_vm3, %v7523_v52  ;;  %v6819_v51 = vadd.f32 %v12586_v31, %v17204_v5 }
0x1ca9   : > { %v6823_v52 = vadd.f32 %v6819_v51, %v17162_v28 }
0x1cae   : > { %13565 = vmatpush3.bf16.xpose.msra.mxu1 %v7533_v53  ;;  %v6827_v53 = vsel %vm4971_vm2, %v6823_v52, 0.0 }
0x1cb5   : > { %13567 = vmatmul.mubr.msk.bf16.vlgmr.msra.gmra.mxu1 %vm5075_vm3, %v7521_v54  ;;  %v6816_v54 = vadd.f32 %v12586_v31, %v17202_v2 }
0x1d65   : > { %v13560_v35 = vpop.f32.mrf.mxu1 }
0x1d67   : > { %v7504_v41 = vpop.f32.mrf.mxu1 }
0x1d69   : > { %v13561_v56 = vpop.f32.mrf.mxu1 }
0x1d6b   : > { %v7507_v57 = vpop.f32.mrf.mxu1 }
0x1d6c   : > { %v14313_v61 = vpack.i.bf16 %v7507_v57, %v7504_v41 }
0x1d75   : > { %v13568_v3 = vpop.f32.mrf.mxu1 }
0x1d76   : > { %v7588_v12 = vmul.f32 0.35355338, %v13568_v3 }
0x1d77   : > { %v7572_v7 = vpop.f32.mrf.mxu1 }
0x1d78   : > { %v7586_v9 = vmul.f32 0.35355338, %v7572_v7  ;;  %v7595_v32 = vsel %vm7092_vm7, %v7588_v12, -inf }
0x1d79   : > { %v13569_v4 = vpop.f32.mrf.mxu1 }
0x1d7a   : > { %v7589_v63 = vsel %vm7085_vm6, %v7586_v9, -inf }
0x1d7b   : > { %7590 = vmax.xlane.f32.xlu1 %v7589_v63  ;;  %v7575_v33 = vpop.f32.mrf.mxu1 }
0x1d7c   : > { %v7587_v11 = vmul.f32 0.35355338, %v7575_v33 }
0x1d7e   : > { %v7592_v13 = vsel %vm7085_vm6, %v7587_v11, -inf }
0x1d7f   : > { %7593 = vmax.xlane.f32.xlu0 %v7592_v13 }
0x1d83   : > { %7596 = vmax.xlane.f32.xlu0 %v7595_v32 }
0x1e04   : > { %v7591_v14 = vpop.xlane.xlu1 %7590 }
0x1e05   : > { %v7598_v16 = vsub.f32 %v7586_v9, %v7591_v14 }
0x1e07   : > { %v7601_v20 = vmul.f32 1.442695, %v7598_v16 }
0x1e08   : > { %v7594_v10 = vpop.xlane.xlu0 %7593 }
0x1e09   : > { %v7599_v15 = vsub.f32 %v7587_v11, %v7594_v10 }
0x1e0b   : > { %v7603_v17 = vmul.f32 1.442695, %v7599_v15 }
0x1e0c   : > { %v7597_v18 = vpop.xlane.xlu0 %7596 }
0x1e0d   : > { %14732 = vpow2.f32 %v7603_v17  ;;  %v7600_v19 = vsub.f32 %v7588_v12, %v7597_v18 }
0x1e0f   : > { %v7605_v21 = vmul.f32 1.442695, %v7600_v19 }
0x1e11   : > { %14734 = vpow2.f32 %v7605_v21  ;;  %v12615_v21 = vld [vmem:[#allocation4] ss:$0 sm:$0xff] }
0x1e12   : > { %14736 = vpow2.f32 %v7601_v20 }
0x1e1a   : > { %v14733_v22 = vpop.eup %14732 }
0x1e1b   : > { %v7610_v23 = vsel %vm7085_vm6, %v14733_v22, 0.0 }
0x1e1c   : > { %7611 = vadd.xlane.f32.xlu0 %v7610_v23 }
0x1e1e   : > { %v14735_v24 = vpop.eup %14734 }
0x1e1f   : > { %v7613_v25 = vsel %vm7092_vm7, %v14735_v24, 0.0  ;;  %v14737_v26 = vpop.eup %14736 }
0x1e20   : > { %7614 = vadd.xlane.f32.xlu1 %v7613_v25  ;;  %v7607_v29 = vsel %vm7085_vm6, %v14737_v26, 0.0 }
0x1e24   : > { %7608 = vadd.xlane.f32.xlu1 %v7607_v29 }
0x1e32   : > { %7626 = vrot.lane.b32.xlu0 %v17222_v48, %s18299_s3 }
0x1e35   : > { %7624 = vrot.lane.b32.xlu1 %v17224_v50, %s18299_s3 }
0x1e36   : > { %7693 = vrot.lane.b32.xlu0 %v17274_v58, %s18303_s2 }
0x1e39   : > { %14309 = vrot.lane.b32.xlu1 %v14308_v1, %s18303_s2 }
0x1e3a   : > { %7705 = vrot.lane.b32.xlu0 %v13560_v35, %s18304_s22  ;;  %v6822_v35 = vadd.f32 %v6816_v54, %v17160_v27 }
0x1e3c   : > { %v6824_v41 = vsel %vm4971_vm2, %v6822_v35, 0.0 }
0x1e3d   : > { %14314 = vrot.lane.b32.xlu1 %v14313_v61, %s18304_s22 }
0x1ea5   : > { %v7612_v30 = vpop.xlane.xlu0 %7611 }
0x1ea9   : > { %v7615_v34 = vpop.xlane.xlu1 %7614  ;;  %v7627_v36 = vpop.permute.xlu0 %7626 }
0x1eaa   : > { %13917 = vmatprep.subr.msk.bf16.mxu0 %vm7128_vm8, %v7627_v36  ;;  %v7636_v48 = vsel %vm7128_vm8, %v7627_v36, 0  ;;  %14738 = vrcp.f32 %v7615_v34 }
0x1eab   : > { %13571 = vmatpush3.bf16.msra.mxu0 %v7636_v48  ;;  %14740 = vrcp.f32 %v7612_v30 }
0x1ead   : > { %v7609_v50 = vpop.xlane.xlu1 %7608  ;;  %v7694_v56 = vpop.permute.xlu0 %7693 }
0x1eae   : > { %14742 = vrcp.f32 %v7609_v50  ;;  %v7724_v28 = vsel %vm5075_vm3, %v17240_v62, %v7694_v56 }
0x1eb1   : > { %v7625_v58 = vpop.permute.xlu1 %7624  ;;  %v7706_v61 = vpop.permute.xlu0 %7705 }
0x1eb2   : > { %13572 = vmatprep.subr.bf16.mxu0 %v7625_v58  ;;  %v7727_v33 = vsel %vm5125_vm4, %v7724_v28, %v7706_v61 }
0x1eb3   : > { %13573 = vmatpush3.bf16.msra.mxu0 %v7625_v58 }
0x1eb4   : > { %13578 = vmatprep.subr.bf16.mxu0 %v14586_v59 }
0x1eb5   : > { %v14310_v57 = vpop.permute.xlu1 %14309 }
0x1eb6   : > { %v14312_v7 = vunpack.i.h.bf16 %v14310_v57  ;;  %v14311_v9 = vunpack.i.l.bf16 %v14310_v57 }
0x1eb7   : > { %v14739_v60 = vpop.eup %14738 }
0x1eb8   : > { %v14741_v0 = vpop.eup %14740  ;;  %v7621_v37 = vmul.f32 %v14739_v60, %v14735_v24  ;;  %v7723_v27 = vsel %vm5075_vm3, %v17244_v8, %v14312_v7  ;;  %v7722_v11 = vsel %vm5075_vm3, %v17242_v6, %v14311_v9  ;;  %v12592_v9 = vld [vmem:[#allocation51] ss:$0 sm:$0xff] }
0x1eb9   : > { %v7620_v39 = vmul.f32 %v14741_v0, %v14733_v22  ;;  %v14315_v3 = vpop.permute.xlu1 %14314 }
0x1eba   : > { %v7623_v55 = vpack.c.bf16 %v7621_v37, %v7621_v37  ;;  %v14317_v4 = vunpack.i.h.bf16 %v14315_v3  ;;  %v14316_v5 = vunpack.i.l.bf16 %v14315_v3  ;;  %v17365_v37 = vld [vmem:[%s18314_s14 + $0x8] sm:$0xff]  }
0x1ebb   : > { %v14743_v1 = vpop.eup %14742  ;;  %13586 = vmatprep.subr.bf16.mxu1 %v17365_v37 }
0x1ebc   : > { %v7619_v38 = vmul.f32 %v14743_v1, %v14737_v26  ;;  %v7725_v32 = vsel %vm5125_vm4, %v7722_v11, %v14316_v5  ;;  %v7726_v14 = vsel %vm5125_vm4, %v7723_v27, %v14317_v4  ;;  %13587 = vmatpush3.bf16.msra.mxu1 %v17365_v37 }
0x1ebe   : > { %v7622_v40 = vpack.c.bf16 %v7620_v39, %v7619_v38  ;;  %v17370_v38 = vld [vmem:[%s18314_s14] sm:$0xff]   ;;  %s18315_s14 = sld [smem:[#allocation85_spill]] }
0x1ebf   : > { %13588 = vmatprep.subr.bf16.mxu1 %v17370_v38 }
0x1ec0   : > { %13574 = vmatprep.mubr.msk.bf16.mxu0 %vm7085_vm6, %v7622_v40  ;;  %13589 = vmatpush3.bf16.msra.mxu1 %v17370_v38 }
0x1ec1   : > { %13575 = vmatmul.mubr.msk.bf16.vlgmr.msra.gmra.mxu0 %vm7085_vm6, %v7623_v55  ;;  %13602 = vmatprep.subr.bf16.mxu1 %v15961_v49 }
0x1ec2   : > { %13579 = vmatpush3.bf16.msra.mxu0 %v14586_v59 }
0x1ec3   : > { %13580 = vmatprep.subr.bf16.mxu0 %v14587_v42 }
0x1ec6   : > { %13581 = vmatpush3.bf16.msra.mxu0 %v14587_v42 }
0x1ec7   : > { %13594 = vmatprep.subr.bf16.mxu0 %v15961_v49 }
0x1f81   : > { %v13576_v43 = vpop.f32.mrf.mxu0 }
0x1f82   : > { %7717 = vrot.lane.b32.xlu0 %v13576_v43, %s18305_s28 }
0x1f83   : > { %v7672_v44 = vpop.f32.mrf.mxu0 }
0x1f85   : > { %v13577_v45 = vpop.f32.mrf.mxu0 }
0x1f87   : > { %v7675_v46 = vpop.f32.mrf.mxu0 }
0x1f88   : > { %v14318_v47 = vpack.i.bf16 %v7675_v46, %v7672_v44 }
0x1f8a   : > { %14319 = vrot.lane.b32.xlu1 %v14318_v47, %s18305_s28 }
0x1fa1   : > { %6828 = vadd.xlane.f32.xlu0 %v6827_v53 }
0x1fae   : > { %6825 = vadd.xlane.f32.xlu1 %v6824_v41 }
0x1ff4   : > { %v7718_v63 = vpop.permute.xlu0 %7717 }
0x1ff5   : > { %v7730_v10 = vsel %vm5591_vm5, %v7727_v33, %v7718_v63  ;;  %v12593_v63 = vld [vmem:[#allocation49] ss:$0 sm:$0xff] }
0x1ff6   : > { %v7736_v17 = vpack.c.bf16 %v7730_v10, %v7730_v10 }
0x1ffc   : > { %v14320_v2 = vpop.permute.xlu1 %14319 }
0x1ffd   : > { %v14322_v12 = vunpack.i.h.bf16 %v14320_v2  ;;  %v14321_v13 = vunpack.i.l.bf16 %v14320_v2 }
0x1fff   : > { %v7729_v62 = vsel %vm5591_vm5, %v7726_v14, %v14322_v12  ;;  %v7728_v15 = vsel %vm5591_vm5, %v7725_v32, %v14321_v13  ;;  %v17389_v13 = vld [vmem:[%s18315_s14] ss:$0 sm:$0xff]  ;;  %s18317_s14 = sld [smem:[#allocation92_spill]] }
0x2000   : > { %v7735_v16 = vpack.c.bf16 %v7729_v62, %v7728_v15 }
0x2002   : > { %13582 = vmatprep.mubr.msk.bf16.mxu0 %vm4971_vm2, %v7735_v16 }
0x2003   : > { %13583 = vmatmul.mubr.msk.bf16.vlgmr.msra.gmra.mxu0 %vm4971_vm2, %v7736_v17 }
0x2004   : > { %13598 = vmatprep.mubr.msk.bf16.mxu0 %vm15962_vm0, %v15961_v49 }
0x202a   : > { %v6829_v6 = vpop.xlane.xlu0 %6828 }
0x202b   : > { %v6831_v19 = vmul.f32 0.03125, %v6829_v6 }
0x202d   : > { %v6833_v25 = vsub.f32 %v6823_v52, %v6831_v19 }
0x202f   : > { %v6835_v60 = vmul.f32 %v6833_v25, %v6833_v25 }
0x2031   : > { %v6839_v1 = vsel %vm4971_vm2, %v6835_v60, 0.0 }
0x2037   : > { %v6826_v8 = vpop.xlane.xlu1 %6825 }
0x2038   : > { %v6830_v20 = vmul.f32 0.03125, %v6826_v8 }
0x203a   : > { %v6832_v26 = vsub.f32 %v6822_v35, %v6830_v20  ;;  %v14947_v20 = vld [vmem:[%s18293_s11 + $0x8] sm:$0xff] }
0x203c   : > { %v6834_v58 = vmul.f32 %v6832_v26, %v6832_v26 }
0x203e   : > { %v6836_v0 = vsel %vm4971_vm2, %v6834_v58, 0.0 }
0x20c3   : > { %v13584_v18 = vpop.f32.mrf.mxu0 }
0x20c4   : > { %v7805_v29 = vadd.f32 %v13584_v18, %v12615_v21  ;;  %v14946_v18 = vld [vmem:[%s18293_s11] sm:$0xff]  ;;  %s18321_s11 = sld [smem:[#allocation91_spill]] }
0x20c5   : > { %v7796_v22 = vpop.f32.mrf.mxu0 }
0x20c6   : > { %v7797_v23 = vadd.f32 %v12615_v21, %v7796_v22  ;;  %v7820_v50 = vsel %vm7819_vm9, %v7805_v29, 0.0 }
0x20c7   : > { %v13585_v24 = vpop.f32.mrf.mxu0 }
0x20c8   : > { %v7813_v30 = vsel %vm4971_vm2, %v7797_v23, 0.0 }
0x20c9   : > { %v7799_v34 = vpop.f32.mrf.mxu0  ;;  %7814 = vadd.xlane.f32.xlu0 %v7813_v30 }
0x20ca   : > { %v7800_v36 = vadd.f32 %v12615_v21, %v7799_v34 }
0x20cc   : > { %v7816_v48 = vsel %vm4971_vm2, %v7800_v36, 0.0 }
0x20cd   : > { %7817 = vadd.xlane.f32.xlu1 %v7816_v48  ;;  %7821 = vadd.xlane.f32.xlu0 %v7820_v50 }
0x20d1   : > { %6837 = vadd.xlane.f32.xlu1 %v6836_v0  ;;  %6840 = vadd.xlane.f32.xlu0 %v6839_v1 }
0x2152   : > { %v7815_v39 = vpop.xlane.xlu0 %7814 }
0x2153   : > { %v7823_v40 = vmul.f32 0.03125, %v7815_v39 }
0x2155   : > { %v17375_v44 = vsub.f32 %v7797_v23, %v7823_v40 }
0x2156   : > { %v7818_v55 = vpop.xlane.xlu1 %7817  ;;  %v7822_v59 = vpop.xlane.xlu0 %7821 }
0x2157   : > { %v7824_v42 = vmul.f32 0.03125, %v7818_v55  ;;  %v7825_v43 = vmul.f32 0.03125, %v7822_v59  ;;  %v7829_v35 = vmul.f32 %v17375_v44, %v17375_v44  ;;  %v14948_v55 = vld [vmem:[%s16364_s8 + $0x10] sm:$0xf] }
0x2159   : > { %v7827_v45 = vsub.f32 %v7800_v36, %v7824_v42  ;;  %v7828_v46 = vsub.f32 %v7805_v29, %v7825_v43  ;;  %v7832_v3 = vsel %vm4971_vm2, %v7829_v35, 0.0  ;;  %v12621_v36 = vld [vmem:[%s18317_s14] ss:$0 sm:$0xff]  ;;  %s18319_s14 = sld [smem:[#allocation84_spill]] }
0x215a   : > { %v6838_v47 = vpop.xlane.xlu1 %6837  ;;  %v6841_v31 = vpop.xlane.xlu0 %6840  ;;  %v14949_v42 = vld [vmem:[%s16364_s8] sm:$0xff] }
0x215b   : > { %v6842_v51 = vmul.f32 0.03125, %v6838_v47  ;;  %v6843_v52 = vmul.f32 0.03125, %v6841_v31  ;;  %v7830_v53 = vmul.f32 %v7827_v45, %v7827_v45  ;;  %v7831_v54 = vmul.f32 %v7828_v46, %v7828_v46 }
0x215d   : > { %v6844_v41 = vadd.f32 1e-05, %v6842_v51  ;;  %v6845_v56 = vadd.f32 1e-05, %v6843_v52  ;;  %v7835_v57 = vsel %vm4971_vm2, %v7830_v53, 0.0  ;;  %v7838_v61 = vsel %vm7819_vm9, %v7831_v54, 0.0 }
0x215e   : > { %7836 = vadd.xlane.f32.xlu0 %v7835_v57  ;;  %7839 = vadd.xlane.f32.xlu1 %v7838_v61 }
0x215f   : > { %14744 = vrsqrt.f32 %v6844_v41 }
0x2160   : > { %14746 = vrsqrt.f32 %v6845_v56 }
0x2162   : > { %7833 = vadd.xlane.f32.xlu1 %v7832_v3 }
0x216c   : > { %v14745_v7 = vpop.eup %14744 }
0x216d   : > { %v14747_v4 = vpop.eup %14746  ;;  %v6848_v5 = vmul.f32 %v14745_v7, %v6832_v26  ;;  %v12620_v26 = vld [vmem:[%s18316_s15] ss:$0 sm:$0xff]  ;;  %s18318_s15 = sld [smem:[#allocation86_spill]] }
0x216e   : > { %v6849_v28 = vmul.f32 %v14747_v4, %v6833_v25 }
0x216f   : > { %v6857_v33 = vmul.f32 %v12592_v9, %v6848_v5 }
0x2170   : > { %v6858_v2 = vmul.f32 %v12592_v9, %v6849_v28 }
0x2171   : > { %v6866_v27 = vadd.f32 %v12593_v63, %v6857_v33 }
0x2172   : > { %v6867_v11 = vadd.f32 %v12593_v63, %v6858_v2 }
0x2173   : > { %7956 = vrot.lane.b32.xlu1 %v17370_v38, %s18309_s6  ;;  %v6868_v19 = vadd.f32 %v14946_v18, %v6866_v27 }
0x2174   : > { %7958 = vrot.lane.b32.xlu0 %v17365_v37, %s18309_s6  ;;  %v17386_v12 = vpack.c.bf16 %v6867_v11, %v6866_v27  ;;  %v6869_v21 = vadd.f32 %v14947_v20, %v6867_v11 }
0x2176   : > { %v17396_v24 = vpack.c.bf16 %v6869_v21, %v6868_v19 }
0x2177   : > { %7962 = vrot.lane.b32.xlu1 %v17389_v13, %s18309_s6 }
0x21e7   : > { %v7840_v32 = vpop.xlane.xlu1 %7839  ;;  %v7837_v14 = vpop.xlane.xlu0 %7836 }
0x21e8   : > { %v7843_v10 = vmul.f32 0.03125, %v7840_v32  ;;  %v7842_v62 = vmul.f32 0.03125, %v7837_v14 }
0x21ea   : > { %v7846_v15 = vadd.f32 1e-05, %v7843_v10  ;;  %v7845_v16 = vadd.f32 1e-05, %v7842_v62 }
0x21eb   : > { %v7834_v17 = vpop.xlane.xlu1 %7833  ;;  %v7959_v6 = vpop.permute.xlu0 %7958 }
0x21ec   : > { %14748 = vrsqrt.f32 %v7846_v15  ;;  %v7841_v8 = vmul.f32 0.03125, %v7834_v17  ;;  %13595 = vmatpush3.bf16.msra.mxu0 %v7959_v6 }
0x21ed   : > { %14750 = vrsqrt.f32 %v7845_v16  ;;  %13596 = vmatprep.subr.bf16.mxu0 %v15961_v49 }
0x21ee   : > { %v7844_v22 = vadd.f32 1e-05, %v7841_v8 }
0x21ef   : > { %v7957_v23 = vpop.permute.xlu1 %7956 }
0x21f0   : > { %14752 = vrsqrt.f32 %v7844_v22  ;;  %13597 = vmatpush3.bf16.msra.mxu0 %v7957_v23 }
0x21f3   : > { %13599 = vmatmul.mubr.msk.bf16.vlgmr.msra.gmra.mxu0 %vm4971_vm2, %v17396_v24  ;;  %v7963_v51 = vpop.permute.xlu1 %7962 }
0x21f9   : > { %v14749_v25 = vpop.eup %14748 }
0x21fa   : > { %v14751_v29 = vpop.eup %14750  ;;  %v7852_v30 = vmul.f32 %v14749_v25, %v7828_v46 }
0x21fb   : > { %v7851_v34 = vmul.f32 %v14751_v29, %v7827_v45  ;;  %v14950_v45 = vld [vmem:[%s16364_s8 + $0x8] sm:$0xff] }
0x21fc   : > { %v7862_v48 = vmul.f32 %v12620_v26, %v7852_v30 }
0x21fd   : > { %v14753_v50 = vpop.eup %14752  ;;  %v7861_v58 = vmul.f32 %v12620_v26, %v7851_v34 }
0x21fe   : > { %v7850_v60 = vmul.f32 %v14753_v50, %v17375_v44  ;;  %v17403_v0 = vadd.f32 %v12621_v36, %v7862_v48 }
0x21ff   : > { %v17405_v39 = vadd.f32 %v12621_v36, %v7861_v58 }
0x2200   : > { %v7860_v1 = vmul.f32 %v12620_v26, %v7850_v60  ;;  %v7875_v59 = vadd.f32 %v14948_v55, %v17403_v0 }
0x2201   : > { %v7874_v46 = vadd.f32 %v14950_v45, %v17405_v39 }
0x2202   : > { %v17407_v40 = vadd.f32 %v12621_v36, %v7860_v1  ;;  %v7882_v31 = vpack.c.bf16 %v7875_v59, %v7875_v59 }
0x2204   : > { %v7873_v43 = vadd.f32 %v14949_v42, %v17407_v40 }
0x2206   : > { %v7881_v47 = vpack.c.bf16 %v7874_v46, %v7873_v43 }
0x2208   : > { %13590 = vmatprep.mubr.msk.bf16.mxu1 %vm4971_vm2, %v7881_v47 }
0x2209   : > { %13591 = vmatmul.mubr.msk.bf16.vlgmr.msra.gmra.mxu1 %vm4971_vm2, %v7882_v31 }
0x220a   : > { %13606 = vmatprep.mubr.msk.bf16.mxu1 %vm15962_vm0, %v15961_v49 }
0x22b3   : > { %v8002_v44 = vpop.f32.mrf.mxu0 }
0x22b4   : > { %v8003_v54 = vadd.f32 %v8002_v44, %v7963_v51 }
0x22b5   : > { %v13600_v52 = vpop.f32.mrf.mxu0 }
0x22b7   : > { %v8005_v53 = vpop.f32.mrf.mxu0 }
0x22b8   : > { %v8006_v35 = vadd.f32 %v8005_v53, %v7963_v51 }
0x22b9   : > { %v13601_v41 = vpop.f32.mrf.mxu0 }
0x22ba   : > { %v8065_v56 = vpack.c.bf16 %v8006_v35, %v8003_v54 }
0x22bc   : > { %8224 = vrot.lane.b32.xlu0 %v8065_v56, %s18311_s12  ;;  %13918 = vmatprep.subr.msk.bf16.mxu0 %vm5075_vm3, %v8065_v56  ;;  %v8074_v57 = vsel %vm5075_vm3, %v8065_v56, 0 }
0x22bd   : > { %13611 = vmatpush3.bf16.xpose.msra.mxu0 %v8074_v57 }
0x22c9   : > { %v13592_v61 = vpop.f32.mrf.mxu1 }
0x22ca   : > { %v7950_v3 = vadd.f32 %v13592_v61, %v17389_v13 }
0x22cb   : > { %v7941_v7 = vpop.f32.mrf.mxu1 }
0x22cc   : > { %v8064_v9 = vpack.c.bf16 %v7950_v3, %v7950_v3  ;;  %v7942_v28 = vadd.f32 %v17389_v13, %v7941_v7 }
0x22cd   : > { %v13593_v4 = vpop.f32.mrf.mxu1 }
0x22ce   : > { %8221 = vrot.lane.b32.xlu0 %v8064_v9, %s18311_s12 }
0x22cf   : > { %v7944_v5 = vpop.f32.mrf.mxu1 }
0x22d0   : > { %v7945_v63 = vadd.f32 %v17389_v13, %v7944_v5 }
0x22d2   : > { %v8063_v33 = vpack.c.bf16 %v7945_v63, %v7942_v28 }
0x22d4   : > { %8219 = vrot.lane.b32.xlu1 %v8063_v33, %s18311_s12  ;;  %13612 = vmatprep.mubr.msk.bf16.mxu0 %vm5075_vm3, %v8063_v33 }
0x22d5   : > { %8379 = vrot.lane.b32.xlu0 %v8063_v33, %s18312_s13  ;;  %13613 = vmatmul.mubr.msk.bf16.vlgmr.msra.gmra.mxu0 %vm5075_vm3, %v8064_v9 }
0x22d8   : > { %8383 = vrot.lane.b32.xlu1 %v8065_v56, %s18312_s13 }
0x22d9   : > { %8541 = vrot.lane.b32.xlu0 %v8065_v56, %s18299_s3 }
0x22dc   : > { %8381 = vrot.lane.b32.xlu1 %v8064_v9, %s18312_s13 }
0x22dd   : > { %8539 = vrot.lane.b32.xlu0 %v8064_v9, %s18299_s3 }
0x22e0   : > { %8537 = vrot.lane.b32.xlu1 %v8063_v33, %s18299_s3 }
0x22e1   : > { %8010 = vrot.lane.b32.xlu0 %v17370_v38, %s18301_s5 }
0x22e4   : > { %8012 = vrot.lane.b32.xlu1 %v17365_v37, %s18301_s5 }
0x232e   : > { %v8225_v2 = vpop.permute.xlu0 %8224 }
0x232f   : > { %13919 = vmatprep.subr.msk.bf16.mxu0 %vm5075_vm3, %v8225_v2  ;;  %v8233_v27 = vsel %vm5075_vm3, %v8225_v2, 0 }
0x2330   : > { %13623 = vmatpush3.bf16.xpose.msra.mxu0 %v8233_v27 }
0x2340   : > { %v8222_v11 = vpop.permute.xlu0 %8221 }
0x2346   : > { %v8220_v32 = vpop.permute.xlu1 %8219 }
0x2347   : > { %v8380_v14 = vpop.permute.xlu0 %8379  ;;  %13624 = vmatprep.mubr.msk.bf16.mxu0 %vm5075_vm3, %v8220_v32 }
0x2348   : > { %13625 = vmatmul.mubr.msk.bf16.vlgmr.msra.gmra.mxu0 %vm5075_vm3, %v8222_v11 }
0x2349   : > { %13636 = vmatprep.mubr.msk.bf16.mxu0 %vm5075_vm3, %v8380_v14 }
0x234a   : > { %v8384_v10 = vpop.permute.xlu1 %8383 }
0x234b   : > { %13920 = vmatprep.subr.msk.bf16.mxu0 %vm5075_vm3, %v8384_v10  ;;  %v8392_v37 = vsel %vm5075_vm3, %v8384_v10, 0  ;;  %v8542_v38 = vpop.permute.xlu0 %8541 }
0x234c   : > { %13635 = vmatpush3.bf16.xpose.msra.mxu0 %v8392_v37  ;;  %v8550_v16 = vsel %vm5075_vm3, %v8542_v38, 0 }
0x234d   : > { %13921 = vmatprep.subr.msk.bf16.mxu0 %vm5075_vm3, %v8542_v38 }
0x234e   : > { %v8382_v62 = vpop.permute.xlu1 %8381 }
0x234f   : > { %v8540_v17 = vpop.permute.xlu0 %8539 }
0x2352   : > { %v8538_v15 = vpop.permute.xlu1 %8537 }
0x2353   : > { %13637 = vmatmul.mubr.msk.bf16.vlgmr.msra.gmra.mxu0 %vm5075_vm3, %v8382_v62  ;;  %v8011_v8 = vpop.permute.xlu0 %8010 }
0x2354   : > { %13647 = vmatpush3.bf16.xpose.msra.mxu0 %v8550_v16  ;;  %13648 = vmatprep.mubr.msk.bf16.mxu0 %vm5075_vm3, %v8538_v15 }
0x2356   : > { %v8013_v6 = vpop.permute.xlu1 %8012 }
0x2357   : > { %13603 = vmatpush3.bf16.msra.mxu1 %v8013_v6 }
0x2358   : > { %13604 = vmatprep.subr.bf16.mxu1 %v15961_v49 }
0x235b   : > { %13605 = vmatpush3.bf16.msra.mxu1 %v8011_v8  ;;  %13649 = vmatmul.mubr.msk.bf16.vlgmr.msra.gmra.mxu0 %vm5075_vm3, %v8540_v17 }
0x235e   : > { %13607 = vmatmul.mubr.msk.bf16.vlgmr.msra.gmra.mxu1 %vm4971_vm2, %v17386_v12 }
0x2395   : > { %v13614_v18 = vpop.f32.mrf.mxu0 }
0x2396   : > { %v17460_v26 = vmul.f32 0.35355338, %v13614_v18 }
0x2397   : > { %v8110_v19 = vpop.f32.mrf.mxu0 }
0x2398   : > { %v17454_v20 = vmul.f32 0.35355338, %v8110_v19  ;;  %v8134_v30 = vsel %vm8133_vm10, %v17460_v26, -inf }
0x2399   : > { %v13615_v21 = vpop.f32.mrf.mxu0 }
0x239a   : > { %v8127_v22 = vsel %vm5125_vm4, %v17454_v20, -inf }
0x239b   : > { %8128 = vmax.xlane.f32.xlu1 %v8127_v22  ;;  %v8113_v23 = vpop.f32.mrf.mxu0 }
0x239c   : > { %v17458_v25 = vmul.f32 0.35355338, %v8113_v23 }
0x239e   : > { %v8130_v29 = vsel %vm5125_vm4, %v17458_v25, -inf }
0x239f   : > { %8131 = vmax.xlane.f32.xlu0 %v8130_v29 }
0x23a3   : > { %8135 = vmax.xlane.f32.xlu0 %v8134_v30 }
0x2408   : > { %v13626_v34 = vpop.f32.mrf.mxu0 }
0x2409   : > { %v17468_v58 = vmul.f32 0.35355338, %v13626_v34 }
0x240a   : > { %v8269_v36 = vpop.f32.mrf.mxu0 }
0x240b   : > { %v17466_v48 = vmul.f32 0.35355338, %v8269_v36  ;;  %v8292_v59 = vsel %vm8133_vm10, %v17468_v58, -inf }
0x240c   : > { %v13627_v50 = vpop.f32.mrf.mxu0 }
0x240d   : > { %v8286_v60 = vsel %vm5125_vm4, %v17466_v48, -inf }
0x240e   : > { %8287 = vmax.xlane.f32.xlu1 %v8286_v60  ;;  %v8272_v1 = vpop.f32.mrf.mxu0 }
0x240f   : > { %v17472_v55 = vmul.f32 0.35355338, %v8272_v1 }
0x2411   : > { %v8289_v42 = vsel %vm5125_vm4, %v17472_v55, -inf }
0x2412   : > { %8293 = vmax.xlane.f32.xlu1 %v8292_v59  ;;  %8290 = vmax.xlane.f32.xlu0 %v8289_v42 }
0x2413   : > { %v13638_v43 = vpop.f32.mrf.mxu0 }
0x2414   : > { %v17478_v31 = vmul.f32 0.35355338, %v13638_v43 }
0x2415   : > { %v8428_v45 = vpop.f32.mrf.mxu0 }
0x2416   : > { %v8442_v46 = vmul.f32 0.35355338, %v8428_v45  ;;  %v8451_v35 = vsel %vm8133_vm10, %v17478_v31, -inf }
0x2417   : > { %v13639_v47 = vpop.f32.mrf.mxu0 }
0x2418   : > { %v8445_v44 = vsel %vm5125_vm4, %v8442_v46, -inf }
0x2419   : > { %v8431_v51 = vpop.f32.mrf.mxu0  ;;  %8446 = vmax.xlane.f32.xlu0 %v8445_v44 }
0x241a   : > { %v17481_v52 = vmul.f32 0.35355338, %v8431_v51 }
0x241b   : > { %v13650_v53 = vpop.f32.mrf.mxu0 }
0x241c   : > { %v8448_v54 = vsel %vm5125_vm4, %v17481_v52, -inf  ;;  %v17489_v3 = vmul.f32 0.35355338, %v13650_v53 }
0x241d   : > { %v8586_v41 = vpop.f32.mrf.mxu0  ;;  %8449 = vmax.xlane.f32.xlu1 %v8448_v54  ;;  %8452 = vmax.xlane.f32.xlu0 %v8451_v35 }
0x241e   : > { %v17487_v56 = vmul.f32 0.35355338, %v8586_v41  ;;  %v8056_v57 = vpop.f32.mrf.mxu1  ;;  %v8609_v33 = vsel %vm8133_vm10, %v17489_v3, -inf }
0x241f   : > { %v13651_v61 = vpop.f32.mrf.mxu0 }
0x2420   : > { %v13608_v7 = vpop.f32.mrf.mxu1  ;;  %v8603_v9 = vsel %vm5125_vm4, %v17487_v56, -inf }
0x2421   : > { %v8589_v4 = vpop.f32.mrf.mxu0  ;;  %8604 = vmax.xlane.f32.xlu1 %v8603_v9 }
0x2422   : > { %v17493_v5 = vmul.f32 0.35355338, %v8589_v4  ;;  %v8059_v28 = vpop.f32.mrf.mxu1 }
0x2424   : > { %v13609_v63 = vpop.f32.mrf.mxu1  ;;  %v8606_v2 = vsel %vm5125_vm4, %v17493_v5, -inf  ;;  %v8129_v18 = vpop.xlane.xlu1 %8128 }
0x2425   : > { %8610 = vmax.xlane.f32.xlu1 %v8609_v33  ;;  %8607 = vmax.xlane.f32.xlu0 %v8606_v2  ;;  %v8137_v22 = vsub.f32 %v17454_v20, %v8129_v18 }
0x2427   : > { %v8140_v29 = vmul.f32 1.442695, %v8137_v22 }
0x2428   : > { %v8132_v27 = vpop.xlane.xlu0 %8131 }
0x2429   : > { %v8138_v30 = vsub.f32 %v17458_v25, %v8132_v27 }
0x242b   : > { %v8142_v36 = vmul.f32 1.442695, %v8138_v30 }
0x242c   : > { %v8136_v11 = vpop.xlane.xlu0 %8135 }
0x242d   : > { %v8139_v19 = vsub.f32 %v17460_v26, %v8136_v11 }
0x242f   : > { %v8144_v23 = vmul.f32 1.442695, %v8139_v19 }
0x243b   : > { %8016 = vrot.lane.b32.xlu0 %v17389_v13, %s18301_s5 }
0x2497   : > { %v8288_v21 = vpop.xlane.xlu1 %8287 }
0x2498   : > { %v8295_v60 = vsub.f32 %v17466_v48, %v8288_v21 }
0x249a   : > { %v8298_v59 = vmul.f32 1.442695, %v8295_v60 }
0x249b   : > { %v8291_v32 = vpop.xlane.xlu0 %8290  ;;  %v8294_v34 = vpop.xlane.xlu1 %8293 }
0x249c   : > { %v8297_v50 = vsub.f32 %v17468_v58, %v8294_v34  ;;  %v8296_v20 = vsub.f32 %v17472_v55, %v8291_v32 }
0x249e   : > { %v8302_v26 = vmul.f32 1.442695, %v8297_v50  ;;  %v8300_v43 = vmul.f32 1.442695, %v8296_v20 }
0x24a2   : > { %v8447_v14 = vpop.xlane.xlu0 %8446 }
0x24a3   : > { %v8454_v10 = vsub.f32 %v8442_v46, %v8447_v14 }
0x24a5   : > { %v8457_v37 = vmul.f32 1.442695, %v8454_v10 }
0x24a6   : > { %v8453_v38 = vpop.xlane.xlu0 %8452  ;;  %v8450_v1 = vpop.xlane.xlu1 %8449 }
0x24a7   : > { %14754 = vpow2.f32 %v8457_v37  ;;  %v8456_v45 = vsub.f32 %v17478_v31, %v8453_v38  ;;  %v8455_v48 = vsub.f32 %v17481_v52, %v8450_v1 }
0x24a8   : > { %14756 = vpow2.f32 %v8144_v23 }
0x24a9   : > { %14758 = vpow2.f32 %v8140_v29  ;;  %v8461_v47 = vmul.f32 1.442695, %v8456_v45  ;;  %v8459_v53 = vmul.f32 1.442695, %v8455_v48 }
0x24aa   : > { %14760 = vpow2.f32 %v8142_v36  ;;  %v8605_v25 = vpop.xlane.xlu1 %8604 }
0x24ab   : > { %14762 = vpow2.f32 %v8302_v26  ;;  %v8612_v41 = vsub.f32 %v17487_v56, %v8605_v25 }
0x24ac   : > { %14764 = vpow2.f32 %v8298_v59 }
0x24ad   : > { %14766 = vpow2.f32 %v8300_v43  ;;  %v8615_v7 = vmul.f32 1.442695, %v8612_v41 }
0x24ae   : > { %v17501_v62 = vpop.xlane.xlu0 %8607  ;;  %v8611_v51 = vpop.xlane.xlu1 %8610  ;;  %14768 = vpow2.f32 %v8461_v47 }
0x24af   : > { %v8614_v31 = vsub.f32 %v17489_v3, %v8611_v51  ;;  %14770 = vpow2.f32 %v8459_v53  ;;  %v8613_v3 = vsub.f32 %v17493_v5, %v17501_v62 }
0x24b1   : > { %v8619_v52 = vmul.f32 1.442695, %v8614_v31 }
0x24b2   : > { %v8017_v15 = vpop.permute.xlu0 %8016 }
0x24b3   : > { %v8057_v16 = vadd.f32 %v8056_v57, %v8017_v15  ;;  %v8060_v17 = vadd.f32 %v8059_v28, %v8017_v15  ;;  %14772 = vpow2.f32 %v8619_v52  ;;  %v8617_v28 = vmul.f32 1.442695, %v8613_v3 }
0x24b4   : > { %v17503_v6 = vpop.eup %14754  ;;  %14774 = vpow2.f32 %v8615_v7 }
0x24b5   : > { %v17505_v8 = vpack.c.bf16 %v8060_v17, %v8057_v16  ;;  %v8463_v13 = vsel %vm5125_vm4, %v17503_v6, 0.0  ;;  %v17521_v42 = vpop.eup %14756  ;;  %14776 = vpow2.f32 %v8617_v28 }
0x24b6   : > { %8464 = vadd.xlane.f32.xlu0 %v8463_v13  ;;  %v8152_v46 = vsel %vm8133_vm10, %v17521_v42, 0.0  ;;  %v17526_v58 = vpop.eup %14758 }
0x24b7   : > { %8322 = vrot.lane.b32.xlu1 %v17505_v8, %s18311_s12  ;;  %13616 = vmatprep.subr.bf16.mxu1 %v17505_v8  ;;  %v8146_v55 = vsel %vm5125_vm4, %v17526_v58, 0.0  ;;  %v14761_v44 = vpop.eup %14760 }
0x24b8   : > { %13617 = vmatpush3.bf16.msra.mxu1 %v17505_v8  ;;  %v8149_v54 = vsel %vm5125_vm4, %v14761_v44, 0.0  ;;  %v17533_v35 = vpop.eup %14762 }
0x24b9   : > { %v8310_v57 = vsel %vm8133_vm10, %v17533_v35, 0.0  ;;  %v17538_v61 = vpop.eup %14764 }
0x24ba   : > { %v8304_v9 = vsel %vm5125_vm4, %v17538_v61, 0.0  ;;  %v14767_v4 = vpop.eup %14766 }
0x24bb   : > { %v8307_v56 = vsel %vm5125_vm4, %v14767_v4, 0.0  ;;  %v17545_v63 = vpop.eup %14768 }
0x24bc   : > { %v8469_v33 = vsel %vm8133_vm10, %v17545_v63, 0.0  ;;  %v17549_v2 = vpop.eup %14770 }
0x24bd   : > { %v8466_v5 = vsel %vm5125_vm4, %v17549_v2, 0.0 }
0x24c0   : > { %v17553_v27 = vpop.eup %14772 }
0x24c1   : > { %v8627_v11 = vsel %vm8133_vm10, %v17553_v27, 0.0  ;;  %v17557_v32 = vpop.eup %14774 }
0x24c2   : > { %v8621_v14 = vsel %vm5125_vm4, %v17557_v32, 0.0  ;;  %v17561_v10 = vpop.eup %14776 }
0x24c3   : > { %v8624_v37 = vsel %vm5125_vm4, %v17561_v10, 0.0 }
0x24cc   : > { %8480 = vrot.lane.b32.xlu0 %v17505_v8, %s18312_s13 }
0x24db   : > { %8153 = vadd.xlane.f32.xlu1 %v8152_v46 }
0x24df   : > { %8147 = vadd.xlane.f32.xlu1 %v8146_v55 }
0x24e3   : > { %8150 = vadd.xlane.f32.xlu1 %v8149_v54 }
0x24e7   : > { %8311 = vadd.xlane.f32.xlu1 %v8310_v57 }
0x24eb   : > { %8305 = vadd.xlane.f32.xlu1 %v8304_v9 }
0x24ef   : > { %8308 = vadd.xlane.f32.xlu1 %v8307_v56 }
0x24f3   : > { %8470 = vadd.xlane.f32.xlu1 %v8469_v33 }
0x24f7   : > { %8467 = vadd.xlane.f32.xlu1 %v8466_v5 }
0x24fb   : > { %8628 = vadd.xlane.f32.xlu1 %v8627_v11 }
0x24ff   : > { %8622 = vadd.xlane.f32.xlu1 %v8621_v14 }
0x2503   : > { %8625 = vadd.xlane.f32.xlu1 %v8624_v37  ;;  %v14590_v37 = vld [vmem:[%s18318_s15 + $0x8] sm:$0xff]  }
0x2504   : > { %13658 = vmatprep.subr.bf16.mxu0 %v14590_v37 }
0x2505   : > { %13659 = vmatpush3.bf16.msra.mxu0 %v14590_v37 }
0x2514   : > { %8638 = vrot.lane.b32.xlu1 %v17505_v8, %s18299_s3 }
0x2529   : > { %v8323_v38 = vpop.permute.xlu1 %8322 }
0x252a   : > { %13628 = vmatprep.subr.bf16.mxu1 %v8323_v38 }
0x253f   : > { %v8465_v8 = vpop.xlane.xlu0 %8464 }
0x2543   : > { %v8481_v26 = vpop.permute.xlu0 %8480 }
0x2564   : > { %v8154_v62 = vpop.xlane.xlu1 %8153 }
0x2565   : > { %14778 = vrcp.f32 %v8154_v62 }
0x2568   : > { %v8148_v15 = vpop.xlane.xlu1 %8147 }
0x2569   : > { %14780 = vrcp.f32 %v8148_v15 }
0x256c   : > { %v8151_v16 = vpop.xlane.xlu1 %8150 }
0x256d   : > { %14782 = vrcp.f32 %v8151_v16 }
0x2570   : > { %v8312_v17 = vpop.xlane.xlu1 %8311 }
0x2571   : > { %14784 = vrcp.f32 %v8312_v17  ;;  %v14591_v17 = vld [vmem:[%s18318_s15] sm:$0xff]   ;;  %s18322_s15 = sld [smem:[#allocation95_spill]] }
0x2572   : > { %v14779_v18 = vpop.eup %14778  ;;  %13660 = vmatprep.subr.bf16.mxu0 %v14591_v17 }
0x2573   : > { %v8160_v23 = vmul.f32 %v14779_v18, %v17521_v42  ;;  %13661 = vmatpush3.bf16.msra.mxu0 %v14591_v17 }
0x2574   : > { %v8306_v13 = vpop.xlane.xlu1 %8305 }
0x2575   : > { %14786 = vrcp.f32 %v8306_v13  ;;  %v8162_v50 = vpack.c.bf16 %v8160_v23, %v8160_v23 }
0x2576   : > { %v14781_v19 = vpop.eup %14780 }
0x2577   : > { %v8158_v29 = vmul.f32 %v14781_v19, %v17526_v58 }
0x2578   : > { %v8309_v21 = vpop.xlane.xlu1 %8308 }
0x2579   : > { %14788 = vrcp.f32 %v8309_v21 }
0x257a   : > { %v14783_v22 = vpop.eup %14782 }
0x257b   : > { %v8159_v30 = vmul.f32 %v14783_v22, %v14761_v44 }
0x257c   : > { %v8471_v34 = vpop.xlane.xlu1 %8470 }
0x257d   : > { %v8161_v36 = vpack.c.bf16 %v8159_v30, %v8158_v29  ;;  %14790 = vrcp.f32 %v8471_v34 }
0x257e   : > { %14792 = vrcp.f32 %v8465_v8  ;;  %v14785_v1 = vpop.eup %14784 }
0x257f   : > { %13618 = vmatprep.mubr.msk.bf16.mxu1 %vm5125_vm4, %v8161_v36  ;;  %v8318_v25 = vmul.f32 %v14785_v1, %v17533_v35 }
0x2580   : > { %v8468_v60 = vpop.xlane.xlu1 %8467  ;;  %13619 = vmatmul.mubr.msk.bf16.vlgmr.msra.gmra.mxu1 %vm5125_vm4, %v8162_v50 }
0x2581   : > { %14794 = vrcp.f32 %v8468_v60  ;;  %13629 = vmatpush3.bf16.msra.mxu1 %v8323_v38  ;;  %v8320_v48 = vpack.c.bf16 %v8318_v25, %v8318_v25 }
0x2582   : > { %13640 = vmatprep.subr.bf16.mxu1 %v8481_v26  ;;  %v14787_v59 = vpop.eup %14786 }
0x2583   : > { %v8316_v43 = vmul.f32 %v14787_v59, %v17538_v61 }
0x2584   : > { %v8629_v20 = vpop.xlane.xlu1 %8628 }
0x2585   : > { %14796 = vrcp.f32 %v8629_v20 }
0x2586   : > { %v14789_v42 = vpop.eup %14788 }
0x2587   : > { %v8317_v45 = vmul.f32 %v14789_v42, %v14767_v4 }
0x2588   : > { %v8623_v46 = vpop.xlane.xlu1 %8622 }
0x2589   : > { %v8319_v58 = vpack.c.bf16 %v8317_v45, %v8316_v43  ;;  %14798 = vrcp.f32 %v8623_v46 }
0x258a   : > { %v14791_v47 = vpop.eup %14790 }
0x258b   : > { %13630 = vmatprep.mubr.msk.bf16.mxu1 %vm5125_vm4, %v8319_v58  ;;  %v14793_v55 = vpop.eup %14792  ;;  %v8477_v53 = vmul.f32 %v14791_v47, %v17545_v63 }
0x258c   : > { %v8626_v44 = vpop.xlane.xlu1 %8625  ;;  %13631 = vmatmul.mubr.msk.bf16.vlgmr.msra.gmra.mxu1 %vm5125_vm4, %v8320_v48  ;;  %v8475_v31 = vmul.f32 %v14793_v55, %v17503_v6 }
0x258d   : > { %14800 = vrcp.f32 %v8626_v44  ;;  %13641 = vmatpush3.bf16.msra.mxu1 %v8481_v26  ;;  %v8479_v52 = vpack.c.bf16 %v8477_v53, %v8477_v53 }
0x258e   : > { %v14795_v51 = vpop.eup %14794 }
0x258f   : > { %v8476_v54 = vmul.f32 %v14795_v51, %v17549_v2 }
0x2590   : > { %v8639_v35 = vpop.permute.xlu1 %8638 }
0x2591   : > { %13652 = vmatprep.subr.bf16.mxu1 %v8639_v35  ;;  %v8478_v41 = vpack.c.bf16 %v8476_v54, %v8475_v31  ;;  %v12645_v31 = vld [vmem:[%s18319_s14] ss:$0 sm:$0xff]  ;;  %s18320_s14 = sld [smem:[#allocation89_spill]] }
0x2592   : > { %v14797_v57 = vpop.eup %14796 }
0x2593   : > { %13642 = vmatprep.mubr.msk.bf16.mxu1 %vm5125_vm4, %v8478_v41  ;;  %v8635_v3 = vmul.f32 %v14797_v57, %v17553_v27 }
0x2594   : > { %13643 = vmatmul.mubr.msk.bf16.vlgmr.msra.gmra.mxu1 %vm5125_vm4, %v8479_v52 }
0x2595   : > { %13653 = vmatpush3.bf16.msra.mxu1 %v8639_v35  ;;  %v8637_v28 = vpack.c.bf16 %v8635_v3, %v8635_v3 }
0x2596   : > { %v14799_v61 = vpop.eup %14798 }
0x2597   : > { %v8633_v9 = vmul.f32 %v14799_v61, %v17557_v32 }
0x259a   : > { %v14801_v7 = vpop.eup %14800 }
0x259b   : > { %v8634_v6 = vmul.f32 %v14801_v7, %v17561_v10 }
0x259d   : > { %v8636_v4 = vpack.c.bf16 %v8634_v6, %v8633_v9 }
0x259f   : > { %13654 = vmatprep.mubr.msk.bf16.mxu1 %vm5125_vm4, %v8636_v4 }
0x25a0   : > { %13655 = vmatmul.mubr.msk.bf16.vlgmr.msra.gmra.mxu1 %vm5125_vm4, %v8637_v28 }
0x2640   : > { %v13620_v56 = vpop.f32.mrf.mxu1 }
0x2642   : > { %v8203_v63 = vpop.f32.mrf.mxu1 }
0x2644   : > { %v13621_v33 = vpop.f32.mrf.mxu1 }
0x2646   : > { %v8206_v2 = vpop.f32.mrf.mxu1 }
0x264c   : > { %v13632_v5 = vpop.f32.mrf.mxu1 }
0x264d   : > { %8702 = vrot.lane.b32.xlu1 %v13632_v5, %s18303_s2 }
0x264e   : > { %v8365_v27 = vpop.f32.mrf.mxu1 }
0x2650   : > { %v13633_v11 = vpop.f32.mrf.mxu1 }
0x2652   : > { %v8368_v32 = vpop.f32.mrf.mxu1 }
0x2653   : > { %v14323_v14 = vpack.i.bf16 %v8368_v32, %v8365_v27 }
0x2654   : > { %v13644_v10 = vpop.f32.mrf.mxu1 }
0x2655   : > { %14324 = vrot.lane.b32.xlu1 %v14323_v14, %s18303_s2  ;;  %8714 = vrot.lane.b32.xlu0 %v13644_v10, %s18304_s22 }
0x2656   : > { %v8523_v38 = vpop.f32.mrf.mxu1 }
0x2658   : > { %v13645_v62 = vpop.f32.mrf.mxu1 }
0x2659   : > { %v14592_v62 = vld [vmem:[%s18320_s14 + $0x8] sm:$0xff]  }
0x265a   : > { %v8526_v15 = vpop.f32.mrf.mxu1  ;;  %13666 = vmatprep.subr.bf16.mxu1 %v14592_v62 }
0x265b   : > { %v14328_v16 = vpack.i.bf16 %v8526_v15, %v8523_v38  ;;  %v14593_v15 = vld [vmem:[%s18320_s14] sm:$0xff]   ;;  %13667 = vmatpush3.bf16.msra.mxu1 %v14592_v62  ;;  %s18324_s14 = sld [smem:[#allocation88_spill]] }
0x265c   : > { %13668 = vmatprep.subr.bf16.mxu1 %v14593_v15 }
0x265d   : > { %14329 = vrot.lane.b32.xlu1 %v14328_v16, %s18304_s22  ;;  %v14594_v16 = vld [vmem:[%s18321_s11 + $0x18] sm:$0xff]  }
0x265e   : > { %13674 = vmatprep.subr.bf16.mxu0 %v14594_v16 }
0x265f   : > { %13669 = vmatpush3.bf16.msra.mxu1 %v14593_v15 }
0x2660   : > { %v13656_v13 = vpop.f32.mrf.mxu1 }
0x2661   : > { %8726 = vrot.lane.b32.xlu0 %v13656_v13, %s18305_s28 }
0x2662   : > { %v8681_v18 = vpop.f32.mrf.mxu1 }
0x2664   : > { %v13657_v19 = vpop.f32.mrf.mxu1 }
0x2666   : > { %v8684_v21 = vpop.f32.mrf.mxu1 }
0x2667   : > { %v14333_v22 = vpack.i.bf16 %v8684_v21, %v8681_v18 }
0x2669   : > { %14334 = vrot.lane.b32.xlu1 %v14333_v22, %s18305_s28 }
0x26bf   : > { %v8703_v23 = vpop.permute.xlu1 %8702 }
0x26c0   : > { %v8733_v26 = vsel %vm5075_vm3, %v13620_v56, %v8703_v23 }
0x26c7   : > { %v14325_v8 = vpop.permute.xlu1 %14324  ;;  %v8715_v29 = vpop.permute.xlu0 %8714 }
0x26c8   : > { %v14327_v34 = vunpack.i.h.bf16 %v14325_v8  ;;  %v14326_v36 = vunpack.i.l.bf16 %v14325_v8  ;;  %v8736_v59 = vsel %vm5125_vm4, %v8733_v26, %v8715_v29 }
0x26ca   : > { %v8732_v42 = vsel %vm5075_vm3, %v8206_v2, %v14327_v34  ;;  %v8731_v25 = vsel %vm5075_vm3, %v8203_v63, %v14326_v36  ;;  %v12650_v36 = vld [vmem:[%s18322_s15] ss:$0 sm:$0xff]  ;;  %s18326_s15 = sld [smem:[#allocation116_spill]] }
0x26cf   : > { %v14330_v30 = vpop.permute.xlu1 %14329 }
0x26d0   : > { %v14332_v50 = vunpack.i.h.bf16 %v14330_v30  ;;  %v14331_v60 = vunpack.i.l.bf16 %v14330_v30 }
0x26d2   : > { %v8735_v46 = vsel %vm5125_vm4, %v8732_v42, %v14332_v50  ;;  %v8734_v58 = vsel %vm5125_vm4, %v8731_v25, %v14331_v60 }
0x26d3   : > { %v8727_v1 = vpop.permute.xlu0 %8726 }
0x26d4   : > { %v8739_v48 = vsel %vm5591_vm5, %v8736_v59, %v8727_v1  ;;  %v12651_v1 = vld [vmem:[%s18323_s16] ss:$0 sm:$0xff]  ;;  %s18325_s16 = sld [smem:[#allocation90_spill]] }
0x26d5   : > { %v8745_v51 = vpack.c.bf16 %v8739_v48, %v8739_v48 }
0x26db   : > { %v14335_v20 = vpop.permute.xlu1 %14334 }
0x26dc   : > { %v14337_v43 = vunpack.i.h.bf16 %v14335_v20  ;;  %v14336_v45 = vunpack.i.l.bf16 %v14335_v20 }
0x26de   : > { %v8738_v47 = vsel %vm5591_vm5, %v8735_v46, %v14337_v43  ;;  %v8737_v55 = vsel %vm5591_vm5, %v8734_v58, %v14336_v45 }
0x26df   : > { %v8744_v44 = vpack.c.bf16 %v8738_v47, %v8737_v55  ;;  %v14595_v47 = vld [vmem:[%s18321_s11 + $0x10] sm:$0xff]   ;;  %v14596_v55 = vld [vmem:[%s18321_s11 + $0x8] sm:$0xff]  }
0x26e1   : > { %13662 = vmatprep.mubr.msk.bf16.mxu0 %vm4971_vm2, %v8744_v44  ;;  %v14597_v44 = vld [vmem:[%s18321_s11] sm:$0xff]  }
0x26e2   : > { %13663 = vmatmul.mubr.msk.bf16.vlgmr.msra.gmra.mxu0 %vm4971_vm2, %v8745_v51 }
0x26e3   : > { %13675 = vmatpush3.bf16.msra.mxu0 %v14594_v16 }
0x26e4   : > { %13676 = vmatprep.subr.bf16.mxu0 %v14595_v47 }
0x26e7   : > { %13677 = vmatpush3.bf16.msra.mxu0 %v14595_v47 }
0x26e8   : > { %13678 = vmatprep.subr.bf16.mxu0 %v14596_v55 }
0x26eb   : > { %13679 = vmatpush3.bf16.msra.mxu0 %v14596_v55 }
0x26ec   : > { %13680 = vmatprep.subr.bf16.mxu0 %v14597_v44 }
0x26ef   : > { %13681 = vmatpush3.bf16.msra.mxu0 %v14597_v44 }
0x27a2   : > { %v13664_v53 = vpop.f32.mrf.mxu0 }
0x27a3   : > { %v8814_v61 = vadd.f32 %v13664_v53, %v12645_v31  ;;  %v12652_v53 = vld [vmem:[%s18324_s14] ss:$0 sm:$0xff]  ;;  %s18327_s14 = sld [smem:[#allocation96_spill]] }
0x27a4   : > { %v8805_v54 = vpop.f32.mrf.mxu0 }
0x27a5   : > { %v8806_v35 = vadd.f32 %v12645_v31, %v8805_v54  ;;  %v8821_v6 = vadd.f32 %v8814_v61, %v17403_v0 }
0x27a6   : > { %v13665_v41 = vpop.f32.mrf.mxu0 }
0x27a7   : > { %v8819_v52 = vadd.f32 %v8806_v35, %v17407_v40  ;;  %v8828_v28 = vsel %vm7819_vm9, %v8821_v6, 0.0 }
0x27a8   : > { %v8808_v57 = vpop.f32.mrf.mxu0 }
0x27a9   : > { %v8809_v7 = vadd.f32 %v12645_v31, %v8808_v57  ;;  %v8822_v3 = vsel %vm4971_vm2, %v8819_v52, 0.0  ;;  %v12665_v44 = vld [vmem:[%s18327_s14] ss:$0 sm:$0xff]  ;;  %s18340_s14 = sld [smem:[#allocation82_spill]] }
0x27aa   : > { %8823 = vadd.xlane.f32.xlu1 %v8822_v3 }
0x27ab   : > { %v8820_v9 = vadd.f32 %v8809_v7, %v17405_v39 }
0x27ad   : > { %v8825_v4 = vsel %vm4971_vm2, %v8820_v9, 0.0 }
0x27ae   : > { %8826 = vadd.xlane.f32.xlu0 %v8825_v4 }
0x27b2   : > { %8829 = vadd.xlane.f32.xlu0 %v8828_v28  ;;  %v12657_v28 = vld [vmem:[%s18325_s16] ss:$0 sm:$0xff]  ;;  %s18339_s16 = sld [smem:[#allocation80_spill]] }
0x2833   : > { %v8824_v56 = vpop.xlane.xlu1 %8823 }
0x2834   : > { %v8831_v63 = vmul.f32 0.03125, %v8824_v56 }
0x2836   : > { %v8834_v33 = vsub.f32 %v8819_v52, %v8831_v63 }
0x2837   : > { %v8827_v40 = vpop.xlane.xlu0 %8826 }
0x2838   : > { %v8832_v2 = vmul.f32 0.03125, %v8827_v40  ;;  %v8837_v5 = vmul.f32 %v8834_v33, %v8834_v33 }
0x283a   : > { %v8835_v27 = vsub.f32 %v8820_v9, %v8832_v2  ;;  %v8840_v11 = vsel %vm4971_vm2, %v8837_v5, 0.0 }
0x283b   : > { %v8830_v39 = vpop.xlane.xlu0 %8829  ;;  %8841 = vadd.xlane.f32.xlu0 %v8840_v11 }
0x283c   : > { %v8833_v0 = vmul.f32 0.03125, %v8830_v39  ;;  %v8838_v32 = vmul.f32 %v8835_v27, %v8835_v27 }
0x283e   : > { %v8836_v14 = vsub.f32 %v8821_v6, %v8833_v0  ;;  %v8843_v10 = vsel %vm4971_vm2, %v8838_v32, 0.0 }
0x283f   : > { %8844 = vadd.xlane.f32.xlu1 %v8843_v10 }
0x2840   : > { %v8839_v37 = vmul.f32 %v8836_v14, %v8836_v14 }
0x2842   : > { %v8846_v38 = vsel %vm7819_vm9, %v8839_v37, 0.0 }
0x2843   : > { %8847 = vadd.xlane.f32.xlu0 %v8846_v38 }
0x28c4   : > { %v8842_v17 = vpop.xlane.xlu0 %8841 }
0x28c5   : > { %v8849_v13 = vmul.f32 0.03125, %v8842_v17 }
0x28c7   : > { %v8852_v18 = vadd.f32 1e-05, %v8849_v13 }
0x28c8   : > { %v8845_v19 = vpop.xlane.xlu1 %8844 }
0x28c9   : > { %14802 = vrsqrt.f32 %v8852_v18  ;;  %v8850_v21 = vmul.f32 0.03125, %v8845_v19 }
0x28cb   : > { %v8853_v22 = vadd.f32 1e-05, %v8850_v21 }
0x28cc   : > { %v8848_v23 = vpop.xlane.xlu0 %8847 }
0x28cd   : > { %14804 = vrsqrt.f32 %v8853_v22  ;;  %v8851_v8 = vmul.f32 0.03125, %v8848_v23 }
0x28cf   : > { %v8854_v29 = vadd.f32 1e-05, %v8851_v8 }
0x28d1   : > { %14806 = vrsqrt.f32 %v8854_v29 }
0x28d6   : > { %v14803_v30 = vpop.eup %14802 }
0x28d7   : > { %v8858_v34 = vmul.f32 %v14803_v30, %v8834_v33  ;;  %v14598_v30 = vld [vmem:[%s18326_s15 + $0x8] sm:$0xff]  }
0x28d8   : > { %13686 = vmatprep.subr.bf16.mxu1 %v14598_v30 }
0x28d9   : > { %v8868_v26 = vmul.f32 %v12650_v36, %v8858_v34  ;;  %v14599_v34 = vld [vmem:[%s18326_s15] sm:$0xff]  }
0x28da   : > { %v14805_v50 = vpop.eup %14804 }
0x28db   : > { %v8859_v60 = vmul.f32 %v14805_v50, %v8835_v27  ;;  %v8878_v25 = vadd.f32 %v12651_v1, %v8868_v26 }
0x28dd   : > { %v8869_v59 = vmul.f32 %v12650_v36, %v8859_v60 }
0x28de   : > { %v14807_v20 = vpop.eup %14806 }
0x28df   : > { %v8860_v42 = vmul.f32 %v14807_v20, %v8836_v14  ;;  %v8879_v43 = vadd.f32 %v12651_v1, %v8869_v59 }
0x28e1   : > { %v8870_v45 = vmul.f32 %v12650_v36, %v8860_v42  ;;  %v8885_v46 = vpack.c.bf16 %v8879_v43, %v8878_v25 }
0x28e3   : > { %v8880_v58 = vadd.f32 %v12651_v1, %v8870_v45  ;;  %13670 = vmatprep.mubr.msk.bf16.mxu1 %vm4971_vm2, %v8885_v46  ;;  %v12664_v46 = vld [vmem:[#allocation2] ss:$0 sm:$0xff] }
0x28e5   : > { %v8886_v48 = vpack.c.bf16 %v8880_v58, %v8880_v58 }
0x28e7   : > { %13671 = vmatmul.mubr.msk.bf16.vlgmr.msra.gmra.mxu1 %vm4971_vm2, %v8886_v48 }
0x28e8   : > { %13687 = vmatpush3.bf16.msra.mxu1 %v14598_v30 }
0x28e9   : > { %13688 = vmatprep.subr.bf16.mxu1 %v14599_v34 }
0x28ec   : > { %13689 = vmatpush3.bf16.msra.mxu1 %v14599_v34 }
0x29a7   : > { %v13672_v51 = vpop.f32.mrf.mxu1 }
0x29a8   : > { %v8955_v54 = vadd.f32 %v13672_v51, %v12652_v53 }
0x29a9   : > { %v8946_v31 = vpop.f32.mrf.mxu1 }
0x29aa   : > { %v8947_v41 = vadd.f32 %v12652_v53, %v8946_v31  ;;  %v8962_v61 = vmax.f32 %v8955_v54, 0.0 }
0x29ab   : > { %v13673_v35 = vpop.f32.mrf.mxu1 }
0x29ac   : > { %v8960_v7 = vmax.f32 %v8947_v41, 0.0  ;;  %v8972_v6 = vpack.c.bf16 %v8962_v61, %v8962_v61  ;;  %v17649_v61 = vld [vmem:[%s16364_s8] sm:$0xff] }
0x29ad   : > { %v8949_v52 = vpop.f32.mrf.mxu1 }
0x29ae   : > { %v8950_v57 = vadd.f32 %v12652_v53, %v8949_v52  ;;  %v17644_v52 = vld [vmem:[%s16364_s8 + $0x10] sm:$0xf] }
0x29b0   : > { %v8961_v3 = vmax.f32 %v8950_v57, 0.0 }
0x29b2   : > { %v8971_v9 = vpack.c.bf16 %v8961_v3, %v8960_v7  ;;  %v17654_v3 = vld [vmem:[%s16364_s8 + $0x8] sm:$0xff] }
0x29b4   : > { %13682 = vmatprep.mubr.msk.bf16.mxu0 %vm4900_vm1, %v8971_v9 }
0x29b5   : > { %13683 = vmatmul.mubr.msk.bf16.vlgmr.msra.gmra.mxu0 %vm4900_vm1, %v8972_v6 }
0x2a75   : > { %v13684_v4 = vpop.f32.mrf.mxu0 }
0x2a76   : > { %v9053_v63 = vadd.f32 %v13684_v4, %v12657_v28 }
0x2a77   : > { %v9044_v56 = vpop.f32.mrf.mxu0 }
0x2a78   : > { %v9045_v33 = vadd.f32 %v12657_v28, %v9044_v56  ;;  %v9060_v27 = vadd.f32 %v9053_v63, %v8880_v58  ;;  %v17663_v56 = vld [vmem:[#allocation24] ss:$0 sm:$0xff] }
0x2a79   : > { %v13685_v40 = vpop.f32.mrf.mxu0 }
0x2a7a   : > { %v9058_v2 = vadd.f32 %v9045_v33, %v8878_v25  ;;  %v9067_v14 = vsel %vm7819_vm9, %v9060_v27, 0.0 }
0x2a7b   : > { %v9047_v5 = vpop.f32.mrf.mxu0 }
0x2a7c   : > { %v9048_v11 = vadd.f32 %v12657_v28, %v9047_v5  ;;  %v9061_v39 = vsel %vm4971_vm2, %v9058_v2, 0.0 }
0x2a7d   : > { %9062 = vadd.xlane.f32.xlu1 %v9061_v39 }
0x2a7e   : > { %v9059_v0 = vadd.f32 %v9048_v11, %v8879_v43 }
0x2a80   : > { %v9064_v32 = vsel %vm4971_vm2, %v9059_v0, 0.0 }
0x2a81   : > { %9065 = vadd.xlane.f32.xlu0 %v9064_v32  ;;  %9068 = vadd.xlane.f32.xlu1 %v9067_v14 }
0x2b06   : > { %v9063_v10 = vpop.xlane.xlu1 %9062 }
0x2b07   : > { %v9070_v37 = vmul.f32 0.03125, %v9063_v10 }
0x2b09   : > { %v9073_v38 = vsub.f32 %v9058_v2, %v9070_v37 }
0x2b0a   : > { %v9066_v62 = vpop.xlane.xlu0 %9065  ;;  %v9069_v15 = vpop.xlane.xlu1 %9068 }
0x2b0b   : > { %v9071_v16 = vmul.f32 0.03125, %v9066_v62  ;;  %v9072_v17 = vmul.f32 0.03125, %v9069_v15  ;;  %v9076_v13 = vmul.f32 %v9073_v38, %v9073_v38 }
0x2b0d   : > { %v9074_v18 = vsub.f32 %v9059_v0, %v9071_v16  ;;  %v9075_v19 = vsub.f32 %v9060_v27, %v9072_v17  ;;  %v9079_v21 = vsel %vm4971_vm2, %v9076_v13, 0.0 }
0x2b0e   : > { %9080 = vadd.xlane.f32.xlu0 %v9079_v21 }
0x2b0f   : > { %v9077_v22 = vmul.f32 %v9074_v18, %v9074_v18  ;;  %v9078_v23 = vmul.f32 %v9075_v19, %v9075_v19 }
0x2b11   : > { %v9082_v8 = vsel %vm4971_vm2, %v9077_v22, 0.0  ;;  %v9085_v29 = vsel %vm7819_vm9, %v9078_v23, 0.0 }
0x2b12   : > { %9083 = vadd.xlane.f32.xlu1 %v9082_v8  ;;  %9086 = vadd.xlane.f32.xlu0 %v9085_v29 }
0x2b97   : > { %v9081_v36 = vpop.xlane.xlu0 %9080 }
0x2b98   : > { %v9088_v50 = vmul.f32 0.03125, %v9081_v36 }
0x2b9a   : > { %v9091_v60 = vadd.f32 1e-05, %v9088_v50 }
0x2b9b   : > { %v9087_v26 = vpop.xlane.xlu0 %9086  ;;  %v9084_v1 = vpop.xlane.xlu1 %9083 }
0x2b9c   : > { %14808 = vrsqrt.f32 %v9091_v60  ;;  %v9090_v59 = vmul.f32 0.03125, %v9087_v26  ;;  %v9089_v20 = vmul.f32 0.03125, %v9084_v1 }
0x2b9e   : > { %v9093_v42 = vadd.f32 1e-05, %v9090_v59  ;;  %v9092_v25 = vadd.f32 1e-05, %v9089_v20 }
0x2ba0   : > { %14810 = vrsqrt.f32 %v9093_v42 }
0x2ba1   : > { %14812 = vrsqrt.f32 %v9092_v25 }
0x2ba9   : > { %v14809_v43 = vpop.eup %14808 }
0x2baa   : > { %v9097_v45 = vmul.f32 %v14809_v43, %v9073_v38 }
0x2bac   : > { %v9107_v48 = vmul.f32 %v12664_v46, %v9097_v45 }
0x2bad   : > { %v14811_v58 = vpop.eup %14810 }
0x2bae   : > { %v14813_v47 = vpop.eup %14812  ;;  %v9099_v55 = vmul.f32 %v14811_v58, %v9075_v19  ;;  %v17637_v54 = vadd.f32 %v12665_v44, %v9107_v48 }
0x2baf   : > { %v9098_v51 = vmul.f32 %v14813_v47, %v9074_v18 }
0x2bb0   : > { %v9109_v53 = vmul.f32 %v12664_v46, %v9099_v55  ;;  %v9120_v7 = vadd.f32 %v17649_v61, %v17637_v54 }
0x2bb1   : > { %v9108_v31 = vmul.f32 %v12664_v46, %v9098_v51 }
0x2bb2   : > { %v17639_v35 = vadd.f32 %v12665_v44, %v9109_v53 }
0x2bb3   : > { %v17641_v41 = vadd.f32 %v12665_v44, %v9108_v31 }
0x2bb4   : > { %v9122_v57 = vadd.f32 %v17644_v52, %v17639_v35  ;;  %v9203_v15 = vpack.c.bf16 %v17639_v35, %v17639_v35 }
0x2bb5   : > { %v9121_v9 = vadd.f32 %v17654_v3, %v17641_v41  ;;  %v9202_v28 = vpack.c.bf16 %v17641_v41, %v17637_v54 }
0x2bb6   : > { %v9129_v6 = vpack.c.bf16 %v9122_v57, %v9122_v57 }
0x2bb7   : > { %v9128_v4 = vpack.c.bf16 %v9121_v9, %v9120_v7 }
0x2bb9   : > { %13690 = vmatprep.mubr.msk.bf16.mxu1 %vm4971_vm2, %v9128_v4 }
0x2bba   : > { %13691 = vmatmul.mubr.msk.bf16.vlgmr.msra.gmra.mxu1 %vm4971_vm2, %v9129_v6 }
0x2bbb   : > { %13698 = vmatprep.mubr.msk.bf16.mxu1 %vm4971_vm2, %v9202_v28 }
0x2c7a   : > { %v13692_v63 = vpop.f32.mrf.mxu1 }
0x2c7b   : > { %v9197_v33 = vadd.f32 %v13692_v63, %v17663_v56 }
0x2c7c   : > { %v9188_v40 = vpop.f32.mrf.mxu1 }
0x2c7d   : > { %v17666_v2 = vpack.c.bf16 %v9197_v33, %v9197_v33  ;;  %v9189_v11 = vadd.f32 %v17663_v56, %v9188_v40 }
0x2c7e   : > { %v13693_v5 = vpop.f32.mrf.mxu1 }
0x2c7f   : > { %9275 = vrot.lane.b32.xlu1 %v17666_v2, %s18309_s6 }
0x2c80   : > { %v9191_v27 = vpop.f32.mrf.mxu1 }
0x2c81   : > { %v9192_v39 = vadd.f32 %v17663_v56, %v9191_v27 }
0x2c83   : > { %v17672_v0 = vpack.c.bf16 %v9192_v39, %v9189_v11  ;;  %9206 = vrot.lane.b32.xlu1 %v14598_v30, %s18301_s5 }
0x2c85   : > { %9273 = vrot.lane.b32.xlu0 %v17672_v0, %s18309_s6  ;;  %13706 = vmatprep.mubr.msk.bf16.mxu0 %vm5075_vm3, %v17672_v0 }
0x2c87   : > { %9204 = vrot.lane.b32.xlu1 %v14599_v34, %s18301_s5 }
0x2cf1   : > { %v9276_v32 = vpop.permute.xlu1 %9275 }
0x2cf2   : > { %13922 = vmatprep.subr.msk.bf16.mxu0 %vm5075_vm3, %v9276_v32  ;;  %v9287_v14 = vsel %vm5075_vm3, %v9276_v32, 0 }
0x2cf3   : > { %13703 = vmatpush3.bf16.xpose.msra.mxu0 %v9287_v14 }
0x2cf5   : > { %v9207_v10 = vpop.permute.xlu1 %9206 }
0x2cf6   : > { %13694 = vmatprep.subr.bf16.mxu1 %v9207_v10 }
0x2cf7   : > { %13695 = vmatpush3.bf16.msra.mxu1 %v9207_v10  ;;  %v9274_v37 = vpop.permute.xlu0 %9273 }
0x2cf8   : > { %13923 = vmatprep.subr.msk.bf16.mxu0 %vm5075_vm3, %v9274_v37  ;;  %v9284_v62 = vsel %vm5075_vm3, %v9274_v37, 0 }
0x2cf9   : > { %v9205_v38 = vpop.permute.xlu1 %9204 }
0x2cfa   : > { %13696 = vmatprep.subr.bf16.mxu1 %v9205_v38 }
0x2cfb   : > { %13697 = vmatpush3.bf16.msra.mxu1 %v9205_v38  ;;  %13705 = vmatpush3.bf16.xpose.msra.mxu0 %v9284_v62 }
0x2cfe   : > { %13699 = vmatmul.mubr.msk.bf16.vlgmr.msra.gmra.mxu1 %vm4971_vm2, %v9203_v15 }
0x2d02   : > { %13707 = vmatmul.mubr.msk.bf16.vlgmr.msra.gmra.mxu0 %vm5075_vm3, %v17666_v2 }
0x2dbe   : > { %v13700_v16 = vpop.f32.mrf.mxu1 }
0x2dc0   : > { %v9253_v17 = vpop.f32.mrf.mxu1 }
0x2dc2   : > { %v13701_v13 = vpop.f32.mrf.mxu1  ;;  %v13708_v18 = vpop.f32.mrf.mxu0 }
0x2dc3   : > { %v9339_v30 = vmul.f32 0.35355338, %v13708_v18 }
0x2dc4   : > { %v9323_v19 = vpop.f32.mrf.mxu0  ;;  %v9256_v51 = vpop.f32.mrf.mxu1 }
0x2dc5   : > { %v9337_v21 = vmul.f32 0.35355338, %v9323_v19  ;;  %v9346_v36 = vsel %vm7092_vm7, %v9339_v30, -inf }
0x2dc6   : > { %v13709_v22 = vpop.f32.mrf.mxu0 }
0x2dc7   : > { %v9340_v23 = vsel %vm7085_vm6, %v9337_v21, -inf }
0x2dc8   : > { %9341 = vmax.xlane.f32.xlu1 %v9340_v23  ;;  %v9326_v8 = vpop.f32.mrf.mxu0 }
0x2dc9   : > { %v9338_v29 = vmul.f32 0.35355338, %v9326_v8 }
0x2dcb   : > { %v9343_v34 = vsel %vm7085_vm6, %v9338_v29, -inf }
0x2dcc   : > { %9344 = vmax.xlane.f32.xlu0 %v9343_v34 }
0x2dd0   : > { %9347 = vmax.xlane.f32.xlu0 %v9346_v36 }
0x2e51   : > { %v9342_v50 = vpop.xlane.xlu1 %9341 }
0x2e52   : > { %v9349_v1 = vsub.f32 %v9337_v21, %v9342_v50 }
0x2e54   : > { %v9352_v25 = vmul.f32 1.442695, %v9349_v1 }
0x2e55   : > { %v9345_v60 = vpop.xlane.xlu0 %9344 }
0x2e56   : > { %v9350_v26 = vsub.f32 %v9338_v29, %v9345_v60 }
0x2e58   : > { %v9354_v59 = vmul.f32 1.442695, %v9350_v26 }
0x2e59   : > { %v9348_v20 = vpop.xlane.xlu0 %9347 }
0x2e5a   : > { %14814 = vpow2.f32 %v9354_v59  ;;  %v9351_v42 = vsub.f32 %v9339_v30, %v9348_v20 }
0x2e5c   : > { %v9356_v43 = vmul.f32 1.442695, %v9351_v42 }
0x2e5e   : > { %14816 = vpow2.f32 %v9356_v43 }
0x2e5f   : > { %14818 = vpow2.f32 %v9352_v25 }
0x2e67   : > { %v14815_v45 = vpop.eup %14814 }
0x2e68   : > { %v9361_v46 = vsel %vm7085_vm6, %v14815_v45, 0.0 }
0x2e69   : > { %9362 = vadd.xlane.f32.xlu1 %v9361_v46 }
0x2e6b   : > { %v14817_v58 = vpop.eup %14816 }
0x2e6c   : > { %v9364_v48 = vsel %vm7092_vm7, %v14817_v58, 0.0  ;;  %v14819_v47 = vpop.eup %14818 }
0x2e6d   : > { %9365 = vadd.xlane.f32.xlu0 %v9364_v48  ;;  %v9358_v55 = vsel %vm7085_vm6, %v14819_v47, 0.0 }
0x2e71   : > { %9359 = vadd.xlane.f32.xlu0 %v9358_v55 }
0x2e7a   : > { %9210 = vrot.lane.b32.xlu1 %v17663_v56, %s18301_s5 }
0x2e7e   : > { %9436 = vrot.lane.b32.xlu1 %v17672_v0, %s18310_s10 }
0x2e82   : > { %9432 = vrot.lane.b32.xlu1 %v17672_v0, %s18311_s12 }
0x2e86   : > { %9434 = vrot.lane.b32.xlu1 %v17666_v2, %s18311_s12 }
0x2e87   : > { %9438 = vrot.lane.b32.xlu0 %v17666_v2, %s18310_s10  ;;  %s18329_s10 = sld [smem:[#allocation104_spill]] }
0x2ef2   : > { %v9363_v44 = vpop.xlane.xlu1 %9362 }
0x2ef6   : > { %v9211_v53 = vpop.permute.xlu1 %9210  ;;  %v9366_v31 = vpop.xlane.xlu0 %9365 }
0x2ef7   : > { %v9254_v57 = vadd.f32 %v9253_v17, %v9211_v53  ;;  %v9262_v7 = vadd.f32 %v13700_v16, %v9211_v53  ;;  %v9257_v9 = vadd.f32 %v9256_v51, %v9211_v53  ;;  %14820 = vrcp.f32 %v9366_v31 }
0x2ef8   : > { %14822 = vrcp.f32 %v9363_v44 }
0x2ef9   : > { %v17705_v6 = vpack.c.bf16 %v9262_v7, %v9262_v7  ;;  %v17707_v28 = vpack.c.bf16 %v9257_v9, %v9254_v57 }
0x2efa   : > { %v9360_v4 = vpop.xlane.xlu0 %9359  ;;  %v9437_v11 = vpop.permute.xlu1 %9436 }
0x2efb   : > { %14824 = vrcp.f32 %v9360_v4  ;;  %13924 = vmatprep.subr.msk.bf16.mxu1 %vm7128_vm8, %v17705_v6  ;;  %v9382_v56 = vsel %vm7128_vm8, %v17705_v6, 0  ;;  %v9447_v62 = vsel %vm5075_vm3, %v9437_v11, 0 }
0x2efc   : > { %13711 = vmatpush3.bf16.msra.mxu1 %v9382_v56 }
0x2efd   : > { %13712 = vmatprep.subr.bf16.mxu1 %v17707_v28 }
0x2efe   : > { %v9439_v63 = vpop.permute.xlu0 %9438  ;;  %v9433_v37 = vpop.permute.xlu1 %9432 }
0x2eff   : > { %v9450_v38 = vsel %vm5075_vm3, %v9439_v63, 0 }
0x2f00   : > { %13713 = vmatpush3.bf16.msra.mxu1 %v17707_v28 }
0x2f01   : > { %13925 = vmatprep.subr.msk.bf16.mxu1 %vm5075_vm3, %v9439_v63 }
0x2f02   : > { %v9435_v15 = vpop.permute.xlu1 %9434 }
0x2f04   : > { %v14821_v33 = vpop.eup %14820 }
0x2f05   : > { %v14823_v40 = vpop.eup %14822  ;;  %v9372_v27 = vmul.f32 %v14821_v33, %v14817_v58 }
0x2f06   : > { %v9371_v32 = vmul.f32 %v14823_v40, %v14815_v45 }
0x2f07   : > { %v9374_v10 = vpack.c.bf16 %v9372_v27, %v9372_v27 }
0x2f08   : > { %v14825_v5 = vpop.eup %14824 }
0x2f09   : > { %v9370_v39 = vmul.f32 %v14825_v5, %v14819_v47 }
0x2f0b   : > { %v9373_v14 = vpack.c.bf16 %v9371_v32, %v9370_v39 }
0x2f0d   : > { %13714 = vmatprep.mubr.msk.bf16.mxu1 %vm7085_vm6, %v9373_v14 }
0x2f0e   : > { %13715 = vmatmul.mubr.msk.bf16.vlgmr.msra.gmra.mxu1 %vm7085_vm6, %v9374_v10 }
0x2f0f   : > { %13719 = vmatpush3.bf16.xpose.msra.mxu1 %v9450_v38  ;;  %13722 = vmatprep.mubr.msk.bf16.mxu1 %vm5075_vm3, %v9433_v37 }
0x2f10   : > { %13926 = vmatprep.subr.msk.bf16.mxu1 %vm5075_vm3, %v9437_v11 }
0x2f17   : > { %13721 = vmatpush3.bf16.xpose.msra.mxu1 %v9447_v62 }
0x2f1e   : > { %13723 = vmatmul.mubr.msk.bf16.vlgmr.msra.gmra.mxu1 %vm5075_vm3, %v9435_v15 }
0x2fce   : > { %v17723_v16 = vpop.f32.mrf.mxu1 }
0x2fd0   : > { %v17725_v17 = vpop.f32.mrf.mxu1 }
0x2fd2   : > { %v13717_v13 = vpop.f32.mrf.mxu1 }
0x2fd4   : > { %v17727_v18 = vpop.f32.mrf.mxu1 }
0x2fde   : > { %v13724_v19 = vpop.f32.mrf.mxu1 }
0x2fdf   : > { %v9502_v8 = vmul.f32 0.35355338, %v13724_v19 }
0x2fe0   : > { %v9486_v21 = vpop.f32.mrf.mxu1 }
0x2fe1   : > { %v9500_v22 = vmul.f32 0.35355338, %v9486_v21  ;;  %v9509_v36 = vsel %vm7092_vm7, %v9502_v8, -inf }
0x2fe2   : > { %v13725_v23 = vpop.f32.mrf.mxu1 }
0x2fe3   : > { %v9503_v29 = vsel %vm7085_vm6, %v9500_v22, -inf }
0x2fe4   : > { %9504 = vmax.xlane.f32.xlu0 %v9503_v29  ;;  %v9489_v30 = vpop.f32.mrf.mxu1 }
0x2fe5   : > { %v9501_v34 = vmul.f32 0.35355338, %v9489_v30 }
0x2fe7   : > { %v9506_v50 = vsel %vm7085_vm6, %v9501_v34, -inf }
0x2fe8   : > { %9510 = vmax.xlane.f32.xlu0 %v9509_v36  ;;  %9507 = vmax.xlane.f32.xlu1 %v9506_v50 }
0x306d   : > { %v9505_v60 = vpop.xlane.xlu0 %9504 }
0x306e   : > { %v9512_v26 = vsub.f32 %v9500_v22, %v9505_v60 }
0x3070   : > { %v9515_v1 = vmul.f32 1.442695, %v9512_v26 }
0x3071   : > { %v9511_v59 = vpop.xlane.xlu0 %9510  ;;  %v9508_v20 = vpop.xlane.xlu1 %9507 }
0x3072   : > { %14826 = vpow2.f32 %v9515_v1  ;;  %v9514_v42 = vsub.f32 %v9502_v8, %v9511_v59  ;;  %v9513_v25 = vsub.f32 %v9501_v34, %v9508_v20 }
0x3074   : > { %v9519_v43 = vmul.f32 1.442695, %v9514_v42  ;;  %v9517_v45 = vmul.f32 1.442695, %v9513_v25 }
0x3076   : > { %14828 = vpow2.f32 %v9519_v43 }
0x3077   : > { %14830 = vpow2.f32 %v9517_v45 }
0x307f   : > { %v14827_v46 = vpop.eup %14826 }
0x3080   : > { %v9521_v58 = vsel %vm7085_vm6, %v14827_v46, 0.0 }
0x3081   : > { %9522 = vadd.xlane.f32.xlu0 %v9521_v58 }
0x3083   : > { %v14829_v48 = vpop.eup %14828 }
0x3084   : > { %v14831_v47 = vpop.eup %14830  ;;  %v9527_v55 = vsel %vm7092_vm7, %v14829_v48, 0.0 }
0x3085   : > { %9528 = vadd.xlane.f32.xlu1 %v9527_v55  ;;  %v9524_v44 = vsel %vm7085_vm6, %v14831_v47, 0.0 }
0x3086   : > { %9525 = vadd.xlane.f32.xlu0 %v9524_v44 }
0x3096   : > { %9540 = vrot.lane.b32.xlu1 %v17707_v28, %s18311_s12 }
0x309a   : > { %9608 = vrot.lane.b32.xlu1 %v17666_v2, %s18298_s1 }
0x309c   : > { %9542 = vrot.lane.b32.xlu0 %v17705_v6, %s18311_s12 }
0x309e   : > { %9606 = vrot.lane.b32.xlu1 %v17672_v0, %s18298_s1  ;;  %s18335_s1 = sld [smem:[#allocation79_spill]] }
0x30a0   : > { %9602 = vrot.lane.b32.xlu0 %v17672_v0, %s18312_s13 }
0x30a2   : > { %9604 = vrot.lane.b32.xlu1 %v17666_v2, %s18312_s13 }
0x310a   : > { %v9523_v51 = vpop.xlane.xlu0 %9522 }
0x310b   : > { %14832 = vrcp.f32 %v9523_v51 }
0x310e   : > { %v9529_v53 = vpop.xlane.xlu1 %9528 }
0x310f   : > { %v9526_v31 = vpop.xlane.xlu0 %9525  ;;  %14834 = vrcp.f32 %v9529_v53 }
0x3110   : > { %14836 = vrcp.f32 %v9526_v31 }
0x3112   : > { %v9541_v7 = vpop.permute.xlu1 %9540 }
0x3113   : > { %v9543_v57 = vpop.permute.xlu0 %9542 }
0x3114   : > { %v9552_v9 = vsel %vm7128_vm8, %v9543_v57, 0  ;;  %13927 = vmatprep.subr.msk.bf16.mxu0 %vm7128_vm8, %v9543_v57 }
0x3115   : > { %13727 = vmatpush3.bf16.msra.mxu0 %v9552_v9 }
0x3116   : > { %13728 = vmatprep.subr.bf16.mxu0 %v9541_v7  ;;  %v9609_v4 = vpop.permute.xlu1 %9608 }
0x3117   : > { %v9603_v32 = vpop.permute.xlu0 %9602  ;;  %v9620_v14 = vsel %vm5075_vm3, %v9609_v4, 0 }
0x3118   : > { %v14833_v56 = vpop.eup %14832 }
0x3119   : > { %13729 = vmatpush3.bf16.msra.mxu0 %v9541_v7  ;;  %v9533_v5 = vmul.f32 %v14833_v56, %v14827_v46 }
0x311a   : > { %13928 = vmatprep.subr.msk.bf16.mxu0 %vm5075_vm3, %v9609_v4  ;;  %v9607_v10 = vpop.permute.xlu1 %9606 }
0x311b   : > { %v9617_v37 = vsel %vm5075_vm3, %v9607_v10, 0 }
0x311c   : > { %v14835_v63 = vpop.eup %14834 }
0x311d   : > { %v14837_v33 = vpop.eup %14836  ;;  %v9535_v40 = vmul.f32 %v14835_v63, %v14829_v48 }
0x311e   : > { %v9534_v27 = vmul.f32 %v14837_v33, %v14831_v47  ;;  %v9605_v38 = vpop.permute.xlu1 %9604 }
0x311f   : > { %v9537_v11 = vpack.c.bf16 %v9535_v40, %v9535_v40 }
0x3120   : > { %v9536_v39 = vpack.c.bf16 %v9534_v27, %v9533_v5 }
0x3122   : > { %13730 = vmatprep.mubr.msk.bf16.mxu0 %vm7085_vm6, %v9536_v39 }
0x3123   : > { %13731 = vmatmul.mubr.msk.bf16.vlgmr.msra.gmra.mxu0 %vm7085_vm6, %v9537_v11 }
0x3124   : > { %13735 = vmatpush3.bf16.xpose.msra.mxu0 %v9620_v14  ;;  %13738 = vmatprep.mubr.msk.bf16.mxu0 %vm5075_vm3, %v9603_v32 }
0x3125   : > { %13929 = vmatprep.subr.msk.bf16.mxu0 %vm5075_vm3, %v9607_v10 }
0x312c   : > { %13737 = vmatpush3.bf16.xpose.msra.mxu0 %v9617_v37 }
0x3133   : > { %13739 = vmatmul.mubr.msk.bf16.vlgmr.msra.gmra.mxu0 %vm5075_vm3, %v9605_v38 }
0x31e3   : > { %v17757_v62 = vpop.f32.mrf.mxu0 }
0x31e5   : > { %v17759_v15 = vpop.f32.mrf.mxu0 }
0x31e7   : > { %v13733_v13 = vpop.f32.mrf.mxu0 }
0x31e9   : > { %v17761_v19 = vpop.f32.mrf.mxu0 }
0x31ea   : > { %v14338_v21 = vpack.i.bf16 %v17761_v19, %v17759_v15 }
0x31f3   : > { %v13740_v22 = vpop.f32.mrf.mxu0 }
0x31f4   : > { %v9672_v30 = vmul.f32 0.35355338, %v13740_v22 }
0x31f5   : > { %v9656_v23 = vpop.f32.mrf.mxu0 }
0x31f6   : > { %v9670_v8 = vmul.f32 0.35355338, %v9656_v23  ;;  %v9679_v60 = vsel %vm7092_vm7, %v9672_v30, -inf }
0x31f7   : > { %v13741_v29 = vpop.f32.mrf.mxu0 }
0x31f8   : > { %v9673_v34 = vsel %vm7085_vm6, %v9670_v8, -inf }
0x31f9   : > { %9674 = vmax.xlane.f32.xlu0 %v9673_v34  ;;  %v9659_v36 = vpop.f32.mrf.mxu0 }
0x31fa   : > { %v9671_v50 = vmul.f32 0.35355338, %v9659_v36 }
0x31fc   : > { %v9676_v26 = vsel %vm7085_vm6, %v9671_v50, -inf }
0x31fd   : > { %9680 = vmax.xlane.f32.xlu0 %v9679_v60  ;;  %9677 = vmax.xlane.f32.xlu1 %v9676_v26 }
0x3282   : > { %v9675_v1 = vpop.xlane.xlu0 %9674 }
0x3283   : > { %v9682_v59 = vsub.f32 %v9670_v8, %v9675_v1 }
0x3285   : > { %v9685_v20 = vmul.f32 1.442695, %v9682_v59 }
0x3286   : > { %v9681_v42 = vpop.xlane.xlu0 %9680  ;;  %v9678_v25 = vpop.xlane.xlu1 %9677 }
0x3287   : > { %14838 = vpow2.f32 %v9685_v20  ;;  %v9684_v43 = vsub.f32 %v9672_v30, %v9681_v42  ;;  %v9683_v45 = vsub.f32 %v9671_v50, %v9678_v25 }
0x3289   : > { %v9689_v46 = vmul.f32 1.442695, %v9684_v43  ;;  %v9687_v58 = vmul.f32 1.442695, %v9683_v45 }
0x328b   : > { %14840 = vpow2.f32 %v9689_v46 }
0x328c   : > { %14842 = vpow2.f32 %v9687_v58 }
0x3294   : > { %v14839_v48 = vpop.eup %14838 }
0x3295   : > { %v9691_v47 = vsel %vm7085_vm6, %v14839_v48, 0.0 }
0x3296   : > { %9692 = vadd.xlane.f32.xlu0 %v9691_v47 }
0x3298   : > { %v14841_v55 = vpop.eup %14840 }
0x3299   : > { %v14843_v44 = vpop.eup %14842  ;;  %v9697_v51 = vsel %vm7092_vm7, %v14841_v55, 0.0 }
0x329a   : > { %9698 = vadd.xlane.f32.xlu1 %v9697_v51  ;;  %v9694_v53 = vsel %vm7085_vm6, %v14843_v44, 0.0 }
0x329b   : > { %9695 = vadd.xlane.f32.xlu0 %v9694_v53 }
0x32ab   : > { %9708 = vrot.lane.b32.xlu1 %v17707_v28, %s18312_s13 }
0x32af   : > { %9776 = vrot.lane.b32.xlu1 %v17666_v2, %s18300_s4 }
0x32b1   : > { %9710 = vrot.lane.b32.xlu0 %v17705_v6, %s18312_s13 }
0x32b3   : > { %9774 = vrot.lane.b32.xlu1 %v17672_v0, %s18300_s4  ;;  %s18328_s4 = sld [smem:[#allocation115_spill]] }
0x32b5   : > { %9770 = vrot.lane.b32.xlu0 %v17672_v0, %s18299_s3 }
0x32b7   : > { %9772 = vrot.lane.b32.xlu1 %v17666_v2, %s18299_s3 }
0x331f   : > { %v9693_v31 = vpop.xlane.xlu0 %9692 }
0x3320   : > { %14844 = vrcp.f32 %v9693_v31 }
0x3323   : > { %v9699_v57 = vpop.xlane.xlu1 %9698 }
0x3324   : > { %v9696_v7 = vpop.xlane.xlu0 %9695  ;;  %14846 = vrcp.f32 %v9699_v57 }
0x3325   : > { %14848 = vrcp.f32 %v9696_v7 }
0x3327   : > { %v9709_v4 = vpop.permute.xlu1 %9708 }
0x3328   : > { %v9711_v9 = vpop.permute.xlu0 %9710 }
0x3329   : > { %v9720_v56 = vsel %vm7128_vm8, %v9711_v9, 0  ;;  %13930 = vmatprep.subr.msk.bf16.mxu1 %vm7128_vm8, %v9711_v9 }
0x332a   : > { %13743 = vmatpush3.bf16.msra.mxu1 %v9720_v56 }
0x332b   : > { %13744 = vmatprep.subr.bf16.mxu1 %v9709_v4  ;;  %v9777_v63 = vpop.permute.xlu1 %9776 }
0x332c   : > { %v9771_v32 = vpop.permute.xlu0 %9770  ;;  %v9788_v14 = vsel %vm5075_vm3, %v9777_v63, 0 }
0x332d   : > { %v14845_v0 = vpop.eup %14844 }
0x332e   : > { %13745 = vmatpush3.bf16.msra.mxu1 %v9709_v4  ;;  %v9703_v5 = vmul.f32 %v14845_v0, %v14839_v48 }
0x332f   : > { %13931 = vmatprep.subr.msk.bf16.mxu1 %vm5075_vm3, %v9777_v63  ;;  %v9775_v10 = vpop.permute.xlu1 %9774 }
0x3330   : > { %v9785_v37 = vsel %vm5075_vm3, %v9775_v10, 0 }
0x3331   : > { %v14847_v2 = vpop.eup %14846 }
0x3332   : > { %v14849_v33 = vpop.eup %14848  ;;  %v9705_v40 = vmul.f32 %v14847_v2, %v14841_v55 }
0x3333   : > { %v9704_v27 = vmul.f32 %v14849_v33, %v14843_v44  ;;  %v9773_v38 = vpop.permute.xlu1 %9772 }
0x3334   : > { %v9707_v11 = vpack.c.bf16 %v9705_v40, %v9705_v40 }
0x3335   : > { %v9706_v39 = vpack.c.bf16 %v9704_v27, %v9703_v5  ;;  %v14600_v27 = vld [vmem:[%s18328_s4 + $0x8] sm:$0xff]  }
0x3337   : > { %13746 = vmatprep.mubr.msk.bf16.mxu1 %vm7085_vm6, %v9706_v39 }
0x3338   : > { %13747 = vmatmul.mubr.msk.bf16.vlgmr.msra.gmra.mxu1 %vm7085_vm6, %v9707_v11  ;;  %v14601_v11 = vld [vmem:[%s18328_s4] sm:$0xff]  }
0x3339   : > { %13751 = vmatpush3.bf16.xpose.msra.mxu1 %v9788_v14  ;;  %13754 = vmatprep.mubr.msk.bf16.mxu1 %vm5075_vm3, %v9771_v32 }
0x333a   : > { %13932 = vmatprep.subr.msk.bf16.mxu1 %vm5075_vm3, %v9775_v10 }
0x3341   : > { %13753 = vmatpush3.bf16.xpose.msra.mxu1 %v9785_v37 }
0x3348   : > { %13755 = vmatmul.mubr.msk.bf16.vlgmr.msra.gmra.mxu1 %vm5075_vm3, %v9773_v38 }
0x33f8   : > { %v13748_v13 = vpop.f32.mrf.mxu1 }
0x33fa   : > { %v9756_v22 = vpop.f32.mrf.mxu1 }
0x33fc   : > { %v13749_v23 = vpop.f32.mrf.mxu1 }
0x33fe   : > { %v9759_v8 = vpop.f32.mrf.mxu1 }
0x33ff   : > { %v14343_v29 = vpack.i.bf16 %v9759_v8, %v9756_v22 }
0x3408   : > { %v13756_v30 = vpop.f32.mrf.mxu1 }
0x3409   : > { %v9840_v60 = vmul.f32 0.35355338, %v13756_v30 }
0x340a   : > { %v9824_v34 = vpop.f32.mrf.mxu1 }
0x340b   : > { %v9838_v36 = vmul.f32 0.35355338, %v9824_v34  ;;  %v9847_v20 = vsel %vm7092_vm7, %v9840_v60, -inf }
0x340c   : > { %v13757_v50 = vpop.f32.mrf.mxu1 }
0x340d   : > { %v9841_v26 = vsel %vm7085_vm6, %v9838_v36, -inf }
0x340e   : > { %9842 = vmax.xlane.f32.xlu0 %v9841_v26  ;;  %v9827_v1 = vpop.f32.mrf.mxu1 }
0x340f   : > { %v9839_v59 = vmul.f32 0.35355338, %v9827_v1 }
0x3411   : > { %v9844_v42 = vsel %vm7085_vm6, %v9839_v59, -inf }
0x3412   : > { %9848 = vmax.xlane.f32.xlu0 %v9847_v20  ;;  %9845 = vmax.xlane.f32.xlu1 %v9844_v42 }
0x3497   : > { %v9843_v25 = vpop.xlane.xlu0 %9842 }
0x3498   : > { %v9850_v43 = vsub.f32 %v9838_v36, %v9843_v25 }
0x349a   : > { %v9853_v45 = vmul.f32 1.442695, %v9850_v43 }
0x349b   : > { %v9849_v46 = vpop.xlane.xlu0 %9848  ;;  %v9846_v58 = vpop.xlane.xlu1 %9845 }
0x349c   : > { %14850 = vpow2.f32 %v9853_v45  ;;  %v9852_v48 = vsub.f32 %v9840_v60, %v9849_v46  ;;  %v9851_v47 = vsub.f32 %v9839_v59, %v9846_v58 }
0x349e   : > { %v9857_v55 = vmul.f32 1.442695, %v9852_v48  ;;  %v9855_v44 = vmul.f32 1.442695, %v9851_v47  ;;  %v12689_v48 = vld [vmem:[#allocation22] ss:$0 sm:$0xff] }
0x34a0   : > { %14852 = vpow2.f32 %v9857_v55 }
0x34a1   : > { %14854 = vpow2.f32 %v9855_v44 }
0x34a9   : > { %v14851_v51 = vpop.eup %14850 }
0x34aa   : > { %v9859_v53 = vsel %vm7085_vm6, %v14851_v51, 0.0 }
0x34ab   : > { %9860 = vadd.xlane.f32.xlu0 %v9859_v53 }
0x34ad   : > { %v14853_v31 = vpop.eup %14852 }
0x34ae   : > { %v14855_v57 = vpop.eup %14854  ;;  %v9865_v7 = vsel %vm7092_vm7, %v14853_v31, 0.0 }
0x34af   : > { %9866 = vadd.xlane.f32.xlu1 %v9865_v7  ;;  %v9862_v9 = vsel %vm7085_vm6, %v14855_v57, 0.0 }
0x34b0   : > { %9863 = vadd.xlane.f32.xlu0 %v9862_v9 }
0x34c0   : > { %9876 = vrot.lane.b32.xlu1 %v17707_v28, %s18299_s3 }
0x34c4   : > { %14339 = vrot.lane.b32.xlu1 %v14338_v21, %s18303_s2 }
0x34c6   : > { %9878 = vrot.lane.b32.xlu0 %v17705_v6, %s18299_s3 }
0x34c8   : > { %9945 = vrot.lane.b32.xlu1 %v17757_v62, %s18303_s2 }
0x34ca   : > { %14344 = vrot.lane.b32.xlu0 %v14343_v29, %s18304_s22 }
0x34cc   : > { %9957 = vrot.lane.b32.xlu1 %v13748_v13, %s18304_s22 }
0x3534   : > { %v9861_v4 = vpop.xlane.xlu0 %9860 }
0x3535   : > { %14856 = vrcp.f32 %v9861_v4 }
0x3538   : > { %v9867_v56 = vpop.xlane.xlu1 %9866 }
0x3539   : > { %v9864_v63 = vpop.xlane.xlu0 %9863  ;;  %14858 = vrcp.f32 %v9867_v56 }
0x353a   : > { %14860 = vrcp.f32 %v9864_v63 }
0x353c   : > { %v9877_v6 = vpop.permute.xlu1 %9876 }
0x353d   : > { %v9879_v28 = vpop.permute.xlu0 %9878 }
0x353e   : > { %v9888_v15 = vsel %vm7128_vm8, %v9879_v28, 0  ;;  %13933 = vmatprep.subr.msk.bf16.mxu0 %vm7128_vm8, %v9879_v28  ;;  %v17843_v28 = vld [vmem:[%s18329_s10 + $0x8] sm:$0xff]  }
0x353f   : > { %13759 = vmatpush3.bf16.msra.mxu0 %v9888_v15  ;;  %13774 = vmatprep.subr.bf16.mxu1 %v17843_v28 }
0x3540   : > { %13760 = vmatprep.subr.bf16.mxu0 %v9877_v6  ;;  %v14340_v38 = vpop.permute.xlu1 %14339  ;;  %13775 = vmatpush3.bf16.msra.mxu1 %v17843_v28 }
0x3541   : > { %v14345_v22 = vpop.permute.xlu0 %14344  ;;  %v14342_v23 = vunpack.i.h.bf16 %v14340_v38  ;;  %v14341_v8 = vunpack.i.l.bf16 %v14340_v38 }
0x3542   : > { %v14857_v62 = vpop.eup %14856  ;;  %v14347_v30 = vunpack.i.h.bf16 %v14345_v22  ;;  %v14346_v34 = vunpack.i.l.bf16 %v14345_v22 }
0x3543   : > { %13761 = vmatpush3.bf16.msra.mxu0 %v9877_v6  ;;  %v9871_v2 = vmul.f32 %v14857_v62, %v14851_v51  ;;  %v9975_v36 = vsel %vm5075_vm3, %v17727_v18, %v14342_v23  ;;  %v9974_v50 = vsel %vm5075_vm3, %v17725_v17, %v14341_v8 }
0x3544   : > { %13766 = vmatprep.subr.bf16.mxu0 %v14600_v27  ;;  %v9946_v13 = vpop.permute.xlu1 %9945  ;;  %v9977_v43 = vsel %vm5125_vm4, %v9974_v50, %v14346_v34  ;;  %v9978_v45 = vsel %vm5125_vm4, %v9975_v36, %v14347_v30 }
0x3545   : > { %v9976_v26 = vsel %vm5075_vm3, %v17723_v16, %v9946_v13 }
0x3546   : > { %v14859_v19 = vpop.eup %14858 }
0x3547   : > { %v14861_v21 = vpop.eup %14860  ;;  %v9873_v0 = vmul.f32 %v14859_v19, %v14853_v31 }
0x3548   : > { %v9872_v33 = vmul.f32 %v14861_v21, %v14855_v57  ;;  %v9958_v29 = vpop.permute.xlu1 %9957 }
0x3549   : > { %v9875_v40 = vpack.c.bf16 %v9873_v0, %v9873_v0  ;;  %v9979_v59 = vsel %vm5125_vm4, %v9976_v26, %v9958_v29 }
0x354a   : > { %v9874_v5 = vpack.c.bf16 %v9872_v33, %v9871_v2 }
0x354c   : > { %13762 = vmatprep.mubr.msk.bf16.mxu0 %vm7085_vm6, %v9874_v5 }
0x354d   : > { %13763 = vmatmul.mubr.msk.bf16.vlgmr.msra.gmra.mxu0 %vm7085_vm6, %v9875_v40 }
0x354e   : > { %13767 = vmatpush3.bf16.msra.mxu0 %v14600_v27 }
0x354f   : > { %13768 = vmatprep.subr.bf16.mxu0 %v14601_v11 }
0x3552   : > { %13769 = vmatpush3.bf16.msra.mxu0 %v14601_v11 }
0x3553   : > { %13782 = vmatprep.subr.bf16.mxu0 %v15961_v49 }
0x360d   : > { %v13764_v39 = vpop.f32.mrf.mxu0 }
0x360e   : > { %9969 = vrot.lane.b32.xlu1 %v13764_v39, %s18305_s28 }
0x360f   : > { %v9924_v32 = vpop.f32.mrf.mxu0 }
0x3611   : > { %v13765_v14 = vpop.f32.mrf.mxu0 }
0x3613   : > { %v9927_v10 = vpop.f32.mrf.mxu0 }
0x3614   : > { %v14348_v37 = vpack.i.bf16 %v9927_v10, %v9924_v32  ;;  %v17860_v32 = vld [vmem:[#allocation9] ss:$0 sm:$0xff] }
0x3616   : > { %14349 = vrot.lane.b32.xlu0 %v14348_v37, %s18305_s28 }
0x3680   : > { %v9970_v60 = vpop.permute.xlu1 %9969 }
0x3681   : > { %v9982_v25 = vsel %vm5591_vm5, %v9979_v59, %v9970_v60  ;;  %v12694_v60 = vld [vmem:[#allocation15] ss:$0 sm:$0xff] }
0x3682   : > { %v9988_v58 = vpack.c.bf16 %v9982_v25, %v9982_v25 }
0x3688   : > { %v14350_v1 = vpop.permute.xlu0 %14349 }
0x3689   : > { %v14352_v20 = vunpack.i.h.bf16 %v14350_v1  ;;  %v14351_v42 = vunpack.i.l.bf16 %v14350_v1 }
0x368b   : > { %v9980_v18 = vsel %vm5591_vm5, %v9977_v43, %v14351_v42  ;;  %v9981_v46 = vsel %vm5591_vm5, %v9978_v45, %v14352_v20  ;;  %v12695_v42 = vld [vmem:[#allocation13] ss:$0 sm:$0xff] }
0x368c   : > { %v9987_v17 = vpack.c.bf16 %v9981_v46, %v9980_v18 }
0x368e   : > { %13770 = vmatprep.mubr.msk.bf16.mxu0 %vm4971_vm2, %v9987_v17 }
0x368f   : > { %13771 = vmatmul.mubr.msk.bf16.vlgmr.msra.gmra.mxu0 %vm4971_vm2, %v9988_v58 }
0x3690   : > { %13786 = vmatprep.mubr.msk.bf16.mxu0 %vm15962_vm0, %v15961_v49 }
0x374f   : > { %v13772_v16 = vpop.f32.mrf.mxu0 }
0x3750   : > { %v10057_v55 = vadd.f32 %v13772_v16, %v12689_v48 }
0x3751   : > { %v10048_v47 = vpop.f32.mrf.mxu0 }
0x3752   : > { %v10049_v44 = vadd.f32 %v12689_v48, %v10048_v47  ;;  %v10064_v57 = vadd.f32 %v10057_v55, %v17639_v35 }
0x3753   : > { %v13773_v51 = vpop.f32.mrf.mxu0 }
0x3754   : > { %v10062_v53 = vadd.f32 %v10049_v44, %v17637_v54  ;;  %v10071_v63 = vsel %vm7819_vm9, %v10064_v57, 0.0  ;;  %v17848_v54 = vld [vmem:[%s18329_s10] sm:$0xff]  }
0x3755   : > { %v10051_v31 = vpop.f32.mrf.mxu0  ;;  %13776 = vmatprep.subr.bf16.mxu1 %v17848_v54 }
0x3756   : > { %v10052_v7 = vadd.f32 %v12689_v48, %v10051_v31  ;;  %v10065_v9 = vsel %vm4971_vm2, %v10062_v53, 0.0  ;;  %13777 = vmatpush3.bf16.msra.mxu1 %v17848_v54 }
0x3757   : > { %10066 = vadd.xlane.f32.xlu0 %v10065_v9  ;;  %13790 = vmatprep.subr.bf16.mxu1 %v15961_v49 }
0x3758   : > { %v10063_v4 = vadd.f32 %v10052_v7, %v17641_v41 }
0x375a   : > { %v10068_v56 = vsel %vm4971_vm2, %v10063_v4, 0.0 }
0x375b   : > { %10069 = vadd.xlane.f32.xlu1 %v10068_v56  ;;  %10072 = vadd.xlane.f32.xlu0 %v10071_v63 }
0x37e0   : > { %v10067_v35 = vpop.xlane.xlu0 %10066 }
0x37e1   : > { %v10074_v41 = vmul.f32 0.03125, %v10067_v35 }
0x37e3   : > { %v10077_v15 = vsub.f32 %v10062_v53, %v10074_v41 }
0x37e4   : > { %v10070_v6 = vpop.xlane.xlu1 %10069  ;;  %v10073_v62 = vpop.xlane.xlu0 %10072 }
0x37e5   : > { %v10075_v19 = vmul.f32 0.03125, %v10070_v6  ;;  %v10076_v21 = vmul.f32 0.03125, %v10073_v62  ;;  %v10080_v0 = vmul.f32 %v10077_v15, %v10077_v15 }
0x37e7   : > { %v10078_v2 = vsub.f32 %v10063_v4, %v10075_v19  ;;  %v10079_v33 = vsub.f32 %v10064_v57, %v10076_v21  ;;  %v10083_v40 = vsel %vm4971_vm2, %v10080_v0, 0.0 }
0x37e8   : > { %10084 = vadd.xlane.f32.xlu0 %v10083_v40 }
0x37e9   : > { %v10081_v5 = vmul.f32 %v10078_v2, %v10078_v2  ;;  %v10082_v27 = vmul.f32 %v10079_v33, %v10079_v33 }
0x37eb   : > { %v10086_v11 = vsel %vm4971_vm2, %v10081_v5, 0.0  ;;  %v10089_v39 = vsel %vm7819_vm9, %v10082_v27, 0.0 }
0x37ec   : > { %10087 = vadd.xlane.f32.xlu0 %v10086_v11  ;;  %10090 = vadd.xlane.f32.xlu1 %v10089_v39 }
0x37fd   : > { %10206 = vrot.lane.b32.xlu1 %v17848_v54, %s18309_s6 }
0x3801   : > { %10212 = vrot.lane.b32.xlu1 %v17860_v32, %s18309_s6 }
0x3802   : > { %10208 = vrot.lane.b32.xlu0 %v17843_v28, %s18309_s6  ;;  %s18333_s6 = sld [smem:[#allocation83_spill]] }
0x3871   : > { %v10085_v14 = vpop.xlane.xlu0 %10084 }
0x3872   : > { %v10092_v10 = vmul.f32 0.03125, %v10085_v14 }
0x3874   : > { %v10095_v37 = vadd.f32 1e-05, %v10092_v10 }
0x3875   : > { %v10091_v38 = vpop.xlane.xlu1 %10090  ;;  %v10088_v13 = vpop.xlane.xlu0 %10087 }
0x3876   : > { %14862 = vrsqrt.f32 %v10095_v37  ;;  %v10094_v22 = vmul.f32 0.03125, %v10091_v38  ;;  %v10093_v23 = vmul.f32 0.03125, %v10088_v13 }
0x3878   : > { %v10097_v8 = vadd.f32 1e-05, %v10094_v22  ;;  %v10096_v29 = vadd.f32 1e-05, %v10093_v23 }
0x3879   : > { %v10209_v30 = vpop.permute.xlu0 %10208  ;;  %v10207_v34 = vpop.permute.xlu1 %10206 }
0x387a   : > { %14864 = vrsqrt.f32 %v10097_v8  ;;  %13783 = vmatpush3.bf16.msra.mxu0 %v10209_v30 }
0x387b   : > { %14866 = vrsqrt.f32 %v10096_v29  ;;  %13784 = vmatprep.subr.bf16.mxu0 %v15961_v49 }
0x387d   : > { %v10213_v44 = vpop.permute.xlu1 %10212 }
0x387e   : > { %13785 = vmatpush3.bf16.msra.mxu0 %v10207_v34 }
0x3881   : > { %13787 = vmatmul.mubr.msk.bf16.vlgmr.msra.gmra.mxu0 %vm4971_vm2, %v17396_v24 }
0x3883   : > { %v14863_v36 = vpop.eup %14862 }
0x3884   : > { %v10101_v50 = vmul.f32 %v14863_v36, %v10077_v15 }
0x3886   : > { %v10111_v1 = vmul.f32 %v12694_v60, %v10101_v50 }
0x3887   : > { %v14865_v26 = vpop.eup %14864 }
0x3888   : > { %v14867_v59 = vpop.eup %14866  ;;  %v10103_v20 = vmul.f32 %v14865_v26, %v10079_v33  ;;  %v17867_v18 = vadd.f32 %v12695_v42, %v10111_v1 }
0x3889   : > { %v10102_v25 = vmul.f32 %v14867_v59, %v10078_v2 }
0x388a   : > { %v10113_v43 = vmul.f32 %v12694_v60, %v10103_v20  ;;  %v10124_v58 = vadd.f32 %v17649_v61, %v17867_v18 }
0x388b   : > { %v10112_v45 = vmul.f32 %v12694_v60, %v10102_v25 }
0x388c   : > { %v17869_v46 = vadd.f32 %v12695_v42, %v10113_v43 }
0x388d   : > { %v17871_v17 = vadd.f32 %v12695_v42, %v10112_v45 }
0x388e   : > { %v10126_v24 = vadd.f32 %v17644_v52, %v17869_v46 }
0x388f   : > { %v10125_v16 = vadd.f32 %v17654_v3, %v17871_v17 }
0x3890   : > { %v10133_v48 = vpack.c.bf16 %v10126_v24, %v10126_v24 }
0x3891   : > { %v10132_v47 = vpack.c.bf16 %v10125_v16, %v10124_v58 }
0x3893   : > { %13778 = vmatprep.mubr.msk.bf16.mxu1 %vm4971_vm2, %v10132_v47 }
0x3894   : > { %13779 = vmatmul.mubr.msk.bf16.vlgmr.msra.gmra.mxu1 %vm4971_vm2, %v10133_v48 }
0x3895   : > { %13794 = vmatprep.mubr.msk.bf16.mxu1 %vm15962_vm0, %v15961_v49 }
0x3941   : > { %v10249_v55 = vpop.f32.mrf.mxu0 }
0x3942   : > { %v10250_v52 = vadd.f32 %v10249_v55, %v10213_v44 }
0x3943   : > { %v13788_v51 = vpop.f32.mrf.mxu0 }
0x3945   : > { %v10252_v53 = vpop.f32.mrf.mxu0 }
0x3946   : > { %v10253_v31 = vadd.f32 %v10252_v53, %v10213_v44 }
0x3947   : > { %v13789_v57 = vpop.f32.mrf.mxu0 }
0x3948   : > { %v10308_v61 = vpack.c.bf16 %v10253_v31, %v10250_v52 }
0x394a   : > { %10466 = vrot.lane.b32.xlu1 %v10308_v61, %s18311_s12  ;;  %13934 = vmatprep.subr.msk.bf16.mxu0 %vm5075_vm3, %v10308_v61  ;;  %v10317_v3 = vsel %vm5075_vm3, %v10308_v61, 0 }
0x394b   : > { %13799 = vmatpush3.bf16.xpose.msra.mxu0 %v10317_v3 }
0x3954   : > { %v13780_v7 = vpop.f32.mrf.mxu1 }
0x3955   : > { %v10201_v9 = vadd.f32 %v13780_v7, %v17860_v32 }
0x3956   : > { %v10192_v4 = vpop.f32.mrf.mxu1 }
0x3957   : > { %v10307_v56 = vpack.c.bf16 %v10201_v9, %v10201_v9  ;;  %v10193_v41 = vadd.f32 %v17860_v32, %v10192_v4 }
0x3958   : > { %v13781_v63 = vpop.f32.mrf.mxu1 }
0x3959   : > { %10463 = vrot.lane.b32.xlu1 %v10307_v56, %s18311_s12 }
0x395a   : > { %v10195_v35 = vpop.f32.mrf.mxu1 }
0x395b   : > { %v10196_v15 = vadd.f32 %v17860_v32, %v10195_v35 }
0x395d   : > { %v10306_v6 = vpack.c.bf16 %v10196_v15, %v10193_v41 }
0x395f   : > { %10461 = vrot.lane.b32.xlu0 %v10306_v6, %s18311_s12  ;;  %13800 = vmatprep.mubr.msk.bf16.mxu0 %vm5075_vm3, %v10306_v6 }
0x3960   : > { %10621 = vrot.lane.b32.xlu1 %v10306_v6, %s18312_s13  ;;  %13801 = vmatmul.mubr.msk.bf16.vlgmr.msra.gmra.mxu0 %vm5075_vm3, %v10307_v56 }
0x3963   : > { %10625 = vrot.lane.b32.xlu0 %v10308_v61, %s18312_s13 }
0x3964   : > { %10783 = vrot.lane.b32.xlu1 %v10308_v61, %s18299_s3 }
0x3967   : > { %10623 = vrot.lane.b32.xlu0 %v10307_v56, %s18312_s13 }
0x3968   : > { %10781 = vrot.lane.b32.xlu1 %v10307_v56, %s18299_s3 }
0x396b   : > { %10779 = vrot.lane.b32.xlu0 %v10306_v6, %s18299_s3 }
0x396c   : > { %10256 = vrot.lane.b32.xlu1 %v17848_v54, %s18301_s5 }
0x396f   : > { %10258 = vrot.lane.b32.xlu0 %v17843_v28, %s18301_s5 }
0x39bc   : > { %v10467_v62 = vpop.permute.xlu1 %10466 }
0x39bd   : > { %v10475_v19 = vsel %vm5075_vm3, %v10467_v62, 0  ;;  %13935 = vmatprep.subr.msk.bf16.mxu0 %vm5075_vm3, %v10467_v62 }
0x39be   : > { %13811 = vmatpush3.bf16.xpose.msra.mxu0 %v10475_v19 }
0x39cb   : > { %v10464_v21 = vpop.permute.xlu1 %10463 }
0x39d1   : > { %v10462_v0 = vpop.permute.xlu0 %10461 }
0x39d2   : > { %v10622_v2 = vpop.permute.xlu1 %10621  ;;  %13812 = vmatprep.mubr.msk.bf16.mxu0 %vm5075_vm3, %v10462_v0 }
0x39d3   : > { %13813 = vmatmul.mubr.msk.bf16.vlgmr.msra.gmra.mxu0 %vm5075_vm3, %v10464_v21 }
0x39d4   : > { %13824 = vmatprep.mubr.msk.bf16.mxu0 %vm5075_vm3, %v10622_v2 }
0x39d5   : > { %v10626_v33 = vpop.permute.xlu0 %10625 }
0x39d6   : > { %v10634_v54 = vsel %vm5075_vm3, %v10626_v33, 0  ;;  %13936 = vmatprep.subr.msk.bf16.mxu0 %vm5075_vm3, %v10626_v33  ;;  %v10784_v28 = vpop.permute.xlu1 %10783 }
0x39d7   : > { %13823 = vmatpush3.bf16.xpose.msra.mxu0 %v10634_v54  ;;  %v10792_v27 = vsel %vm5075_vm3, %v10784_v28, 0 }
0x39d8   : > { %13937 = vmatprep.subr.msk.bf16.mxu0 %vm5075_vm3, %v10784_v28 }
0x39d9   : > { %v10624_v40 = vpop.permute.xlu0 %10623 }
0x39da   : > { %v10782_v11 = vpop.permute.xlu1 %10781 }
0x39dd   : > { %v10780_v5 = vpop.permute.xlu0 %10779 }
0x39de   : > { %13825 = vmatmul.mubr.msk.bf16.vlgmr.msra.gmra.mxu0 %vm5075_vm3, %v10624_v40  ;;  %v10257_v14 = vpop.permute.xlu1 %10256 }
0x39df   : > { %13835 = vmatpush3.bf16.xpose.msra.mxu0 %v10792_v27  ;;  %13836 = vmatprep.mubr.msk.bf16.mxu0 %vm5075_vm3, %v10780_v5 }
0x39e1   : > { %v10259_v39 = vpop.permute.xlu0 %10258 }
0x39e2   : > { %13791 = vmatpush3.bf16.msra.mxu1 %v10259_v39 }
0x39e3   : > { %13792 = vmatprep.subr.bf16.mxu1 %v15961_v49 }
0x39e6   : > { %13793 = vmatpush3.bf16.msra.mxu1 %v10257_v14  ;;  %13837 = vmatmul.mubr.msk.bf16.vlgmr.msra.gmra.mxu0 %vm5075_vm3, %v10782_v11 }
0x39e9   : > { %13795 = vmatmul.mubr.msk.bf16.vlgmr.msra.gmra.mxu1 %vm4971_vm2, %v17386_v12 }
0x3a20   : > { %v13802_v10 = vpop.f32.mrf.mxu0 }
0x3a21   : > { %v17918_v37 = vmul.f32 0.35355338, %v13802_v10 }
0x3a22   : > { %v10353_v38 = vpop.f32.mrf.mxu0 }
0x3a23   : > { %v17920_v13 = vmul.f32 0.35355338, %v10353_v38  ;;  %v10376_v22 = vsel %vm8133_vm10, %v17918_v37, -inf }
0x3a24   : > { %10377 = vmax.xlane.f32.xlu0 %v10376_v22  ;;  %v13803_v23 = vpop.f32.mrf.mxu0 }
0x3a25   : > { %v10370_v49 = vsel %vm5125_vm4, %v17920_v13, -inf }
0x3a26   : > { %v10356_v8 = vpop.f32.mrf.mxu0 }
0x3a27   : > { %v17924_v29 = vmul.f32 0.35355338, %v10356_v8 }
0x3a28   : > { %10371 = vmax.xlane.f32.xlu0 %v10370_v49 }
0x3a29   : > { %v10373_v12 = vsel %vm5125_vm4, %v17924_v29, -inf }
0x3a2a   : > { %10374 = vmax.xlane.f32.xlu1 %v10373_v12 }
0x3a93   : > { %v13814_v30 = vpop.f32.mrf.mxu0 }
0x3a94   : > { %v17930_v34 = vmul.f32 0.35355338, %v13814_v30 }
0x3a95   : > { %v10511_v36 = vpop.f32.mrf.mxu0 }
0x3a96   : > { %v17932_v50 = vmul.f32 0.35355338, %v10511_v36  ;;  %v10534_v60 = vsel %vm8133_vm10, %v17930_v34, -inf }
0x3a97   : > { %10535 = vmax.xlane.f32.xlu1 %v10534_v60  ;;  %v13815_v26 = vpop.f32.mrf.mxu0 }
0x3a98   : > { %v10528_v1 = vsel %vm5125_vm4, %v17932_v50, -inf }
0x3a99   : > { %10529 = vmax.xlane.f32.xlu0 %v10528_v1  ;;  %v10514_v59 = vpop.f32.mrf.mxu0 }
0x3a9a   : > { %v17938_v20 = vmul.f32 0.35355338, %v10514_v59 }
0x3a9c   : > { %v10531_v42 = vsel %vm5125_vm4, %v17938_v20, -inf }
0x3a9d   : > { %10532 = vmax.xlane.f32.xlu0 %v10531_v42 }
0x3a9e   : > { %v13826_v25 = vpop.f32.mrf.mxu0 }
0x3a9f   : > { %v17942_v58 = vmul.f32 0.35355338, %v13826_v25 }
0x3aa0   : > { %v10670_v43 = vpop.f32.mrf.mxu0 }
0x3aa1   : > { %v10684_v45 = vmul.f32 0.35355338, %v10670_v43  ;;  %v10693_v44 = vsel %vm8133_vm10, %v17942_v58, -inf }
0x3aa2   : > { %v13827_v24 = vpop.f32.mrf.mxu0 }
0x3aa3   : > { %v10687_v16 = vsel %vm5125_vm4, %v10684_v45, -inf }
0x3aa4   : > { %10688 = vmax.xlane.f32.xlu0 %v10687_v16  ;;  %v10673_v48 = vpop.f32.mrf.mxu0 }
0x3aa5   : > { %v17945_v47 = vmul.f32 0.35355338, %v10673_v48 }
0x3aa6   : > { %v13838_v55 = vpop.f32.mrf.mxu0 }
0x3aa7   : > { %v10690_v51 = vsel %vm5125_vm4, %v17945_v47, -inf  ;;  %v17953_v61 = vmul.f32 0.35355338, %v13838_v55 }
0x3aa8   : > { %10694 = vmax.xlane.f32.xlu0 %v10693_v44  ;;  %10691 = vmax.xlane.f32.xlu1 %v10690_v51  ;;  %v10828_v53 = vpop.f32.mrf.mxu0 }
0x3aa9   : > { %v17951_v52 = vmul.f32 0.35355338, %v10828_v53  ;;  %v10299_v31 = vpop.f32.mrf.mxu1  ;;  %v10851_v35 = vsel %vm8133_vm10, %v17953_v61, -inf }
0x3aaa   : > { %v13839_v57 = vpop.f32.mrf.mxu0 }
0x3aab   : > { %v13796_v3 = vpop.f32.mrf.mxu1  ;;  %v10845_v7 = vsel %vm5125_vm4, %v17951_v52, -inf }
0x3aac   : > { %10846 = vmax.xlane.f32.xlu1 %v10845_v7  ;;  %v10831_v9 = vpop.f32.mrf.mxu0 }
0x3aad   : > { %v17957_v4 = vmul.f32 0.35355338, %v10831_v9  ;;  %v10302_v56 = vpop.f32.mrf.mxu1  ;;  %v10378_v15 = vpop.xlane.xlu0 %10377 }
0x3aae   : > { %v10381_v39 = vsub.f32 %v17918_v37, %v10378_v15 }
0x3aaf   : > { %v13797_v63 = vpop.f32.mrf.mxu1  ;;  %v10848_v41 = vsel %vm5125_vm4, %v17957_v4, -inf }
0x3ab0   : > { %10852 = vmax.xlane.f32.xlu1 %v10851_v35  ;;  %10849 = vmax.xlane.f32.xlu0 %v10848_v41  ;;  %v10386_v14 = vmul.f32 1.442695, %v10381_v39 }
0x3ab1   : > { %v10372_v6 = vpop.xlane.xlu0 %10371 }
0x3ab2   : > { %v10379_v10 = vsub.f32 %v17920_v13, %v10372_v6 }
0x3ab3   : > { %v10375_v38 = vpop.xlane.xlu1 %10374 }
0x3ab4   : > { %v10382_v22 = vmul.f32 1.442695, %v10379_v10  ;;  %v10380_v23 = vsub.f32 %v17924_v29, %v10375_v38 }
0x3ab6   : > { %v10384_v49 = vmul.f32 1.442695, %v10380_v23 }
0x3ac6   : > { %10262 = vrot.lane.b32.xlu0 %v17860_v32, %s18301_s5  ;;  %s18330_s5 = sld [smem:[#allocation103_spill]] }
0x3b20   : > { %v10536_v8 = vpop.xlane.xlu1 %10535 }
0x3b21   : > { %v10539_v12 = vsub.f32 %v17930_v34, %v10536_v8 }
0x3b22   : > { %v10530_v62 = vpop.xlane.xlu0 %10529 }
0x3b23   : > { %v10544_v30 = vmul.f32 1.442695, %v10539_v12  ;;  %v10537_v37 = vsub.f32 %v17932_v50, %v10530_v62 }
0x3b25   : > { %v10540_v13 = vmul.f32 1.442695, %v10537_v37 }
0x3b26   : > { %v10533_v19 = vpop.xlane.xlu0 %10532 }
0x3b27   : > { %v10538_v60 = vsub.f32 %v17938_v20, %v10533_v19 }
0x3b29   : > { %v10542_v1 = vmul.f32 1.442695, %v10538_v60 }
0x3b2d   : > { %v10689_v21 = vpop.xlane.xlu0 %10688 }
0x3b2e   : > { %v10696_v0 = vsub.f32 %v10684_v45, %v10689_v21 }
0x3b30   : > { %v10699_v2 = vmul.f32 1.442695, %v10696_v0 }
0x3b31   : > { %v10695_v33 = vpop.xlane.xlu0 %10694  ;;  %v10692_v36 = vpop.xlane.xlu1 %10691 }
0x3b32   : > { %14868 = vpow2.f32 %v10699_v2  ;;  %v10698_v59 = vsub.f32 %v17942_v58, %v10695_v33  ;;  %v10697_v50 = vsub.f32 %v17945_v47, %v10692_v36 }
0x3b33   : > { %14870 = vpow2.f32 %v10386_v14 }
0x3b34   : > { %14872 = vpow2.f32 %v10382_v22  ;;  %v10703_v25 = vmul.f32 1.442695, %v10698_v59  ;;  %v10701_v24 = vmul.f32 1.442695, %v10697_v50 }
0x3b35   : > { %14874 = vpow2.f32 %v10384_v49  ;;  %v10847_v29 = vpop.xlane.xlu1 %10846 }
0x3b36   : > { %14876 = vpow2.f32 %v10544_v30  ;;  %v10854_v55 = vsub.f32 %v17951_v52, %v10847_v29 }
0x3b37   : > { %14878 = vpow2.f32 %v10540_v13 }
0x3b38   : > { %14880 = vpow2.f32 %v10542_v1  ;;  %v10857_v53 = vmul.f32 1.442695, %v10854_v55 }
0x3b39   : > { %v17965_v54 = vpop.xlane.xlu0 %10849  ;;  %v10853_v45 = vpop.xlane.xlu1 %10852  ;;  %14882 = vpow2.f32 %v10703_v25 }
0x3b3a   : > { %v10856_v58 = vsub.f32 %v17953_v61, %v10853_v45  ;;  %14884 = vpow2.f32 %v10701_v24 }
0x3b3c   : > { %v10861_v47 = vmul.f32 1.442695, %v10856_v58 }
0x3b3d   : > { %v10263_v28 = vpop.permute.xlu0 %10262 }
0x3b3e   : > { %v10300_v40 = vadd.f32 %v10299_v31, %v10263_v28  ;;  %v10303_v5 = vadd.f32 %v10302_v56, %v10263_v28  ;;  %14886 = vpow2.f32 %v10861_v47  ;;  %v10855_v31 = vsub.f32 %v17957_v4, %v17965_v54 }
0x3b3f   : > { %v17967_v27 = vpop.eup %14868  ;;  %14888 = vpow2.f32 %v10857_v53 }
0x3b40   : > { %v17969_v11 = vpack.c.bf16 %v10303_v5, %v10300_v40  ;;  %v10705_v32 = vsel %vm5125_vm4, %v17967_v27, 0.0  ;;  %v17985_v26 = vpop.eup %14870  ;;  %v10859_v3 = vmul.f32 1.442695, %v10855_v31 }
0x3b41   : > { %10706 = vadd.xlane.f32.xlu0 %v10705_v32  ;;  %v10394_v42 = vsel %vm8133_vm10, %v17985_v26, 0.0  ;;  %v17990_v34 = vpop.eup %14872 }
0x3b42   : > { %10564 = vrot.lane.b32.xlu1 %v17969_v11, %s18311_s12  ;;  %13804 = vmatprep.subr.bf16.mxu1 %v17969_v11  ;;  %v10388_v20 = vsel %vm5125_vm4, %v17990_v34, 0.0  ;;  %v14875_v43 = vpop.eup %14874  ;;  %14890 = vpow2.f32 %v10859_v3  ;;  %s18334_s12 = sld [smem:[#allocation77_spill]] }
0x3b43   : > { %13805 = vmatpush3.bf16.msra.mxu1 %v17969_v11  ;;  %v10391_v16 = vsel %vm5125_vm4, %v14875_v43, 0.0  ;;  %v17997_v48 = vpop.eup %14876 }
0x3b44   : > { %v10552_v44 = vsel %vm8133_vm10, %v17997_v48, 0.0  ;;  %v18002_v51 = vpop.eup %14878 }
0x3b45   : > { %v10546_v57 = vsel %vm5125_vm4, %v18002_v51, 0.0  ;;  %v14881_v61 = vpop.eup %14880 }
0x3b46   : > { %v10549_v52 = vsel %vm5125_vm4, %v14881_v61, 0.0  ;;  %v18009_v7 = vpop.eup %14882 }
0x3b47   : > { %v10711_v9 = vsel %vm8133_vm10, %v18009_v7, 0.0  ;;  %v18013_v56 = vpop.eup %14884 }
0x3b48   : > { %v10708_v4 = vsel %vm5125_vm4, %v18013_v56, 0.0 }
0x3b4b   : > { %v18017_v63 = vpop.eup %14886 }
0x3b4c   : > { %v10869_v35 = vsel %vm8133_vm10, %v18017_v63, 0.0  ;;  %v18021_v41 = vpop.eup %14888 }
0x3b4d   : > { %v10863_v15 = vsel %vm5125_vm4, %v18021_v41, 0.0 }
0x3b4f   : > { %v18025_v6 = vpop.eup %14890 }
0x3b50   : > { %v10866_v62 = vsel %vm5125_vm4, %v18025_v6, 0.0 }
0x3b57   : > { %10722 = vrot.lane.b32.xlu0 %v17969_v11, %s18312_s13  ;;  %s18331_s13 = sld [smem:[#allocation106_spill]] }
0x3b66   : > { %10395 = vadd.xlane.f32.xlu1 %v10394_v42 }
0x3b6a   : > { %10389 = vadd.xlane.f32.xlu1 %v10388_v20 }
0x3b6e   : > { %10392 = vadd.xlane.f32.xlu1 %v10391_v16 }
0x3b72   : > { %10553 = vadd.xlane.f32.xlu1 %v10552_v44 }
0x3b76   : > { %10547 = vadd.xlane.f32.xlu1 %v10546_v57 }
0x3b7a   : > { %10550 = vadd.xlane.f32.xlu1 %v10549_v52 }
0x3b7e   : > { %10712 = vadd.xlane.f32.xlu1 %v10711_v9 }
0x3b82   : > { %10709 = vadd.xlane.f32.xlu1 %v10708_v4 }
0x3b86   : > { %10870 = vadd.xlane.f32.xlu1 %v10869_v35 }
0x3b8a   : > { %10864 = vadd.xlane.f32.xlu1 %v10863_v15 }
0x3b8e   : > { %10867 = vadd.xlane.f32.xlu1 %v10866_v62 }
0x3b9f   : > { %10880 = vrot.lane.b32.xlu1 %v17969_v11, %s18299_s3  ;;  %s18332_s3 = sld [smem:[#allocation108_spill]] }
0x3bb4   : > { %v10565_v19 = vpop.permute.xlu1 %10564 }
0x3bb5   : > { %13816 = vmatprep.subr.bf16.mxu1 %v10565_v19 }
0x3bca   : > { %v10707_v11 = vpop.xlane.xlu0 %10706 }
0x3bce   : > { %v10723_v49 = vpop.permute.xlu0 %10722 }
0x3bef   : > { %v10396_v21 = vpop.xlane.xlu1 %10395 }
0x3bf0   : > { %14892 = vrcp.f32 %v10396_v21  ;;  %v14605_v21 = vld [vmem:[%s18330_s5] sm:$0xff]  }
0x3bf3   : > { %v10390_v0 = vpop.xlane.xlu1 %10389 }
0x3bf4   : > { %14894 = vrcp.f32 %v10390_v0 }
0x3bf7   : > { %v10393_v2 = vpop.xlane.xlu1 %10392 }
0x3bf8   : > { %14896 = vrcp.f32 %v10393_v2 }
0x3bfb   : > { %v10554_v33 = vpop.xlane.xlu1 %10553 }
0x3bfc   : > { %14898 = vrcp.f32 %v10554_v33 }
0x3bfd   : > { %v14893_v28 = vpop.eup %14892 }
0x3bfe   : > { %v10402_v39 = vmul.f32 %v14893_v28, %v17985_v26 }
0x3bff   : > { %v10548_v54 = vpop.xlane.xlu1 %10547 }
0x3c00   : > { %14900 = vrcp.f32 %v10548_v54  ;;  %v10404_v23 = vpack.c.bf16 %v10402_v39, %v10402_v39 }
0x3c01   : > { %v14895_v40 = vpop.eup %14894 }
0x3c02   : > { %v10400_v14 = vmul.f32 %v14895_v40, %v17990_v34 }
0x3c03   : > { %v10551_v5 = vpop.xlane.xlu1 %10550 }
0x3c04   : > { %14902 = vrcp.f32 %v10551_v5 }
0x3c05   : > { %v14897_v32 = vpop.eup %14896 }
0x3c06   : > { %v10401_v10 = vmul.f32 %v14897_v32, %v14875_v43 }
0x3c07   : > { %v10713_v38 = vpop.xlane.xlu1 %10712 }
0x3c08   : > { %v10403_v22 = vpack.c.bf16 %v10401_v10, %v10400_v14  ;;  %14904 = vrcp.f32 %v10713_v38 }
0x3c09   : > { %14906 = vrcp.f32 %v10707_v11  ;;  %v14899_v12 = vpop.eup %14898 }
0x3c0a   : > { %13806 = vmatprep.mubr.msk.bf16.mxu1 %vm5125_vm4, %v10403_v22  ;;  %v10560_v13 = vmul.f32 %v14899_v12, %v17997_v48 }
0x3c0b   : > { %v10710_v8 = vpop.xlane.xlu1 %10709  ;;  %13807 = vmatmul.mubr.msk.bf16.vlgmr.msra.gmra.mxu1 %vm5125_vm4, %v10404_v23 }
0x3c0c   : > { %14908 = vrcp.f32 %v10710_v8  ;;  %13817 = vmatpush3.bf16.msra.mxu1 %v10565_v19  ;;  %v10562_v59 = vpack.c.bf16 %v10560_v13, %v10560_v13 }
0x3c0d   : > { %13828 = vmatprep.subr.bf16.mxu1 %v10723_v49  ;;  %v14901_v30 = vpop.eup %14900 }
0x3c0e   : > { %v10558_v60 = vmul.f32 %v14901_v30, %v18002_v51 }
0x3c0f   : > { %v10871_v37 = vpop.xlane.xlu1 %10870 }
0x3c10   : > { %14910 = vrcp.f32 %v10871_v37 }
0x3c11   : > { %v14903_v36 = vpop.eup %14902 }
0x3c12   : > { %v10559_v26 = vmul.f32 %v14903_v36, %v14881_v61 }
0x3c13   : > { %v10865_v29 = vpop.xlane.xlu1 %10864 }
0x3c14   : > { %v10561_v1 = vpack.c.bf16 %v10559_v26, %v10558_v60  ;;  %14912 = vrcp.f32 %v10865_v29 }
0x3c15   : > { %v14905_v42 = vpop.eup %14904 }
0x3c16   : > { %13818 = vmatprep.mubr.msk.bf16.mxu1 %vm5125_vm4, %v10561_v1  ;;  %v14907_v34 = vpop.eup %14906  ;;  %v10719_v20 = vmul.f32 %v14905_v42, %v18009_v7 }
0x3c17   : > { %v10868_v50 = vpop.xlane.xlu1 %10867  ;;  %13819 = vmatmul.mubr.msk.bf16.vlgmr.msra.gmra.mxu1 %vm5125_vm4, %v10562_v59  ;;  %v10717_v43 = vmul.f32 %v14907_v34, %v17967_v27 }
0x3c18   : > { %14914 = vrcp.f32 %v10868_v50  ;;  %13829 = vmatpush3.bf16.msra.mxu1 %v10723_v49  ;;  %v10721_v16 = vpack.c.bf16 %v10719_v20, %v10719_v20  ;;  %v12719_v50 = vld [vmem:[#allocation7] ss:$0 sm:$0xff] }
0x3c19   : > { %v14909_v25 = vpop.eup %14908 }
0x3c1a   : > { %v10718_v45 = vmul.f32 %v14909_v25, %v18013_v56 }
0x3c1b   : > { %v10881_v24 = vpop.permute.xlu1 %10880 }
0x3c1c   : > { %13840 = vmatprep.subr.bf16.mxu1 %v10881_v24  ;;  %v10720_v58 = vpack.c.bf16 %v10718_v45, %v10717_v43 }
0x3c1d   : > { %v14911_v48 = vpop.eup %14910 }
0x3c1e   : > { %13830 = vmatprep.mubr.msk.bf16.mxu1 %vm5125_vm4, %v10720_v58  ;;  %v10877_v44 = vmul.f32 %v14911_v48, %v18017_v63 }
0x3c1f   : > { %13831 = vmatmul.mubr.msk.bf16.vlgmr.msra.gmra.mxu1 %vm5125_vm4, %v10721_v16 }
0x3c20   : > { %13841 = vmatpush3.bf16.msra.mxu1 %v10881_v24  ;;  %v10879_v31 = vpack.c.bf16 %v10877_v44, %v10877_v44 }
0x3c21   : > { %v14913_v55 = vpop.eup %14912 }
0x3c22   : > { %v10875_v51 = vmul.f32 %v14913_v55, %v18021_v41  ;;  %v14604_v41 = vld [vmem:[%s18330_s5 + $0x8] sm:$0xff]  }
0x3c23   : > { %13846 = vmatprep.subr.bf16.mxu0 %v14604_v41 }
0x3c24   : > { %13847 = vmatpush3.bf16.msra.mxu0 %v14604_v41  ;;  %v14607_v41 = vld [vmem:[%s18331_s13] sm:$0xff]  }
0x3c25   : > { %v14915_v47 = vpop.eup %14914  ;;  %13848 = vmatprep.subr.bf16.mxu0 %v14605_v21 }
0x3c26   : > { %v10876_v27 = vmul.f32 %v14915_v47, %v18025_v6 }
0x3c28   : > { %v10878_v53 = vpack.c.bf16 %v10876_v27, %v10875_v51  ;;  %13849 = vmatpush3.bf16.msra.mxu0 %v14605_v21 }
0x3c2a   : > { %13842 = vmatprep.mubr.msk.bf16.mxu1 %vm5125_vm4, %v10878_v53 }
0x3c2b   : > { %13843 = vmatmul.mubr.msk.bf16.vlgmr.msra.gmra.mxu1 %vm5125_vm4, %v10879_v31 }
0x3ccb   : > { %v13808_v57 = vpop.f32.mrf.mxu1 }
0x3ccd   : > { %v10445_v61 = vpop.f32.mrf.mxu1 }
0x3ccf   : > { %v13809_v3 = vpop.f32.mrf.mxu1 }
0x3cd1   : > { %v10448_v52 = vpop.f32.mrf.mxu1 }
0x3cd7   : > { %v13820_v7 = vpop.f32.mrf.mxu1 }
0x3cd8   : > { %10944 = vrot.lane.b32.xlu1 %v13820_v7, %s18303_s2 }
0x3cd9   : > { %v10607_v9 = vpop.f32.mrf.mxu1 }
0x3cdb   : > { %v13821_v56 = vpop.f32.mrf.mxu1 }
0x3cdd   : > { %v10610_v4 = vpop.f32.mrf.mxu1 }
0x3cde   : > { %v14353_v63 = vpack.i.bf16 %v10610_v4, %v10607_v9 }
0x3cdf   : > { %v13832_v35 = vpop.f32.mrf.mxu1 }
0x3ce0   : > { %14354 = vrot.lane.b32.xlu1 %v14353_v63, %s18303_s2  ;;  %10956 = vrot.lane.b32.xlu0 %v13832_v35, %s18304_s22  ;;  %v14606_v35 = vld [vmem:[%s18331_s13 + $0x8] sm:$0xff]   ;;  %s18336_s2 = sld [smem:[#allocation76_spill]] }
0x3ce1   : > { %v10765_v15 = vpop.f32.mrf.mxu1  ;;  %13854 = vmatprep.subr.bf16.mxu1 %v14606_v35 }
0x3ce2   : > { %13855 = vmatpush3.bf16.msra.mxu1 %v14606_v35 }
0x3ce3   : > { %v13833_v6 = vpop.f32.mrf.mxu1  ;;  %13856 = vmatprep.subr.bf16.mxu1 %v14607_v41 }
0x3ce5   : > { %v10768_v62 = vpop.f32.mrf.mxu1 }
0x3ce6   : > { %v14358_v19 = vpack.i.bf16 %v10768_v62, %v10765_v15  ;;  %13857 = vmatpush3.bf16.msra.mxu1 %v14607_v41  ;;  %v14608_v15 = vld [vmem:[%s18332_s3 + $0x18] sm:$0xff]  }
0x3ce7   : > { %13862 = vmatprep.subr.bf16.mxu0 %v14608_v15 }
0x3ce8   : > { %14359 = vrot.lane.b32.xlu1 %v14358_v19, %s18304_s22  ;;  %s18338_s22 = sld [smem:[#allocation78_spill]] }
0x3ceb   : > { %v13844_v0 = vpop.f32.mrf.mxu1 }
0x3cec   : > { %10968 = vrot.lane.b32.xlu0 %v13844_v0, %s18305_s28 }
0x3ced   : > { %v10923_v2 = vpop.f32.mrf.mxu1 }
0x3cef   : > { %v13845_v33 = vpop.f32.mrf.mxu1 }
0x3cf1   : > { %v10926_v54 = vpop.f32.mrf.mxu1 }
0x3cf2   : > { %v14363_v28 = vpack.i.bf16 %v10926_v54, %v10923_v2 }
0x3cf4   : > { %14364 = vrot.lane.b32.xlu1 %v14363_v28, %s18305_s28  ;;  %s18337_s28 = sld [smem:[#allocation81_spill]] }
0x3d4a   : > { %v10945_v40 = vpop.permute.xlu1 %10944 }
0x3d4b   : > { %v10975_v22 = vsel %vm5075_vm3, %v13808_v57, %v10945_v40 }
0x3d52   : > { %v14355_v5 = vpop.permute.xlu1 %14354  ;;  %v10957_v32 = vpop.permute.xlu0 %10956 }
0x3d53   : > { %v14357_v11 = vunpack.i.h.bf16 %v14355_v5  ;;  %v14356_v14 = vunpack.i.l.bf16 %v14355_v5  ;;  %v10978_v8 = vsel %vm5125_vm4, %v10975_v22, %v10957_v32  ;;  %v12724_v32 = vld [vmem:[#allocation18] ss:$0 sm:$0xff] }
0x3d55   : > { %v10974_v12 = vsel %vm5075_vm3, %v10448_v52, %v14357_v11  ;;  %v10973_v30 = vsel %vm5075_vm3, %v10445_v61, %v14356_v14 }
0x3d5a   : > { %v14360_v39 = vpop.permute.xlu1 %14359 }
0x3d5b   : > { %v14362_v10 = vunpack.i.h.bf16 %v14360_v39  ;;  %v14361_v38 = vunpack.i.l.bf16 %v14360_v39 }
0x3d5d   : > { %v10977_v13 = vsel %vm5125_vm4, %v10974_v12, %v14362_v10  ;;  %v10976_v60 = vsel %vm5125_vm4, %v10973_v30, %v14361_v38  ;;  %v12725_v10 = vld [vmem:[#allocation16] ss:$0 sm:$0xff] }
0x3d5e   : > { %v10969_v23 = vpop.permute.xlu0 %10968 }
0x3d5f   : > { %v10981_v26 = vsel %vm5591_vm5, %v10978_v8, %v10969_v23 }
0x3d60   : > { %v10987_v42 = vpack.c.bf16 %v10981_v26, %v10981_v26  ;;  %v14611_v26 = vld [vmem:[%s18332_s3] sm:$0xff]  }
0x3d66   : > { %v14365_v49 = vpop.permute.xlu1 %14364 }
0x3d67   : > { %v14367_v37 = vunpack.i.h.bf16 %v14365_v49  ;;  %v14366_v36 = vunpack.i.l.bf16 %v14365_v49 }
0x3d69   : > { %v10980_v29 = vsel %vm5591_vm5, %v10977_v13, %v14367_v37  ;;  %v10979_v1 = vsel %vm5591_vm5, %v10976_v60, %v14366_v36  ;;  %v14609_v13 = vld [vmem:[%s18332_s3 + $0x10] sm:$0xff]   ;;  %v14610_v60 = vld [vmem:[%s18332_s3 + $0x8] sm:$0xff]  }
0x3d6a   : > { %v10986_v59 = vpack.c.bf16 %v10980_v29, %v10979_v1  ;;  %v12726_v1 = vld [vmem:[#allocation10] ss:$0 sm:$0xff] }
0x3d6c   : > { %13850 = vmatprep.mubr.msk.bf16.mxu0 %vm4971_vm2, %v10986_v59 }
0x3d6d   : > { %13851 = vmatmul.mubr.msk.bf16.vlgmr.msra.gmra.mxu0 %vm4971_vm2, %v10987_v42 }
0x3d6e   : > { %13863 = vmatpush3.bf16.msra.mxu0 %v14608_v15 }
0x3d6f   : > { %13864 = vmatprep.subr.bf16.mxu0 %v14609_v13 }
0x3d72   : > { %13865 = vmatpush3.bf16.msra.mxu0 %v14609_v13 }
0x3d73   : > { %13866 = vmatprep.subr.bf16.mxu0 %v14610_v60 }
0x3d76   : > { %13867 = vmatpush3.bf16.msra.mxu0 %v14610_v60 }
0x3d77   : > { %13868 = vmatprep.subr.bf16.mxu0 %v14611_v26 }
0x3d7a   : > { %13869 = vmatpush3.bf16.msra.mxu0 %v14611_v26 }
0x3e2d   : > { %v13852_v34 = vpop.f32.mrf.mxu0 }
0x3e2e   : > { %v11056_v58 = vadd.f32 %v13852_v34, %v12719_v50 }
0x3e2f   : > { %v11047_v25 = vpop.f32.mrf.mxu0 }
0x3e30   : > { %v11048_v20 = vadd.f32 %v12719_v50, %v11047_v25  ;;  %v11063_v47 = vadd.f32 %v11056_v58, %v17869_v46 }
0x3e31   : > { %v13853_v43 = vpop.f32.mrf.mxu0 }
0x3e32   : > { %v11061_v45 = vadd.f32 %v11048_v20, %v17867_v18  ;;  %v11070_v51 = vsel %vm7819_vm9, %v11063_v47, 0.0 }
0x3e33   : > { %v11050_v24 = vpop.f32.mrf.mxu0 }
0x3e34   : > { %v11051_v16 = vadd.f32 %v12719_v50, %v11050_v24  ;;  %v11064_v48 = vsel %vm4971_vm2, %v11061_v45, 0.0 }
0x3e35   : > { %11065 = vadd.xlane.f32.xlu1 %v11064_v48 }
0x3e36   : > { %v11062_v55 = vadd.f32 %v11051_v16, %v17871_v17 }
0x3e38   : > { %v11067_v44 = vsel %vm4971_vm2, %v11062_v55, 0.0 }
0x3e39   : > { %11068 = vadd.xlane.f32.xlu0 %v11067_v44 }
0x3e3d   : > { %11071 = vadd.xlane.f32.xlu0 %v11070_v51 }
0x3ebe   : > { %v11066_v27 = vpop.xlane.xlu1 %11065 }
0x3ebf   : > { %v11073_v53 = vmul.f32 0.03125, %v11066_v27 }
0x3ec1   : > { %v11076_v31 = vsub.f32 %v11061_v45, %v11073_v53 }
0x3ec2   : > { %v11069_v18 = vpop.xlane.xlu0 %11068 }
0x3ec3   : > { %v11074_v57 = vmul.f32 0.03125, %v11069_v18  ;;  %v11079_v61 = vmul.f32 %v11076_v31, %v11076_v31 }
0x3ec5   : > { %v11077_v3 = vsub.f32 %v11062_v55, %v11074_v57  ;;  %v11082_v52 = vsel %vm4971_vm2, %v11079_v61, 0.0  ;;  %v12731_v55 = vld [vmem:[#allocation12] ss:$0 sm:$0xff] }
0x3ec6   : > { %v11072_v17 = vpop.xlane.xlu0 %11071  ;;  %11083 = vadd.xlane.f32.xlu1 %v11082_v52 }
0x3ec7   : > { %v11075_v46 = vmul.f32 0.03125, %v11072_v17  ;;  %v11080_v7 = vmul.f32 %v11077_v3, %v11077_v3 }
0x3ec9   : > { %v11078_v9 = vsub.f32 %v11063_v47, %v11075_v46  ;;  %v11085_v56 = vsel %vm4971_vm2, %v11080_v7, 0.0 }
0x3eca   : > { %11086 = vadd.xlane.f32.xlu0 %v11085_v56 }
0x3ecb   : > { %v11081_v4 = vmul.f32 %v11078_v9, %v11078_v9 }
0x3ecd   : > { %v11088_v63 = vsel %vm7819_vm9, %v11081_v4, 0.0 }
0x3ece   : > { %11089 = vadd.xlane.f32.xlu1 %v11088_v63 }
0x3f4f   : > { %v11084_v6 = vpop.xlane.xlu1 %11083 }
0x3f50   : > { %v11091_v62 = vmul.f32 0.03125, %v11084_v6 }
0x3f52   : > { %v11094_v19 = vadd.f32 1e-05, %v11091_v62 }
0x3f53   : > { %v11087_v21 = vpop.xlane.xlu0 %11086 }
0x3f54   : > { %14916 = vrsqrt.f32 %v11094_v19  ;;  %v11092_v0 = vmul.f32 0.03125, %v11087_v21 }
0x3f56   : > { %v11095_v2 = vadd.f32 1e-05, %v11092_v0 }
0x3f57   : > { %v11090_v33 = vpop.xlane.xlu1 %11089 }
0x3f58   : > { %14918 = vrsqrt.f32 %v11095_v2  ;;  %v11093_v54 = vmul.f32 0.03125, %v11090_v33 }
0x3f5a   : > { %v11096_v28 = vadd.f32 1e-05, %v11093_v54 }
0x3f5c   : > { %14920 = vrsqrt.f32 %v11096_v28 }
0x3f61   : > { %v14917_v40 = vpop.eup %14916 }
0x3f62   : > { %v11100_v5 = vmul.f32 %v14917_v40, %v11076_v31 }
0x3f64   : > { %v11110_v14 = vmul.f32 %v12724_v32, %v11100_v5 }
0x3f65   : > { %v14919_v39 = vpop.eup %14918 }
0x3f66   : > { %v11101_v11 = vmul.f32 %v14919_v39, %v11077_v3  ;;  %v11120_v8 = vadd.f32 %v12725_v10, %v11110_v14 }
0x3f68   : > { %v11111_v38 = vmul.f32 %v12724_v32, %v11101_v11 }
0x3f69   : > { %v14921_v22 = vpop.eup %14920 }
0x3f6a   : > { %v11102_v23 = vmul.f32 %v14921_v22, %v11078_v9  ;;  %v11121_v49 = vadd.f32 %v12725_v10, %v11111_v38  ;;  %v12738_v38 = vld [vmem:[#allocation21] ss:$0 sm:$0xff] }
0x3f6c   : > { %v11112_v12 = vmul.f32 %v12724_v32, %v11102_v23  ;;  %v11127_v30 = vpack.c.bf16 %v11121_v49, %v11120_v8  ;;  %v12739_v23 = vld [vmem:[#allocation19] ss:$0 sm:$0xff] }
0x3f6e   : > { %v11122_v37 = vadd.f32 %v12725_v10, %v11112_v12  ;;  %13858 = vmatprep.mubr.msk.bf16.mxu1 %vm4971_vm2, %v11127_v30 }
0x3f70   : > { %v11128_v36 = vpack.c.bf16 %v11122_v37, %v11122_v37 }
0x3f72   : > { %13859 = vmatmul.mubr.msk.bf16.vlgmr.msra.gmra.mxu1 %vm4971_vm2, %v11128_v36 }
0x4032   : > { %v13860_v29 = vpop.f32.mrf.mxu1 }
0x4033   : > { %v11197_v42 = vadd.f32 %v13860_v29, %v12726_v1 }
0x4034   : > { %v11188_v59 = vpop.f32.mrf.mxu1 }
0x4035   : > { %v11189_v50 = vadd.f32 %v12726_v1, %v11188_v59  ;;  %v11204_v43 = vmax.f32 %v11197_v42, 0.0 }
0x4036   : > { %v13861_v34 = vpop.f32.mrf.mxu1 }
0x4037   : > { %v11202_v45 = vmax.f32 %v11189_v50, 0.0  ;;  %v11214_v16 = vpack.c.bf16 %v11204_v43, %v11204_v43 }
0x4038   : > { %v11191_v25 = vpop.f32.mrf.mxu1 }
0x4039   : > { %v11192_v20 = vadd.f32 %v12726_v1, %v11191_v25 }
0x403b   : > { %v11203_v24 = vmax.f32 %v11192_v20, 0.0 }
0x403d   : > { %v11213_v58 = vpack.c.bf16 %v11203_v24, %v11202_v45 }
0x403f   : > { %13870 = vmatprep.mubr.msk.bf16.mxu0 %vm4900_vm1, %v11213_v58 }
0x4040   : > { %13871 = vmatmul.mubr.msk.bf16.vlgmr.msra.gmra.mxu0 %vm4900_vm1, %v11214_v16 }
0x4100   : > { %v13872_v48 = vpop.f32.mrf.mxu0 }
0x4101   : > { %v11295_v44 = vadd.f32 %v13872_v48, %v12731_v55 }
0x4102   : > { %v11286_v47 = vpop.f32.mrf.mxu0 }
0x4103   : > { %v11287_v51 = vadd.f32 %v12731_v55, %v11286_v47  ;;  %v11302_v18 = vadd.f32 %v11295_v44, %v11122_v37 }
0x4104   : > { %v13873_v27 = vpop.f32.mrf.mxu0 }
0x4105   : > { %v11300_v53 = vadd.f32 %v11287_v51, %v11120_v8  ;;  %v11309_v17 = vsel %vm7819_vm9, %v11302_v18, 0.0 }
0x4106   : > { %v11289_v31 = vpop.f32.mrf.mxu0 }
0x4107   : > { %v11290_v57 = vadd.f32 %v12731_v55, %v11289_v31  ;;  %v11303_v61 = vsel %vm4971_vm2, %v11300_v53, 0.0  ;;  %v14613_v31 = vld [vmem:[%s18333_s6] sm:$0xff]  }
0x4108   : > { %11304 = vadd.xlane.f32.xlu0 %v11303_v61 }
0x4109   : > { %v11301_v3 = vadd.f32 %v11290_v57, %v11121_v49 }
0x410b   : > { %v11306_v52 = vsel %vm4971_vm2, %v11301_v3, 0.0 }
0x410c   : > { %11307 = vadd.xlane.f32.xlu1 %v11306_v52  ;;  %11310 = vadd.xlane.f32.xlu0 %v11309_v17 }
0x4191   : > { %v11305_v46 = vpop.xlane.xlu0 %11304 }
0x4192   : > { %v11312_v7 = vmul.f32 0.03125, %v11305_v46 }
0x4194   : > { %v11315_v9 = vsub.f32 %v11300_v53, %v11312_v7  ;;  %v14612_v53 = vld [vmem:[%s18333_s6 + $0x8] sm:$0xff]  }
0x4195   : > { %v11308_v56 = vpop.xlane.xlu1 %11307  ;;  %v11311_v4 = vpop.xlane.xlu0 %11310  ;;  %13874 = vmatprep.subr.bf16.mxu1 %v14612_v53 }
0x4196   : > { %v11313_v63 = vmul.f32 0.03125, %v11308_v56  ;;  %v11314_v35 = vmul.f32 0.03125, %v11311_v4  ;;  %v11318_v41 = vmul.f32 %v11315_v9, %v11315_v9  ;;  %13875 = vmatpush3.bf16.msra.mxu1 %v14612_v53 }
0x4197   : > { %13876 = vmatprep.subr.bf16.mxu1 %v14613_v31 }
0x4198   : > { %v11316_v15 = vsub.f32 %v11301_v3, %v11313_v63  ;;  %v11317_v6 = vsub.f32 %v11302_v18, %v11314_v35  ;;  %v11321_v62 = vsel %vm4971_vm2, %v11318_v41, 0.0  ;;  %v14614_v18 = vld [vmem:[%s18334_s12 + $0x8] sm:$0xff]   ;;  %v12740_v35 = vld [vmem:[#allocation27] ss:$0 sm:$0xff] }
0x4199   : > { %11322 = vadd.xlane.f32.xlu1 %v11321_v62 }
0x419a   : > { %v11319_v19 = vmul.f32 %v11316_v15, %v11316_v15  ;;  %v11320_v21 = vmul.f32 %v11317_v6, %v11317_v6  ;;  %13877 = vmatpush3.bf16.msra.mxu1 %v14613_v31 }
0x419b   : > { %13882 = vmatprep.subr.bf16.mxu1 %v14614_v18 }
0x419c   : > { %v11324_v0 = vsel %vm4971_vm2, %v11319_v19, 0.0  ;;  %v11327_v2 = vsel %vm7819_vm9, %v11320_v21, 0.0 }
0x419d   : > { %11325 = vadd.xlane.f32.xlu0 %v11324_v0  ;;  %11328 = vadd.xlane.f32.xlu1 %v11327_v2  ;;  %v12741_v0 = vld [vmem:[#allocation25] ss:$0 sm:$0xff] }
0x4222   : > { %v11323_v33 = vpop.xlane.xlu1 %11322 }
0x4223   : > { %v11330_v54 = vmul.f32 0.03125, %v11323_v33 }
0x4225   : > { %v11333_v28 = vadd.f32 1e-05, %v11330_v54 }
0x4226   : > { %v11329_v40 = vpop.xlane.xlu1 %11328  ;;  %v11326_v5 = vpop.xlane.xlu0 %11325 }
0x4227   : > { %14922 = vrsqrt.f32 %v11333_v28  ;;  %v11332_v32 = vmul.f32 0.03125, %v11329_v40  ;;  %v11331_v39 = vmul.f32 0.03125, %v11326_v5 }
0x4229   : > { %v11335_v11 = vadd.f32 1e-05, %v11332_v32  ;;  %v11334_v14 = vadd.f32 1e-05, %v11331_v39  ;;  %v14615_v32 = vld [vmem:[%s18334_s12] sm:$0xff]   ;;  %v14616_v39 = vld [vmem:[%s18335_s1 + $0x8] sm:$0xff]  }
0x422a   : > { %13890 = vmatprep.subr.bf16.mxu0 %v14616_v39 }
0x422b   : > { %14924 = vrsqrt.f32 %v11335_v11  ;;  %13891 = vmatpush3.bf16.msra.mxu0 %v14616_v39  ;;  %v14617_v11 = vld [vmem:[%s18335_s1] sm:$0xff]  }
0x422c   : > { %14926 = vrsqrt.f32 %v11334_v14  ;;  %13892 = vmatprep.subr.bf16.mxu0 %v14617_v11 }
0x422f   : > { %13893 = vmatpush3.bf16.msra.mxu0 %v14617_v11 }
0x4234   : > { %v14923_v10 = vpop.eup %14922 }
0x4235   : > { %v11339_v22 = vmul.f32 %v14923_v10, %v11315_v9 }
0x4237   : > { %v11349_v8 = vmul.f32 %v12738_v38, %v11339_v22 }
0x4238   : > { %v14925_v49 = vpop.eup %14924 }
0x4239   : > { %v14927_v12 = vpop.eup %14926  ;;  %v11359_v30 = vadd.f32 %v12739_v23, %v11349_v8  ;;  %v11341_v37 = vmul.f32 %v14925_v49, %v11317_v6  ;;  %v12747_v8 = vld [vmem:[%s18336_s2] ss:$0 sm:$0xff]  ;;  %s15975_s2 = smov 2  }
0x423a   : > { %v11340_v36 = vmul.f32 %v14927_v12, %v11316_v15 }
0x423b   : > { %v11362_v13 = vsel %vm4971_vm2, %v11359_v30, 0.0  ;;  %v11351_v60 = vmul.f32 %v12738_v38, %v11341_v37 }
0x423c   : > { %11363 = vadd.xlane.f32.xlu0 %v11362_v13  ;;  %v11350_v26 = vmul.f32 %v12738_v38, %v11340_v36 }
0x423d   : > { %v11361_v29 = vadd.f32 %v12739_v23, %v11351_v60 }
0x423e   : > { %v11360_v1 = vadd.f32 %v12739_v23, %v11350_v26 }
0x423f   : > { %v11368_v59 = vsel %vm7819_vm9, %v11361_v29, 0.0 }
0x4240   : > { %11369 = vadd.xlane.f32.xlu0 %v11368_v59  ;;  %v11365_v42 = vsel %vm4971_vm2, %v11360_v1, 0.0 }
0x4241   : > { %11366 = vadd.xlane.f32.xlu1 %v11365_v42  ;;  %v14618_v42 = vld [vmem:[%s18337_s28 + $0x8] sm:$0xff]  }
0x42c5   : > { %v11364_v34 = vpop.xlane.xlu0 %11363 }
0x42c6   : > { %v11371_v50 = vmul.f32 0.03125, %v11364_v34  ;;  %v14619_v34 = vld [vmem:[%s18337_s28] sm:$0xff]  }
0x42c8   : > { %v11374_v25 = vsub.f32 %v11359_v30, %v11371_v50 }
0x42c9   : > { %v11370_v20 = vpop.xlane.xlu0 %11369 }
0x42ca   : > { %v11367_v43 = vpop.xlane.xlu1 %11366  ;;  %v11373_v45 = vmul.f32 0.03125, %v11370_v20  ;;  %v11377_v24 = vmul.f32 %v11374_v25, %v11374_v25 }
0x42cb   : > { %v11372_v58 = vmul.f32 0.03125, %v11367_v43 }
0x42cc   : > { %v11376_v16 = vsub.f32 %v11361_v29, %v11373_v45  ;;  %v11380_v48 = vsel %vm4971_vm2, %v11377_v24, 0.0 }
0x42cd   : > { %v11375_v55 = vsub.f32 %v11360_v1, %v11372_v58  ;;  %11381 = vadd.xlane.f32.xlu1 %v11380_v48 }
0x42ce   : > { %v11379_v47 = vmul.f32 %v11376_v16, %v11376_v16 }
0x42cf   : > { %v11378_v44 = vmul.f32 %v11375_v55, %v11375_v55 }
0x42d0   : > { %v11386_v51 = vsel %vm7819_vm9, %v11379_v47, 0.0 }
0x42d1   : > { %v11383_v27 = vsel %vm4971_vm2, %v11378_v44, 0.0  ;;  %11387 = vadd.xlane.f32.xlu1 %v11386_v51 }
0x42d2   : > { %11384 = vadd.xlane.f32.xlu0 %v11383_v27  ;;  %v12757_v27 = vld [vmem:[%s18339_s16] ss:$0 sm:$0xff] }
0x4356   : > { %v11382_v57 = vpop.xlane.xlu1 %11381 }
0x4357   : > { %v11389_v61 = vmul.f32 0.03125, %v11382_v57 }
0x4359   : > { %v11392_v3 = vadd.f32 1e-05, %v11389_v61 }
0x435a   : > { %v11388_v52 = vpop.xlane.xlu1 %11387 }
0x435b   : > { %14928 = vrsqrt.f32 %v11392_v3  ;;  %v11391_v17 = vmul.f32 0.03125, %v11388_v52  ;;  %v11385_v46 = vpop.xlane.xlu0 %11384 }
0x435c   : > { %v11390_v7 = vmul.f32 0.03125, %v11385_v46 }
0x435d   : > { %v11394_v9 = vadd.f32 1e-05, %v11391_v17 }
0x435e   : > { %v11393_v56 = vadd.f32 1e-05, %v11390_v7 }
0x435f   : > { %14930 = vrsqrt.f32 %v11394_v9 }
0x4360   : > { %14932 = vrsqrt.f32 %v11393_v56 }
0x4368   : > { %v14929_v4 = vpop.eup %14928 }
0x4369   : > { %v11398_v63 = vmul.f32 %v14929_v4, %v11374_v25  ;;  %v12752_v25 = vld [vmem:[%s18338_s22] ss:$0 sm:$0xff]  ;;  %s13939_s22 = smul.u32 24, %s18342_s7 }
0x436b   : > { %v11408_v19 = vmul.f32 %v12740_v35, %v11398_v63  ;;  %s2672_s16 = scalar_lea.vmem %s16369_s9, %s13939_s22 }
0x436c   : > { %v14931_v41 = vpop.eup %14930 }
0x436d   : > { %v14933_v15 = vpop.eup %14932  ;;  %v11400_v6 = vmul.f32 %v14931_v41, %v11376_v16  ;;  %v11418_v54 = vadd.f32 %v12741_v0, %v11408_v19  ;;  %v12742_v19 = vld [vmem:[%s18340_s14] ss:$0 sm:$0xff] }
0x436e   : > { %v11399_v62 = vmul.f32 %v14933_v15, %v11375_v55 }
0x436f   : > { %v11410_v21 = vmul.f32 %v12740_v35, %v11400_v6 }
0x4370   : > { %v11409_v2 = vmul.f32 %v12740_v35, %v11399_v62 }
0x4371   : > { %v11420_v33 = vadd.f32 %v12741_v0, %v11410_v21 }
0x4372   : > { %v11419_v28 = vadd.f32 %v12741_v0, %v11409_v2 }
0x4373   : > { %v11426_v40 = vpack.c.bf16 %v11420_v33, %v11420_v33 }
0x4374   : > { %v11425_v5 = vpack.c.bf16 %v11419_v28, %v11418_v54 }
0x4376   : > { %13878 = vmatprep.mubr.msk.bf16.mxu1 %vm4971_vm2, %v11425_v5 }
0x4377   : > { %13879 = vmatmul.mubr.msk.bf16.vlgmr.msra.gmra.mxu1 %vm4971_vm2, %v11426_v40 }
0x4378   : > { %13883 = vmatpush3.bf16.msra.mxu1 %v14614_v18  ;;  %13886 = vmatprep.mubr.msk.bf16.mxu1 %vm4971_vm2, %v11425_v5 }
0x4379   : > { %13884 = vmatprep.subr.bf16.mxu1 %v14615_v32 }
0x437c   : > { %13885 = vmatpush3.bf16.msra.mxu1 %v14615_v32 }
0x437d   : > { %13898 = vmatprep.subr.bf16.mxu1 %v14618_v42 }
0x437f   : > { %13887 = vmatmul.mubr.msk.bf16.vlgmr.msra.gmra.mxu1 %vm4971_vm2, %v11426_v40 }
0x4380   : > { %13899 = vmatpush3.bf16.msra.mxu1 %v14618_v42 }
0x4381   : > { %13900 = vmatprep.subr.bf16.mxu1 %v14619_v34 }
0x4384   : > { %13901 = vmatpush3.bf16.msra.mxu1 %v14619_v34 }
0x4437   : > { %v18109_v14 = vpop.f32.mrf.mxu1 }
0x4438   : > { %v11495_v32 = vadd.f32 %v18109_v14, %v12742_v19 }
0x4439   : > { %v18111_v10 = vpop.f32.mrf.mxu1 }
0x443a   : > { %v11487_v21 = vadd.f32 %v12742_v19, %v18111_v10 }
0x443b   : > { %v13881_v38 = vpop.f32.mrf.mxu1 }
0x443d   : > { %v18113_v22 = vpop.f32.mrf.mxu1 }
0x443e   : > { %v11490_v54 = vadd.f32 %v12742_v19, %v18113_v22 }
0x443f   : > { %v13888_v23 = vpop.f32.mrf.mxu1 }
0x4440   : > { %v11566_v12 = vadd.f32 %v13888_v23, %v12747_v8 }
0x4441   : > { %v11557_v49 = vpop.f32.mrf.mxu1 }
0x4442   : > { %v11558_v37 = vadd.f32 %v12747_v8, %v11557_v49  ;;  %v11573_v60 = vmax.f32 %v11566_v12, 0.0 }
0x4443   : > { %v13889_v30 = vpop.f32.mrf.mxu1 }
0x4444   : > { %v11571_v26 = vmax.f32 %v11558_v37, 0.0  ;;  %v11579_v59 = vpack.c.bf16 %v11573_v60, %v11573_v60 }
0x4445   : > { %v11560_v36 = vpop.f32.mrf.mxu1 }
0x4446   : > { %v11561_v13 = vadd.f32 %v12747_v8, %v11560_v36 }
0x4448   : > { %v11572_v29 = vmax.f32 %v11561_v13, 0.0 }
0x444a   : > { %v11578_v1 = vpack.c.bf16 %v11572_v29, %v11571_v26 }
0x444c   : > { %13894 = vmatprep.mubr.msk.bf16.mxu0 %vm4971_vm2, %v11578_v1 }
0x444d   : > { %13895 = vmatmul.mubr.msk.bf16.vlgmr.msra.gmra.mxu0 %vm4971_vm2, %v11579_v59 }
0x450d   : > { %v13896_v50 = vpop.f32.mrf.mxu0 }
0x450e   : > { %v11648_v43 = vadd.f32 %v13896_v50, %v12752_v25 }
0x450f   : > { %v11639_v20 = vpop.f32.mrf.mxu0 }
0x4510   : > { %v11640_v24 = vadd.f32 %v12752_v25, %v11639_v20  ;;  %v11655_v48 = vmax.f32 %v11648_v43, 0.0 }
0x4511   : > { %v13897_v45 = vpop.f32.mrf.mxu0 }
0x4512   : > { %v11653_v55 = vmax.f32 %v11640_v24, 0.0  ;;  %v11661_v51 = vpack.c.bf16 %v11655_v48, %v11655_v48 }
0x4513   : > { %v11642_v58 = vpop.f32.mrf.mxu0 }
0x4514   : > { %v11643_v16 = vadd.f32 %v12752_v25, %v11642_v58 }
0x4516   : > { %v11654_v47 = vmax.f32 %v11643_v16, 0.0 }
0x4518   : > { %v11660_v44 = vpack.c.bf16 %v11654_v47, %v11653_v55 }
0x451a   : > { %13902 = vmatprep.mubr.msk.bf16.mxu1 %vm4971_vm2, %v11660_v44 }
0x451b   : > { %13903 = vmatmul.mubr.msk.bf16.vlgmr.msra.gmra.mxu1 %vm4971_vm2, %v11661_v51 }
0x45db   : > { %v13904_v53 = vpop.f32.mrf.mxu1 }
0x45dc   : > { %v11730_v31 = vadd.f32 %v13904_v53, %v12757_v27 }
0x45dd   : > { %v11721_v18 = vpop.f32.mrf.mxu1 }
0x45de   : > { %v11722_v57 = vadd.f32 %v12757_v27, %v11721_v18  ;;  %v12764_v52 = vmul.f32 -1.442695, %v11730_v31 }
0x45df   : > { %v13905_v61 = vpop.f32.mrf.mxu1 }
0x45e0   : > { %v12762_v3 = vmul.f32 -1.442695, %v11722_v57 }
0x45e1   : > { %v11724_v17 = vpop.f32.mrf.mxu1 }
0x45e2   : > { %14934 = vpow2.f32 %v12762_v3  ;;  %v11725_v46 = vadd.f32 %v12757_v27, %v11724_v17 }
0x45e3   : > { %14936 = vpow2.f32 %v12764_v52 }
0x45e4   : > { %v12763_v7 = vmul.f32 -1.442695, %v11725_v46 }
0x45e6   : > { %14938 = vpow2.f32 %v12763_v7 }
0x45ef   : > { %v14935_v9 = vpop.eup %14934 }
0x45f0   : > { %v11744_v56 = vadd.f32 1.0, %v14935_v9  ;;  %v14937_v4 = vpop.eup %14936 }
0x45f1   : > { %v11746_v41 = vadd.f32 1.0, %v14937_v4 }
0x45f2   : > { %14940 = vrcp.f32 %v11744_v56 }
0x45f3   : > { %v14939_v63 = vpop.eup %14938 }
0x45f4   : > { %v11745_v35 = vadd.f32 1.0, %v14939_v63 }
0x45f6   : > { %14942 = vrcp.f32 %v11745_v35 }
0x45f7   : > { %14944 = vrcp.f32 %v11746_v41 }
0x45ff   : > { %v14941_v15 = vpop.eup %14940 }
0x4600   : > { %11756 = vrot.lane.b32.xlu0 %v14941_v15, %s15975_s2 }
0x4603   : > { %v14943_v6 = vpop.eup %14942 }
0x4604   : > { %11758 = vrot.lane.b32.xlu1 %v14943_v6, %s15975_s2  ;;  %v14945_v62 = vpop.eup %14944 }
0x4608   : > { %11760 = vrot.lane.b32.xlu1 %v14945_v62, %s15975_s2 }
0x4672   : > { %v11757_v0 = vpop.permute.xlu0 %11756 }
0x4673   : > { %v11766_v2 = vsel %vm11765_vm11, %v11487_v21, %v11757_v0 }
0x4674   : > { %v11770_v33 = vsel %vm11769_vm12, %v11766_v2, 0.0 }
0x4675   : > { %11773 = vst [vmem:[%s2672_s16] sm:$0xff] %v11770_v33 }
0x4676   : > { %v11759_v28 = vpop.permute.xlu1 %11758 }
0x4677   : > { %v11767_v40 = vsel %vm11765_vm11, %v11490_v54, %v11759_v28 }
0x4678   : > { %v11771_v5 = vsel %vm11769_vm12, %v11767_v40, 0.0 }
0x4679   : > { %11774 = vst [vmem:[%s2672_s16 + $0x8] sm:$0xff] %v11771_v5 }
0x467a   : > { %v11761_v39 = vpop.permute.xlu1 %11760 }
0x467b   : > { %v11768_v11 = vsel %vm11765_vm11, %v11495_v32, %v11761_v39 }
0x467c   : > { %v11772_v38 = vsel %vm11769_vm12, %v11768_v11, 0.0 }
0x467d   : > { %11775 = vst [vmem:[%s2672_s16 + $0x10] sm:$0xf] %v11772_v38 }
0x467e PF: > { %s183_s0 = sadd.s32 1, %s15848_s0  }
0x467f   : > { %p180_p3 = scmp.ge.s32.totalorder %s183_s0, 4  }
0x4681   :  { %182 = sbr.rel (!%p180_p3) target bundleno = 167 (0xa7), region = 572 }
0x4686   :  { %11797 = vsyncpa [#allocation3], 1 }
0x4687   :  { %11799 = vsyncpa [#allocation3 + $0x1], 1 }
0x4688   :  { %11800 = vsyncpa [#allocation5], 1 }
0x4689   :  { %11801 = vsyncpa [#allocation8], 1 }
0x468a   :  { %11802 = vsyncpa [#allocation11], 1 }
0x468b   :  { %11803 = vsyncpa [#allocation14], 1 }
0x468c   :  { %11804 = vsyncpa [#allocation17], 1 }
0x468d   :  { %11805 = vsyncpa [#allocation20], 1 }
0x468e   :  { %11806 = vsyncpa [#allocation23], 1 }
0x468f   :  { %11807 = vsyncpa [#allocation26], 1 }
0x4690   :  { %11808 = vsyncpa [#allocation29], 1 }
0x4691   :  { %11809 = vsyncpa [#allocation32], 1 }
0x4692   :  { %11810 = vsyncpa [#allocation35], 1 }
0x4693   :  { %11811 = vsyncpa [#allocation38], 1 }
0x4694   :  { %11812 = vsyncpa [#allocation41], 1 }
0x4695   :  { %11813 = vsyncpa [#allocation44], 1 }
0x4696   :  { %11814 = vsyncpa [#allocation47], 1 }
0x4697   :  { %11815 = vsyncpa [#allocation50], 1 }
0x4698   :  { %11816 = vsyncpa [#allocation53], 1 }

</bundles_post_ra>
